<compile_context>
chip_gen: v6e
topology: v6e:2x2x1
jax: 0.10.0
libtpu: 0.0.40
codegen_flags: <defaults>
</compile_context>

<pallas_src>
import functools
import math

import jax
import jax.numpy as jnp
from jax import lax
from jax.experimental import pallas as pl
from jax.experimental.pallas import tpu as pltpu

EPS = 1e-5
VMEM_LIMIT = 32 * 1024 * 1024   # conservative: <= default/physical on v5e/v6e/v7x


def _pick_batch_tile(n, bytes_per_row, budget_bytes=8 << 20):
    """Largest power-of-two batch tile (>=8, <=512) whose per-step working set fits."""
    n8 = ((n + 7) // 8) * 8
    t = 8
    while (t * 2 <= 512 and t * 2 < n8
           and (t * 2) * 3 * bytes_per_row <= budget_bytes):
        t *= 2
    return min(t, n8)


# --------------------- fused LN + unfold/proj + LSTM + ConvT kernel ---------------------
def _band_kernel(x_ref, lnw_ref, lnb_ref, wp_ref, bp_ref, whh_ref, wc_ref, bc_ref,
                 o_ref, xproj_sc, h_sc, c_sc, hout_sc, *, eps, ksize, hidden, ndir):
    # x_ref : [Lf, tn, C]   padded pre-norm input (also the residual)
    # lnw/lnb: [1, C]
    # wp_ref: [K, C, ndir*4H]   bp_ref: [1, ndir*4H]
    # whh_ref: [ndir, H, 4H]
    # wc_ref: [K, ndir*H, C]    bc_ref: [1, C]
    # o_ref : [Lf, tn, C]
    # scratch: xproj_sc [ndir, L, tn, 4H], h_sc/c_sc [ndir, tn, H], hout_sc [ndir, L, tn, H]
    Lf = x_ref.shape[0]
    L = Lf - ksize + 1
    H = hidden

    # ---- LayerNorm over C ----
    x = x_ref[...]
    mu = jnp.mean(x, axis=-1, keepdims=True)
    var = jnp.mean(jnp.square(x - mu), axis=-1, keepdims=True)
    normed = ((x - mu) * lax.rsqrt(var + eps) * lnw_ref[...] + lnb_ref[...]
              ).astype(jnp.bfloat16)

    # ---- unfold (K taps along the sequence) fused with the LSTM input projection.
    # One matmul per tap over *all* time steps (hoisted out of the recurrence),
    # bias folded in. Gate dim (ndir*4H) is lane-dense.
    wp = wp_ref[...].astype(jnp.bfloat16)
    acc = None
    for k in range(ksize):
        term = lax.dot_general(
            normed[k:k + L], wp[k],                      # [L, tn, C] x [C, ndir*4H]
            dimension_numbers=(((2,), (0,)), ((), ())),
            preferred_element_type=jnp.float32)
        acc = term if acc is None else acc + term
    accb = acc + bp_ref[...]                             # [L, tn, ndir*4H]
    for d in range(ndir):
        xproj_sc[d] = lax.slice_in_dim(accb, d * 4 * H, (d + 1) * 4 * H, axis=2)

    # ---- LSTM recurrence(s): only h_prev @ W_hh remains on the serial path.
    # Forward and backward directions are interleaved in one loop; the backward
    # direction uses reverse indexing (no HBM sequence reversal).
    h_sc[...] = jnp.zeros_like(h_sc)
    c_sc[...] = jnp.zeros_like(c_sc)
    whh = [whh_ref[d].astype(jnp.bfloat16) for d in range(ndir)]   # hoisted, bf16 once

    def step(t, carry):
        for d in range(ndir):
            idx = t if d == 0 else L - 1 - t
            gpre = xproj_sc[d, idx]                               # [tn, 4H]
            gates = gpre + jnp.dot(h_sc[d].astype(jnp.bfloat16), whh[d],
                                   preferred_element_type=jnp.float32)
            i_g = jax.nn.sigmoid(gates[:, 0:H])
            f_g = jax.nn.sigmoid(gates[:, H:2 * H])
            g_g = jnp.tanh(gates[:, 2 * H:3 * H])
            o_g = jax.nn.sigmoid(gates[:, 3 * H:4 * H])
            c_new = f_g * c_sc[d] + i_g * g_g
            h_new = o_g * jnp.tanh(c_new)
            c_sc[d] = c_new
            h_sc[d] = h_new
            hout_sc[d, idx] = h_new
        return carry

    lax.fori_loop(0, L, step, 0)

    # ---- ConvTranspose1d (stride 1) + bias + residual, all in VMEM.
    # out[q] = res[q] + b + sum_k h[q - k] @ W[k]; implemented by adding each tap's
    # full-length matmul into a shifted leading-axis slice of the output block.
    o_ref[...] = x_ref[...] + bc_ref[...]
    wc = wc_ref[...].astype(jnp.bfloat16)
    h_dirs = [hout_sc[d].astype(jnp.bfloat16) for d in range(ndir)]
    for k in range(ksize):
        contrib = None
        for d in range(ndir):
            wkd = lax.slice_in_dim(wc[k], d * H, (d + 1) * H, axis=0)   # [H, C]
            term = lax.dot_general(
                h_dirs[d], wkd,                                         # [L, tn, H] x [H, C]
                dimension_numbers=(((2,), (0,)), ((), ())),
                preferred_element_type=jnp.float32)
            contrib = term if contrib is None else contrib + term
        o_ref[k:k + L] = o_ref[k:k + L] + contrib


def _band_path(seq, ln_w, ln_b, w_proj, b_proj, w_hh, ct_w, ct_b, *,
               ksize, hidden, ndir, eps):
    """seq: [Lf, N, C] (sequence-major, padded, pre-norm). Returns [Lf, N, C]."""
    Lf, N, C = seq.shape
    L = Lf - ksize + 1
    H = hidden
    G = ndir * 4 * H
    I = ndir * H

    # rough per-batch-row working set (in/out blocks double-buffered + scratch)
    bytes_per_row = 4 * (4 * Lf * C + L * G + L * I + 4 * H)
    tn = _pick_batch_tile(N, bytes_per_row)
    Np = ((N + tn - 1) // tn) * tn
    if Np != N:
        seq = jnp.pad(seq, ((0, 0), (0, Np - N), (0, 0)))

    out = pl.pallas_call(
        functools.partial(_band_kernel, eps=eps, ksize=ksize, hidden=H, ndir=ndir),
        out_shape=jax.ShapeDtypeStruct((Lf, Np, C), jnp.float32),
        grid=(Np // tn,),
        in_specs=[
            pl.BlockSpec((Lf, tn, C), lambda i: (0, i, 0)),
            pl.BlockSpec((1, C), lambda i: (0, 0)),
            pl.BlockSpec((1, C), lambda i: (0, 0)),
            pl.BlockSpec((ksize, C, G), lambda i: (0, 0, 0)),
            pl.BlockSpec((1, G), lambda i: (0, 0)),
            pl.BlockSpec((ndir, H, 4 * H), lambda i: (0, 0, 0)),
            pl.BlockSpec((ksize, I, C), lambda i: (0, 0, 0)),
            pl.BlockSpec((1, C), lambda i: (0, 0)),
        ],
        out_specs=pl.BlockSpec((Lf, tn, C), lambda i: (0, i, 0)),
        scratch_shapes=[
            pltpu.VMEM((ndir, L, tn, 4 * H), jnp.float32),   # pre-computed gate inputs
            pltpu.VMEM((ndir, tn, H), jnp.float32),          # h state
            pltpu.VMEM((ndir, tn, H), jnp.float32),          # c state
            pltpu.VMEM((ndir, L, tn, H), jnp.float32),       # full LSTM output (in VMEM)
        ],
        compiler_params=pltpu.CompilerParams(
            dimension_semantics=("parallel",),
            vmem_limit_bytes=VMEM_LIMIT),
    )(seq, ln_w, ln_b, w_proj, b_proj, w_hh, ct_w, ct_b)

    return out[:, :N, :] if Np != N else out


# ------------------------------------ Full forward ------------------------------------
def causal_intra_inter_band(x, params, *, emb_dim, ksize, emb_hs, hidden, eps=EPS):
    B, C, oQ, oT = x.shape
    assert C == emb_dim
    assert emb_hs == 1 and ksize != emb_hs  # ConvTranspose1d branch of the module
    pad = ksize - emb_hs
    T = math.ceil((oT + 2 * pad - ksize) / emb_hs) * emb_hs + ksize
    Q = math.ceil((oQ + 2 * pad - ksize) / emb_hs) * emb_hs + ksize

    # B C Q T -> B T Q C, pad T and Q (matches F.pad in the reference)
    inp = jnp.transpose(x, (0, 3, 2, 1)).astype(jnp.float32)
    inp = jnp.pad(inp, ((0, 0), (pad, T - oT - pad), (pad, Q - oQ - pad), (0, 0)))

    # ----- intra: bidirectional LSTM along Q, batch = B*T -----
    seq1 = jnp.transpose(inp, (2, 0, 1, 3)).reshape(Q, B * T, C)     # [Q, B*T, C]
    intra = _band_path(seq1,
                       params['intra_ln_w'], params['intra_ln_b'],
                       params['intra_w_proj'], params['intra_b_proj'],
                       params['intra_w_hh'],
                       params['intra_ct_w'], params['intra_ct_b'],
                       ksize=ksize, hidden=hidden, ndir=2, eps=eps)  # [Q, B*T, C]

    # ----- inter: unidirectional LSTM along T, batch = B*Q -----
    seq2 = jnp.transpose(intra.reshape(Q, B, T, C), (2, 1, 0, 3)).reshape(T, B * Q, C)
    inter = _band_path(seq2,
                       params['inter_ln_w'], params['inter_ln_b'],
                       params['inter_w_proj'], params['inter_b_proj'],
                       params['inter_w_hh'],
                       params['inter_ct_w'], params['inter_ct_b'],
                       ksize=ksize, hidden=hidden, ndir=1, eps=eps)  # [T, B*Q, C]

    out = jnp.transpose(inter.reshape(T, B, Q, C), (1, 3, 2, 0))     # [B, C, Q, T]
    return out[:, :, pad:pad + oQ, pad:pad + oT]


# --------------------------------- deterministic params ---------------------------------
def init_params(key, emb_dim, ksize, hidden):
    C, H, K = emb_dim, hidden, ksize
    keys = jax.random.split(key, 14)

    def u(k, shape, scale):
        return jax.random.uniform(k, shape, jnp.float32, -scale, scale)

    s = 1.0 / math.sqrt(H)
    s_ci = 1.0 / math.sqrt(2 * H * K)
    s_co = 1.0 / math.sqrt(H * K)
    return {
        'intra_ln_w': 1.0 + u(keys[0], (1, C), 0.1),
        'intra_ln_b': u(keys[1], (1, C), 0.1),
        'intra_w_proj': u(keys[2], (K, C, 8 * H), s),       # fwd|bwd gates, i,f,g,o
        'intra_b_proj': u(keys[3], (1, 8 * H), s),
        'intra_w_hh': u(keys[4], (2, H, 4 * H), s),
        'intra_ct_w': u(keys[5], (K, 2 * H, C), s_ci),
        'intra_ct_b': u(keys[6], (1, C), s_ci),
        'inter_ln_w': 1.0 + u(keys[7], (1, C), 0.1),
        'inter_ln_b': u(keys[8], (1, C), 0.1),
        'inter_w_proj': u(keys[9], (K, C, 4 * H), s),
        'inter_b_proj': u(keys[10], (1, 4 * H), s),
        'inter_w_hh': u(keys[11], (1, H, 4 * H), s),
        'inter_ct_w': u(keys[12], (K, H, C), s_co),
        'inter_ct_b': u(keys[13], (1, C), s_co),
    }


if __name__ == "__main__":
    # Small config consistent with the module's __init__ signature.
    emb_dim, ksize, emb_hs, hidden = 16, 4, 1, 32
    B, Q, T = 2, 8, 8

    key = jax.random.PRNGKey(0)
    kx, kp = jax.random.split(key)
    x = jax.random.normal(kx, (B, emb_dim, Q, T), jnp.float32)   # [B C Q T]
    params = init_params(kp, emb_dim, ksize, hidden)

    fwd = jax.jit(functools.partial(
        causal_intra_inter_band,
        emb_dim=emb_dim, ksize=ksize, emb_hs=emb_hs, hidden=hidden))
    out = jax.block_until_ready(fwd(x, params))

    assert out.shape == x.shape, (out.shape, x.shape)
    assert bool(jnp.all(jnp.isfinite(out)))
    print("KERNEL_OK")
</pallas_src>

<mosaic_0001>
module attributes {stable_mosaic.version = 11 : i64} {
  func.func @_band_kernel(%arg0: i32, %arg1: memref<14x16x16xf32, #tpu.memory_space<vmem>>, %arg2: memref<1x16xf32, #tpu.memory_space<vmem>>, %arg3: memref<1x16xf32, #tpu.memory_space<vmem>>, %arg4: memref<4x16x256xf32, #tpu.memory_space<vmem>>, %arg5: memref<1x256xf32, #tpu.memory_space<vmem>>, %arg6: memref<2x32x128xf32, #tpu.memory_space<vmem>>, %arg7: memref<4x64x16xf32, #tpu.memory_space<vmem>>, %arg8: memref<1x16xf32, #tpu.memory_space<vmem>>, %arg9: memref<14x16x16xf32, #tpu.memory_space<vmem>>, %arg10: memref<2x11x16x128xf32, #tpu.memory_space<vmem>>, %arg11: memref<2x16x32xf32, #tpu.memory_space<vmem>>, %arg12: memref<2x16x32xf32, #tpu.memory_space<vmem>>, %arg13: memref<2x11x16x32xf32, #tpu.memory_space<vmem>>) attributes {dimension_semantics = [#tpu.dimension_semantics<parallel>], iteration_bounds = array<i64: 2>, scalar_prefetch = 0 : i64, scratch_operands = 4 : i64, tpu.core_type = #tpu.core_type<tc>, window_params = [{transform_indices = @transform_0, window_bounds = array<i64: 14, 16, 16>}, {pipeline_mode = #tpu.pipeline_mode<synchronous>, transform_indices = @transform_1, window_bounds = array<i64: 1, 16>}, {pipeline_mode = #tpu.pipeline_mode<synchronous>, transform_indices = @transform_2, window_bounds = array<i64: 1, 16>}, {pipeline_mode = #tpu.pipeline_mode<synchronous>, transform_indices = @transform_3, window_bounds = array<i64: 4, 16, 256>}, {pipeline_mode = #tpu.pipeline_mode<synchronous>, transform_indices = @transform_4, window_bounds = array<i64: 1, 256>}, {pipeline_mode = #tpu.pipeline_mode<synchronous>, transform_indices = @transform_5, window_bounds = array<i64: 2, 32, 128>}, {pipeline_mode = #tpu.pipeline_mode<synchronous>, transform_indices = @transform_6, window_bounds = array<i64: 4, 64, 16>}, {pipeline_mode = #tpu.pipeline_mode<synchronous>, transform_indices = @transform_7, window_bounds = array<i64: 1, 16>}, {transform_indices = @transform_8, window_bounds = array<i64: 14, 16, 16>}]} {
    %c0 = arith.constant 0 : index
    %c0_0 = arith.constant 0 : index
    %c0_1 = arith.constant 0 : index
    %0 = vector.load %arg1[%c0, %c0_0, %c0_1] : memref<14x16x16xf32, #tpu.memory_space<vmem>>, vector<14x16x16xf32>
    %cst = arith.constant dense<0.000000e+00> : vector<14x16xf32>
    %1 = vector.multi_reduction <add>, %0, %cst [2] : vector<14x16x16xf32> to vector<14x16xf32>
    %2 = vector.shape_cast %1 : vector<14x16xf32> to vector<14x16x1xf32>
    %cst_2 = arith.constant 1.600000e+01 : f32
    %3 = vector.broadcast %cst_2 : f32 to vector<14x16x1xf32>
    %4 = arith.divf %2, %3 : vector<14x16x1xf32>
    %5 = vector.broadcast %4 : vector<14x16x1xf32> to vector<14x16x16xf32>
    %6 = arith.subf %0, %5 : vector<14x16x16xf32>
    %7 = arith.mulf %6, %6 : vector<14x16x16xf32>
    %cst_3 = arith.constant dense<0.000000e+00> : vector<14x16xf32>
    %8 = vector.multi_reduction <add>, %7, %cst_3 [2] : vector<14x16x16xf32> to vector<14x16xf32>
    %9 = vector.shape_cast %8 : vector<14x16xf32> to vector<14x16x1xf32>
    %cst_4 = arith.constant 1.600000e+01 : f32
    %10 = vector.broadcast %cst_4 : f32 to vector<14x16x1xf32>
    %11 = arith.divf %9, %10 : vector<14x16x1xf32>
    %12 = vector.broadcast %4 : vector<14x16x1xf32> to vector<14x16x16xf32>
    %13 = arith.subf %0, %12 : vector<14x16x16xf32>
    %cst_5 = arith.constant 9.99999974E-6 : f32
    %14 = vector.broadcast %cst_5 : f32 to vector<14x16x1xf32>
    %15 = arith.addf %11, %14 : vector<14x16x1xf32>
    %16 = math.rsqrt %15 : vector<14x16x1xf32>
    %17 = vector.broadcast %16 : vector<14x16x1xf32> to vector<14x16x16xf32>
    %18 = arith.mulf %13, %17 : vector<14x16x16xf32>
    %c0_6 = arith.constant 0 : index
    %c0_7 = arith.constant 0 : index
    %19 = vector.load %arg2[%c0_6, %c0_7] : memref<1x16xf32, #tpu.memory_space<vmem>>, vector<1x16xf32>
    %20 = vector.shape_cast %19 : vector<1x16xf32> to vector<1x1x16xf32>
    %21 = vector.broadcast %20 : vector<1x1x16xf32> to vector<14x16x16xf32>
    %22 = arith.mulf %18, %21 : vector<14x16x16xf32>
    %c0_8 = arith.constant 0 : index
    %c0_9 = arith.constant 0 : index
    %23 = vector.load %arg3[%c0_8, %c0_9] : memref<1x16xf32, #tpu.memory_space<vmem>>, vector<1x16xf32>
    %24 = vector.shape_cast %23 : vector<1x16xf32> to vector<1x1x16xf32>
    %25 = vector.broadcast %24 : vector<1x1x16xf32> to vector<14x16x16xf32>
    %26 = arith.addf %22, %25 : vector<14x16x16xf32>
    %27 = arith.truncf %26 : vector<14x16x16xf32> to vector<14x16x16xbf16>
    %c0_10 = arith.constant 0 : index
    %c0_11 = arith.constant 0 : index
    %c0_12 = arith.constant 0 : index
    %28 = vector.load %arg4[%c0_10, %c0_11, %c0_12] : memref<4x16x256xf32, #tpu.memory_space<vmem>>, vector<4x16x256xf32>
    %29 = arith.truncf %28 : vector<4x16x256xf32> to vector<4x16x256xbf16>
    %30 = vector.extract_strided_slice %27 {offsets = [0, 0, 0], sizes = [11, 16, 16], strides = [1, 1, 1]} : vector<14x16x16xbf16> to vector<11x16x16xbf16>
    %31 = vector.extract_strided_slice %29 {offsets = [0, 0, 0], sizes = [1, 16, 256], strides = [1, 1, 1]} : vector<4x16x256xbf16> to vector<1x16x256xbf16>
    %32 = vector.shape_cast %31 : vector<1x16x256xbf16> to vector<16x256xbf16>
    %cst_13 = arith.constant dense<0.000000e+00> : vector<11x16x256xf32>
    %33 = tpu.matmul %30, %32, %cst_13 {dimension_numbers = #tpu.dot_dimension_numbers<[2], [0], [0, 1], [1], [0, 0, 0, 1, 1, 1], [], []>} : vector<11x16x16xbf16>, vector<16x256xbf16>, vector<11x16x256xf32> -> vector<11x16x256xf32>
    %34 = vector.extract_strided_slice %27 {offsets = [1, 0, 0], sizes = [11, 16, 16], strides = [1, 1, 1]} : vector<14x16x16xbf16> to vector<11x16x16xbf16>
    %35 = vector.extract_strided_slice %29 {offsets = [1, 0, 0], sizes = [1, 16, 256], strides = [1, 1, 1]} : vector<4x16x256xbf16> to vector<1x16x256xbf16>
    %36 = vector.shape_cast %35 : vector<1x16x256xbf16> to vector<16x256xbf16>
    %cst_14 = arith.constant dense<0.000000e+00> : vector<11x16x256xf32>
    %37 = tpu.matmul %34, %36, %cst_14 {dimension_numbers = #tpu.dot_dimension_numbers<[2], [0], [0, 1], [1], [0, 0, 0, 1, 1, 1], [], []>} : vector<11x16x16xbf16>, vector<16x256xbf16>, vector<11x16x256xf32> -> vector<11x16x256xf32>
    %38 = arith.addf %33, %37 : vector<11x16x256xf32>
    %39 = vector.extract_strided_slice %27 {offsets = [2, 0, 0], sizes = [11, 16, 16], strides = [1, 1, 1]} : vector<14x16x16xbf16> to vector<11x16x16xbf16>
    %40 = vector.extract_strided_slice %29 {offsets = [2, 0, 0], sizes = [1, 16, 256], strides = [1, 1, 1]} : vector<4x16x256xbf16> to vector<1x16x256xbf16>
    %41 = vector.shape_cast %40 : vector<1x16x256xbf16> to vector<16x256xbf16>
    %cst_15 = arith.constant dense<0.000000e+00> : vector<11x16x256xf32>
    %42 = tpu.matmul %39, %41, %cst_15 {dimension_numbers = #tpu.dot_dimension_numbers<[2], [0], [0, 1], [1], [0, 0, 0, 1, 1, 1], [], []>} : vector<11x16x16xbf16>, vector<16x256xbf16>, vector<11x16x256xf32> -> vector<11x16x256xf32>
    %43 = arith.addf %38, %42 : vector<11x16x256xf32>
    %44 = vector.extract_strided_slice %27 {offsets = [3, 0, 0], sizes = [11, 16, 16], strides = [1, 1, 1]} : vector<14x16x16xbf16> to vector<11x16x16xbf16>
    %45 = vector.extract_strided_slice %29 {offsets = [3, 0, 0], sizes = [1, 16, 256], strides = [1, 1, 1]} : vector<4x16x256xbf16> to vector<1x16x256xbf16>
    %46 = vector.shape_cast %45 : vector<1x16x256xbf16> to vector<16x256xbf16>
    %cst_16 = arith.constant dense<0.000000e+00> : vector<11x16x256xf32>
    %47 = tpu.matmul %44, %46, %cst_16 {dimension_numbers = #tpu.dot_dimension_numbers<[2], [0], [0, 1], [1], [0, 0, 0, 1, 1, 1], [], []>} : vector<11x16x16xbf16>, vector<16x256xbf16>, vector<11x16x256xf32> -> vector<11x16x256xf32>
    %48 = arith.addf %43, %47 : vector<11x16x256xf32>
    %c0_17 = arith.constant 0 : index
    %c0_18 = arith.constant 0 : index
    %49 = vector.load %arg5[%c0_17, %c0_18] : memref<1x256xf32, #tpu.memory_space<vmem>>, vector<1x256xf32>
    %50 = vector.shape_cast %49 : vector<1x256xf32> to vector<1x1x256xf32>
    %51 = vector.broadcast %50 : vector<1x1x256xf32> to vector<11x16x256xf32>
    %52 = arith.addf %48, %51 : vector<11x16x256xf32>
    %53 = vector.extract_strided_slice %52 {offsets = [0, 0, 0], sizes = [11, 16, 128], strides = [1, 1, 1]} : vector<11x16x256xf32> to vector<11x16x128xf32>
    %c0_19 = arith.constant 0 : index
    %c0_20 = arith.constant 0 : index
    %c0_21 = arith.constant 0 : index
    %c0_22 = arith.constant 0 : index
    %54 = vector.load %arg10[%c0_19, %c0_20, %c0_21, %c0_22] : memref<2x11x16x128xf32, #tpu.memory_space<vmem>>, vector<1x11x16x128xf32>
    %55 = vector.shape_cast %54 : vector<1x11x16x128xf32> to vector<11x16x128xf32>
    %56 = vector.shape_cast %53 : vector<11x16x128xf32> to vector<1x11x16x128xf32>
    tpu.vector_store %arg10[%c0_19, %c0_20, %c0_21, %c0_22], %56 {strides = array<i32>} : memref<2x11x16x128xf32, #tpu.memory_space<vmem>>, vector<1x11x16x128xf32>,
    %57 = vector.extract_strided_slice %52 {offsets = [0, 0, 128], sizes = [11, 16, 128], strides = [1, 1, 1]} : vector<11x16x256xf32> to vector<11x16x128xf32>
    %c1 = arith.constant 1 : index
    %c0_23 = arith.constant 0 : index
    %c0_24 = arith.constant 0 : index
    %c0_25 = arith.constant 0 : index
    %58 = vector.load %arg10[%c1, %c0_23, %c0_24, %c0_25] : memref<2x11x16x128xf32, #tpu.memory_space<vmem>>, vector<1x11x16x128xf32>
    %59 = vector.shape_cast %58 : vector<1x11x16x128xf32> to vector<11x16x128xf32>
    %60 = vector.shape_cast %57 : vector<11x16x128xf32> to vector<1x11x16x128xf32>
    tpu.vector_store %arg10[%c1, %c0_23, %c0_24, %c0_25], %60 {strides = array<i32>} : memref<2x11x16x128xf32, #tpu.memory_space<vmem>>, vector<1x11x16x128xf32>,
    %cst_26 = arith.constant 0.000000e+00 : f32
    %61 = vector.broadcast %cst_26 : f32 to vector<2x16x32xf32>
    %c0_27 = arith.constant 0 : index
    %c0_28 = arith.constant 0 : index
    %c0_29 = arith.constant 0 : index
    %62 = vector.load %arg11[%c0_27, %c0_28, %c0_29] : memref<2x16x32xf32, #tpu.memory_space<vmem>>, vector<2x16x32xf32>
    tpu.vector_store %arg11[%c0_27, %c0_28, %c0_29], %61 {strides = array<i32>} : memref<2x16x32xf32, #tpu.memory_space<vmem>>, vector<2x16x32xf32>,
    %cst_30 = arith.constant 0.000000e+00 : f32
    %63 = vector.broadcast %cst_30 : f32 to vector<2x16x32xf32>
    %c0_31 = arith.constant 0 : index
    %c0_32 = arith.constant 0 : index
    %c0_33 = arith.constant 0 : index
    %64 = vector.load %arg12[%c0_31, %c0_32, %c0_33] : memref<2x16x32xf32, #tpu.memory_space<vmem>>, vector<2x16x32xf32>
    tpu.vector_store %arg12[%c0_31, %c0_32, %c0_33], %63 {strides = array<i32>} : memref<2x16x32xf32, #tpu.memory_space<vmem>>, vector<2x16x32xf32>,
    %c0_34 = arith.constant 0 : index
    %c0_35 = arith.constant 0 : index
    %c0_36 = arith.constant 0 : index
    %65 = vector.load %arg6[%c0_34, %c0_35, %c0_36] : memref<2x32x128xf32, #tpu.memory_space<vmem>>, vector<1x32x128xf32>
    %66 = vector.shape_cast %65 : vector<1x32x128xf32> to vector<32x128xf32>
    %67 = arith.truncf %66 : vector<32x128xf32> to vector<32x128xbf16>
    %c1_37 = arith.constant 1 : index
    %c0_38 = arith.constant 0 : index
    %c0_39 = arith.constant 0 : index
    %68 = vector.load %arg6[%c1_37, %c0_38, %c0_39] : memref<2x32x128xf32, #tpu.memory_space<vmem>>, vector<1x32x128xf32>
    %69 = vector.shape_cast %68 : vector<1x32x128xf32> to vector<32x128xf32>
    %70 = arith.truncf %69 : vector<32x128xf32> to vector<32x128xbf16>
    %c0_i32 = arith.constant 0 : i32
    %c11_i32 = arith.constant 11 : i32
    %71 = arith.addi %c0_i32, %c11_i32 : i32
    %c1_i32 = arith.constant 1 : i32
    scf.for %arg14 = %c0_i32 to %71 step %c1_i32  : i32 {
      %c0_90 = arith.constant 0 : index
      %134 = arith.index_cast %arg14 : i32 to index
      %c0_91 = arith.constant 0 : index
      %c0_92 = arith.constant 0 : index
      %135 = vector.load %arg10[%c0_90, %134, %c0_91, %c0_92] : memref<2x11x16x128xf32, #tpu.memory_space<vmem>>, vector<1x1x16x128xf32>
      %136 = vector.shape_cast %135 : vector<1x1x16x128xf32> to vector<16x128xf32>
      %c0_93 = arith.constant 0 : index
      %c0_94 = arith.constant 0 : index
      %c0_95 = arith.constant 0 : index
      %137 = vector.load %arg11[%c0_93, %c0_94, %c0_95] : memref<2x16x32xf32, #tpu.memory_space<vmem>>, vector<1x16x32xf32>
      %138 = vector.shape_cast %137 : vector<1x16x32xf32> to vector<16x32xf32>
      %139 = arith.truncf %138 : vector<16x32xf32> to vector<16x32xbf16>
      %cst_96 = arith.constant dense<0.000000e+00> : vector<16x128xf32>
      %140 = tpu.matmul %139, %67, %cst_96 {dimension_numbers = #tpu.dot_dimension_numbers<[1], [0], [0], [1], [0, 0, 1, 1], [], []>} : vector<16x32xbf16>, vector<32x128xbf16>, vector<16x128xf32> -> vector<16x128xf32>
      %141 = arith.addf %136, %140 : vector<16x128xf32>
      %142 = vector.extract_strided_slice %141 {offsets = [0, 0], sizes = [16, 32], strides = [1, 1]} : vector<16x128xf32> to vector<16x32xf32>
      %143 = arith.negf %142 : vector<16x32xf32>
      %144 = math.exp %143 : vector<16x32xf32>
      %cst_97 = arith.constant 1.000000e+00 : f32
      %145 = vector.broadcast %cst_97 : f32 to vector<16x32xf32>
      %146 = arith.addf %145, %144 : vector<16x32xf32>
      %147 = arith.divf %145, %146 : vector<16x32xf32>
      %148 = vector.extract_strided_slice %141 {offsets = [0, 32], sizes = [16, 32], strides = [1, 1]} : vector<16x128xf32> to vector<16x32xf32>
      %149 = arith.negf %148 : vector<16x32xf32>
      %150 = math.exp %149 : vector<16x32xf32>
      %cst_98 = arith.constant 1.000000e+00 : f32
      %151 = vector.broadcast %cst_98 : f32 to vector<16x32xf32>
      %152 = arith.addf %151, %150 : vector<16x32xf32>
      %153 = arith.divf %151, %152 : vector<16x32xf32>
      %154 = vector.extract_strided_slice %141 {offsets = [0, 64], sizes = [16, 32], strides = [1, 1]} : vector<16x128xf32> to vector<16x32xf32>
      %155 = math.tanh %154 : vector<16x32xf32>
      %156 = vector.extract_strided_slice %141 {offsets = [0, 96], sizes = [16, 32], strides = [1, 1]} : vector<16x128xf32> to vector<16x32xf32>
      %157 = arith.negf %156 : vector<16x32xf32>
      %158 = math.exp %157 : vector<16x32xf32>
      %cst_99 = arith.constant 1.000000e+00 : f32
      %159 = vector.broadcast %cst_99 : f32 to vector<16x32xf32>
      %160 = arith.addf %159, %158 : vector<16x32xf32>
      %161 = arith.divf %159, %160 : vector<16x32xf32>
      %c0_100 = arith.constant 0 : index
      %c0_101 = arith.constant 0 : index
      %c0_102 = arith.constant 0 : index
      %162 = vector.load %arg12[%c0_100, %c0_101, %c0_102] : memref<2x16x32xf32, #tpu.memory_space<vmem>>, vector<1x16x32xf32>
      %163 = vector.shape_cast %162 : vector<1x16x32xf32> to vector<16x32xf32>
      %164 = arith.mulf %153, %163 : vector<16x32xf32>
      %165 = arith.mulf %147, %155 : vector<16x32xf32>
      %166 = arith.addf %164, %165 : vector<16x32xf32>
      %167 = math.tanh %166 : vector<16x32xf32>
      %168 = arith.mulf %161, %167 : vector<16x32xf32>
      %c0_103 = arith.constant 0 : index
      %c0_104 = arith.constant 0 : index
      %c0_105 = arith.constant 0 : index
      %169 = vector.load %arg12[%c0_103, %c0_104, %c0_105] : memref<2x16x32xf32, #tpu.memory_space<vmem>>, vector<1x16x32xf32>
      %170 = vector.shape_cast %169 : vector<1x16x32xf32> to vector<16x32xf32>
      %171 = vector.shape_cast %166 : vector<16x32xf32> to vector<1x16x32xf32>
      tpu.vector_store %arg12[%c0_103, %c0_104, %c0_105], %171 {strides = array<i32>} : memref<2x16x32xf32, #tpu.memory_space<vmem>>, vector<1x16x32xf32>,
      %c0_106 = arith.constant 0 : index
      %c0_107 = arith.constant 0 : index
      %c0_108 = arith.constant 0 : index
      %172 = vector.load %arg11[%c0_106, %c0_107, %c0_108] : memref<2x16x32xf32, #tpu.memory_space<vmem>>, vector<1x16x32xf32>
      %173 = vector.shape_cast %172 : vector<1x16x32xf32> to vector<16x32xf32>
      %174 = vector.shape_cast %168 : vector<16x32xf32> to vector<1x16x32xf32>
      tpu.vector_store %arg11[%c0_106, %c0_107, %c0_108], %174 {strides = array<i32>} : memref<2x16x32xf32, #tpu.memory_space<vmem>>, vector<1x16x32xf32>,
      %c0_109 = arith.constant 0 : index
      %175 = arith.index_cast %arg14 : i32 to index
      %c0_110 = arith.constant 0 : index
      %c0_111 = arith.constant 0 : index
      %176 = vector.load %arg13[%c0_109, %175, %c0_110, %c0_111] : memref<2x11x16x32xf32, #tpu.memory_space<vmem>>, vector<1x1x16x32xf32>
      %177 = vector.shape_cast %176 : vector<1x1x16x32xf32> to vector<16x32xf32>
      %178 = vector.shape_cast %168 : vector<16x32xf32> to vector<1x1x16x32xf32>
      tpu.vector_store %arg13[%c0_109, %175, %c0_110, %c0_111], %178 {strides = array<i32>} : memref<2x11x16x32xf32, #tpu.memory_space<vmem>>, vector<1x1x16x32xf32>,
      %c10_i32 = arith.constant 10 : i32
      %179 = arith.subi %c10_i32, %arg14 : i32
      %c1_112 = arith.constant 1 : index
      %180 = arith.index_cast %179 : i32 to index
      %c0_113 = arith.constant 0 : index
      %c0_114 = arith.constant 0 : index
      %181 = vector.load %arg10[%c1_112, %180, %c0_113, %c0_114] : memref<2x11x16x128xf32, #tpu.memory_space<vmem>>, vector<1x1x16x128xf32>
      %182 = vector.shape_cast %181 : vector<1x1x16x128xf32> to vector<16x128xf32>
      %c1_115 = arith.constant 1 : index
      %c0_116 = arith.constant 0 : index
      %c0_117 = arith.constant 0 : index
      %183 = vector.load %arg11[%c1_115, %c0_116, %c0_117] : memref<2x16x32xf32, #tpu.memory_space<vmem>>, vector<1x16x32xf32>
      %184 = vector.shape_cast %183 : vector<1x16x32xf32> to vector<16x32xf32>
      %185 = arith.truncf %184 : vector<16x32xf32> to vector<16x32xbf16>
      %cst_118 = arith.constant dense<0.000000e+00> : vector<16x128xf32>
      %186 = tpu.matmul %185, %70, %cst_118 {dimension_numbers = #tpu.dot_dimension_numbers<[1], [0], [0], [1], [0, 0, 1, 1], [], []>} : vector<16x32xbf16>, vector<32x128xbf16>, vector<16x128xf32> -> vector<16x128xf32>
      %187 = arith.addf %182, %186 : vector<16x128xf32>
      %188 = vector.extract_strided_slice %187 {offsets = [0, 0], sizes = [16, 32], strides = [1, 1]} : vector<16x128xf32> to vector<16x32xf32>
      %189 = arith.negf %188 : vector<16x32xf32>
      %190 = math.exp %189 : vector<16x32xf32>
      %cst_119 = arith.constant 1.000000e+00 : f32
      %191 = vector.broadcast %cst_119 : f32 to vector<16x32xf32>
      %192 = arith.addf %191, %190 : vector<16x32xf32>
      %193 = arith.divf %191, %192 : vector<16x32xf32>
      %194 = vector.extract_strided_slice %187 {offsets = [0, 32], sizes = [16, 32], strides = [1, 1]} : vector<16x128xf32> to vector<16x32xf32>
      %195 = arith.negf %194 : vector<16x32xf32>
      %196 = math.exp %195 : vector<16x32xf32>
      %cst_120 = arith.constant 1.000000e+00 : f32
      %197 = vector.broadcast %cst_120 : f32 to vector<16x32xf32>
      %198 = arith.addf %197, %196 : vector<16x32xf32>
      %199 = arith.divf %197, %198 : vector<16x32xf32>
      %200 = vector.extract_strided_slice %187 {offsets = [0, 64], sizes = [16, 32], strides = [1, 1]} : vector<16x128xf32> to vector<16x32xf32>
      %201 = math.tanh %200 : vector<16x32xf32>
      %202 = vector.extract_strided_slice %187 {offsets = [0, 96], sizes = [16, 32], strides = [1, 1]} : vector<16x128xf32> to vector<16x32xf32>
      %203 = arith.negf %202 : vector<16x32xf32>
      %204 = math.exp %203 : vector<16x32xf32>
      %cst_121 = arith.constant 1.000000e+00 : f32
      %205 = vector.broadcast %cst_121 : f32 to vector<16x32xf32>
      %206 = arith.addf %205, %204 : vector<16x32xf32>
      %207 = arith.divf %205, %206 : vector<16x32xf32>
      %c1_122 = arith.constant 1 : index
      %c0_123 = arith.constant 0 : index
      %c0_124 = arith.constant 0 : index
      %208 = vector.load %arg12[%c1_122, %c0_123, %c0_124] : memref<2x16x32xf32, #tpu.memory_space<vmem>>, vector<1x16x32xf32>
      %209 = vector.shape_cast %208 : vector<1x16x32xf32> to vector<16x32xf32>
      %210 = arith.mulf %199, %209 : vector<16x32xf32>
      %211 = arith.mulf %193, %201 : vector<16x32xf32>
      %212 = arith.addf %210, %211 : vector<16x32xf32>
      %213 = math.tanh %212 : vector<16x32xf32>
      %214 = arith.mulf %207, %213 : vector<16x32xf32>
      %c1_125 = arith.constant 1 : index
      %c0_126 = arith.constant 0 : index
      %c0_127 = arith.constant 0 : index
      %215 = vector.load %arg12[%c1_125, %c0_126, %c0_127] : memref<2x16x32xf32, #tpu.memory_space<vmem>>, vector<1x16x32xf32>
      %216 = vector.shape_cast %215 : vector<1x16x32xf32> to vector<16x32xf32>
      %217 = vector.shape_cast %212 : vector<16x32xf32> to vector<1x16x32xf32>
      tpu.vector_store %arg12[%c1_125, %c0_126, %c0_127], %217 {strides = array<i32>} : memref<2x16x32xf32, #tpu.memory_space<vmem>>, vector<1x16x32xf32>,
      %c1_128 = arith.constant 1 : index
      %c0_129 = arith.constant 0 : index
      %c0_130 = arith.constant 0 : index
      %218 = vector.load %arg11[%c1_128, %c0_129, %c0_130] : memref<2x16x32xf32, #tpu.memory_space<vmem>>, vector<1x16x32xf32>
      %219 = vector.shape_cast %218 : vector<1x16x32xf32> to vector<16x32xf32>
      %220 = vector.shape_cast %214 : vector<16x32xf32> to vector<1x16x32xf32>
      tpu.vector_store %arg11[%c1_128, %c0_129, %c0_130], %220 {strides = array<i32>} : memref<2x16x32xf32, #tpu.memory_space<vmem>>, vector<1x16x32xf32>,
      %c1_131 = arith.constant 1 : index
      %221 = arith.index_cast %179 : i32 to index
      %c0_132 = arith.constant 0 : index
      %c0_133 = arith.constant 0 : index
      %222 = vector.load %arg13[%c1_131, %221, %c0_132, %c0_133] : memref<2x11x16x32xf32, #tpu.memory_space<vmem>>, vector<1x1x16x32xf32>
      %223 = vector.shape_cast %222 : vector<1x1x16x32xf32> to vector<16x32xf32>
      %224 = vector.shape_cast %214 : vector<16x32xf32> to vector<1x1x16x32xf32>
      tpu.vector_store %arg13[%c1_131, %221, %c0_132, %c0_133], %224 {strides = array<i32>} : memref<2x11x16x32xf32, #tpu.memory_space<vmem>>, vector<1x1x16x32xf32>,
    }
    %c11_i32_40 = arith.constant 11 : i32
    %c0_41 = arith.constant 0 : index
    %c0_42 = arith.constant 0 : index
    %c0_43 = arith.constant 0 : index
    %72 = vector.load %arg1[%c0_41, %c0_42, %c0_43] : memref<14x16x16xf32, #tpu.memory_space<vmem>>, vector<14x16x16xf32>
    %c0_44 = arith.constant 0 : index
    %c0_45 = arith.constant 0 : index
    %73 = vector.load %arg8[%c0_44, %c0_45] : memref<1x16xf32, #tpu.memory_space<vmem>>, vector<1x16xf32>
    %74 = vector.shape_cast %73 : vector<1x16xf32> to vector<1x1x16xf32>
    %75 = vector.broadcast %74 : vector<1x1x16xf32> to vector<14x16x16xf32>
    %76 = arith.addf %72, %75 : vector<14x16x16xf32>
    %c0_46 = arith.constant 0 : index
    %c0_47 = arith.constant 0 : index
    %c0_48 = arith.constant 0 : index
    %77 = vector.load %arg9[%c0_46, %c0_47, %c0_48] : memref<14x16x16xf32, #tpu.memory_space<vmem>>, vector<14x16x16xf32>
    tpu.vector_store %arg9[%c0_46, %c0_47, %c0_48], %76 {strides = array<i32>} : memref<14x16x16xf32, #tpu.memory_space<vmem>>, vector<14x16x16xf32>,
    %c0_49 = arith.constant 0 : index
    %c0_50 = arith.constant 0 : index
    %c0_51 = arith.constant 0 : index
    %78 = vector.load %arg7[%c0_49, %c0_50, %c0_51] : memref<4x64x16xf32, #tpu.memory_space<vmem>>, vector<4x64x16xf32>
    %79 = arith.truncf %78 : vector<4x64x16xf32> to vector<4x64x16xbf16>
    %c0_52 = arith.constant 0 : index
    %c0_53 = arith.constant 0 : index
    %c0_54 = arith.constant 0 : index
    %c0_55 = arith.constant 0 : index
    %80 = vector.load %arg13[%c0_52, %c0_53, %c0_54, %c0_55] : memref<2x11x16x32xf32, #tpu.memory_space<vmem>>, vector<1x11x16x32xf32>
    %81 = vector.shape_cast %80 : vector<1x11x16x32xf32> to vector<11x16x32xf32>
    %82 = arith.truncf %81 : vector<11x16x32xf32> to vector<11x16x32xbf16>
    %c1_56 = arith.constant 1 : index
    %c0_57 = arith.constant 0 : index
    %c0_58 = arith.constant 0 : index
    %c0_59 = arith.constant 0 : index
    %83 = vector.load %arg13[%c1_56, %c0_57, %c0_58, %c0_59] : memref<2x11x16x32xf32, #tpu.memory_space<vmem>>, vector<1x11x16x32xf32>
    %84 = vector.shape_cast %83 : vector<1x11x16x32xf32> to vector<11x16x32xf32>
    %85 = arith.truncf %84 : vector<11x16x32xf32> to vector<11x16x32xbf16>
    %86 = vector.extract_strided_slice %79 {offsets = [0, 0, 0], sizes = [1, 64, 16], strides = [1, 1, 1]} : vector<4x64x16xbf16> to vector<1x64x16xbf16>
    %87 = vector.shape_cast %86 : vector<1x64x16xbf16> to vector<64x16xbf16>
    %88 = vector.extract_strided_slice %87 {offsets = [0, 0], sizes = [32, 16], strides = [1, 1]} : vector<64x16xbf16> to vector<32x16xbf16>
    %cst_60 = arith.constant dense<0.000000e+00> : vector<11x16x16xf32>
    %89 = tpu.matmul %82, %88, %cst_60 {dimension_numbers = #tpu.dot_dimension_numbers<[2], [0], [0, 1], [1], [0, 0, 0, 1, 1, 1], [], []>} : vector<11x16x32xbf16>, vector<32x16xbf16>, vector<11x16x16xf32> -> vector<11x16x16xf32>
    %90 = vector.extract_strided_slice %79 {offsets = [0, 0, 0], sizes = [1, 64, 16], strides = [1, 1, 1]} : vector<4x64x16xbf16> to vector<1x64x16xbf16>
    %91 = vector.shape_cast %90 : vector<1x64x16xbf16> to vector<64x16xbf16>
    %92 = vector.extract_strided_slice %91 {offsets = [32, 0], sizes = [32, 16], strides = [1, 1]} : vector<64x16xbf16> to vector<32x16xbf16>
    %cst_61 = arith.constant dense<0.000000e+00> : vector<11x16x16xf32>
    %93 = tpu.matmul %85, %92, %cst_61 {dimension_numbers = #tpu.dot_dimension_numbers<[2], [0], [0, 1], [1], [0, 0, 0, 1, 1, 1], [], []>} : vector<11x16x32xbf16>, vector<32x16xbf16>, vector<11x16x16xf32> -> vector<11x16x16xf32>
    %94 = arith.addf %89, %93 : vector<11x16x16xf32>
    %c0_62 = arith.constant 0 : index
    %c0_63 = arith.constant 0 : index
    %c0_64 = arith.constant 0 : index
    %95 = vector.load %arg9[%c0_62, %c0_63, %c0_64] : memref<14x16x16xf32, #tpu.memory_space<vmem>>, vector<11x16x16xf32>
    %96 = arith.addf %95, %94 : vector<11x16x16xf32>
    %c0_65 = arith.constant 0 : index
    %c0_66 = arith.constant 0 : index
    %c0_67 = arith.constant 0 : index
    %97 = vector.load %arg9[%c0_65, %c0_66, %c0_67] : memref<14x16x16xf32, #tpu.memory_space<vmem>>, vector<11x16x16xf32>
    tpu.vector_store %arg9[%c0_65, %c0_66, %c0_67], %96 {strides = array<i32>} : memref<14x16x16xf32, #tpu.memory_space<vmem>>, vector<11x16x16xf32>,
    %98 = vector.extract_strided_slice %79 {offsets = [1, 0, 0], sizes = [1, 64, 16], strides = [1, 1, 1]} : vector<4x64x16xbf16> to vector<1x64x16xbf16>
    %99 = vector.shape_cast %98 : vector<1x64x16xbf16> to vector<64x16xbf16>
    %100 = vector.extract_strided_slice %99 {offsets = [0, 0], sizes = [32, 16], strides = [1, 1]} : vector<64x16xbf16> to vector<32x16xbf16>
    %cst_68 = arith.constant dense<0.000000e+00> : vector<11x16x16xf32>
    %101 = tpu.matmul %82, %100, %cst_68 {dimension_numbers = #tpu.dot_dimension_numbers<[2], [0], [0, 1], [1], [0, 0, 0, 1, 1, 1], [], []>} : vector<11x16x32xbf16>, vector<32x16xbf16>, vector<11x16x16xf32> -> vector<11x16x16xf32>
    %102 = vector.extract_strided_slice %79 {offsets = [1, 0, 0], sizes = [1, 64, 16], strides = [1, 1, 1]} : vector<4x64x16xbf16> to vector<1x64x16xbf16>
    %103 = vector.shape_cast %102 : vector<1x64x16xbf16> to vector<64x16xbf16>
    %104 = vector.extract_strided_slice %103 {offsets = [32, 0], sizes = [32, 16], strides = [1, 1]} : vector<64x16xbf16> to vector<32x16xbf16>
    %cst_69 = arith.constant dense<0.000000e+00> : vector<11x16x16xf32>
    %105 = tpu.matmul %85, %104, %cst_69 {dimension_numbers = #tpu.dot_dimension_numbers<[2], [0], [0, 1], [1], [0, 0, 0, 1, 1, 1], [], []>} : vector<11x16x32xbf16>, vector<32x16xbf16>, vector<11x16x16xf32> -> vector<11x16x16xf32>
    %106 = arith.addf %101, %105 : vector<11x16x16xf32>
    %c1_70 = arith.constant 1 : index
    %c0_71 = arith.constant 0 : index
    %c0_72 = arith.constant 0 : index
    %107 = vector.load %arg9[%c1_70, %c0_71, %c0_72] : memref<14x16x16xf32, #tpu.memory_space<vmem>>, vector<11x16x16xf32>
    %108 = arith.addf %107, %106 : vector<11x16x16xf32>
    %c1_73 = arith.constant 1 : index
    %c0_74 = arith.constant 0 : index
    %c0_75 = arith.constant 0 : index
    %109 = vector.load %arg9[%c1_73, %c0_74, %c0_75] : memref<14x16x16xf32, #tpu.memory_space<vmem>>, vector<11x16x16xf32>
    tpu.vector_store %arg9[%c1_73, %c0_74, %c0_75], %108 {strides = array<i32>} : memref<14x16x16xf32, #tpu.memory_space<vmem>>, vector<11x16x16xf32>,
    %110 = vector.extract_strided_slice %79 {offsets = [2, 0, 0], sizes = [1, 64, 16], strides = [1, 1, 1]} : vector<4x64x16xbf16> to vector<1x64x16xbf16>
    %111 = vector.shape_cast %110 : vector<1x64x16xbf16> to vector<64x16xbf16>
    %112 = vector.extract_strided_slice %111 {offsets = [0, 0], sizes = [32, 16], strides = [1, 1]} : vector<64x16xbf16> to vector<32x16xbf16>
    %cst_76 = arith.constant dense<0.000000e+00> : vector<11x16x16xf32>
    %113 = tpu.matmul %82, %112, %cst_76 {dimension_numbers = #tpu.dot_dimension_numbers<[2], [0], [0, 1], [1], [0, 0, 0, 1, 1, 1], [], []>} : vector<11x16x32xbf16>, vector<32x16xbf16>, vector<11x16x16xf32> -> vector<11x16x16xf32>
    %114 = vector.extract_strided_slice %79 {offsets = [2, 0, 0], sizes = [1, 64, 16], strides = [1, 1, 1]} : vector<4x64x16xbf16> to vector<1x64x16xbf16>
    %115 = vector.shape_cast %114 : vector<1x64x16xbf16> to vector<64x16xbf16>
    %116 = vector.extract_strided_slice %115 {offsets = [32, 0], sizes = [32, 16], strides = [1, 1]} : vector<64x16xbf16> to vector<32x16xbf16>
    %cst_77 = arith.constant dense<0.000000e+00> : vector<11x16x16xf32>
    %117 = tpu.matmul %85, %116, %cst_77 {dimension_numbers = #tpu.dot_dimension_numbers<[2], [0], [0, 1], [1], [0, 0, 0, 1, 1, 1], [], []>} : vector<11x16x32xbf16>, vector<32x16xbf16>, vector<11x16x16xf32> -> vector<11x16x16xf32>
    %118 = arith.addf %113, %117 : vector<11x16x16xf32>
    %c2 = arith.constant 2 : index
    %c0_78 = arith.constant 0 : index
    %c0_79 = arith.constant 0 : index
    %119 = vector.load %arg9[%c2, %c0_78, %c0_79] : memref<14x16x16xf32, #tpu.memory_space<vmem>>, vector<11x16x16xf32>
    %120 = arith.addf %119, %118 : vector<11x16x16xf32>
    %c2_80 = arith.constant 2 : index
    %c0_81 = arith.constant 0 : index
    %c0_82 = arith.constant 0 : index
    %121 = vector.load %arg9[%c2_80, %c0_81, %c0_82] : memref<14x16x16xf32, #tpu.memory_space<vmem>>, vector<11x16x16xf32>
    tpu.vector_store %arg9[%c2_80, %c0_81, %c0_82], %120 {strides = array<i32>} : memref<14x16x16xf32, #tpu.memory_space<vmem>>, vector<11x16x16xf32>,
    %122 = vector.extract_strided_slice %79 {offsets = [3, 0, 0], sizes = [1, 64, 16], strides = [1, 1, 1]} : vector<4x64x16xbf16> to vector<1x64x16xbf16>
    %123 = vector.shape_cast %122 : vector<1x64x16xbf16> to vector<64x16xbf16>
    %124 = vector.extract_strided_slice %123 {offsets = [0, 0], sizes = [32, 16], strides = [1, 1]} : vector<64x16xbf16> to vector<32x16xbf16>
    %cst_83 = arith.constant dense<0.000000e+00> : vector<11x16x16xf32>
    %125 = tpu.matmul %82, %124, %cst_83 {dimension_numbers = #tpu.dot_dimension_numbers<[2], [0], [0, 1], [1], [0, 0, 0, 1, 1, 1], [], []>} : vector<11x16x32xbf16>, vector<32x16xbf16>, vector<11x16x16xf32> -> vector<11x16x16xf32>
    %126 = vector.extract_strided_slice %79 {offsets = [3, 0, 0], sizes = [1, 64, 16], strides = [1, 1, 1]} : vector<4x64x16xbf16> to vector<1x64x16xbf16>
    %127 = vector.shape_cast %126 : vector<1x64x16xbf16> to vector<64x16xbf16>
    %128 = vector.extract_strided_slice %127 {offsets = [32, 0], sizes = [32, 16], strides = [1, 1]} : vector<64x16xbf16> to vector<32x16xbf16>
    %cst_84 = arith.constant dense<0.000000e+00> : vector<11x16x16xf32>
    %129 = tpu.matmul %85, %128, %cst_84 {dimension_numbers = #tpu.dot_dimension_numbers<[2], [0], [0, 1], [1], [0, 0, 0, 1, 1, 1], [], []>} : vector<11x16x32xbf16>, vector<32x16xbf16>, vector<11x16x16xf32> -> vector<11x16x16xf32>
    %130 = arith.addf %125, %129 : vector<11x16x16xf32>
    %c3 = arith.constant 3 : index
    %c0_85 = arith.constant 0 : index
    %c0_86 = arith.constant 0 : index
    %131 = vector.load %arg9[%c3, %c0_85, %c0_86] : memref<14x16x16xf32, #tpu.memory_space<vmem>>, vector<11x16x16xf32>
    %132 = arith.addf %131, %130 : vector<11x16x16xf32>
    %c3_87 = arith.constant 3 : index
    %c0_88 = arith.constant 0 : index
    %c0_89 = arith.constant 0 : index
    %133 = vector.load %arg9[%c3_87, %c0_88, %c0_89] : memref<14x16x16xf32, #tpu.memory_space<vmem>>, vector<11x16x16xf32>
    tpu.vector_store %arg9[%c3_87, %c0_88, %c0_89], %132 {strides = array<i32>} : memref<14x16x16xf32, #tpu.memory_space<vmem>>, vector<11x16x16xf32>,
    return
  }
  func.func @transform_0(%arg0: i32) -> (i32, i32, i32) {
    %c0_i32 = arith.constant 0 : i32
    %c0_i32_0 = arith.constant 0 : i32
    %c0_i32_1 = arith.constant 0 : i32
    return %c0_i32, %arg0, %c0_i32_0 : i32, i32, i32
  }
  func.func @transform_1(%arg0: i32) -> (i32, i32) {
    %c0_i32 = arith.constant 0 : i32
    %c0_i32_0 = arith.constant 0 : i32
    %c0_i32_1 = arith.constant 0 : i32
    return %c0_i32, %c0_i32_0 : i32, i32
  }
  func.func @transform_2(%arg0: i32) -> (i32, i32) {
    %c0_i32 = arith.constant 0 : i32
    %c0_i32_0 = arith.constant 0 : i32
    %c0_i32_1 = arith.constant 0 : i32
    return %c0_i32, %c0_i32_0 : i32, i32
  }
  func.func @transform_3(%arg0: i32) -> (i32, i32, i32) {
    %c0_i32 = arith.constant 0 : i32
    %c0_i32_0 = arith.constant 0 : i32
    %c0_i32_1 = arith.constant 0 : i32
    %c0_i32_2 = arith.constant 0 : i32
    return %c0_i32, %c0_i32_0, %c0_i32_1 : i32, i32, i32
  }
  func.func @transform_4(%arg0: i32) -> (i32, i32) {
    %c0_i32 = arith.constant 0 : i32
    %c0_i32_0 = arith.constant 0 : i32
    %c0_i32_1 = arith.constant 0 : i32
    return %c0_i32, %c0_i32_0 : i32, i32
  }
  func.func @transform_5(%arg0: i32) -> (i32, i32, i32) {
    %c0_i32 = arith.constant 0 : i32
    %c0_i32_0 = arith.constant 0 : i32
    %c0_i32_1 = arith.constant 0 : i32
    %c0_i32_2 = arith.constant 0 : i32
    return %c0_i32, %c0_i32_0, %c0_i32_1 : i32, i32, i32
  }
  func.func @transform_6(%arg0: i32) -> (i32, i32, i32) {
    %c0_i32 = arith.constant 0 : i32
    %c0_i32_0 = arith.constant 0 : i32
    %c0_i32_1 = arith.constant 0 : i32
    %c0_i32_2 = arith.constant 0 : i32
    return %c0_i32, %c0_i32_0, %c0_i32_1 : i32, i32, i32
  }
  func.func @transform_7(%arg0: i32) -> (i32, i32) {
    %c0_i32 = arith.constant 0 : i32
    %c0_i32_0 = arith.constant 0 : i32
    %c0_i32_1 = arith.constant 0 : i32
    return %c0_i32, %c0_i32_0 : i32, i32
  }
  func.func @transform_8(%arg0: i32) -> (i32, i32, i32) {
    %c0_i32 = arith.constant 0 : i32
    %c0_i32_0 = arith.constant 0 : i32
    %c0_i32_1 = arith.constant 0 : i32
    return %c0_i32, %arg0, %c0_i32_0 : i32, i32, i32
  }
}

module attributes {stable_mosaic.version = 11 : i64} {
  func.func @_band_kernel(%arg0: i32, %arg1: memref<14x16x16xf32, #tpu.memory_space<vmem>>, %arg2: memref<1x16xf32, #tpu.memory_space<vmem>>, %arg3: memref<1x16xf32, #tpu.memory_space<vmem>>, %arg4: memref<4x16x128xf32, #tpu.memory_space<vmem>>, %arg5: memref<1x128xf32, #tpu.memory_space<vmem>>, %arg6: memref<1x32x128xf32, #tpu.memory_space<vmem>>, %arg7: memref<4x32x16xf32, #tpu.memory_space<vmem>>, %arg8: memref<1x16xf32, #tpu.memory_space<vmem>>, %arg9: memref<14x16x16xf32, #tpu.memory_space<vmem>>, %arg10: memref<1x11x16x128xf32, #tpu.memory_space<vmem>>, %arg11: memref<1x16x32xf32, #tpu.memory_space<vmem>>, %arg12: memref<1x16x32xf32, #tpu.memory_space<vmem>>, %arg13: memref<1x11x16x32xf32, #tpu.memory_space<vmem>>) attributes {dimension_semantics = [#tpu.dimension_semantics<parallel>], iteration_bounds = array<i64: 2>, scalar_prefetch = 0 : i64, scratch_operands = 4 : i64, tpu.core_type = #tpu.core_type<tc>, window_params = [{transform_indices = @transform_0, window_bounds = array<i64: 14, 16, 16>}, {pipeline_mode = #tpu.pipeline_mode<synchronous>, transform_indices = @transform_1, window_bounds = array<i64: 1, 16>}, {pipeline_mode = #tpu.pipeline_mode<synchronous>, transform_indices = @transform_2, window_bounds = array<i64: 1, 16>}, {pipeline_mode = #tpu.pipeline_mode<synchronous>, transform_indices = @transform_3, window_bounds = array<i64: 4, 16, 128>}, {pipeline_mode = #tpu.pipeline_mode<synchronous>, transform_indices = @transform_4, window_bounds = array<i64: 1, 128>}, {pipeline_mode = #tpu.pipeline_mode<synchronous>, transform_indices = @transform_5, window_bounds = array<i64: 1, 32, 128>}, {pipeline_mode = #tpu.pipeline_mode<synchronous>, transform_indices = @transform_6, window_bounds = array<i64: 4, 32, 16>}, {pipeline_mode = #tpu.pipeline_mode<synchronous>, transform_indices = @transform_7, window_bounds = array<i64: 1, 16>}, {transform_indices = @transform_8, window_bounds = array<i64: 14, 16, 16>}]} {
    %c0 = arith.constant 0 : index
    %c0_0 = arith.constant 0 : index
    %c0_1 = arith.constant 0 : index
    %0 = vector.load %arg1[%c0, %c0_0, %c0_1] : memref<14x16x16xf32, #tpu.memory_space<vmem>>, vector<14x16x16xf32>
    %cst = arith.constant dense<0.000000e+00> : vector<14x16xf32>
    %1 = vector.multi_reduction <add>, %0, %cst [2] : vector<14x16x16xf32> to vector<14x16xf32>
    %2 = vector.shape_cast %1 : vector<14x16xf32> to vector<14x16x1xf32>
    %cst_2 = arith.constant 1.600000e+01 : f32
    %3 = vector.broadcast %cst_2 : f32 to vector<14x16x1xf32>
    %4 = arith.divf %2, %3 : vector<14x16x1xf32>
    %5 = vector.broadcast %4 : vector<14x16x1xf32> to vector<14x16x16xf32>
    %6 = arith.subf %0, %5 : vector<14x16x16xf32>
    %7 = arith.mulf %6, %6 : vector<14x16x16xf32>
    %cst_3 = arith.constant dense<0.000000e+00> : vector<14x16xf32>
    %8 = vector.multi_reduction <add>, %7, %cst_3 [2] : vector<14x16x16xf32> to vector<14x16xf32>
    %9 = vector.shape_cast %8 : vector<14x16xf32> to vector<14x16x1xf32>
    %cst_4 = arith.constant 1.600000e+01 : f32
    %10 = vector.broadcast %cst_4 : f32 to vector<14x16x1xf32>
    %11 = arith.divf %9, %10 : vector<14x16x1xf32>
    %12 = vector.broadcast %4 : vector<14x16x1xf32> to vector<14x16x16xf32>
    %13 = arith.subf %0, %12 : vector<14x16x16xf32>
    %cst_5 = arith.constant 9.99999974E-6 : f32
    %14 = vector.broadcast %cst_5 : f32 to vector<14x16x1xf32>
    %15 = arith.addf %11, %14 : vector<14x16x1xf32>
    %16 = math.rsqrt %15 : vector<14x16x1xf32>
    %17 = vector.broadcast %16 : vector<14x16x1xf32> to vector<14x16x16xf32>
    %18 = arith.mulf %13, %17 : vector<14x16x16xf32>
    %c0_6 = arith.constant 0 : index
    %c0_7 = arith.constant 0 : index
    %19 = vector.load %arg2[%c0_6, %c0_7] : memref<1x16xf32, #tpu.memory_space<vmem>>, vector<1x16xf32>
    %20 = vector.shape_cast %19 : vector<1x16xf32> to vector<1x1x16xf32>
    %21 = vector.broadcast %20 : vector<1x1x16xf32> to vector<14x16x16xf32>
    %22 = arith.mulf %18, %21 : vector<14x16x16xf32>
    %c0_8 = arith.constant 0 : index
    %c0_9 = arith.constant 0 : index
    %23 = vector.load %arg3[%c0_8, %c0_9] : memref<1x16xf32, #tpu.memory_space<vmem>>, vector<1x16xf32>
    %24 = vector.shape_cast %23 : vector<1x16xf32> to vector<1x1x16xf32>
    %25 = vector.broadcast %24 : vector<1x1x16xf32> to vector<14x16x16xf32>
    %26 = arith.addf %22, %25 : vector<14x16x16xf32>
    %27 = arith.truncf %26 : vector<14x16x16xf32> to vector<14x16x16xbf16>
    %c0_10 = arith.constant 0 : index
    %c0_11 = arith.constant 0 : index
    %c0_12 = arith.constant 0 : index
    %28 = vector.load %arg4[%c0_10, %c0_11, %c0_12] : memref<4x16x128xf32, #tpu.memory_space<vmem>>, vector<4x16x128xf32>
    %29 = arith.truncf %28 : vector<4x16x128xf32> to vector<4x16x128xbf16>
    %30 = vector.extract_strided_slice %27 {offsets = [0, 0, 0], sizes = [11, 16, 16], strides = [1, 1, 1]} : vector<14x16x16xbf16> to vector<11x16x16xbf16>
    %31 = vector.extract_strided_slice %29 {offsets = [0, 0, 0], sizes = [1, 16, 128], strides = [1, 1, 1]} : vector<4x16x128xbf16> to vector<1x16x128xbf16>
    %32 = vector.shape_cast %31 : vector<1x16x128xbf16> to vector<16x128xbf16>
    %cst_13 = arith.constant dense<0.000000e+00> : vector<11x16x128xf32>
    %33 = tpu.matmul %30, %32, %cst_13 {dimension_numbers = #tpu.dot_dimension_numbers<[2], [0], [0, 1], [1], [0, 0, 0, 1, 1, 1], [], []>} : vector<11x16x16xbf16>, vector<16x128xbf16>, vector<11x16x128xf32> -> vector<11x16x128xf32>
    %34 = vector.extract_strided_slice %27 {offsets = [1, 0, 0], sizes = [11, 16, 16], strides = [1, 1, 1]} : vector<14x16x16xbf16> to vector<11x16x16xbf16>
    %35 = vector.extract_strided_slice %29 {offsets = [1, 0, 0], sizes = [1, 16, 128], strides = [1, 1, 1]} : vector<4x16x128xbf16> to vector<1x16x128xbf16>
    %36 = vector.shape_cast %35 : vector<1x16x128xbf16> to vector<16x128xbf16>
    %cst_14 = arith.constant dense<0.000000e+00> : vector<11x16x128xf32>
    %37 = tpu.matmul %34, %36, %cst_14 {dimension_numbers = #tpu.dot_dimension_numbers<[2], [0], [0, 1], [1], [0, 0, 0, 1, 1, 1], [], []>} : vector<11x16x16xbf16>, vector<16x128xbf16>, vector<11x16x128xf32> -> vector<11x16x128xf32>
    %38 = arith.addf %33, %37 : vector<11x16x128xf32>
    %39 = vector.extract_strided_slice %27 {offsets = [2, 0, 0], sizes = [11, 16, 16], strides = [1, 1, 1]} : vector<14x16x16xbf16> to vector<11x16x16xbf16>
    %40 = vector.extract_strided_slice %29 {offsets = [2, 0, 0], sizes = [1, 16, 128], strides = [1, 1, 1]} : vector<4x16x128xbf16> to vector<1x16x128xbf16>
    %41 = vector.shape_cast %40 : vector<1x16x128xbf16> to vector<16x128xbf16>
    %cst_15 = arith.constant dense<0.000000e+00> : vector<11x16x128xf32>
    %42 = tpu.matmul %39, %41, %cst_15 {dimension_numbers = #tpu.dot_dimension_numbers<[2], [0], [0, 1], [1], [0, 0, 0, 1, 1, 1], [], []>} : vector<11x16x16xbf16>, vector<16x128xbf16>, vector<11x16x128xf32> -> vector<11x16x128xf32>
    %43 = arith.addf %38, %42 : vector<11x16x128xf32>
    %44 = vector.extract_strided_slice %27 {offsets = [3, 0, 0], sizes = [11, 16, 16], strides = [1, 1, 1]} : vector<14x16x16xbf16> to vector<11x16x16xbf16>
    %45 = vector.extract_strided_slice %29 {offsets = [3, 0, 0], sizes = [1, 16, 128], strides = [1, 1, 1]} : vector<4x16x128xbf16> to vector<1x16x128xbf16>
    %46 = vector.shape_cast %45 : vector<1x16x128xbf16> to vector<16x128xbf16>
    %cst_16 = arith.constant dense<0.000000e+00> : vector<11x16x128xf32>
    %47 = tpu.matmul %44, %46, %cst_16 {dimension_numbers = #tpu.dot_dimension_numbers<[2], [0], [0, 1], [1], [0, 0, 0, 1, 1, 1], [], []>} : vector<11x16x16xbf16>, vector<16x128xbf16>, vector<11x16x128xf32> -> vector<11x16x128xf32>
    %48 = arith.addf %43, %47 : vector<11x16x128xf32>
    %c0_17 = arith.constant 0 : index
    %c0_18 = arith.constant 0 : index
    %49 = vector.load %arg5[%c0_17, %c0_18] : memref<1x128xf32, #tpu.memory_space<vmem>>, vector<1x128xf32>
    %50 = vector.shape_cast %49 : vector<1x128xf32> to vector<1x1x128xf32>
    %51 = vector.broadcast %50 : vector<1x1x128xf32> to vector<11x16x128xf32>
    %52 = arith.addf %48, %51 : vector<11x16x128xf32>
    %53 = vector.extract_strided_slice %52 {offsets = [0, 0, 0], sizes = [11, 16, 128], strides = [1, 1, 1]} : vector<11x16x128xf32> to vector<11x16x128xf32>
    %c0_19 = arith.constant 0 : index
    %c0_20 = arith.constant 0 : index
    %c0_21 = arith.constant 0 : index
    %c0_22 = arith.constant 0 : index
    %54 = vector.load %arg10[%c0_19, %c0_20, %c0_21, %c0_22] : memref<1x11x16x128xf32, #tpu.memory_space<vmem>>, vector<1x11x16x128xf32>
    %55 = vector.shape_cast %54 : vector<1x11x16x128xf32> to vector<11x16x128xf32>
    %56 = vector.shape_cast %53 : vector<11x16x128xf32> to vector<1x11x16x128xf32>
    tpu.vector_store %arg10[%c0_19, %c0_20, %c0_21, %c0_22], %56 {strides = array<i32>} : memref<1x11x16x128xf32, #tpu.memory_space<vmem>>, vector<1x11x16x128xf32>,
    %cst_23 = arith.constant 0.000000e+00 : f32
    %57 = vector.broadcast %cst_23 : f32 to vector<1x16x32xf32>
    %c0_24 = arith.constant 0 : index
    %c0_25 = arith.constant 0 : index
    %c0_26 = arith.constant 0 : index
    %58 = vector.load %arg11[%c0_24, %c0_25, %c0_26] : memref<1x16x32xf32, #tpu.memory_space<vmem>>, vector<1x16x32xf32>
    tpu.vector_store %arg11[%c0_24, %c0_25, %c0_26], %57 {strides = array<i32>} : memref<1x16x32xf32, #tpu.memory_space<vmem>>, vector<1x16x32xf32>,
    %cst_27 = arith.constant 0.000000e+00 : f32
    %59 = vector.broadcast %cst_27 : f32 to vector<1x16x32xf32>
    %c0_28 = arith.constant 0 : index
    %c0_29 = arith.constant 0 : index
    %c0_30 = arith.constant 0 : index
    %60 = vector.load %arg12[%c0_28, %c0_29, %c0_30] : memref<1x16x32xf32, #tpu.memory_space<vmem>>, vector<1x16x32xf32>
    tpu.vector_store %arg12[%c0_28, %c0_29, %c0_30], %59 {strides = array<i32>} : memref<1x16x32xf32, #tpu.memory_space<vmem>>, vector<1x16x32xf32>,
    %c0_31 = arith.constant 0 : index
    %c0_32 = arith.constant 0 : index
    %c0_33 = arith.constant 0 : index
    %61 = vector.load %arg6[%c0_31, %c0_32, %c0_33] : memref<1x32x128xf32, #tpu.memory_space<vmem>>, vector<1x32x128xf32>
    %62 = vector.shape_cast %61 : vector<1x32x128xf32> to vector<32x128xf32>
    %63 = arith.truncf %62 : vector<32x128xf32> to vector<32x128xbf16>
    %c0_i32 = arith.constant 0 : i32
    %c11_i32 = arith.constant 11 : i32
    %64 = arith.addi %c0_i32, %c11_i32 : i32
    %c1_i32 = arith.constant 1 : i32
    scf.for %arg14 = %c0_i32 to %64 step %c1_i32  : i32 {
      %c0_75 = arith.constant 0 : index
      %104 = arith.index_cast %arg14 : i32 to index
      %c0_76 = arith.constant 0 : index
      %c0_77 = arith.constant 0 : index
      %105 = vector.load %arg10[%c0_75, %104, %c0_76, %c0_77] : memref<1x11x16x128xf32, #tpu.memory_space<vmem>>, vector<1x1x16x128xf32>
      %106 = vector.shape_cast %105 : vector<1x1x16x128xf32> to vector<16x128xf32>
      %c0_78 = arith.constant 0 : index
      %c0_79 = arith.constant 0 : index
      %c0_80 = arith.constant 0 : index
      %107 = vector.load %arg11[%c0_78, %c0_79, %c0_80] : memref<1x16x32xf32, #tpu.memory_space<vmem>>, vector<1x16x32xf32>
      %108 = vector.shape_cast %107 : vector<1x16x32xf32> to vector<16x32xf32>
      %109 = arith.truncf %108 : vector<16x32xf32> to vector<16x32xbf16>
      %cst_81 = arith.constant dense<0.000000e+00> : vector<16x128xf32>
      %110 = tpu.matmul %109, %63, %cst_81 {dimension_numbers = #tpu.dot_dimension_numbers<[1], [0], [0], [1], [0, 0, 1, 1], [], []>} : vector<16x32xbf16>, vector<32x128xbf16>, vector<16x128xf32> -> vector<16x128xf32>
      %111 = arith.addf %106, %110 : vector<16x128xf32>
      %112 = vector.extract_strided_slice %111 {offsets = [0, 0], sizes = [16, 32], strides = [1, 1]} : vector<16x128xf32> to vector<16x32xf32>
      %113 = arith.negf %112 : vector<16x32xf32>
      %114 = math.exp %113 : vector<16x32xf32>
      %cst_82 = arith.constant 1.000000e+00 : f32
      %115 = vector.broadcast %cst_82 : f32 to vector<16x32xf32>
      %116 = arith.addf %115, %114 : vector<16x32xf32>
      %117 = arith.divf %115, %116 : vector<16x32xf32>
      %118 = vector.extract_strided_slice %111 {offsets = [0, 32], sizes = [16, 32], strides = [1, 1]} : vector<16x128xf32> to vector<16x32xf32>
      %119 = arith.negf %118 : vector<16x32xf32>
      %120 = math.exp %119 : vector<16x32xf32>
      %cst_83 = arith.constant 1.000000e+00 : f32
      %121 = vector.broadcast %cst_83 : f32 to vector<16x32xf32>
      %122 = arith.addf %121, %120 : vector<16x32xf32>
      %123 = arith.divf %121, %122 : vector<16x32xf32>
      %124 = vector.extract_strided_slice %111 {offsets = [0, 64], sizes = [16, 32], strides = [1, 1]} : vector<16x128xf32> to vector<16x32xf32>
      %125 = math.tanh %124 : vector<16x32xf32>
      %126 = vector.extract_strided_slice %111 {offsets = [0, 96], sizes = [16, 32], strides = [1, 1]} : vector<16x128xf32> to vector<16x32xf32>
      %127 = arith.negf %126 : vector<16x32xf32>
      %128 = math.exp %127 : vector<16x32xf32>
      %cst_84 = arith.constant 1.000000e+00 : f32
      %129 = vector.broadcast %cst_84 : f32 to vector<16x32xf32>
      %130 = arith.addf %129, %128 : vector<16x32xf32>
      %131 = arith.divf %129, %130 : vector<16x32xf32>
      %c0_85 = arith.constant 0 : index
      %c0_86 = arith.constant 0 : index
      %c0_87 = arith.constant 0 : index
      %132 = vector.load %arg12[%c0_85, %c0_86, %c0_87] : memref<1x16x32xf32, #tpu.memory_space<vmem>>, vector<1x16x32xf32>
      %133 = vector.shape_cast %132 : vector<1x16x32xf32> to vector<16x32xf32>
      %134 = arith.mulf %123, %133 : vector<16x32xf32>
      %135 = arith.mulf %117, %125 : vector<16x32xf32>
      %136 = arith.addf %134, %135 : vector<16x32xf32>
      %137 = math.tanh %136 : vector<16x32xf32>
      %138 = arith.mulf %131, %137 : vector<16x32xf32>
      %c0_88 = arith.constant 0 : index
      %c0_89 = arith.constant 0 : index
      %c0_90 = arith.constant 0 : index
      %139 = vector.load %arg12[%c0_88, %c0_89, %c0_90] : memref<1x16x32xf32, #tpu.memory_space<vmem>>, vector<1x16x32xf32>
      %140 = vector.shape_cast %139 : vector<1x16x32xf32> to vector<16x32xf32>
      %141 = vector.shape_cast %136 : vector<16x32xf32> to vector<1x16x32xf32>
      tpu.vector_store %arg12[%c0_88, %c0_89, %c0_90], %141 {strides = array<i32>} : memref<1x16x32xf32, #tpu.memory_space<vmem>>, vector<1x16x32xf32>,
      %c0_91 = arith.constant 0 : index
      %c0_92 = arith.constant 0 : index
      %c0_93 = arith.constant 0 : index
      %142 = vector.load %arg11[%c0_91, %c0_92, %c0_93] : memref<1x16x32xf32, #tpu.memory_space<vmem>>, vector<1x16x32xf32>
      %143 = vector.shape_cast %142 : vector<1x16x32xf32> to vector<16x32xf32>
      %144 = vector.shape_cast %138 : vector<16x32xf32> to vector<1x16x32xf32>
      tpu.vector_store %arg11[%c0_91, %c0_92, %c0_93], %144 {strides = array<i32>} : memref<1x16x32xf32, #tpu.memory_space<vmem>>, vector<1x16x32xf32>,
      %c0_94 = arith.constant 0 : index
      %145 = arith.index_cast %arg14 : i32 to index
      %c0_95 = arith.constant 0 : index
      %c0_96 = arith.constant 0 : index
      %146 = vector.load %arg13[%c0_94, %145, %c0_95, %c0_96] : memref<1x11x16x32xf32, #tpu.memory_space<vmem>>, vector<1x1x16x32xf32>
      %147 = vector.shape_cast %146 : vector<1x1x16x32xf32> to vector<16x32xf32>
      %148 = vector.shape_cast %138 : vector<16x32xf32> to vector<1x1x16x32xf32>
      tpu.vector_store %arg13[%c0_94, %145, %c0_95, %c0_96], %148 {strides = array<i32>} : memref<1x11x16x32xf32, #tpu.memory_space<vmem>>, vector<1x1x16x32xf32>,
    }
    %c11_i32_34 = arith.constant 11 : i32
    %c0_35 = arith.constant 0 : index
    %c0_36 = arith.constant 0 : index
    %c0_37 = arith.constant 0 : index
    %65 = vector.load %arg1[%c0_35, %c0_36, %c0_37] : memref<14x16x16xf32, #tpu.memory_space<vmem>>, vector<14x16x16xf32>
    %c0_38 = arith.constant 0 : index
    %c0_39 = arith.constant 0 : index
    %66 = vector.load %arg8[%c0_38, %c0_39] : memref<1x16xf32, #tpu.memory_space<vmem>>, vector<1x16xf32>
    %67 = vector.shape_cast %66 : vector<1x16xf32> to vector<1x1x16xf32>
    %68 = vector.broadcast %67 : vector<1x1x16xf32> to vector<14x16x16xf32>
    %69 = arith.addf %65, %68 : vector<14x16x16xf32>
    %c0_40 = arith.constant 0 : index
    %c0_41 = arith.constant 0 : index
    %c0_42 = arith.constant 0 : index
    %70 = vector.load %arg9[%c0_40, %c0_41, %c0_42] : memref<14x16x16xf32, #tpu.memory_space<vmem>>, vector<14x16x16xf32>
    tpu.vector_store %arg9[%c0_40, %c0_41, %c0_42], %69 {strides = array<i32>} : memref<14x16x16xf32, #tpu.memory_space<vmem>>, vector<14x16x16xf32>,
    %c0_43 = arith.constant 0 : index
    %c0_44 = arith.constant 0 : index
    %c0_45 = arith.constant 0 : index
    %71 = vector.load %arg7[%c0_43, %c0_44, %c0_45] : memref<4x32x16xf32, #tpu.memory_space<vmem>>, vector<4x32x16xf32>
    %72 = arith.truncf %71 : vector<4x32x16xf32> to vector<4x32x16xbf16>
    %c0_46 = arith.constant 0 : index
    %c0_47 = arith.constant 0 : index
    %c0_48 = arith.constant 0 : index
    %c0_49 = arith.constant 0 : index
    %73 = vector.load %arg13[%c0_46, %c0_47, %c0_48, %c0_49] : memref<1x11x16x32xf32, #tpu.memory_space<vmem>>, vector<1x11x16x32xf32>
    %74 = vector.shape_cast %73 : vector<1x11x16x32xf32> to vector<11x16x32xf32>
    %75 = arith.truncf %74 : vector<11x16x32xf32> to vector<11x16x32xbf16>
    %76 = vector.extract_strided_slice %72 {offsets = [0, 0, 0], sizes = [1, 32, 16], strides = [1, 1, 1]} : vector<4x32x16xbf16> to vector<1x32x16xbf16>
    %77 = vector.shape_cast %76 : vector<1x32x16xbf16> to vector<32x16xbf16>
    %78 = vector.extract_strided_slice %77 {offsets = [0, 0], sizes = [32, 16], strides = [1, 1]} : vector<32x16xbf16> to vector<32x16xbf16>
    %cst_50 = arith.constant dense<0.000000e+00> : vector<11x16x16xf32>
    %79 = tpu.matmul %75, %78, %cst_50 {dimension_numbers = #tpu.dot_dimension_numbers<[2], [0], [0, 1], [1], [0, 0, 0, 1, 1, 1], [], []>} : vector<11x16x32xbf16>, vector<32x16xbf16>, vector<11x16x16xf32> -> vector<11x16x16xf32>
    %c0_51 = arith.constant 0 : index
    %c0_52 = arith.constant 0 : index
    %c0_53 = arith.constant 0 : index
    %80 = vector.load %arg9[%c0_51, %c0_52, %c0_53] : memref<14x16x16xf32, #tpu.memory_space<vmem>>, vector<11x16x16xf32>
    %81 = arith.addf %80, %79 : vector<11x16x16xf32>
    %c0_54 = arith.constant 0 : index
    %c0_55 = arith.constant 0 : index
    %c0_56 = arith.constant 0 : index
    %82 = vector.load %arg9[%c0_54, %c0_55, %c0_56] : memref<14x16x16xf32, #tpu.memory_space<vmem>>, vector<11x16x16xf32>
    tpu.vector_store %arg9[%c0_54, %c0_55, %c0_56], %81 {strides = array<i32>} : memref<14x16x16xf32, #tpu.memory_space<vmem>>, vector<11x16x16xf32>,
    %83 = vector.extract_strided_slice %72 {offsets = [1, 0, 0], sizes = [1, 32, 16], strides = [1, 1, 1]} : vector<4x32x16xbf16> to vector<1x32x16xbf16>
    %84 = vector.shape_cast %83 : vector<1x32x16xbf16> to vector<32x16xbf16>
    %85 = vector.extract_strided_slice %84 {offsets = [0, 0], sizes = [32, 16], strides = [1, 1]} : vector<32x16xbf16> to vector<32x16xbf16>
    %cst_57 = arith.constant dense<0.000000e+00> : vector<11x16x16xf32>
    %86 = tpu.matmul %75, %85, %cst_57 {dimension_numbers = #tpu.dot_dimension_numbers<[2], [0], [0, 1], [1], [0, 0, 0, 1, 1, 1], [], []>} : vector<11x16x32xbf16>, vector<32x16xbf16>, vector<11x16x16xf32> -> vector<11x16x16xf32>
    %c1 = arith.constant 1 : index
    %c0_58 = arith.constant 0 : index
    %c0_59 = arith.constant 0 : index
    %87 = vector.load %arg9[%c1, %c0_58, %c0_59] : memref<14x16x16xf32, #tpu.memory_space<vmem>>, vector<11x16x16xf32>
    %88 = arith.addf %87, %86 : vector<11x16x16xf32>
    %c1_60 = arith.constant 1 : index
    %c0_61 = arith.constant 0 : index
    %c0_62 = arith.constant 0 : index
    %89 = vector.load %arg9[%c1_60, %c0_61, %c0_62] : memref<14x16x16xf32, #tpu.memory_space<vmem>>, vector<11x16x16xf32>
    tpu.vector_store %arg9[%c1_60, %c0_61, %c0_62], %88 {strides = array<i32>} : memref<14x16x16xf32, #tpu.memory_space<vmem>>, vector<11x16x16xf32>,
    %90 = vector.extract_strided_slice %72 {offsets = [2, 0, 0], sizes = [1, 32, 16], strides = [1, 1, 1]} : vector<4x32x16xbf16> to vector<1x32x16xbf16>
    %91 = vector.shape_cast %90 : vector<1x32x16xbf16> to vector<32x16xbf16>
    %92 = vector.extract_strided_slice %91 {offsets = [0, 0], sizes = [32, 16], strides = [1, 1]} : vector<32x16xbf16> to vector<32x16xbf16>
    %cst_63 = arith.constant dense<0.000000e+00> : vector<11x16x16xf32>
    %93 = tpu.matmul %75, %92, %cst_63 {dimension_numbers = #tpu.dot_dimension_numbers<[2], [0], [0, 1], [1], [0, 0, 0, 1, 1, 1], [], []>} : vector<11x16x32xbf16>, vector<32x16xbf16>, vector<11x16x16xf32> -> vector<11x16x16xf32>
    %c2 = arith.constant 2 : index
    %c0_64 = arith.constant 0 : index
    %c0_65 = arith.constant 0 : index
    %94 = vector.load %arg9[%c2, %c0_64, %c0_65] : memref<14x16x16xf32, #tpu.memory_space<vmem>>, vector<11x16x16xf32>
    %95 = arith.addf %94, %93 : vector<11x16x16xf32>
    %c2_66 = arith.constant 2 : index
    %c0_67 = arith.constant 0 : index
    %c0_68 = arith.constant 0 : index
    %96 = vector.load %arg9[%c2_66, %c0_67, %c0_68] : memref<14x16x16xf32, #tpu.memory_space<vmem>>, vector<11x16x16xf32>
    tpu.vector_store %arg9[%c2_66, %c0_67, %c0_68], %95 {strides = array<i32>} : memref<14x16x16xf32, #tpu.memory_space<vmem>>, vector<11x16x16xf32>,
    %97 = vector.extract_strided_slice %72 {offsets = [3, 0, 0], sizes = [1, 32, 16], strides = [1, 1, 1]} : vector<4x32x16xbf16> to vector<1x32x16xbf16>
    %98 = vector.shape_cast %97 : vector<1x32x16xbf16> to vector<32x16xbf16>
    %99 = vector.extract_strided_slice %98 {offsets = [0, 0], sizes = [32, 16], strides = [1, 1]} : vector<32x16xbf16> to vector<32x16xbf16>
    %cst_69 = arith.constant dense<0.000000e+00> : vector<11x16x16xf32>
    %100 = tpu.matmul %75, %99, %cst_69 {dimension_numbers = #tpu.dot_dimension_numbers<[2], [0], [0, 1], [1], [0, 0, 0, 1, 1, 1], [], []>} : vector<11x16x32xbf16>, vector<32x16xbf16>, vector<11x16x16xf32> -> vector<11x16x16xf32>
    %c3 = arith.constant 3 : index
    %c0_70 = arith.constant 0 : index
    %c0_71 = arith.constant 0 : index
    %101 = vector.load %arg9[%c3, %c0_70, %c0_71] : memref<14x16x16xf32, #tpu.memory_space<vmem>>, vector<11x16x16xf32>
    %102 = arith.addf %101, %100 : vector<11x16x16xf32>
    %c3_72 = arith.constant 3 : index
    %c0_73 = arith.constant 0 : index
    %c0_74 = arith.constant 0 : index
    %103 = vector.load %arg9[%c3_72, %c0_73, %c0_74] : memref<14x16x16xf32, #tpu.memory_space<vmem>>, vector<11x16x16xf32>
    tpu.vector_store %arg9[%c3_72, %c0_73, %c0_74], %102 {strides = array<i32>} : memref<14x16x16xf32, #tpu.memory_space<vmem>>, vector<11x16x16xf32>,
    return
  }
  func.func @transform_0(%arg0: i32) -> (i32, i32, i32) {
    %c0_i32 = arith.constant 0 : i32
    %c0_i32_0 = arith.constant 0 : i32
    %c0_i32_1 = arith.constant 0 : i32
    return %c0_i32, %arg0, %c0_i32_0 : i32, i32, i32
  }
  func.func @transform_1(%arg0: i32) -> (i32, i32) {
    %c0_i32 = arith.constant 0 : i32
    %c0_i32_0 = arith.constant 0 : i32
    %c0_i32_1 = arith.constant 0 : i32
    return %c0_i32, %c0_i32_0 : i32, i32
  }
  func.func @transform_2(%arg0: i32) -> (i32, i32) {
    %c0_i32 = arith.constant 0 : i32
    %c0_i32_0 = arith.constant 0 : i32
    %c0_i32_1 = arith.constant 0 : i32
    return %c0_i32, %c0_i32_0 : i32, i32
  }
  func.func @transform_3(%arg0: i32) -> (i32, i32, i32) {
    %c0_i32 = arith.constant 0 : i32
    %c0_i32_0 = arith.constant 0 : i32
    %c0_i32_1 = arith.constant 0 : i32
    %c0_i32_2 = arith.constant 0 : i32
    return %c0_i32, %c0_i32_0, %c0_i32_1 : i32, i32, i32
  }
  func.func @transform_4(%arg0: i32) -> (i32, i32) {
    %c0_i32 = arith.constant 0 : i32
    %c0_i32_0 = arith.constant 0 : i32
    %c0_i32_1 = arith.constant 0 : i32
    return %c0_i32, %c0_i32_0 : i32, i32
  }
  func.func @transform_5(%arg0: i32) -> (i32, i32, i32) {
    %c0_i32 = arith.constant 0 : i32
    %c0_i32_0 = arith.constant 0 : i32
    %c0_i32_1 = arith.constant 0 : i32
    %c0_i32_2 = arith.constant 0 : i32
    return %c0_i32, %c0_i32_0, %c0_i32_1 : i32, i32, i32
  }
  func.func @transform_6(%arg0: i32) -> (i32, i32, i32) {
    %c0_i32 = arith.constant 0 : i32
    %c0_i32_0 = arith.constant 0 : i32
    %c0_i32_1 = arith.constant 0 : i32
    %c0_i32_2 = arith.constant 0 : i32
    return %c0_i32, %c0_i32_0, %c0_i32_1 : i32, i32, i32
  }
  func.func @transform_7(%arg0: i32) -> (i32, i32) {
    %c0_i32 = arith.constant 0 : i32
    %c0_i32_0 = arith.constant 0 : i32
    %c0_i32_1 = arith.constant 0 : i32
    return %c0_i32, %c0_i32_0 : i32, i32
  }
  func.func @transform_8(%arg0: i32) -> (i32, i32, i32) {
    %c0_i32 = arith.constant 0 : i32
    %c0_i32_0 = arith.constant 0 : i32
    %c0_i32_1 = arith.constant 0 : i32
    return %c0_i32, %arg0, %c0_i32_0 : i32, i32, i32
  }
}

</mosaic_0001>

<bundles_post_ra>
// kernel: causal_intra_inter_band.3
= control target key start
LH: loop header
LB: loop body
LE: loop exit
PB: predicated region body
PF: predicated region fallthrough
CT: control target
= control target key end

     0   :  { %s3782_s27 = smov 0   ;;  %s3784_s28 = smov 0   ;;  %s5444_s0 = inlined_call_operand.vmem [shape: f32[14,32,16], index: 0, kind: input, shape index: {}]   ;;  %s5445_s1 = inlined_call_operand.vmem [shape: f32[1,16], index: 1, kind: input, shape index: {}]   ;;  %s5446_s2 = inlined_call_operand.vmem [shape: f32[1,16], index: 2, kind: input, shape index: {}]   ;;  %s5447_s3 = inlined_call_operand.vmem [shape: f32[4,16,128], index: 3, kind: input, shape index: {}]   ;;  %s5448_s4 = inlined_call_operand.vmem [shape: f32[1,128], index: 4, kind: input, shape index: {}]   ;;  %s5449_s5 = inlined_call_operand.vmem [shape: f32[1,32,128], index: 5, kind: input, shape index: {}]   ;;  %s5450_s6 = inlined_call_operand.vmem [shape: f32[4,32,16], index: 6, kind: input, shape index: {}]   ;;  %s5451_s7 = inlined_call_operand.vmem [shape: f32[1,16], index: 7, kind: input, shape index: {}]   ;;  %s5452_s8 = inlined_call_operand.vmem [shape: f32[14,32,16], index: 8, kind: output, shape index: {}]  }
   0x1   :  { %s3786_s29 = smov 0  }
   0x2 LB: > { %s2857_s30 = sadd.s32 4294967295, %s3724_s29   ;;  %s3799_s9 = sadd.s32 1, %s3724_s29   ;;  %s3724_s29 = sphi %s3786_s29, %s5456_s29   ;;  %s3720_s28 = sphi %s3784_s28, %s5455_s28   ;;  %s3716_s27 = sphi %s3782_s27, %s5454_s27  }
   0x3   : > { %s22_s10 = ssub.s32 %s3724_s29, %s3799_s9  ;;  %s25_s11 = sadd.s32 1, %s3720_s28 }
   0x4   : > { %p23_p0 = scmp.eq.s32.totalorder %s22_s10, 0  ;;  %p32_p1 = scmp.ne.s32.totalorder %s3720_s28, %s3716_s27 }
   0x5   : > { %p33_p2 = scmp.eq.s32.totalorder %s3724_s29, 0  ;;  %p209_p3 = scmp.eq.s32.totalorder %s2857_s30, 1 }
   0x6   : > { %s3810_s12 = scalar_select %p23_p0, %s3720_s28, %s25_s11  }
   0x7   : > { %p34_p4 = por %p33_p2, %p32_p1  ;;  %p3812_p5 = por %p209_p3, %p32_p1 }
   0x8   : > { %p2860_p6 = scmp.ge.s32.totalorder %s3724_s29, 2 }
   0xa   : > { %252 = sbr.rel (%p2860_p6) target bundleno = 33 (0x21), region = 44 }
   0xf   : > { %255 = sbr.rel (!%p34_p4) target bundleno = 33 (0x21), region = 48  ;;  %s257_s14 = sand.u32 (%p34_p4), 1, %s3720_s28  }
  0x10   : > { %s3096_s15 = sshll.u32 (%p34_p4), %s3724_s29, 4  ;;  %s3585_s16 = smul.u32 (%p34_p4), 224, %s257_s14 }
  0x11   : > { %s3822_s19 = scalar_lea.vmem (%p34_p4), %s5444_s0, %s3096_s15 }
  0x12   : > { %v345_v0 = vld [vmem:[%s3822_s19] sm:$0xff] (%p34_p4)  ;;  %v347_v1 = vld [vmem:[%s3822_s19 + $0x8] sm:$0xff] (%p34_p4)  ;;  %s3830_s20 = scalar_lea.vmem (%p34_p4), [#allocation6], %s3585_s16 }
  0x13   : > { %v349_v2 = vld [vmem:[%s3822_s19 + $0x20] sm:$0xff] (%p34_p4)  ;;  %v351_v3 = vld [vmem:[%s3822_s19 + $0x28] sm:$0xff] (%p34_p4)  ;;  %346 = vst [vmem:[%s3830_s20] sm:$0xff] (%p34_p4), %v345_v0  ;;  %348 = vst [vmem:[%s3830_s20 + $0x8] sm:$0xff] (%p34_p4), %v347_v1 }
  0x14   : > { %v353_v4 = vld [vmem:[%s3822_s19 + $0x40] sm:$0xff]  ;;  %v355_v5 = vld [vmem:[%s3822_s19 + $0x48] sm:$0xff]  ;;  %350 = vst [vmem:[%s3830_s20 + $0x10] sm:$0xff] %v349_v2  ;;  %352 = vst [vmem:[%s3830_s20 + $0x18] sm:$0xff] %v351_v3 }
  0x15   : > { %354 = vst [vmem:[%s3830_s20 + $0x20] sm:$0xff] %v353_v4  ;;  %356 = vst [vmem:[%s3830_s20 + $0x28] sm:$0xff] %v355_v5  ;;  %v357_v6 = vld [vmem:[%s3822_s19 + $0x60] sm:$0xff]  ;;  %v359_v7 = vld [vmem:[%s3822_s19 + $0x68] sm:$0xff] }
  0x16   : > { %v361_v8 = vld [vmem:[%s3822_s19 + $0x80] sm:$0xff]  ;;  %358 = vst [vmem:[%s3830_s20 + $0x30] sm:$0xff] %v357_v6  ;;  %360 = vst [vmem:[%s3830_s20 + $0x38] sm:$0xff] %v359_v7  ;;  %v363_v9 = vld [vmem:[%s3822_s19 + $0x88] sm:$0xff] }
  0x17   : > { %362 = vst [vmem:[%s3830_s20 + $0x40] sm:$0xff] %v361_v8  ;;  %v365_v10 = vld [vmem:[%s3822_s19 + $0xa0] sm:$0xff]  ;;  %v367_v11 = vld [vmem:[%s3822_s19 + $0xa8] sm:$0xff]  ;;  %364 = vst [vmem:[%s3830_s20 + $0x48] sm:$0xff] %v363_v9 }
  0x18   : > { %366 = vst [vmem:[%s3830_s20 + $0x50] sm:$0xff] %v365_v10  ;;  %368 = vst [vmem:[%s3830_s20 + $0x58] sm:$0xff] %v367_v11  ;;  %v369_v12 = vld [vmem:[%s3822_s19 + $0xc0] sm:$0xff]  ;;  %v371_v13 = vld [vmem:[%s3822_s19 + $0xc8] sm:$0xff] }
  0x19   : > { %v373_v14 = vld [vmem:[%s3822_s19 + $0xe0] sm:$0xff]  ;;  %370 = vst [vmem:[%s3830_s20 + $0x60] sm:$0xff] %v369_v12  ;;  %372 = vst [vmem:[%s3830_s20 + $0x68] sm:$0xff] %v371_v13  ;;  %v375_v15 = vld [vmem:[%s3822_s19 + $0xe8] sm:$0xff] }
  0x1a   : > { %374 = vst [vmem:[%s3830_s20 + $0x70] sm:$0xff] %v373_v14  ;;  %v377_v16 = vld [vmem:[%s3822_s19 + $0x100] sm:$0xff]  ;;  %v379_v17 = vld [vmem:[%s3822_s19 + $0x108] sm:$0xff]  ;;  %376 = vst [vmem:[%s3830_s20 + $0x78] sm:$0xff] %v375_v15 }
  0x1b   : > { %378 = vst [vmem:[%s3830_s20 + $0x80] sm:$0xff] %v377_v16  ;;  %380 = vst [vmem:[%s3830_s20 + $0x88] sm:$0xff] %v379_v17  ;;  %v381_v18 = vld [vmem:[%s3822_s19 + $0x120] sm:$0xff]  ;;  %v383_v19 = vld [vmem:[%s3822_s19 + $0x128] sm:$0xff] }
  0x1c   : > { %v385_v20 = vld [vmem:[%s3822_s19 + $0x140] sm:$0xff]  ;;  %382 = vst [vmem:[%s3830_s20 + $0x90] sm:$0xff] %v381_v18  ;;  %384 = vst [vmem:[%s3830_s20 + $0x98] sm:$0xff] %v383_v19  ;;  %v387_v21 = vld [vmem:[%s3822_s19 + $0x148] sm:$0xff] }
  0x1d   : > { %386 = vst [vmem:[%s3830_s20 + $0xa0] sm:$0xff] %v385_v20  ;;  %v389_v22 = vld [vmem:[%s3822_s19 + $0x160] sm:$0xff]  ;;  %v391_v23 = vld [vmem:[%s3822_s19 + $0x168] sm:$0xff]  ;;  %388 = vst [vmem:[%s3830_s20 + $0xa8] sm:$0xff] %v387_v21 }
  0x1e   : > { %390 = vst [vmem:[%s3830_s20 + $0xb0] sm:$0xff] %v389_v22  ;;  %392 = vst [vmem:[%s3830_s20 + $0xb8] sm:$0xff] %v391_v23  ;;  %v393_v24 = vld [vmem:[%s3822_s19 + $0x180] sm:$0xff]  ;;  %v395_v25 = vld [vmem:[%s3822_s19 + $0x188] sm:$0xff] }
  0x1f   : > { %v397_v26 = vld [vmem:[%s3822_s19 + $0x1a0] sm:$0xff]  ;;  %394 = vst [vmem:[%s3830_s20 + $0xc0] sm:$0xff] %v393_v24  ;;  %396 = vst [vmem:[%s3830_s20 + $0xc8] sm:$0xff] %v395_v25  ;;  %v399_v27 = vld [vmem:[%s3822_s19 + $0x1a8] sm:$0xff] }
  0x20   : > { %398 = vst [vmem:[%s3830_s20 + $0xd0] sm:$0xff] %v397_v26  ;;  %400 = vst [vmem:[%s3830_s20 + $0xd8] sm:$0xff] %v399_v27 }
  0x21 PF: > { %p2863_p7 = scmp.ge.s32.totalorder %s3724_s29, 1  ;;  %p405_p8 = scmp.lt.s32.totalorder %s3724_s29, 3 }
  0x23   : > { %p406_p9 = pnand %p2863_p7, %p405_p8 }
  0x24   : > { %s412_s21 = sand.u32 (!%p406_p9), 1, %s3716_s27   ;;  %s4698_s27 = smov (!%p406_p9), 0  }
  0x25   : > { %409 = sbr.rel (%p406_p9) target bundleno = 1967 (0x7af), region = 86 }
  0x26   : > { %s3885_s22 = smul.u32 (!%p406_p9), 224, %s412_s21 }
  0x28   : > { %s3888_s23 = scalar_lea.vmem (!%p406_p9), [#allocation6], %s3885_s22  ;;  %s4696_s26 = scalar_lea.vmem (!%p406_p9), [#allocation7], %s3885_s22 }
  0x2a   : > { %vm475_vm0 = vcmask 130048   ;;  %v3891_v28 = vld [vmem:[%s3888_s23 + $0x10] sm:$0xff]  ;;  %v3894_v29 = vld [vmem:[%s3888_s23 + $0x18] sm:$0xff]  ;;  %v3897_v30 = vld [vmem:[%s3888_s23] sm:$0xff]  ;;  %vm3731_vm1 = vmmov 0   ;;  %vm1558_vm2 = vcmask 261120  }
  0x2b   : > { %v482_v31 = vsel %vm475_vm0, %v3891_v28, 0.0  ;;  %v476_v32 = vsel %vm475_vm0, %v3897_v30, 0.0  ;;  %v3904_v33 = vld [vmem:[%s3888_s23 + $0x8] sm:$0xff]  ;;  %v485_v34 = vsel %vm475_vm0, %v3894_v29, 0.0  ;;  %v3911_v36 = vld [vmem:[%s3888_s23 + $0x20] sm:$0xff]  ;;  %v3921_v40 = vld [vmem:[%s3888_s23 + $0x30] sm:$0xff] }
  0x2c   : > { %483 = vadd.xlane.f32.xlu0 %v482_v31  ;;  %477 = vadd.xlane.f32.xlu1 %v476_v32  ;;  %v479_v35 = vsel %vm475_vm0, %v3904_v33, 0.0  ;;  %v3914_v37 = vld [vmem:[%s3888_s23 + $0x28] sm:$0xff]  ;;  %v488_v38 = vsel %vm475_vm0, %v3911_v36, 0.0  ;;  %v3924_v41 = vld [vmem:[%s3888_s23 + $0x38] sm:$0xff]  ;;  %v494_v42 = vsel %vm475_vm0, %v3921_v40, 0.0  ;;  %v3931_v44 = vld [vmem:[%s3888_s23 + $0x40] sm:$0xff] }
  0x2d   : > { %v491_v39 = vsel %vm475_vm0, %v3914_v37, 0.0  ;;  %v497_v43 = vsel %vm475_vm0, %v3924_v41, 0.0  ;;  %v3934_v45 = vld [vmem:[%s3888_s23 + $0x48] sm:$0xff]  ;;  %v500_v46 = vsel %vm475_vm0, %v3931_v44, 0.0  ;;  %v3941_v48 = vld [vmem:[%s3888_s23 + $0x50] sm:$0xff]  ;;  %v3944_v49 = vld [vmem:[%s3888_s23 + $0x58] sm:$0xff] }
  0x2e   : > { %v503_v47 = vsel %vm475_vm0, %v3934_v45, 0.0  ;;  %v506_v50 = vsel %vm475_vm0, %v3941_v48, 0.0  ;;  %v509_v51 = vsel %vm475_vm0, %v3944_v49, 0.0  ;;  %v3951_v52 = vld [vmem:[%s3888_s23 + $0x60] sm:$0xff]  ;;  %v3954_v53 = vld [vmem:[%s3888_s23 + $0x68] sm:$0xff]  ;;  %v3961_v56 = vld [vmem:[%s3888_s23 + $0x70] sm:$0xff] }
  0x2f   : > { %v512_v54 = vsel %vm475_vm0, %v3951_v52, 0.0  ;;  %v515_v55 = vsel %vm475_vm0, %v3954_v53, 0.0  ;;  %v3964_v57 = vld [vmem:[%s3888_s23 + $0x78] sm:$0xff]  ;;  %v518_v58 = vsel %vm475_vm0, %v3961_v56, 0.0  ;;  %v3971_v60 = vld [vmem:[%s3888_s23 + $0x80] sm:$0xff]  ;;  %v3974_v61 = vld [vmem:[%s3888_s23 + $0x88] sm:$0xff] }
  0x30   : > { %486 = vadd.xlane.f32.xlu0 %v485_v34  ;;  %480 = vadd.xlane.f32.xlu1 %v479_v35  ;;  %v521_v59 = vsel %vm475_vm0, %v3964_v57, 0.0  ;;  %v524_v62 = vsel %vm475_vm0, %v3971_v60, 0.0  ;;  %v527_v63 = vsel %vm475_vm0, %v3974_v61, 0.0  ;;  %v3981_v0 = vld [vmem:[%s3888_s23 + $0x90] sm:$0xff]  ;;  %v3984_v1 = vld [vmem:[%s3888_s23 + $0x98] sm:$0xff]  ;;  %v3991_v4 = vld [vmem:[%s3888_s23 + $0xa0] sm:$0xff] }
  0x31   : > { %v530_v2 = vsel %vm475_vm0, %v3981_v0, 0.0  ;;  %v533_v3 = vsel %vm475_vm0, %v3984_v1, 0.0  ;;  %v3994_v5 = vld [vmem:[%s3888_s23 + $0xa8] sm:$0xff]  ;;  %v536_v6 = vsel %vm475_vm0, %v3991_v4, 0.0 }
  0x32   : > { %v539_v7 = vsel %vm475_vm0, %v3994_v5, 0.0 }
  0x34   : > { %489 = vadd.xlane.f32.xlu0 %v488_v38  ;;  %492 = vadd.xlane.f32.xlu1 %v491_v39 }
  0x38   : > { %495 = vadd.xlane.f32.xlu0 %v494_v42  ;;  %498 = vadd.xlane.f32.xlu1 %v497_v43 }
  0x3c   : > { %501 = vadd.xlane.f32.xlu0 %v500_v46  ;;  %504 = vadd.xlane.f32.xlu1 %v503_v47 }
  0x40   : > { %507 = vadd.xlane.f32.xlu0 %v506_v50  ;;  %510 = vadd.xlane.f32.xlu1 %v509_v51 }
  0x44   : > { %513 = vadd.xlane.f32.xlu0 %v512_v54  ;;  %516 = vadd.xlane.f32.xlu1 %v515_v55 }
  0x48   : > { %519 = vadd.xlane.f32.xlu0 %v518_v58  ;;  %522 = vadd.xlane.f32.xlu1 %v521_v59 }
  0x4c   : > { %525 = vadd.xlane.f32.xlu0 %v524_v62  ;;  %528 = vadd.xlane.f32.xlu1 %v527_v63 }
  0x50   : > { %531 = vadd.xlane.f32.xlu0 %v530_v2  ;;  %534 = vadd.xlane.f32.xlu1 %v533_v3 }
  0x54   : > { %537 = vadd.xlane.f32.xlu0 %v536_v6  ;;  %540 = vadd.xlane.f32.xlu1 %v539_v7 }
  0xb5   : > { %v484_v8 = vpop.xlane.xlu0 %483  ;;  %v478_v9 = vpop.xlane.xlu1 %477 }
  0xb6   : > { %v563_v10 = vmul.f32 0.0625, %v484_v8  ;;  %v561_v11 = vmul.f32 0.0625, %v478_v9 }
  0xb8   : > { %v4001_v12 = vsub.f32 %v3891_v28, %v563_v10  ;;  %v4004_v13 = vsub.f32 %v3897_v30, %v561_v11  ;;  %v4021_v28 = vld [vmem:[%s3888_s23 + $0xb0] sm:$0xff] }
  0xb9   : > { %v487_v14 = vpop.xlane.xlu0 %486  ;;  %v481_v15 = vpop.xlane.xlu1 %480  ;;  %v542_v34 = vsel %vm475_vm0, %v4021_v28, 0.0 }
  0xba   : > { %v564_v16 = vmul.f32 0.0625, %v487_v14  ;;  %v619_v17 = vmul.f32 %v4001_v12, %v4001_v12  ;;  %v562_v18 = vmul.f32 0.0625, %v481_v15  ;;  %v617_v19 = vmul.f32 %v4004_v13, %v4004_v13 }
  0xbc   : > { %v4011_v20 = vsub.f32 %v3894_v29, %v564_v16  ;;  %v651_v21 = vsel %vm475_vm0, %v619_v17, 0.0  ;;  %v4015_v22 = vsub.f32 %v3904_v33, %v562_v18  ;;  %v645_v24 = vsel %vm475_vm0, %v617_v19, 0.0 }
  0xbd   : > { %652 = vadd.xlane.f32.xlu0 %v651_v21  ;;  %v490_v23 = vpop.xlane.xlu0 %489  ;;  %v493_v25 = vpop.xlane.xlu1 %492 }
  0xbe   : > { %v565_v26 = vmul.f32 0.0625, %v490_v23  ;;  %v620_v27 = vmul.f32 %v4011_v20, %v4011_v20  ;;  %v618_v29 = vmul.f32 %v4015_v22, %v4015_v22  ;;  %v566_v30 = vmul.f32 0.0625, %v493_v25 }
  0xc0   : > { %v4026_v31 = vsub.f32 %v3911_v36, %v565_v26  ;;  %v654_v32 = vsel %vm475_vm0, %v620_v27, 0.0  ;;  %v4032_v35 = vsub.f32 %v3914_v37, %v566_v30  ;;  %v648_v42 = vsel %vm475_vm0, %v618_v29, 0.0  ;;  %v4038_v36 = vld [vmem:[%s3888_s23 + $0xb8] sm:$0xff] }
  0xc1   : > { %655 = vadd.xlane.f32.xlu1 %v654_v32  ;;  %646 = vadd.xlane.f32.xlu0 %v645_v24  ;;  %v496_v33 = vpop.xlane.xlu0 %495  ;;  %v499_v38 = vpop.xlane.xlu1 %498  ;;  %v545_v37 = vsel %vm475_vm0, %v4038_v36, 0.0 }
  0xc2   : > { %v567_v39 = vmul.f32 0.0625, %v496_v33  ;;  %v621_v43 = vmul.f32 %v4026_v31, %v4026_v31  ;;  %v568_v46 = vmul.f32 0.0625, %v499_v38  ;;  %v622_v54 = vmul.f32 %v4032_v35, %v4032_v35 }
  0xc4   : > { %v4041_v47 = vsub.f32 %v3921_v40, %v567_v39  ;;  %v4046_v51 = vsub.f32 %v3924_v41, %v568_v46  ;;  %v657_v59 = vsel %vm475_vm0, %v621_v43, 0.0  ;;  %v660_v41 = vsel %vm475_vm0, %v622_v54, 0.0 }
  0xc5   : > { %543 = vadd.xlane.f32.xlu0 %v542_v34  ;;  %649 = vadd.xlane.f32.xlu1 %v648_v42  ;;  %v502_v50 = vpop.xlane.xlu0 %501  ;;  %v505_v55 = vpop.xlane.xlu1 %504 }
  0xc6   : > { %v569_v58 = vmul.f32 0.0625, %v502_v50  ;;  %v623_v40 = vmul.f32 %v4041_v47, %v4041_v47  ;;  %v570_v62 = vmul.f32 0.0625, %v505_v55  ;;  %v624_v6 = vmul.f32 %v4046_v51, %v4046_v51 }
  0xc8   : > { %v4054_v63 = vsub.f32 %v3931_v44, %v569_v58  ;;  %v4058_v3 = vsub.f32 %v3934_v45, %v570_v62  ;;  %v663_v9 = vsel %vm475_vm0, %v623_v40, 0.0  ;;  %v666_v45 = vsel %vm475_vm0, %v624_v6, 0.0 }
  0xc9   : > { %658 = vadd.xlane.f32.xlu0 %v657_v59  ;;  %546 = vadd.xlane.f32.xlu1 %v545_v37  ;;  %v508_v2 = vpop.xlane.xlu0 %507  ;;  %v511_v7 = vpop.xlane.xlu1 %510 }
  0xca   : > { %v571_v8 = vmul.f32 0.0625, %v508_v2  ;;  %v625_v10 = vmul.f32 %v4054_v63, %v4054_v63  ;;  %v572_v44 = vmul.f32 0.0625, %v511_v7  ;;  %v626_v16 = vmul.f32 %v4058_v3, %v4058_v3 }
  0xcc   : > { %v4066_v11 = vsub.f32 %v3941_v48, %v571_v8  ;;  %v4070_v15 = vsub.f32 %v3944_v49, %v572_v44  ;;  %v669_v19 = vsel %vm475_vm0, %v625_v10, 0.0  ;;  %v672_v49 = vsel %vm475_vm0, %v626_v16, 0.0  ;;  %v927_v16 = vld [vmem:[%s5447_s3 + $0x10] sm:$0xff] }
  0xcd   : > { %664 = vadd.xlane.f32.xlu0 %v663_v9  ;;  %661 = vadd.xlane.f32.xlu1 %v660_v41  ;;  %v514_v14 = vpop.xlane.xlu0 %513  ;;  %v517_v17 = vpop.xlane.xlu1 %516 }
  0xce   : > { %v573_v18 = vmul.f32 0.0625, %v514_v14  ;;  %v627_v21 = vmul.f32 %v4066_v11, %v4066_v11  ;;  %v574_v48 = vmul.f32 0.0625, %v517_v17  ;;  %v628_v26 = vmul.f32 %v4070_v15, %v4070_v15  ;;  %v928_v17 = vld [vmem:[%s5447_s3 + $0x18] sm:$0xff] }
  0xd0   : > { %v4078_v23 = vsub.f32 %v3951_v52, %v573_v18  ;;  %v4082_v25 = vsub.f32 %v3954_v53, %v574_v48  ;;  %v675_v30 = vsel %vm475_vm0, %v627_v21, 0.0  ;;  %v678_v53 = vsel %vm475_vm0, %v628_v26, 0.0 }
  0xd1   : > { %670 = vadd.xlane.f32.xlu0 %v669_v19  ;;  %667 = vadd.xlane.f32.xlu1 %v666_v45  ;;  %v520_v24 = vpop.xlane.xlu0 %519  ;;  %v523_v27 = vpop.xlane.xlu1 %522  ;;  %v934_v18 = vpack.c.bf16 %v928_v17, %v927_v16 }
  0xd2   : > { %v575_v29 = vmul.f32 0.0625, %v520_v24  ;;  %v629_v32 = vmul.f32 %v4078_v23, %v4078_v23  ;;  %v576_v52 = vmul.f32 0.0625, %v523_v27  ;;  %v630_v39 = vmul.f32 %v4082_v25, %v4082_v25 }
  0xd3   : > { %v3730_v24 = vmov 0.0  }
  0xd4   : > { %v4090_v33 = vsub.f32 %v3961_v56, %v575_v29  ;;  %v4094_v38 = vsub.f32 %v3964_v57, %v576_v52  ;;  %v681_v46 = vsel %vm475_vm0, %v629_v32, 0.0  ;;  %v684_v57 = vsel %vm475_vm0, %v630_v39, 0.0  ;;  %3201 = vmatprep.subr.bf16.mxu0 %v3730_v24  ;;  %3247 = vmatprep.subr.bf16.mxu1 %v3730_v24  ;;  %1559 = vst.msk [vmem:[#allocation3] sm:$0xff] %vm1558_vm2, %v3730_v24 }
  0xd5   : > { %676 = vadd.xlane.f32.xlu0 %v675_v30  ;;  %673 = vadd.xlane.f32.xlu1 %v672_v49  ;;  %v526_v34 = vpop.xlane.xlu0 %525  ;;  %v529_v42 = vpop.xlane.xlu1 %528  ;;  %v925_v49 = vld [vmem:[%s5447_s3] sm:$0xff]  ;;  %1560 = vst.msk [vmem:[#allocation3 + $0x8] sm:$0xff] %vm1558_vm2, %v3730_v24  ;;  %1561 = vst.msk [vmem:[#allocation4] sm:$0xff] %vm1558_vm2, %v3730_v24 }
  0xd6   : > { %v577_v43 = vmul.f32 0.0625, %v526_v34  ;;  %v631_v50 = vmul.f32 %v4090_v33, %v4090_v33  ;;  %v578_v56 = vmul.f32 0.0625, %v529_v42  ;;  %v632_v58 = vmul.f32 %v4094_v38, %v4094_v38  ;;  %3202 = vmatpush3.bf16.msra.mxu0 %v934_v18  ;;  %3203 = vmatprep.mubr.msk.bf16.mxu0 %vm3731_vm1, %v3730_v24  ;;  %1562 = vst.msk [vmem:[#allocation4 + $0x8] sm:$0xff] %vm1558_vm2, %v3730_v24 }
  0xd7   : > { %3293 = vmatprep.subr.bf16.mxu0 %v3730_v24  ;;  %3249 = vmatprep.mubr.msk.bf16.mxu1 %vm3731_vm1, %v3730_v24 }
  0xd8   : > { %v4102_v37 = vsub.f32 %v3971_v60, %v577_v43  ;;  %v4106_v55 = vsub.f32 %v3974_v61, %v578_v56  ;;  %v687_v62 = vsel %vm475_vm0, %v631_v50, 0.0  ;;  %v690_v7 = vsel %vm475_vm0, %v632_v58, 0.0 }
  0xd9   : > { %682 = vadd.xlane.f32.xlu0 %v681_v46  ;;  %679 = vadd.xlane.f32.xlu1 %v678_v53  ;;  %v532_v54 = vpop.xlane.xlu0 %531  ;;  %v535_v59 = vpop.xlane.xlu1 %534 }
  0xda   : > { %v579_v40 = vmul.f32 0.0625, %v532_v54  ;;  %v633_v2 = vmul.f32 %v4102_v37, %v4102_v37  ;;  %v580_v60 = vmul.f32 0.0625, %v535_v59  ;;  %v634_v8 = vmul.f32 %v4106_v55, %v4106_v55 }
  0xdc   : > { %v4114_v41 = vsub.f32 %v3981_v0, %v579_v40  ;;  %v693_v61 = vsel %vm475_vm0, %v633_v2, 0.0  ;;  %v4121_v44 = vsub.f32 %v3984_v1, %v580_v60  ;;  %v696_v1 = vsel %vm475_vm0, %v634_v8, 0.0  ;;  %v4168_v8 = vld [vmem:[%s3888_s23 + $0xc0] sm:$0xff] }
  0xdd   : > { %688 = vadd.xlane.f32.xlu0 %v687_v62  ;;  %685 = vadd.xlane.f32.xlu1 %v684_v57  ;;  %v538_v6 = vpop.xlane.xlu0 %537  ;;  %v541_v9 = vpop.xlane.xlu1 %540  ;;  %v548_v16 = vsel %vm475_vm0, %v4168_v8, 0.0 }
  0xde   : > { %v581_v10 = vmul.f32 0.0625, %v538_v6  ;;  %v635_v14 = vmul.f32 %v4114_v41, %v4114_v41  ;;  %v582_v0 = vmul.f32 0.0625, %v541_v9  ;;  %v636_v48 = vmul.f32 %v4121_v44, %v4121_v44 }
  0xe0   : > { %v4126_v45 = vsub.f32 %v3991_v4, %v581_v10  ;;  %v699_v19 = vsel %vm475_vm0, %v635_v14, 0.0  ;;  %v4137_v21 = vsub.f32 %v3994_v5, %v582_v0  ;;  %v926_v5 = vld [vmem:[%s5447_s3 + $0x8] sm:$0xff]  ;;  %v702_v29 = vsel %vm475_vm0, %v636_v48, 0.0 }
  0xe1   : > { %694 = vadd.xlane.f32.xlu0 %v693_v61  ;;  %691 = vadd.xlane.f32.xlu1 %v690_v7  ;;  %v933_v26 = vpack.c.bf16 %v926_v5, %v925_v49 }
  0xe2   : > { %v637_v4 = vmul.f32 %v4126_v45, %v4126_v45  ;;  %v638_v30 = vmul.f32 %v4137_v21, %v4137_v21 }
  0xe3   : > { %3248 = vmatpush3.bf16.msra.mxu1 %v933_v26 }
  0xe4   : > { %v705_v27 = vsel %vm475_vm0, %v637_v4, 0.0  ;;  %3339 = vmatprep.subr.bf16.mxu1 %v3730_v24  ;;  %v708_v32 = vsel %vm475_vm0, %v638_v30, 0.0  ;;  %v4179_v4 = vld [vmem:[%s3888_s23 + $0xd0] sm:$0xff] }
  0xe5   : > { %700 = vadd.xlane.f32.xlu0 %v699_v19  ;;  %697 = vadd.xlane.f32.xlu1 %v696_v1 }
  0xe9   : > { %706 = vadd.xlane.f32.xlu0 %v705_v27  ;;  %703 = vadd.xlane.f32.xlu1 %v702_v29 }
  0xed   : > { %709 = vadd.xlane.f32.xlu1 %v708_v32  ;;  %v554_v32 = vsel %vm475_vm0, %v4179_v4, 0.0 }
 0x146   : > { %v653_v52 = vpop.xlane.xlu0 %652 }
 0x147   : > { %v731_v34 = vmul.f32 0.0625, %v653_v52 }
 0x149   : > { %v759_v53 = vadd.f32 1e-05, %v731_v34  ;;  %v4193_v34 = vld [vmem:[%s5445_s1] ss:$0 sm:$0xff] }
 0x14a   : > { %v647_v39 = vpop.xlane.xlu0 %646  ;;  %v656_v42 = vpop.xlane.xlu1 %655 }
 0x14b   : > { %3626 = vrsqrt.f32 %v759_v53  ;;  %v729_v43 = vmul.f32 0.0625, %v647_v39  ;;  %v732_v46 = vmul.f32 0.0625, %v656_v42  ;;  %v4196_v39 = vld [vmem:[%s3888_s23 + $0xd8] sm:$0xff] }
 0x14d   : > { %v757_v50 = vadd.f32 1e-05, %v729_v43  ;;  %v760_v56 = vadd.f32 1e-05, %v732_v46 }
 0x14e   : > { %v544_v54 = vpop.xlane.xlu0 %543  ;;  %v650_v57 = vpop.xlane.xlu1 %649 }
 0x14f   : > { %3628 = vrsqrt.f32 %v757_v50  ;;  %v583_v58 = vmul.f32 0.0625, %v544_v54  ;;  %v730_v59 = vmul.f32 0.0625, %v650_v57 }
 0x150   : > { %3630 = vrsqrt.f32 %v760_v56 }
 0x151   : > { %v4163_v40 = vsub.f32 %v4021_v28, %v583_v58  ;;  %v758_v62 = vadd.f32 1e-05, %v730_v59  ;;  %v557_v58 = vsel %vm475_vm0, %v4196_v39, 0.0  ;;  %v4206_v59 = vld [vmem:[%s5446_s2] ss:$0 sm:$0xff] }
 0x152   : > { %v659_v2 = vpop.xlane.xlu0 %658  ;;  %v547_v60 = vpop.xlane.xlu1 %546 }
 0x153   : > { %3632 = vrsqrt.f32 %v758_v62  ;;  %v733_v6 = vmul.f32 0.0625, %v659_v2  ;;  %v584_v61 = vmul.f32 0.0625, %v547_v60  ;;  %v639_v7 = vmul.f32 %v4163_v40, %v4163_v40 }
 0x155   : > { %v761_v9 = vadd.f32 1e-05, %v733_v6  ;;  %v4171_v10 = vsub.f32 %v4038_v36, %v584_v61  ;;  %v711_v28 = vsel %vm475_vm0, %v639_v7, 0.0  ;;  %v4182_v36 = vld [vmem:[%s3888_s23 + $0xc8] sm:$0xff] }
 0x156   : > { %712 = vadd.xlane.f32.xlu0 %v711_v28  ;;  %v665_v14 = vpop.xlane.xlu0 %664  ;;  %v662_v0 = vpop.xlane.xlu1 %661  ;;  %v551_v52 = vsel %vm475_vm0, %v4182_v36, 0.0 }
 0x157   : > { %3634 = vrsqrt.f32 %v761_v9  ;;  %v735_v17 = vmul.f32 0.0625, %v665_v14  ;;  %v734_v1 = vmul.f32 0.0625, %v662_v0  ;;  %v640_v18 = vmul.f32 %v4171_v10, %v4171_v10  ;;  %v931_v0 = vld [vmem:[%s5447_s3 + $0x30] sm:$0xff] }
 0x158   : > { %v3627_v19 = vpop.eup %3626 }
 0x159   : > { %v762_v48 = vadd.f32 1e-05, %v734_v1  ;;  %v714_v49 = vsel %vm475_vm0, %v640_v18, 0.0  ;;  %v763_v5 = vadd.f32 1e-05, %v735_v17  ;;  %v815_v27 = vmul.f32 %v3627_v19, %v4001_v12 }
 0x15a   : > { %549 = vadd.xlane.f32.xlu0 %v548_v16  ;;  %715 = vadd.xlane.f32.xlu1 %v714_v49  ;;  %v668_v26 = vpop.xlane.xlu1 %667  ;;  %v671_v29 = vpop.xlane.xlu0 %670 }
 0x15b   : > { %v736_v30 = vmul.f32 0.0625, %v668_v26  ;;  %3636 = vrsqrt.f32 %v762_v48  ;;  %v737_v46 = vmul.f32 0.0625, %v671_v29  ;;  %v850_v54 = vmul.f32 %v4193_v34, %v815_v27 }
 0x15c   : > { %v3629_v53 = vpop.eup %3628  ;;  %3638 = vrsqrt.f32 %v763_v5 }
 0x15d   : > { %v3631_v42 = vpop.eup %3630  ;;  %v764_v43 = vadd.f32 1e-05, %v736_v30  ;;  %v813_v12 = vmul.f32 %v3629_v53, %v4004_v13  ;;  %v765_v6 = vadd.f32 1e-05, %v737_v46  ;;  %v885_v9 = vadd.f32 %v4206_v59, %v850_v54 }
 0x15e   : > { %555 = vadd.xlane.f32.xlu0 %v554_v32  ;;  %552 = vadd.xlane.f32.xlu1 %v551_v52  ;;  %v674_v50 = vpop.xlane.xlu1 %673  ;;  %v816_v56 = vmul.f32 %v3631_v42, %v4011_v20  ;;  %v677_v61 = vpop.xlane.xlu0 %676 }
 0x15f   : > { %v738_v57 = vmul.f32 0.0625, %v674_v50  ;;  %3640 = vrsqrt.f32 %v764_v43  ;;  %v848_v20 = vmul.f32 %v4193_v34, %v813_v12  ;;  %v739_v18 = vmul.f32 0.0625, %v677_v61 }
 0x160   : > { %v3633_v62 = vpop.eup %3632  ;;  %v851_v13 = vmul.f32 %v4193_v34, %v816_v56 }
 0x161   : > { %v766_v2 = vadd.f32 1e-05, %v738_v57  ;;  %v814_v60 = vmul.f32 %v3633_v62, %v4015_v22  ;;  %v932_v22 = vld [vmem:[%s5447_s3 + $0x38] sm:$0xff]  ;;  %v883_v19 = vadd.f32 %v4206_v59, %v848_v20  ;;  %v767_v30 = vadd.f32 1e-05, %v739_v18  ;;  %v930_v62 = vld [vmem:[%s5447_s3 + $0x28] sm:$0xff] }
 0x162   : > { %558 = vadd.xlane.f32.xlu1 %v557_v58  ;;  %v680_v7 = vpop.xlane.xlu1 %679  ;;  %v886_v28 = vadd.f32 %v4206_v59, %v851_v13  ;;  %v936_v5 = vpack.c.bf16 %v932_v22, %v931_v0  ;;  %v683_v52 = vpop.xlane.xlu0 %682 }
 0x163   : > { %v849_v14 = vmul.f32 %v4193_v34, %v814_v60  ;;  %3642 = vrsqrt.f32 %v766_v2  ;;  %v740_v17 = vmul.f32 0.0625, %v680_v7  ;;  %v741_v50 = vmul.f32 0.0625, %v683_v52 }
 0x164   : > { %v3635_v16 = vpop.eup %3634  ;;  %v912_v1 = vpack.c.bf16 %v886_v28, %v885_v9  ;;  %3644 = vrsqrt.f32 %v765_v6 }
 0x165   : > { %v884_v48 = vadd.f32 %v4206_v59, %v849_v14  ;;  %v817_v49 = vmul.f32 %v3635_v16, %v4026_v31  ;;  %v768_v27 = vadd.f32 1e-05, %v740_v17 }
 0x166   : > { %3204 = vmatmul.mubr.msk.bf16.vlgmr.msra.gmra.mxu0 %vm475_vm0, %v912_v1  ;;  %v686_v32 = vpop.xlane.xlu1 %685  ;;  %v689_v9 = vpop.xlane.xlu0 %688 }
 0x167   : > { %v911_v26 = vpack.c.bf16 %v884_v48, %v883_v19  ;;  %3207 = vmatprep.mubr.msk.bf16.mxu0 %vm3731_vm1, %v3730_v24  ;;  %v852_v42 = vmul.f32 %v4193_v34, %v817_v49  ;;  %3646 = vrsqrt.f32 %v768_v27  ;;  %v742_v43 = vmul.f32 0.0625, %v686_v32 }
 0x168   : > { %v3637_v29 = vpop.eup %3636  ;;  %3648 = vrsqrt.f32 %v767_v30  ;;  %v743_v22 = vmul.f32 0.0625, %v689_v9 }
 0x169   : > { %3250 = vmatmul.mubr.msk.bf16.vlgmr.msra.gmra.mxu1 %vm475_vm0, %v911_v26  ;;  %v818_v53 = vmul.f32 %v3637_v29, %v4032_v35  ;;  %v3639_v31 = vpop.eup %3638  ;;  %v887_v56 = vadd.f32 %v4206_v59, %v852_v42  ;;  %v929_v35 = vld [vmem:[%s5447_s3 + $0x20] sm:$0xff]  ;;  %v770_v13 = vadd.f32 1e-05, %v742_v43 }
 0x16a   : > { %3253 = vmatprep.mubr.msk.bf16.mxu1 %vm3731_vm1, %v3730_v24  ;;  %3340 = vmatpush3.bf16.msra.mxu1 %v936_v5  ;;  %v819_v57 = vmul.f32 %v3639_v31, %v4041_v47  ;;  %v935_v20 = vpack.c.bf16 %v930_v62, %v929_v35  ;;  %v692_v61 = vpop.xlane.xlu1 %691  ;;  %v769_v47 = vadd.f32 1e-05, %v741_v50  ;;  %v771_v26 = vadd.f32 1e-05, %v743_v22 }
 0x16b   : > { %v853_v12 = vmul.f32 %v4193_v34, %v818_v53  ;;  %3650 = vrsqrt.f32 %v770_v13  ;;  %v744_v28 = vmul.f32 0.0625, %v692_v61 }
 0x16c   : > { %v3641_v46 = vpop.eup %3640  ;;  %3294 = vmatpush3.bf16.msra.mxu0 %v935_v20  ;;  %3652 = vrsqrt.f32 %v769_v47 }
 0x16d   : > { %v888_v54 = vadd.f32 %v4206_v59, %v853_v12  ;;  %v820_v58 = vmul.f32 %v3641_v46, %v4046_v51  ;;  %v854_v51 = vmul.f32 %v4193_v34, %v819_v57 }
 0x16e   : > { %v698_v49 = vpop.xlane.xlu1 %697 }
 0x16f   : > { %v4242_v2 = vpack.c.bf16 %v888_v54, %v887_v56  ;;  %v855_v60 = vmul.f32 %v4193_v34, %v820_v58  ;;  %v889_v16 = vadd.f32 %v4206_v59, %v854_v51  ;;  %v746_v27 = vmul.f32 0.0625, %v698_v49 }
 0x170   : > { %v3643_v6 = vpop.eup %3642 }
 0x171   : > { %3254 = vmatmul.mubr.msk.bf16.gmra.mxu1 %vm475_vm0, %v912_v1  ;;  %3208 = vmatmul.mubr.msk.bf16.gmra.mxu0 %vm475_vm0, %v4242_v2  ;;  %v3645_v7 = vpop.eup %3644  ;;  %v890_v14 = vadd.f32 %v4206_v59, %v855_v60  ;;  %v822_v0 = vmul.f32 %v3643_v6, %v4058_v3  ;;  %v772_v1 = vadd.f32 1e-05, %v744_v28  ;;  %v695_v3 = vpop.xlane.xlu0 %694  ;;  %v774_v42 = vadd.f32 1e-05, %v746_v27 }
 0x172   : > { %3257 = vmatprep.mubr.msk.bf16.mxu1 %vm3731_vm1, %v3730_v24  ;;  %3211 = vmatprep.mubr.msk.bf16.mxu0 %vm3731_vm1, %v3730_v24  ;;  %v821_v17 = vmul.f32 %v3645_v7, %v4054_v63  ;;  %v745_v32 = vmul.f32 0.0625, %v695_v3  ;;  %v704_v46 = vpop.xlane.xlu1 %703 }
 0x173   : > { %v4257_v18 = vpack.c.bf16 %v890_v14, %v889_v16  ;;  %v857_v19 = vmul.f32 %v4193_v34, %v822_v0  ;;  %3654 = vrsqrt.f32 %v772_v1  ;;  %v748_v54 = vmul.f32 0.0625, %v704_v46 }
 0x174   : > { %v3647_v48 = vpop.eup %3646  ;;  %v856_v63 = vmul.f32 %v4193_v34, %v821_v17  ;;  %3656 = vrsqrt.f32 %v771_v26  ;;  %v773_v50 = vadd.f32 1e-05, %v745_v32 }
 0x175   : > { %v3649_v5 = vpop.eup %3648  ;;  %v892_v29 = vadd.f32 %v4206_v59, %v857_v19  ;;  %v824_v30 = vmul.f32 %v3647_v48, %v4070_v15  ;;  %v701_v56 = vpop.xlane.xlu0 %700  ;;  %3658 = vrsqrt.f32 %v774_v42  ;;  %v776_v60 = vadd.f32 1e-05, %v748_v54 }
 0x176   : > { %v891_v52 = vadd.f32 %v4206_v59, %v856_v63  ;;  %v823_v53 = vmul.f32 %v3649_v5, %v4066_v11  ;;  %3660 = vrsqrt.f32 %v773_v50  ;;  %v747_v35 = vmul.f32 0.0625, %v701_v56  ;;  %v710_v47 = vpop.xlane.xlu1 %709 }
 0x177   : > { %v859_v43 = vmul.f32 %v4193_v34, %v824_v30  ;;  %3662 = vrsqrt.f32 %v776_v60  ;;  %v750_v9 = vmul.f32 0.0625, %v710_v47 }
 0x178   : > { %v4273_v31 = vpack.c.bf16 %v892_v29, %v891_v52  ;;  %v3651_v12 = vpop.eup %3650  ;;  %v858_v15 = vmul.f32 %v4193_v34, %v823_v53  ;;  %v775_v51 = vadd.f32 1e-05, %v747_v35 }
 0x179   : > { %3258 = vmatmul.mubr.msk.bf16.gmra.mxu1 %vm475_vm0, %v4242_v2  ;;  %3212 = vmatmul.mubr.msk.bf16.gmra.mxu0 %vm475_vm0, %v4257_v18  ;;  %v3653_v11 = vpop.eup %3652  ;;  %v894_v57 = vadd.f32 %v4206_v59, %v859_v43  ;;  %v826_v58 = vmul.f32 %v3651_v12, %v4082_v25  ;;  %v707_v7 = vpop.xlane.xlu0 %706  ;;  %v778_v17 = vadd.f32 1e-05, %v750_v9 }
 0x17a   : > { %3261 = vmatprep.mubr.msk.bf16.mxu1 %vm3731_vm1, %v3730_v24  ;;  %3215 = vmatprep.mubr.msk.bf16.mxu0 %vm3731_vm1, %v3730_v24  ;;  %v893_v62 = vadd.f32 %v4206_v59, %v858_v15  ;;  %v825_v13 = vmul.f32 %v3653_v11, %v4078_v23  ;;  %3664 = vrsqrt.f32 %v775_v51  ;;  %v749_v0 = vmul.f32 0.0625, %v707_v7 }
 0x17b   : > { %v861_v6 = vmul.f32 %v4193_v34, %v826_v58  ;;  %3666 = vrsqrt.f32 %v778_v17 }
 0x17c   : > { %v4289_v20 = vpack.c.bf16 %v894_v57, %v893_v62  ;;  %v860_v25 = vmul.f32 %v4193_v34, %v825_v13  ;;  %v777_v49 = vadd.f32 1e-05, %v749_v0 }
 0x17d   : > { %v896_v28 = vadd.f32 %v4206_v59, %v861_v6 }
 0x17e   : > { %v895_v22 = vadd.f32 %v4206_v59, %v860_v25  ;;  %3668 = vrsqrt.f32 %v777_v49 }
 0x180   : > { %v3655_v61 = vpop.eup %3654  ;;  %v4305_v1 = vpack.c.bf16 %v896_v28, %v895_v22 }
 0x181   : > { %3262 = vmatmul.mubr.msk.bf16.gmra.mxu1 %vm475_vm0, %v4257_v18  ;;  %3216 = vmatmul.mubr.msk.bf16.gmra.mxu0 %vm475_vm0, %v4273_v31  ;;  %v3657_v23 = vpop.eup %3656  ;;  %v828_v14 = vmul.f32 %v3655_v61, %v4094_v38 }
 0x182   : > { %3265 = vmatprep.mubr.msk.bf16.mxu1 %vm3731_vm1, %v3730_v24  ;;  %3219 = vmatprep.mubr.msk.bf16.mxu0 %vm3731_vm1, %v3730_v24  ;;  %v827_v16 = vmul.f32 %v3657_v23, %v4090_v33  ;;  %v3659_v48 = vpop.eup %3658 }
 0x183   : > { %v863_v19 = vmul.f32 %v4193_v34, %v828_v14  ;;  %v3661_v5 = vpop.eup %3660  ;;  %v830_v26 = vmul.f32 %v3659_v48, %v4106_v55 }
 0x184   : > { %v862_v38 = vmul.f32 %v4193_v34, %v827_v16  ;;  %v829_v3 = vmul.f32 %v3661_v5, %v4102_v37  ;;  %v3663_v30 = vpop.eup %3662 }
 0x185   : > { %v898_v33 = vadd.f32 %v4206_v59, %v863_v19  ;;  %v865_v29 = vmul.f32 %v4193_v34, %v830_v26  ;;  %v832_v52 = vmul.f32 %v3663_v30, %v4121_v44 }
 0x186   : > { %v897_v63 = vadd.f32 %v4206_v59, %v862_v38  ;;  %v864_v55 = vmul.f32 %v4193_v34, %v829_v3 }
 0x187   : > { %v3665_v32 = vpop.eup %3664  ;;  %v900_v37 = vadd.f32 %v4206_v59, %v865_v29  ;;  %v867_v12 = vmul.f32 %v4193_v34, %v832_v52 }
 0x188   : > { %v4321_v27 = vpack.c.bf16 %v898_v33, %v897_v63  ;;  %v899_v53 = vadd.f32 %v4206_v59, %v864_v55  ;;  %v831_v42 = vmul.f32 %v3665_v32, %v4114_v41  ;;  %v3667_v46 = vpop.eup %3666 }
 0x189   : > { %3266 = vmatmul.mubr.msk.bf16.gmra.mxu1 %vm475_vm0, %v4273_v31  ;;  %3220 = vmatmul.mubr.msk.bf16.gmra.mxu0 %vm475_vm0, %v4289_v20  ;;  %v902_v41 = vadd.f32 %v4206_v59, %v867_v12  ;;  %v834_v15 = vmul.f32 %v3667_v46, %v4137_v21 }
 0x18a   : > { %3269 = vmatprep.mubr.msk.bf16.mxu1 %vm3731_vm1, %v3730_v24  ;;  %3223 = vmatprep.mubr.msk.bf16.mxu0 %vm3731_vm1, %v3730_v24  ;;  %v4337_v43 = vpack.c.bf16 %v900_v37, %v899_v53  ;;  %v866_v44 = vmul.f32 %v4193_v34, %v831_v42 }
 0x18b   : > { %v3669_v50 = vpop.eup %3668  ;;  %v869_v57 = vmul.f32 %v4193_v34, %v834_v15 }
 0x18c   : > { %v901_v11 = vadd.f32 %v4206_v59, %v866_v44  ;;  %v833_v56 = vmul.f32 %v3669_v50, %v4126_v45 }
 0x18d   : > { %v904_v45 = vadd.f32 %v4206_v59, %v869_v57 }
 0x18e   : > { %v4353_v54 = vpack.c.bf16 %v902_v41, %v901_v11  ;;  %v868_v58 = vmul.f32 %v4193_v34, %v833_v56 }
 0x190   : > { %v903_v21 = vadd.f32 %v4206_v59, %v868_v58 }
 0x191   : > { %3270 = vmatmul.mubr.msk.bf16.gmra.mxu1 %vm475_vm0, %v4289_v20  ;;  %3224 = vmatmul.mubr.msk.bf16.gmra.mxu0 %vm475_vm0, %v4305_v1 }
 0x192   : > { %3273 = vmatprep.mubr.msk.bf16.mxu1 %vm3731_vm1, %v3730_v24  ;;  %3227 = vmatprep.mubr.msk.bf16.mxu0 %vm3731_vm1, %v3730_v24  ;;  %v4367_v35 = vpack.c.bf16 %v904_v45, %v903_v21 }
 0x199   : > { %3274 = vmatmul.mubr.msk.bf16.gmra.mxu1 %vm475_vm0, %v4305_v1  ;;  %3228 = vmatmul.mubr.msk.bf16.gmra.mxu0 %vm475_vm0, %v4321_v27 }
 0x19a   : > { %3277 = vmatprep.mubr.msk.bf16.mxu1 %vm3731_vm1, %v3730_v24  ;;  %3231 = vmatprep.mubr.msk.bf16.mxu0 %vm3731_vm1, %v3730_v24 }
 0x1a1   : > { %3278 = vmatmul.mubr.msk.bf16.gmra.mxu1 %vm475_vm0, %v4321_v27  ;;  %3232 = vmatmul.mubr.msk.bf16.gmra.mxu0 %vm475_vm0, %v4337_v43 }
 0x1a2   : > { %3281 = vmatprep.mubr.msk.bf16.mxu1 %vm3731_vm1, %v3730_v24  ;;  %3235 = vmatprep.mubr.msk.bf16.mxu0 %vm3731_vm1, %v3730_v24 }
 0x1a9   : > { %3282 = vmatmul.mubr.msk.bf16.gmra.mxu1 %vm475_vm0, %v4337_v43  ;;  %3236 = vmatmul.mubr.msk.bf16.gmra.mxu0 %vm475_vm0, %v4353_v54 }
 0x1aa   : > { %3285 = vmatprep.mubr.msk.bf16.mxu1 %vm3731_vm1, %v3730_v24  ;;  %3239 = vmatprep.mubr.msk.bf16.mxu0 %vm3731_vm1, %v3730_v24 }
 0x1b1   : > { %3286 = vmatmul.mubr.msk.bf16.gmra.mxu1 %vm475_vm0, %v4353_v54  ;;  %3240 = vmatmul.mubr.msk.bf16.gmra.mxu0 %vm475_vm0, %v4367_v35 }
 0x1b2   : > { %3289 = vmatprep.mubr.msk.bf16.mxu1 %vm3731_vm1, %v3730_v24  ;;  %3243 = vmatprep.mubr.msk.bf16.mxu0 %vm3731_vm1, %v3730_v24 }
 0x1b9   : > { %3290 = vmatmul.mubr.msk.bf16.gmra.mxu1 %vm475_vm0, %v4367_v35 }
 0x1ba   : > { %3341 = vmatprep.mubr.msk.bf16.mxu1 %vm3731_vm1, %v3730_v24 }
 0x1c1   : > { %3342 = vmatmul.mubr.msk.bf16.vlgmr.msra.gmra.mxu1 %vm475_vm0, %v4257_v18 }
 0x1c2   : > { %3345 = vmatprep.mubr.msk.bf16.mxu1 %vm3731_vm1, %v3730_v24 }
 0x1c9   : > { %3346 = vmatmul.mubr.msk.bf16.gmra.mxu1 %vm475_vm0, %v4273_v31 }
 0x1ca   : > { %3349 = vmatprep.mubr.msk.bf16.mxu1 %vm3731_vm1, %v3730_v24 }
 0x1d1   : > { %3350 = vmatmul.mubr.msk.bf16.gmra.mxu1 %vm475_vm0, %v4289_v20 }
 0x1d2   : > { %3353 = vmatprep.mubr.msk.bf16.mxu1 %vm3731_vm1, %v3730_v24 }
 0x1d9   : > { %3354 = vmatmul.mubr.msk.bf16.gmra.mxu1 %vm475_vm0, %v4305_v1 }
 0x1da   : > { %3357 = vmatprep.mubr.msk.bf16.mxu1 %vm3731_vm1, %v3730_v24 }
 0x1df   : > { %v713_v62 = vpop.xlane.xlu0 %712 }
 0x1e0   : > { %v751_v13 = vmul.f32 0.0625, %v713_v62 }
 0x1e1   : > { %3358 = vmatmul.mubr.msk.bf16.gmra.mxu1 %vm475_vm0, %v4321_v27 }
 0x1e2   : > { %v779_v60 = vadd.f32 1e-05, %v751_v13  ;;  %3361 = vmatprep.mubr.msk.bf16.mxu1 %vm3731_vm1, %v3730_v24 }
 0x1e3   : > { %v550_v6 = vpop.xlane.xlu0 %549  ;;  %v716_v61 = vpop.xlane.xlu1 %715 }
 0x1e4   : > { %3670 = vrsqrt.f32 %v779_v60  ;;  %v585_v47 = vmul.f32 0.0625, %v550_v6  ;;  %v752_v51 = vmul.f32 0.0625, %v716_v61 }
 0x1e6   : > { %v4402_v25 = vsub.f32 %v4168_v8, %v585_v47  ;;  %v780_v23 = vadd.f32 1e-05, %v752_v51 }
 0x1e7   : > { %v556_v7 = vpop.xlane.xlu0 %555  ;;  %v553_v9 = vpop.xlane.xlu1 %552 }
 0x1e8   : > { %3672 = vrsqrt.f32 %v780_v23  ;;  %v587_v28 = vmul.f32 0.0625, %v556_v7  ;;  %v586_v14 = vmul.f32 0.0625, %v553_v9  ;;  %v641_v0 = vmul.f32 %v4402_v25, %v4402_v25 }
 0x1e9   : > { %3362 = vmatmul.mubr.msk.bf16.gmra.mxu1 %vm475_vm0, %v4337_v43 }
 0x1ea   : > { %v4409_v22 = vsub.f32 %v4179_v4, %v587_v28  ;;  %v4412_v16 = vsub.f32 %v4182_v36, %v586_v14  ;;  %v717_v8 = vsel %vm475_vm0, %v641_v0, 0.0  ;;  %3365 = vmatprep.mubr.msk.bf16.mxu1 %vm3731_vm1, %v3730_v24 }
 0x1eb   : > { %718 = vadd.xlane.f32.xlu0 %v717_v8  ;;  %v559_v17 = vpop.xlane.xlu1 %558 }
 0x1ec   : > { %v588_v19 = vmul.f32 0.0625, %v559_v17  ;;  %v643_v48 = vmul.f32 %v4409_v22, %v4409_v22  ;;  %v642_v49 = vmul.f32 %v4412_v16, %v4412_v16 }
 0x1ee   : > { %v4422_v4 = vsub.f32 %v4196_v39, %v588_v19  ;;  %v723_v36 = vsel %vm475_vm0, %v643_v48, 0.0  ;;  %v720_v38 = vsel %vm475_vm0, %v642_v49, 0.0 }
 0x1ef   : > { %724 = vadd.xlane.f32.xlu0 %v723_v36  ;;  %721 = vadd.xlane.f32.xlu1 %v720_v38 }
 0x1f0   : > { %v644_v5 = vmul.f32 %v4422_v4, %v4422_v4 }
 0x1f1   : > { %v3671_v33 = vpop.eup %3670  ;;  %3366 = vmatmul.mubr.msk.bf16.gmra.mxu1 %vm475_vm0, %v4353_v54 }
 0x1f2   : > { %v726_v26 = vsel %vm475_vm0, %v644_v5, 0.0  ;;  %3369 = vmatprep.mubr.msk.bf16.mxu1 %vm3731_vm1, %v3730_v24  ;;  %v835_v39 = vmul.f32 %v3671_v33, %v4163_v40 }
 0x1f3   : > { %727 = vadd.xlane.f32.xlu1 %v726_v26 }
 0x1f4   : > { %v870_v29 = vmul.f32 %v4193_v34, %v835_v39 }
 0x1f5   : > { %v3673_v63 = vpop.eup %3672 }
 0x1f6   : > { %v836_v3 = vmul.f32 %v3673_v63, %v4171_v10  ;;  %v905_v55 = vadd.f32 %v4206_v59, %v870_v29 }
 0x1f8   : > { %v871_v30 = vmul.f32 %v4193_v34, %v836_v3 }
 0x1f9   : > { %3370 = vmatmul.mubr.msk.bf16.gmra.mxu1 %vm475_vm0, %v4367_v35 }
 0x1fa   : > { %v906_v32 = vadd.f32 %v4206_v59, %v871_v30  ;;  %3373 = vmatprep.mubr.msk.bf16.mxu1 %vm3731_vm1, %v3730_v24 }
 0x1fc   : > { %v4443_v37 = vpack.c.bf16 %v906_v32, %v905_v55 }
 0x1fe   : > { %3244 = vmatmul.mubr.msk.bf16.gmra.mxu0 %vm475_vm0, %v4443_v37 }
 0x1ff   : > { %3295 = vmatprep.mubr.msk.bf16.mxu0 %vm3731_vm1, %v3730_v24 }
 0x201   : > { %3374 = vmatmul.mubr.msk.bf16.gmra.mxu1 %vm475_vm0, %v4443_v37 }
 0x202   : > { %3377 = vmatprep.mubr.msk.bf16.mxu1 %vm3731_vm1, %v3730_v24 }
 0x206   : > { %3296 = vmatmul.mubr.msk.bf16.vlgmr.msra.gmra.mxu0 %vm475_vm0, %v4242_v2 }
 0x207   : > { %3299 = vmatprep.mubr.msk.bf16.mxu0 %vm3731_vm1, %v3730_v24 }
 0x20e   : > { %3300 = vmatmul.mubr.msk.bf16.gmra.mxu0 %vm475_vm0, %v4257_v18 }
 0x20f   : > { %3303 = vmatprep.mubr.msk.bf16.mxu0 %vm3731_vm1, %v3730_v24 }
 0x216   : > { %3304 = vmatmul.mubr.msk.bf16.gmra.mxu0 %vm475_vm0, %v4273_v31 }
 0x217   : > { %3307 = vmatprep.mubr.msk.bf16.mxu0 %vm3731_vm1, %v3730_v24 }
 0x21e   : > { %3308 = vmatmul.mubr.msk.bf16.gmra.mxu0 %vm475_vm0, %v4289_v20 }
 0x21f   : > { %3311 = vmatprep.mubr.msk.bf16.mxu0 %vm3731_vm1, %v3730_v24 }
 0x226   : > { %v1004_v40 = vpop.f32.mrf.mxu0  ;;  %3312 = vmatmul.mubr.msk.bf16.gmra.mxu0 %vm475_vm0, %v4305_v1 }
 0x227   : > { %3315 = vmatprep.mubr.msk.bf16.mxu0 %vm3731_vm1, %v3730_v24 }
 0x228   : > { %v3205_v10 = vpop.f32.mrf.mxu0 }
 0x229   : > { %v1128_v2 = vpop.f32.mrf.mxu1 }
 0x22a   : > { %v1007_v18 = vpop.f32.mrf.mxu0  ;;  %v4473_v31 = vadd.f32 %v1128_v2, %v1004_v40 }
 0x22b   : > { %v3251_v52 = vpop.f32.mrf.mxu1 }
 0x22c   : > { %v3206_v53 = vpop.f32.mrf.mxu0 }
 0x22d   : > { %v1131_v42 = vpop.f32.mrf.mxu1 }
 0x22e   : > { %v4475_v12 = vadd.f32 %v1131_v42, %v1007_v18  ;;  %3316 = vmatmul.mubr.msk.bf16.gmra.mxu0 %vm475_vm0, %v4321_v27 }
 0x22f   : > { %v3252_v20 = vpop.f32.mrf.mxu1  ;;  %3319 = vmatprep.mubr.msk.bf16.mxu0 %vm3731_vm1, %v3730_v24 }
 0x231   : > { %v1136_v1 = vpop.f32.mrf.mxu1  ;;  %v1012_v46 = vpop.f32.mrf.mxu0 }
 0x232   : > { %v4481_v44 = vadd.f32 %v1136_v1, %v1012_v46 }
 0x233   : > { %v3255_v50 = vpop.f32.mrf.mxu1  ;;  %v3209_v41 = vpop.f32.mrf.mxu0 }
 0x235   : > { %v1139_v15 = vpop.f32.mrf.mxu1  ;;  %v1015_v11 = vpop.f32.mrf.mxu0 }
 0x236   : > { %3320 = vmatmul.mubr.msk.bf16.gmra.mxu0 %vm475_vm0, %v4337_v43  ;;  %v4485_v56 = vadd.f32 %v1139_v15, %v1015_v11 }
 0x237   : > { %v3256_v57 = vpop.f32.mrf.mxu1  ;;  %3323 = vmatprep.mubr.msk.bf16.mxu0 %vm3731_vm1, %v3730_v24  ;;  %v3210_v27 = vpop.f32.mrf.mxu0 }
 0x239   : > { %v1144_v58 = vpop.f32.mrf.mxu1  ;;  %v1020_v45 = vpop.f32.mrf.mxu0 }
 0x23a   : > { %v4489_v21 = vadd.f32 %v1144_v58, %v1020_v45 }
 0x23b   : > { %v3259_v62 = vpop.f32.mrf.mxu1  ;;  %v3213_v13 = vpop.f32.mrf.mxu0 }
 0x23d   : > { %v1147_v60 = vpop.f32.mrf.mxu1  ;;  %v1023_v6 = vpop.f32.mrf.mxu0 }
 0x23e   : > { %3324 = vmatmul.mubr.msk.bf16.gmra.mxu0 %vm475_vm0, %v4353_v54  ;;  %v4493_v61 = vadd.f32 %v1147_v60, %v1023_v6 }
 0x23f   : > { %v3260_v43 = vpop.f32.mrf.mxu1  ;;  %3327 = vmatprep.mubr.msk.bf16.mxu0 %vm3731_vm1, %v3730_v24  ;;  %v3214_v47 = vpop.f32.mrf.mxu0 }
 0x241   : > { %v1152_v51 = vpop.f32.mrf.mxu1  ;;  %v1028_v23 = vpop.f32.mrf.mxu0 }
 0x242   : > { %v4497_v7 = vadd.f32 %v1152_v51, %v1028_v23 }
 0x243   : > { %v3263_v9 = vpop.f32.mrf.mxu1  ;;  %v3217_v28 = vpop.f32.mrf.mxu0 }
 0x245   : > { %v1155_v14 = vpop.f32.mrf.mxu1  ;;  %v1031_v0 = vpop.f32.mrf.mxu0 }
 0x246   : > { %3328 = vmatmul.mubr.msk.bf16.gmra.mxu0 %vm475_vm0, %v4367_v35  ;;  %v4501_v8 = vadd.f32 %v1155_v14, %v1031_v0 }
 0x247   : > { %v3264_v54 = vpop.f32.mrf.mxu1  ;;  %3331 = vmatprep.mubr.msk.bf16.mxu0 %vm3731_vm1, %v3730_v24  ;;  %v3218_v17 = vpop.f32.mrf.mxu0 }
 0x249   : > { %v1160_v19 = vpop.f32.mrf.mxu1  ;;  %v1036_v48 = vpop.f32.mrf.mxu0 }
 0x24a   : > { %v4505_v49 = vadd.f32 %v1160_v19, %v1036_v48 }
 0x24b   : > { %v3267_v36 = vpop.f32.mrf.mxu1  ;;  %v3221_v38 = vpop.f32.mrf.mxu0 }
 0x24d   : > { %v1163_v5 = vpop.f32.mrf.mxu1  ;;  %v1039_v33 = vpop.f32.mrf.mxu0 }
 0x24e   : > { %3332 = vmatmul.mubr.msk.bf16.gmra.mxu0 %vm475_vm0, %v4443_v37  ;;  %v4509_v26 = vadd.f32 %v1163_v5, %v1039_v33 }
 0x24f   : > { %v3268_v35 = vpop.f32.mrf.mxu1  ;;  %3335 = vmatprep.mubr.msk.bf16.mxu0 %vm3731_vm1, %v3730_v24  ;;  %v3222_v39 = vpop.f32.mrf.mxu0 }
 0x251   : > { %v1168_v63 = vpop.f32.mrf.mxu1  ;;  %v1044_v3 = vpop.f32.mrf.mxu0 }
 0x252   : > { %v4513_v29 = vadd.f32 %v1168_v63, %v1044_v3 }
 0x253   : > { %v3271_v30 = vpop.f32.mrf.mxu1  ;;  %v3225_v55 = vpop.f32.mrf.mxu0 }
 0x255   : > { %v1171_v32 = vpop.f32.mrf.mxu1  ;;  %v1047_v40 = vpop.f32.mrf.mxu0 }
 0x256   : > { %v4515_v10 = vadd.f32 %v1171_v32, %v1047_v40 }
 0x257   : > { %v3272_v2 = vpop.f32.mrf.mxu1  ;;  %v3226_v18 = vpop.f32.mrf.mxu0 }
 0x259   : > { %v1176_v37 = vpop.f32.mrf.mxu1  ;;  %v1052_v52 = vpop.f32.mrf.mxu0 }
 0x25a   : > { %v4517_v53 = vadd.f32 %v1176_v37, %v1052_v52 }
 0x25b   : > { %v3275_v42 = vpop.f32.mrf.mxu1  ;;  %v3229_v20 = vpop.f32.mrf.mxu0 }
 0x25d   : > { %v1179_v1 = vpop.f32.mrf.mxu1  ;;  %v1055_v46 = vpop.f32.mrf.mxu0 }
 0x25e   : > { %v4519_v50 = vadd.f32 %v1179_v1, %v1055_v46 }
 0x25f   : > { %v3276_v41 = vpop.f32.mrf.mxu1  ;;  %v3230_v15 = vpop.f32.mrf.mxu0 }
 0x261   : > { %v1184_v11 = vpop.f32.mrf.mxu1  ;;  %v1060_v57 = vpop.f32.mrf.mxu0 }
 0x262   : > { %v4521_v27 = vadd.f32 %v1184_v11, %v1060_v57 }
 0x263   : > { %v3279_v58 = vpop.f32.mrf.mxu1  ;;  %v3233_v45 = vpop.f32.mrf.mxu0 }
 0x265   : > { %v1187_v62 = vpop.f32.mrf.mxu1  ;;  %v1063_v13 = vpop.f32.mrf.mxu0 }
 0x266   : > { %v4523_v60 = vadd.f32 %v1187_v62, %v1063_v13 }
 0x267   : > { %v3280_v6 = vpop.f32.mrf.mxu1  ;;  %v3234_v43 = vpop.f32.mrf.mxu0 }
 0x269   : > { %v1192_v47 = vpop.f32.mrf.mxu1  ;;  %v1068_v51 = vpop.f32.mrf.mxu0 }
 0x26a   : > { %v4525_v23 = vadd.f32 %v1192_v47, %v1068_v51 }
 0x26b   : > { %v3283_v9 = vpop.f32.mrf.mxu1  ;;  %v3237_v28 = vpop.f32.mrf.mxu0 }
 0x26d   : > { %v1195_v14 = vpop.f32.mrf.mxu1  ;;  %v1071_v0 = vpop.f32.mrf.mxu0 }
 0x26e   : > { %v4527_v54 = vadd.f32 %v1195_v14, %v1071_v0 }
 0x26f   : > { %v3284_v17 = vpop.f32.mrf.mxu1  ;;  %v3238_v19 = vpop.f32.mrf.mxu0 }
 0x271   : > { %v1200_v48 = vpop.f32.mrf.mxu1  ;;  %v1076_v36 = vpop.f32.mrf.mxu0 }
 0x272   : > { %v4529_v38 = vadd.f32 %v1200_v48, %v1076_v36 }
 0x273   : > { %v3287_v5 = vpop.f32.mrf.mxu1  ;;  %v3241_v33 = vpop.f32.mrf.mxu0 }
 0x274   : > { %v719_v35 = vpop.xlane.xlu0 %718 }
 0x275   : > { %v753_v39 = vmul.f32 0.0625, %v719_v35  ;;  %v1203_v63 = vpop.f32.mrf.mxu1  ;;  %v1079_v3 = vpop.f32.mrf.mxu0 }
 0x276   : > { %v4531_v55 = vadd.f32 %v1203_v63, %v1079_v3 }
 0x277   : > { %v781_v30 = vadd.f32 1e-05, %v753_v39  ;;  %v3288_v32 = vpop.f32.mrf.mxu1  ;;  %v3242_v40 = vpop.f32.mrf.mxu0 }
 0x278   : > { %v725_v2 = vpop.xlane.xlu0 %724  ;;  %v722_v37 = vpop.xlane.xlu1 %721 }
 0x279   : > { %3674 = vrsqrt.f32 %v781_v30  ;;  %v755_v18 = vmul.f32 0.0625, %v725_v2  ;;  %v4533_v52 = vpop.f32.mrf.mxu1  ;;  %v754_v42 = vmul.f32 0.0625, %v722_v37 }
 0x27b   : > { %v3291_v20 = vpop.f32.mrf.mxu1  ;;  %v783_v1 = vadd.f32 1e-05, %v755_v18  ;;  %v782_v46 = vadd.f32 1e-05, %v754_v42 }
 0x27c   : > { %v728_v41 = vpop.xlane.xlu1 %727 }
 0x27d   : > { %v4535_v15 = vpop.f32.mrf.mxu1  ;;  %3676 = vrsqrt.f32 %v782_v46  ;;  %v756_v11 = vmul.f32 0.0625, %v728_v41 }
 0x27e   : > { %3678 = vrsqrt.f32 %v783_v1 }
 0x27f   : > { %v3292_v57 = vpop.f32.mrf.mxu1  ;;  %v784_v58 = vadd.f32 1e-05, %v756_v11 }
 0x281   : > { %v4537_v45 = vpop.f32.mrf.mxu1  ;;  %3680 = vrsqrt.f32 %v784_v58 }
 0x283   : > { %v3343_v62 = vpop.f32.mrf.mxu1 }
 0x285   : > { %v4539_v13 = vpop.f32.mrf.mxu1 }
 0x286   : > { %v3675_v6 = vpop.eup %3674 }
 0x287   : > { %v3344_v43 = vpop.f32.mrf.mxu1  ;;  %v837_v47 = vmul.f32 %v3675_v6, %v4402_v25 }
 0x289   : > { %v4542_v51 = vpop.f32.mrf.mxu1  ;;  %v872_v0 = vmul.f32 %v4193_v34, %v837_v47 }
 0x28a   : > { %v3677_v9 = vpop.eup %3676 }
 0x28b   : > { %v3347_v28 = vpop.f32.mrf.mxu1  ;;  %v838_v14 = vmul.f32 %v3677_v9, %v4412_v16  ;;  %v3679_v17 = vpop.eup %3678  ;;  %v907_v33 = vadd.f32 %v4206_v59, %v872_v0 }
 0x28c   : > { %v839_v25 = vmul.f32 %v3679_v17, %v4409_v22 }
 0x28d   : > { %v4546_v19 = vpop.f32.mrf.mxu1  ;;  %v873_v48 = vmul.f32 %v4193_v34, %v838_v14 }
 0x28e   : > { %v3681_v36 = vpop.eup %3680  ;;  %v874_v32 = vmul.f32 %v4193_v34, %v839_v25 }
 0x28f   : > { %v3348_v5 = vpop.f32.mrf.mxu1  ;;  %v908_v35 = vadd.f32 %v4206_v59, %v873_v48  ;;  %v840_v39 = vmul.f32 %v3681_v36, %v4422_v4 }
 0x290   : > { %v909_v2 = vadd.f32 %v4206_v59, %v874_v32  ;;  %v4598_v32 = vld [vmem:[%s5448_s4] ss:$0 sm:$0xff] }
 0x291   : > { %v4553_v63 = vpop.f32.mrf.mxu1  ;;  %v923_v16 = vpack.c.bf16 %v908_v35, %v907_v33  ;;  %v875_v3 = vmul.f32 %v4193_v34, %v840_v39 }
 0x293   : > { %v3351_v30 = vpop.f32.mrf.mxu1  ;;  %3336 = vmatmul.mubr.msk.bf16.gmra.mxu0 %vm475_vm0, %v923_v16  ;;  %3378 = vmatmul.mubr.msk.bf16.gmra.mxu1 %vm475_vm0, %v923_v16  ;;  %v910_v22 = vadd.f32 %v4206_v59, %v875_v3 }
 0x294   : > { %3381 = vmatprep.mubr.msk.bf16.mxu1 %vm3731_vm1, %v3730_v24 }
 0x295   : > { %v4559_v40 = vpop.f32.mrf.mxu1  ;;  %v924_v37 = vpack.c.bf16 %v910_v22, %v909_v2 }
 0x297   : > { %v3352_v4 = vpop.f32.mrf.mxu1 }
 0x299   : > { %v4565_v18 = vpop.f32.mrf.mxu1 }
 0x29b   : > { %v3355_v42 = vpop.f32.mrf.mxu1  ;;  %3382 = vmatmul.mubr.msk.bf16.gmra.mxu1 %vm475_vm0, %v924_v37 }
 0x29d   : > { %v4568_v20 = vpop.f32.mrf.mxu1 }
 0x29f   : > { %v3356_v1 = vpop.f32.mrf.mxu1 }
 0x2a1   : > { %v4570_v34 = vpop.f32.mrf.mxu1 }
 0x2a3   : > { %v3359_v46 = vpop.f32.mrf.mxu1 }
 0x2a5   : > { %v4572_v41 = vpop.f32.mrf.mxu1 }
 0x2a7   : > { %v3360_v11 = vpop.f32.mrf.mxu1 }
 0x2a9   : > { %v4574_v57 = vpop.f32.mrf.mxu1 }
 0x2ab   : > { %v3363_v58 = vpop.f32.mrf.mxu1 }
 0x2ad   : > { %v4576_v62 = vpop.f32.mrf.mxu1 }
 0x2af   : > { %v3364_v59 = vpop.f32.mrf.mxu1 }
 0x2b1   : > { %v4578_v6 = vpop.f32.mrf.mxu1 }
 0x2b3   : > { %v3367_v43 = vpop.f32.mrf.mxu1 }
 0x2b5   : > { %v4580_v47 = vpop.f32.mrf.mxu1 }
 0x2b7   : > { %v3368_v9 = vpop.f32.mrf.mxu1 }
 0x2b9   : > { %v4582_v28 = vpop.f32.mrf.mxu1 }
 0x2bb   : > { %v3371_v14 = vpop.f32.mrf.mxu1 }
 0x2bd   : > { %v4584_v0 = vpop.f32.mrf.mxu1 }
 0x2be   : > { %v4586_v17 = vpop.f32.mrf.mxu0 }
 0x2bf   : > { %v3372_v48 = vpop.f32.mrf.mxu1 }
 0x2c0   : > { %v3245_v36 = vpop.f32.mrf.mxu0 }
 0x2c1   : > { %v4588_v5 = vpop.f32.mrf.mxu1 }
 0x2c2   : > { %v4590_v33 = vpop.f32.mrf.mxu0 }
 0x2c3   : > { %v3375_v35 = vpop.f32.mrf.mxu1 }
 0x2c4   : > { %v3246_v25 = vpop.f32.mrf.mxu0 }
 0x2c5   : > { %v4592_v39 = vpop.f32.mrf.mxu1 }
 0x2c6   : > { %v1252_v16 = vpop.f32.mrf.mxu0 }
 0x2c7   : > { %v1339_v3 = vadd.f32 %v1252_v16, %v4473_v31  ;;  %v3376_v30 = vpop.f32.mrf.mxu1 }
 0x2c8   : > { %v3297_v22 = vpop.f32.mrf.mxu0 }
 0x2c9   : > { %v1485_v4 = vadd.f32 %v4537_v45, %v1339_v3 }
 0x2ca   : > { %v1255_v2 = vpop.f32.mrf.mxu0 }
 0x2cb   : > { %v1514_v37 = vadd.f32 %v4598_v32, %v1485_v4  ;;  %v1340_v42 = vadd.f32 %v1255_v2, %v4475_v12 }
 0x2cc   : > { %v3298_v1 = vpop.f32.mrf.mxu0 }
 0x2cd   : > { %1536 = vst [vmem:[#allocation2] sm:$0xff] %v1514_v37  ;;  %v1486_v46 = vadd.f32 %v4539_v13, %v1340_v42 }
 0x2ce   : > { %v1260_v11 = vpop.f32.mrf.mxu0 }
 0x2cf   : > { %v1515_v31 = vadd.f32 %v4598_v32, %v1486_v46  ;;  %v1341_v58 = vadd.f32 %v1260_v11, %v4481_v44 }
 0x2d0   : > { %v3301_v59 = vpop.f32.mrf.mxu0 }
 0x2d1   : > { %1537 = vst [vmem:[#allocation2 + $0x8] sm:$0xff] %v1515_v31  ;;  %v1487_v43 = vadd.f32 %v4542_v51, %v1341_v58 }
 0x2d2   : > { %v1263_v9 = vpop.f32.mrf.mxu0 }
 0x2d3   : > { %v1516_v45 = vadd.f32 %v4598_v32, %v1487_v43  ;;  %v1342_v14 = vadd.f32 %v1263_v9, %v4485_v56 }
 0x2d4   : > { %v3302_v48 = vpop.f32.mrf.mxu0 }
 0x2d5   : > { %1538 = vst [vmem:[#allocation2 + $0x10] sm:$0xff] %v1516_v45  ;;  %v1488_v12 = vadd.f32 %v4546_v19, %v1342_v14 }
 0x2d6   : > { %v1268_v36 = vpop.f32.mrf.mxu0 }
 0x2d7   : > { %v1517_v13 = vadd.f32 %v4598_v32, %v1488_v12  ;;  %v1343_v35 = vadd.f32 %v1268_v36, %v4489_v21 }
 0x2d8   : > { %v3305_v25 = vpop.f32.mrf.mxu0 }
 0x2d9   : > { %1539 = vst [vmem:[#allocation2 + $0x18] sm:$0xff] %v1517_v13  ;;  %v1489_v44 = vadd.f32 %v4553_v63, %v1343_v35 }
 0x2da   : > { %v1271_v16 = vpop.f32.mrf.mxu0 }
 0x2db   : > { %v1518_v51 = vadd.f32 %v4598_v32, %v1489_v44  ;;  %v1344_v3 = vadd.f32 %v1271_v16, %v4493_v61  ;;  %v4624_v61 = vld [vmem:[%s5449_s5] sm:$0xff] }
 0x2dc   : > { %v3306_v30 = vpop.f32.mrf.mxu0 }
 0x2dd   : > { %1540 = vst [vmem:[#allocation2 + $0x20] sm:$0xff] %v1518_v51  ;;  %v1490_v56 = vadd.f32 %v4559_v40, %v1344_v3  ;;  %v4634_v40 = vld [vmem:[%s5449_s5 + $0x10] sm:$0xff] }
 0x2de   : > { %v1276_v22 = vpop.f32.mrf.mxu0 }
 0x2df   : > { %v1519_v19 = vadd.f32 %v4598_v32, %v1490_v56  ;;  %v1345_v4 = vadd.f32 %v1276_v22, %v4497_v7  ;;  %v4629_v7 = vld [vmem:[%s5449_s5 + $0x8] sm:$0xff] }
 0x2e0   : > { %v3309_v2 = vpop.f32.mrf.mxu0 }
 0x2e1   : > { %1541 = vst [vmem:[#allocation2 + $0x28] sm:$0xff] %v1519_v19  ;;  %v1491_v21 = vadd.f32 %v4565_v18, %v1345_v4  ;;  %v4648_v18 = vld [vmem:[%s5449_s5 + $0x18] sm:$0xff] }
 0x2e2   : > { %v1279_v37 = vpop.f32.mrf.mxu0  ;;  %v1568_v11 = vpack.c.bf16 %v4648_v18, %v4634_v40 }
 0x2e3   : > { %v1520_v63 = vadd.f32 %v4598_v32, %v1491_v21  ;;  %v1346_v42 = vadd.f32 %v1279_v37, %v4501_v8 }
 0x2e4   : > { %v3310_v1 = vpop.f32.mrf.mxu0 }
 0x2e5   : > { %1542 = vst [vmem:[#allocation2 + $0x30] sm:$0xff] %v1520_v63  ;;  %v1492_v8 = vadd.f32 %v4568_v20, %v1346_v42  ;;  %v1567_v20 = vpack.c.bf16 %v4629_v7, %v4624_v61 }
 0x2e6   : > { %v1284_v46 = vpop.f32.mrf.mxu0 }
 0x2e7   : > { %v1521_v31 = vadd.f32 %v4598_v32, %v1492_v8  ;;  %v1347_v58 = vadd.f32 %v1284_v46, %v4505_v49 }
 0x2e8   : > { %v3313_v59 = vpop.f32.mrf.mxu0 }
 0x2e9   : > { %1543 = vst [vmem:[#allocation2 + $0x38] sm:$0xff] %v1521_v31  ;;  %v1493_v43 = vadd.f32 %v4570_v34, %v1347_v58 }
 0x2ea   : > { %v1287_v9 = vpop.f32.mrf.mxu0 }
 0x2eb   : > { %v1522_v45 = vadd.f32 %v4598_v32, %v1493_v43  ;;  %v1348_v14 = vadd.f32 %v1287_v9, %v4509_v26 }
 0x2ec   : > { %v3314_v48 = vpop.f32.mrf.mxu0 }
 0x2ed   : > { %1544 = vst [vmem:[#allocation2 + $0x40] sm:$0xff] %v1522_v45  ;;  %v1494_v12 = vadd.f32 %v4572_v41, %v1348_v14 }
 0x2ee   : > { %v1292_v36 = vpop.f32.mrf.mxu0 }
 0x2ef   : > { %v1523_v13 = vadd.f32 %v4598_v32, %v1494_v12  ;;  %v1349_v35 = vadd.f32 %v1292_v36, %v4513_v29 }
 0x2f0   : > { %v3317_v25 = vpop.f32.mrf.mxu0 }
 0x2f1   : > { %1545 = vst [vmem:[#allocation2 + $0x48] sm:$0xff] %v1523_v13  ;;  %v1495_v49 = vadd.f32 %v4574_v57, %v1349_v35 }
 0x2f2   : > { %v1295_v44 = vpop.f32.mrf.mxu0 }
 0x2f3   : > { %v1524_v34 = vadd.f32 %v4598_v32, %v1495_v49  ;;  %v1350_v16 = vadd.f32 %v1295_v44, %v4515_v10  ;;  %v1209_v44 = vadd.f32 %v4533_v52, %v4586_v17 }
 0x2f4   : > { %v3318_v51 = vpop.f32.mrf.mxu0 }
 0x2f5   : > { %1546 = vst [vmem:[#allocation2 + $0x50] sm:$0xff] %v1524_v34  ;;  %v1496_v26 = vadd.f32 %v4576_v62, %v1350_v16 }
 0x2f6   : > { %v1300_v3 = vpop.f32.mrf.mxu0 }
 0x2f7   : > { %v1525_v41 = vadd.f32 %v4598_v32, %v1496_v26  ;;  %v1351_v30 = vadd.f32 %v1300_v3, %v4517_v53  ;;  %v1212_v3 = vadd.f32 %v4535_v15, %v4590_v33 }
 0x2f8   : > { %v3321_v56 = vpop.f32.mrf.mxu0 }
 0x2f9   : > { %1547 = vst [vmem:[#allocation2 + $0x58] sm:$0xff] %v1525_v41  ;;  %v1497_v29 = vadd.f32 %v4578_v6, %v1351_v30 }
 0x2fa   : > { %v1303_v22 = vpop.f32.mrf.mxu0 }
 0x2fb   : > { %v1526_v57 = vadd.f32 %v4598_v32, %v1497_v29  ;;  %v1352_v19 = vadd.f32 %v1303_v22, %v4519_v50 }
 0x2fc   : > { %v3322_v4 = vpop.f32.mrf.mxu0 }
 0x2fd   : > { %1548 = vst [vmem:[#allocation2 + $0x60] sm:$0xff] %v1526_v57  ;;  %v1498_v10 = vadd.f32 %v4580_v47, %v1352_v19 }
 0x2fe   : > { %v1308_v2 = vpop.f32.mrf.mxu0 }
 0x2ff   : > { %v1527_v62 = vadd.f32 %v4598_v32, %v1498_v10  ;;  %v1353_v21 = vadd.f32 %v1308_v2, %v4521_v27 }
 0x300   : > { %v3325_v37 = vpop.f32.mrf.mxu0 }
 0x301   : > { %1549 = vst [vmem:[#allocation2 + $0x68] sm:$0xff] %v1527_v62  ;;  %v1499_v53 = vadd.f32 %v4582_v28, %v1353_v21 }
 0x302   : > { %v1311_v63 = vpop.f32.mrf.mxu0 }
 0x303   : > { %v1528_v6 = vadd.f32 %v4598_v32, %v1499_v53  ;;  %v1354_v42 = vadd.f32 %v1311_v63, %v4523_v60 }
 0x304   : > { %v3326_v1 = vpop.f32.mrf.mxu0 }
 0x305   : > { %1550 = vst [vmem:[#allocation2 + $0x70] sm:$0xff] %v1528_v6  ;;  %v1500_v50 = vadd.f32 %v4584_v0, %v1354_v42 }
 0x306   : > { %v1316_v8 = vpop.f32.mrf.mxu0 }
 0x307   : > { %v1529_v47 = vadd.f32 %v4598_v32, %v1500_v50  ;;  %v1355_v46 = vadd.f32 %v1316_v8, %v4525_v23 }
 0x308   : > { %v3329_v31 = vpop.f32.mrf.mxu0 }
 0x309   : > { %1551 = vst [vmem:[#allocation2 + $0x78] sm:$0xff] %v1529_v47  ;;  %v1501_v27 = vadd.f32 %v4588_v5, %v1355_v46 }
 0x30a   : > { %v1319_v58 = vpop.f32.mrf.mxu0 }
 0x30b   : > { %v1530_v28 = vadd.f32 %v4598_v32, %v1501_v27  ;;  %v1356_v59 = vadd.f32 %v1319_v58, %v4527_v54 }
 0x30c   : > { %v3330_v43 = vpop.f32.mrf.mxu0 }
 0x30d   : > { %1552 = vst [vmem:[#allocation2 + $0x80] sm:$0xff] %v1530_v28  ;;  %v1502_v60 = vadd.f32 %v4592_v39, %v1356_v59 }
 0x30e   : > { %v1324_v9 = vpop.f32.mrf.mxu0 }
 0x30f   : > { %v1531_v0 = vadd.f32 %v4598_v32, %v1502_v60  ;;  %v1357_v45 = vadd.f32 %v1324_v9, %v4529_v38 }
 0x310   : > { %v3333_v14 = vpop.f32.mrf.mxu0 }
 0x311   : > { %1553 = vst [vmem:[#allocation2 + $0x88] sm:$0xff] %v1531_v0 }
 0x312   : > { %v1327_v23 = vpop.f32.mrf.mxu0 }
 0x313   : > { %v1358_v48 = vadd.f32 %v1327_v23, %v4531_v55 }
 0x314   : > { %v3334_v5 = vpop.f32.mrf.mxu0 }
 0x353   : > { %v1332_v12 = vpop.f32.mrf.mxu0  ;;  %v1470_v36 = vpop.f32.mrf.mxu1 }
 0x354   : > { %v1503_v13 = vadd.f32 %v1470_v36, %v1357_v45  ;;  %v1359_v51 = vadd.f32 %v1332_v12, %v1209_v44 }
 0x355   : > { %v3337_v35 = vpop.f32.mrf.mxu0  ;;  %v3379_v54 = vpop.f32.mrf.mxu1 }
 0x356   : > { %v1532_v25 = vadd.f32 %v4598_v32, %v1503_v13 }
 0x357   : > { %v1335_v49 = vpop.f32.mrf.mxu0  ;;  %v1473_v39 = vpop.f32.mrf.mxu1 }
 0x358   : > { %1554 = vst [vmem:[#allocation2 + $0x90] sm:$0xff] %v1532_v25  ;;  %v1504_v38 = vadd.f32 %v1473_v39, %v1358_v48  ;;  %v1360_v56 = vadd.f32 %v1335_v49, %v1212_v3 }
 0x359   : > { %v3338_v34 = vpop.f32.mrf.mxu0  ;;  %v3380_v16 = vpop.f32.mrf.mxu1 }
 0x35a   : > { %v1533_v55 = vadd.f32 %v4598_v32, %v1504_v38 }
 0x35b   : > { %v1478_v26 = vpop.f32.mrf.mxu1 }
 0x35c   : > { %1555 = vst [vmem:[#allocation2 + $0x98] sm:$0xff] %v1533_v55  ;;  %v1505_v41 = vadd.f32 %v1478_v26, %v1359_v51 }
 0x35d   : > { %v3383_v30 = vpop.f32.mrf.mxu1 }
 0x35e   : > { %v1534_v29 = vadd.f32 %v4598_v32, %v1505_v41 }
 0x35f   : > { %v1481_v22 = vpop.f32.mrf.mxu1 }
 0x360   : > { %1556 = vst [vmem:[#allocation2 + $0xa0] sm:$0xff] %v1534_v29  ;;  %v1506_v52 = vadd.f32 %v1481_v22, %v1360_v56 }
 0x361   : > { %v3384_v17 = vpop.f32.mrf.mxu1 }
 0x362   : > { %v1535_v57 = vadd.f32 %v4598_v32, %v1506_v52 }
 0x364   : > { %1557 = vst [vmem:[#allocation2 + $0xa8] sm:$0xff] %v1535_v57 }
 0x365 LB: >> { %v1642_v15 = vld [vmem:[#allocation4] sm:$0xff]  ;;  %v3732_v33 = vmov 0.0   ;;  %vm3733_vm3 = vmmov 0   ;;  %v1579_v32 = vld [vmem:[#allocation3] sm:$0xff]  ;;  %v1580_v19 = vld [vmem:[#allocation3 + $0x8] sm:$0xff]  ;;  %s3734_s22 = smov 32   ;;  %s3728_s27 = sphi %s4698_s27, %s1574_s27  }
 0x366   : >> { %3385 = vmatprep.subr.bf16.mxu0 %v3732_v33  ;;  %3389 = vmatprep.mubr.msk.bf16.mxu0 %vm3733_vm3, %v3732_v33  ;;  %v1643_v4 = vld [vmem:[#allocation4 + $0x8] sm:$0xff]  ;;  %v1581_v10 = vpack.c.bf16 %v1580_v19, %v1579_v32  ;;  %s2911_s10 = sshll.u32 %s3728_s27, 4  ;;  %s3735_s14 = smov 64  }
 0x367   : >> { %3386 = vmatpush3.bf16.msra.mxu0 %v1568_v11  ;;  %1646 = vrot.lane.b32.xlu1 %v1642_v15, %s3734_s22  ;;  %s1576_s11 = scalar_lea.vmem [#allocation2], %s2911_s10  ;;  %s3736_s15 = smov 96  }
 0x368   : >> { %3387 = vmatprep.subr.bf16.mxu0 %v3732_v33  ;;  %s1706_s16 = scalar_lea.vmem [#allocation5], %s2911_s10  ;;  %s1574_s27 = sadd.s32 1, %s3728_s27  }
 0x369   : >> { %p1571_p10 = scmp.ge.s32.totalorder %s1574_s27, 11  }
 0x36a   : > { %v1802_v55 = vld [vmem:[%s5450_s6 + $0x10] sm:$0xff] (%p1571_p10)  ;;  %v1803_v26 = vld [vmem:[%s5450_s6 + $0x18] sm:$0xff] (%p1571_p10)  ;;  %v1800_v3 = vld [vmem:[%s5450_s6] sm:$0xff] (%p1571_p10)  ;;  %3441 = vmatprep.subr.bf16.mxu1 (%p1571_p10), %v3730_v24  ;;  %3445 = vmatprep.mubr.msk.bf16.mxu1 (%p1571_p10), %vm3731_vm1, %v3730_v24 }
 0x36b   : >> { %3388 = vmatpush3.bf16.msra.mxu0 %v1567_v20  ;;  %1648 = vrot.lane.b32.xlu1 %v1643_v4, %s3734_s22  ;;  %v1577_v2 = vld [vmem:[%s1576_s11] sm:$0xff]  ;;  %v1578_v53 = vld [vmem:[%s1576_s11 + $0x8] sm:$0xff]  ;;  %v1817_v41 = vpack.c.bf16 (%p1571_p10), %v1803_v26, %v1802_v55  ;;  %v1806_v7 = vld [vmem:[%s5450_s6 + $0x30] sm:$0xff] (%p1571_p10) }
 0x36c   : > { %3393 = vmatprep.subr.bf16.mxu0 (%p1571_p10), %v3730_v24  ;;  %v1801_v61 = vld [vmem:[%s5450_s6 + $0x8] sm:$0xff] (%p1571_p10)  ;;  %v1807_v40 = vld [vmem:[%s5450_s6 + $0x38] sm:$0xff] (%p1571_p10)  ;;  %v1804_v56 = vld [vmem:[%s5450_s6 + $0x20] sm:$0xff] (%p1571_p10) }
 0x36d   : > { %v1819_v18 = vpack.c.bf16 (%p1571_p10), %v1807_v40, %v1806_v7  ;;  %v1816_v11 = vpack.c.bf16 (%p1571_p10), %v1801_v61, %v1800_v3  ;;  %v1805_v29 = vld [vmem:[%s5450_s6 + $0x28] sm:$0xff] (%p1571_p10)  ;;  %v1810_v22 = vld [vmem:[%s5450_s6 + $0x50] sm:$0xff] (%p1571_p10)  ;;  %v1811_v52 = vld [vmem:[%s5450_s6 + $0x58] sm:$0xff] (%p1571_p10) }
 0x36e   : >> { %3390 = vmatmul.mubr.msk.bf16.vlgmr.msra.gmra.mxu0 %vm1558_vm2, %v1581_v10  ;;  %v1818_v17 = vpack.c.bf16 (%p1571_p10), %v1805_v29, %v1804_v56  ;;  %v1814_v57 = vld [vmem:[%s5450_s6 + $0x70] sm:$0xff] (%p1571_p10)  ;;  %v1815_v15 = vld [vmem:[%s5450_s6 + $0x78] sm:$0xff] (%p1571_p10)  ;;  %v1821_v32 = vpack.c.bf16 (%p1571_p10), %v1811_v52, %v1810_v22  ;;  %v1808_v4 = vld [vmem:[%s5450_s6 + $0x40] sm:$0xff] (%p1571_p10) }
 0x36f   : > { %3397 = vmatprep.mubr.msk.bf16.mxu0 (%p1571_p10), %vm3731_vm1, %v3730_v24  ;;  %3394 = vmatpush3.bf16.msra.mxu0 (%p1571_p10), %v1817_v41  ;;  %v1823_v19 = vpack.c.bf16 (%p1571_p10), %v1815_v15, %v1814_v57  ;;  %v1809_v10 = vld [vmem:[%s5450_s6 + $0x48] sm:$0xff] (%p1571_p10)  ;;  %v1713_v55 = vld [vmem:[%s3888_s23 + $0x20] sm:$0xff] (%p1571_p10)  ;;  %v1720_v15 = vld [vmem:[%s3888_s23 + $0x58] sm:$0xff] (%p1571_p10) }
 0x370   : > { %3395 = vmatprep.subr.bf16.mxu0 (%p1571_p10), %v3730_v24  ;;  %3442 = vmatpush3.bf16.msra.mxu1 (%p1571_p10), %v1819_v18  ;;  %v1714_v61 = vld [vmem:[%s3888_s23 + $0x28] sm:$0xff] (%p1571_p10)  ;;  %v1715_v18 = vld [vmem:[%s3888_s23 + $0x30] sm:$0xff] (%p1571_p10)  ;;  %v1717_v56 = vld [vmem:[%s3888_s23 + $0x40] sm:$0xff] (%p1571_p10) }
 0x371   : > { %3443 = vmatprep.subr.bf16.mxu1 (%p1571_p10), %v3730_v24  ;;  %v1718_v22 = vld [vmem:[%s3888_s23 + $0x48] sm:$0xff] (%p1571_p10) }
 0x373   : > { %3396 = vmatpush3.bf16.msra.mxu0 (%p1571_p10), %v1816_v11  ;;  %v1716_v11 = vld [vmem:[%s3888_s23 + $0x38] sm:$0xff] (%p1571_p10) }
 0x374   : > { %3489 = vmatprep.subr.bf16.mxu0 (%p1571_p10), %v3730_v24  ;;  %3444 = vmatpush3.bf16.msra.mxu1 (%p1571_p10), %v1818_v17  ;;  %v1719_v17 = vld [vmem:[%s3888_s23 + $0x50] sm:$0xff] (%p1571_p10) }
 0x375   : > { %3537 = vmatprep.subr.bf16.mxu1 (%p1571_p10), %v3730_v24 }
 0x3d9   : >> { %v1647_v45 = vpop.permute.xlu1 %1646 }
 0x3dd   : >> { %v1649_v23 = vpop.permute.xlu1 %1648 }
 0x42e   : >> { %v1619_v62 = vpop.f32.mrf.mxu0 }
 0x42f   : >> { %v1626_v21 = vadd.f32 %v1619_v62, %v1577_v2  ;;  %v1812_v2 = vld [vmem:[%s5450_s6 + $0x60] sm:$0xff] (%p1571_p10)  ;;  %v1813_v62 = vld [vmem:[%s5450_s6 + $0x68] sm:$0xff] (%p1571_p10) }
 0x430   : >> { %v3391_v37 = vpop.f32.mrf.mxu0 }
 0x431   : >> { %3682 = vtanh.f32 %v1626_v21  ;;  %v2913_v8 = vmul.f32 -1.442695, %v1626_v21 }
 0x432   : >> { %v1622_v63 = vpop.f32.mrf.mxu0 }
 0x433   : >> { %v1627_v6 = vadd.f32 %v1622_v63, %v1578_v53  ;;  %v1820_v53 = vpack.c.bf16 (%p1571_p10), %v1809_v10, %v1808_v4  ;;  %v1822_v63 = vpack.c.bf16 (%p1571_p10), %v1813_v62, %v1812_v2  ;;  %v1722_v4 = vld [vmem:[%s3888_s23 + $0x68] sm:$0xff] (%p1571_p10)  ;;  %v1723_v2 = vld [vmem:[%s3888_s23 + $0x70] sm:$0xff] (%p1571_p10) }
 0x434   : >> { %v3392_v42 = vpop.f32.mrf.mxu0 }
 0x435   : >> { %3684 = vtanh.f32 %v1627_v6  ;;  %v2914_v47 = vmul.f32 -1.442695, %v1627_v6 }
 0x436   : >> { %3686 = vpow2.f32 %v2913_v8 }
 0x437   : >> { %3688 = vpow2.f32 %v2914_v47 }
 0x43e   : >> { %v3683_v1 = vpop.eup %3682 }
 0x43f   : >> { %1656 = vrot.lane.b32.xlu0 %v3683_v1, %s3735_s14 }
 0x442   : >> { %v3685_v50 = vpop.eup %3684 }
 0x443   : >> { %1658 = vrot.lane.b32.xlu0 %v3685_v50, %s3735_s14  ;;  %v3687_v46 = vpop.eup %3686 }
 0x444   : >> { %v1634_v31 = vadd.f32 1.0, %v3687_v46  ;;  %v3689_v27 = vpop.eup %3688 }
 0x445   : >> { %v1635_v58 = vadd.f32 1.0, %v3689_v27 }
 0x446   : >> { %3690 = vrcp.f32 %v1634_v31 }
 0x447   : >> { %3692 = vrcp.f32 %v1635_v58 }
 0x453   : >> { %v3691_v28 = vpop.eup %3690 }
 0x454   : >> { %v3693_v60 = vpop.eup %3692  ;;  %v1652_v14 = vmul.f32 %v3691_v28, %v1647_v45  ;;  %v4856_v45 = vld [vmem:[%s5451_s7] ss:$0 sm:$0xff] (%p1571_p10) }
 0x455   : >> { %v1653_v12 = vmul.f32 %v3693_v60, %v1649_v23  ;;  %v1748_v26 = vadd.f32 (%p1571_p10), %v4856_v45, %v1713_v55  ;;  %v1749_v7 = vadd.f32 (%p1571_p10), %v4856_v45, %v1714_v61  ;;  %v1752_v29 = vadd.f32 (%p1571_p10), %v4856_v45, %v1717_v56 }
 0x456   : > { %v1753_v52 = vadd.f32 (%p1571_p10), %v4856_v45, %v1718_v22  ;;  %v1754_v57 = vadd.f32 (%p1571_p10), %v4856_v45, %v1719_v17  ;;  %v1757_v10 = vadd.f32 (%p1571_p10), %v4856_v45, %v1722_v4  ;;  %v1758_v62 = vadd.f32 (%p1571_p10), %v4856_v45, %v1723_v2 }
 0x457   : > { %1776 = vst.msk [vmem:[%s4696_s26 + $0x20] sm:$0xff] (%p1571_p10), %vm475_vm0, %v1748_v26  ;;  %1777 = vst.msk [vmem:[%s4696_s26 + $0x28] sm:$0xff] (%p1571_p10), %vm475_vm0, %v1749_v7 }
 0x458   : > { %1780 = vst.msk [vmem:[%s4696_s26 + $0x40] sm:$0xff] (%p1571_p10), %vm475_vm0, %v1752_v29  ;;  %1781 = vst.msk [vmem:[%s4696_s26 + $0x48] sm:$0xff] (%p1571_p10), %vm475_vm0, %v1753_v52 }
 0x459   : > { %1782 = vst.msk [vmem:[%s4696_s26 + $0x50] sm:$0xff] (%p1571_p10), %vm475_vm0, %v1754_v57  ;;  %1785 = vst.msk [vmem:[%s4696_s26 + $0x68] sm:$0xff] (%p1571_p10), %vm475_vm0, %v1757_v10 }
 0x45a   : > { %1786 = vst.msk [vmem:[%s4696_s26 + $0x70] sm:$0xff] (%p1571_p10), %vm475_vm0, %v1758_v62 }
 0x4b1   : >> { %v1657_v59 = vpop.permute.xlu0 %1656 }
 0x4b2   : >> { %v1662_v43 = vmul.f32 %v3691_v28, %v1657_v59 }
 0x4b4   : >> { %1666 = vrot.lane.b32.xlu0 %v1662_v43, %s3734_s22 }
 0x4b5   : >> { %v1659_v9 = vpop.permute.xlu0 %1658 }
 0x4b6   : >> { %v1663_v0 = vmul.f32 %v3693_v60, %v1659_v9 }
 0x4b8   : >> { %1668 = vrot.lane.b32.xlu1 %v1663_v0, %s3734_s22  ;;  %v1709_v0 = vld [vmem:[%s3888_s23] sm:$0xff] (%p1571_p10) }
 0x526   : >> { %v1667_v48 = vpop.permute.xlu0 %1666 }
 0x527   : >> { %v1672_v5 = vadd.f32 %v1667_v48, %v1652_v14  ;;  %v1744_v14 = vadd.f32 (%p1571_p10), %v4856_v45, %v1709_v0 }
 0x529   : >> { %3694 = vtanh.f32 %v1672_v5  ;;  %1772 = vst.msk [vmem:[%s4696_s26] sm:$0xff] (%p1571_p10), %vm475_vm0, %v1744_v14 }
 0x52a   : >> { %v1669_v36 = vpop.permute.xlu1 %1668 }
 0x52b   : >> { %v1673_v13 = vadd.f32 %v1669_v36, %v1653_v12 }
 0x52d   : >> { %3696 = vtanh.f32 %v1673_v13 }
 0x536   : >> { %v3695_v35 = vpop.eup %3694 }
 0x537   : >> { %1678 = vrot.lane.b32.xlu0 %v3695_v35, %s3735_s14  ;;  %v1710_v35 = vld [vmem:[%s3888_s23 + $0x8] sm:$0xff] (%p1571_p10) }
 0x53a   : >> { %v3697_v54 = vpop.eup %3696 }
 0x53b   : >> { %1680 = vrot.lane.b32.xlu1 %v3697_v54, %s3735_s14  ;;  %1688 = vrot.lane.b32.xlu0 %v1672_v5, %s3736_s15  ;;  %v1745_v54 = vadd.f32 (%p1571_p10), %v4856_v45, %v1710_v35 }
 0x53d   : > { %1773 = vst.msk [vmem:[%s4696_s26 + $0x8] sm:$0xff] (%p1571_p10), %vm475_vm0, %v1745_v54 }
 0x53f   : >> { %1690 = vrot.lane.b32.xlu1 %v1673_v13, %s3736_s15 }
 0x5a9   : >> { %v1679_v25 = vpop.permute.xlu0 %1678 }
 0x5aa   : >> { %v1684_v49 = vmul.f32 %v3691_v28, %v1679_v25 }
 0x5ac   : >> { %1698 = vrot.lane.b32.xlu0 %v1684_v49, %s3734_s22  ;;  %v1711_v49 = vld [vmem:[%s3888_s23 + $0x10] sm:$0xff] (%p1571_p10) }
 0x5ad   : >> { %v1681_v39 = vpop.permute.xlu1 %1680  ;;  %v1689_v44 = vpop.permute.xlu0 %1688 }
 0x5ae   : >> { %v1685_v38 = vmul.f32 %v3693_v60, %v1681_v39  ;;  %1694 = vst.msk [vmem:[#allocation4] sm:$0xff] %vm1558_vm2, %v1689_v44  ;;  %v1746_v39 = vadd.f32 (%p1571_p10), %v4856_v45, %v1711_v49 }
 0x5b0   : >> { %1700 = vrot.lane.b32.xlu1 %v1685_v38, %s3734_s22  ;;  %1774 = vst.msk [vmem:[%s4696_s26 + $0x10] sm:$0xff] (%p1571_p10), %vm475_vm0, %v1746_v39 }
 0x5b1   : >> { %v1691_v34 = vpop.permute.xlu1 %1690 }
 0x5b2   : >> { %1695 = vst.msk [vmem:[#allocation4 + $0x8] sm:$0xff] %vm1558_vm2, %v1691_v34  ;;  %v1712_v34 = vld [vmem:[%s3888_s23 + $0x18] sm:$0xff] (%p1571_p10) }
 0x5b7   : > { %v2013_v54 = vld [vmem:[%s4696_s26 + $0x10] sm:$0xff] (%p1571_p10) }
 0x61e   : >> { %v1699_v16 = vpop.permute.xlu0 %1698 }
 0x61f   : >> { %1704 = vst.msk [vmem:[#allocation3] sm:$0xff] %vm1558_vm2, %v1699_v16  ;;  %1707 = vst.msk [vmem:[%s1706_s16] sm:$0xff] %vm1558_vm2, %v1699_v16  ;;  %v1747_v16 = vadd.f32 (%p1571_p10), %v4856_v45, %v1712_v34 }
 0x621   : > { %1775 = vst.msk [vmem:[%s4696_s26 + $0x18] sm:$0xff] (%p1571_p10), %vm475_vm0, %v1747_v16 }
 0x622   : >> { %v1701_v51 = vpop.permute.xlu1 %1700 }
 0x623   : >> { %1705 = vst.msk [vmem:[#allocation3 + $0x8] sm:$0xff] %vm1558_vm2, %v1701_v51  ;;  %1708 = vst.msk [vmem:[%s1706_s16 + $0x8] sm:$0xff] %vm1558_vm2, %v1701_v51 }
 0x624   : > { %1573 = sbr.rel (!%p1571_p10) target bundleno = 869 (0x365), region = 175 }
 0x628   : > { %v2014_v34 = vld [vmem:[%s4696_s26 + $0x18] sm:$0xff] (%p1571_p10) }
 0x62a   : > { %v1824_v20 = vld [vmem:[#allocation5] sm:$0xff]  ;;  %v1825_v30 = vld [vmem:[#allocation5 + $0x8] sm:$0xff]  ;;  %v1826_v21 = vld [vmem:[#allocation5 + $0x10] sm:$0xff] }
 0x62b   : > { %v4778_v33 = vpack.c.bf16 %v1825_v30, %v1824_v20  ;;  %v1827_v37 = vld [vmem:[#allocation5 + $0x18] sm:$0xff]  ;;  %v1828_v42 = vld [vmem:[#allocation5 + $0x20] sm:$0xff]  ;;  %v1829_v1 = vld [vmem:[#allocation5 + $0x28] sm:$0xff]  ;;  %v1750_v20 = vadd.f32 %v4856_v45, %v1715_v18  ;;  %v1751_v30 = vadd.f32 %v4856_v45, %v1716_v11 }
 0x62c   : > { %v4803_v6 = vpack.c.bf16 %v1827_v37, %v1826_v21  ;;  %v4814_v50 = vpack.c.bf16 %v1829_v1, %v1828_v42  ;;  %v1830_v8 = vld [vmem:[#allocation5 + $0x30] sm:$0xff]  ;;  %v1831_v47 = vld [vmem:[#allocation5 + $0x38] sm:$0xff]  ;;  %v1832_v31 = vld [vmem:[#allocation5 + $0x40] sm:$0xff] }
 0x62d   : > { %3398 = vmatmul.mubr.msk.bf16.vlgmr.msra.gmra.mxu0 %vm1558_vm2, %v4778_v33  ;;  %3446 = vmatmul.mubr.msk.bf16.vlgmr.msra.gmra.mxu1 %vm1558_vm2, %v4778_v33  ;;  %v4824_v46 = vpack.c.bf16 %v1831_v47, %v1830_v8  ;;  %v1833_v27 = vld [vmem:[#allocation5 + $0x48] sm:$0xff]  ;;  %v1834_v28 = vld [vmem:[#allocation5 + $0x50] sm:$0xff]  ;;  %v1835_v59 = vld [vmem:[#allocation5 + $0x58] sm:$0xff]  ;;  %1778 = vst.msk [vmem:[%s4696_s26 + $0x30] sm:$0xff] %vm475_vm0, %v1750_v20 }
 0x62e   : > { %3490 = vmatpush3.bf16.msra.mxu0 %v1821_v32  ;;  %3401 = vmatprep.mubr.msk.bf16.mxu0 %vm3731_vm1, %v3730_v24  ;;  %v4834_v58 = vpack.c.bf16 %v1833_v27, %v1832_v31  ;;  %v4844_v43 = vpack.c.bf16 %v1835_v59, %v1834_v28  ;;  %v1836_v60 = vld [vmem:[#allocation5 + $0x60] sm:$0xff]  ;;  %v1837_v9 = vld [vmem:[#allocation5 + $0x68] sm:$0xff]  ;;  %v1838_v48 = vld [vmem:[#allocation5 + $0x70] sm:$0xff]  ;;  %1779 = vst.msk [vmem:[%s4696_s26 + $0x38] sm:$0xff] %vm475_vm0, %v1751_v30 }
 0x62f   : > { %3538 = vmatpush3.bf16.msra.mxu1 %v1823_v19  ;;  %3449 = vmatprep.mubr.msk.bf16.mxu1 %vm3731_vm1, %v3730_v24  ;;  %v4861_v23 = vpack.c.bf16 %v1837_v9, %v1836_v60  ;;  %v1839_v5 = vld [vmem:[#allocation5 + $0x78] sm:$0xff]  ;;  %v1840_v36 = vld [vmem:[#allocation5 + $0x80] sm:$0xff]  ;;  %v1841_v13 = vld [vmem:[#allocation5 + $0x88] sm:$0xff] }
 0x630   : > { %3491 = vmatprep.subr.bf16.mxu0 %v3730_v24  ;;  %3539 = vmatprep.subr.bf16.mxu1 %v3730_v24  ;;  %v4873_v12 = vpack.c.bf16 %v1839_v5, %v1838_v48  ;;  %v4885_v25 = vpack.c.bf16 %v1841_v13, %v1840_v36  ;;  %v1842_v44 = vld [vmem:[#allocation5 + $0x90] sm:$0xff]  ;;  %v1843_v38 = vld [vmem:[#allocation5 + $0x98] sm:$0xff]  ;;  %v1844_v3 = vld [vmem:[#allocation5 + $0xa0] sm:$0xff] }
 0x631   : > { %v4903_v51 = vpack.c.bf16 %v1843_v38, %v1842_v44  ;;  %v1845_v41 = vld [vmem:[#allocation5 + $0xa8] sm:$0xff]  ;;  %v1721_v32 = vld [vmem:[%s3888_s23 + $0x60] sm:$0xff]  ;;  %v1727_v1 = vld [vmem:[%s3888_s23 + $0x90] sm:$0xff] }
 0x632   : > { %3492 = vmatpush3.bf16.msra.mxu0 %v1820_v53  ;;  %v4921_v40 = vpack.c.bf16 %v1845_v41, %v1844_v3  ;;  %v1756_v19 = vadd.f32 %v4856_v45, %v1721_v32  ;;  %v1724_v21 = vld [vmem:[%s3888_s23 + $0x78] sm:$0xff]  ;;  %v1725_v53 = vld [vmem:[%s3888_s23 + $0x80] sm:$0xff]  ;;  %v1730_v27 = vld [vmem:[%s3888_s23 + $0xa8] sm:$0xff] }
 0x633   : > { %3540 = vmatpush3.bf16.msra.mxu1 %v1822_v63  ;;  %v1759_v37 = vadd.f32 %v4856_v45, %v1724_v21  ;;  %v1760_v63 = vadd.f32 %v4856_v45, %v1725_v53  ;;  %v1728_v8 = vld [vmem:[%s3888_s23 + $0x98] sm:$0xff]  ;;  %v1731_v28 = vld [vmem:[%s3888_s23 + $0xb0] sm:$0xff]  ;;  %v2011_v9 = vld [vmem:[%s4696_s26] sm:$0xff] }
 0x634   : > { %1784 = vst.msk [vmem:[%s4696_s26 + $0x60] sm:$0xff] %vm475_vm0, %v1756_v19  ;;  %v1763_v47 = vadd.f32 %v4856_v45, %v1728_v8  ;;  %v1732_v59 = vld [vmem:[%s3888_s23 + $0xb8] sm:$0xff]  ;;  %v2012_v5 = vld [vmem:[%s4696_s26 + $0x8] sm:$0xff]  ;;  %v2015_v41 = vld [vmem:[%s4696_s26 + $0x20] sm:$0xff] }
 0x635   : > { %3402 = vmatmul.mubr.msk.bf16.gmra.mxu0 %vm1558_vm2, %v4803_v6  ;;  %3450 = vmatmul.mubr.msk.bf16.gmra.mxu1 %vm1558_vm2, %v4803_v6  ;;  %1787 = vst.msk [vmem:[%s4696_s26 + $0x78] sm:$0xff] %vm475_vm0, %v1759_v37  ;;  %1788 = vst.msk [vmem:[%s4696_s26 + $0x80] sm:$0xff] %vm475_vm0, %v1760_v63  ;;  %v1767_v60 = vadd.f32 %v4856_v45, %v1732_v59  ;;  %v2016_v30 = vld [vmem:[%s4696_s26 + $0x28] sm:$0xff]  ;;  %v2018_v21 = vld [vmem:[%s4696_s26 + $0x38] sm:$0xff] }
 0x636   : > { %3405 = vmatprep.mubr.msk.bf16.mxu0 %vm3731_vm1, %v3730_v24  ;;  %3453 = vmatprep.mubr.msk.bf16.mxu1 %vm3731_vm1, %v3730_v24  ;;  %1791 = vst.msk [vmem:[%s4696_s26 + $0x98] sm:$0xff] %vm475_vm0, %v1763_v47  ;;  %v2019_v8 = vld [vmem:[%s4696_s26 + $0x40] sm:$0xff] }
 0x637   : > { %1795 = vst.msk [vmem:[%s4696_s26 + $0xb8] sm:$0xff] %vm475_vm0, %v1767_v60 }
 0x63d   : > { %3406 = vmatmul.mubr.msk.bf16.gmra.mxu0 %vm1558_vm2, %v4814_v50  ;;  %3454 = vmatmul.mubr.msk.bf16.gmra.mxu1 %vm1558_vm2, %v4814_v50 }
 0x63e   : > { %3409 = vmatprep.mubr.msk.bf16.mxu0 %vm3731_vm1, %v3730_v24  ;;  %3457 = vmatprep.mubr.msk.bf16.mxu1 %vm3731_vm1, %v3730_v24 }
 0x645   : > { %3410 = vmatmul.mubr.msk.bf16.gmra.mxu0 %vm1558_vm2, %v4824_v46  ;;  %3458 = vmatmul.mubr.msk.bf16.gmra.mxu1 %vm1558_vm2, %v4824_v46 }
 0x646   : > { %3413 = vmatprep.mubr.msk.bf16.mxu0 %vm3731_vm1, %v3730_v24  ;;  %3461 = vmatprep.mubr.msk.bf16.mxu1 %vm3731_vm1, %v3730_v24 }
 0x64d   : > { %3414 = vmatmul.mubr.msk.bf16.gmra.mxu0 %vm1558_vm2, %v4834_v58  ;;  %3462 = vmatmul.mubr.msk.bf16.gmra.mxu1 %vm1558_vm2, %v4834_v58 }
 0x64e   : > { %3417 = vmatprep.mubr.msk.bf16.mxu0 %vm3731_vm1, %v3730_v24  ;;  %3465 = vmatprep.mubr.msk.bf16.mxu1 %vm3731_vm1, %v3730_v24 }
 0x655   : > { %3418 = vmatmul.mubr.msk.bf16.gmra.mxu0 %vm1558_vm2, %v4844_v43  ;;  %3466 = vmatmul.mubr.msk.bf16.gmra.mxu1 %vm1558_vm2, %v4844_v43 }
 0x656   : > { %3421 = vmatprep.mubr.msk.bf16.mxu0 %vm3731_vm1, %v3730_v24  ;;  %3469 = vmatprep.mubr.msk.bf16.mxu1 %vm3731_vm1, %v3730_v24 }
 0x65d   : > { %3422 = vmatmul.mubr.msk.bf16.gmra.mxu0 %vm1558_vm2, %v4861_v23  ;;  %3470 = vmatmul.mubr.msk.bf16.gmra.mxu1 %vm1558_vm2, %v4861_v23 }
 0x65e   : > { %3425 = vmatprep.mubr.msk.bf16.mxu0 %vm3731_vm1, %v3730_v24  ;;  %3473 = vmatprep.mubr.msk.bf16.mxu1 %vm3731_vm1, %v3730_v24 }
 0x665   : > { %3426 = vmatmul.mubr.msk.bf16.gmra.mxu0 %vm1558_vm2, %v4873_v12  ;;  %3474 = vmatmul.mubr.msk.bf16.gmra.mxu1 %vm1558_vm2, %v4873_v12 }
 0x666   : > { %3429 = vmatprep.mubr.msk.bf16.mxu0 %vm3731_vm1, %v3730_v24  ;;  %3477 = vmatprep.mubr.msk.bf16.mxu1 %vm3731_vm1, %v3730_v24 }
 0x66d   : > { %3430 = vmatmul.mubr.msk.bf16.gmra.mxu0 %vm1558_vm2, %v4885_v25  ;;  %3478 = vmatmul.mubr.msk.bf16.gmra.mxu1 %vm1558_vm2, %v4885_v25 }
 0x66e   : > { %3433 = vmatprep.mubr.msk.bf16.mxu0 %vm3731_vm1, %v3730_v24  ;;  %3481 = vmatprep.mubr.msk.bf16.mxu1 %vm3731_vm1, %v3730_v24 }
 0x675   : > { %3434 = vmatmul.mubr.msk.bf16.gmra.mxu0 %vm1558_vm2, %v4903_v51  ;;  %3482 = vmatmul.mubr.msk.bf16.gmra.mxu1 %vm1558_vm2, %v4903_v51 }
 0x676   : > { %3437 = vmatprep.mubr.msk.bf16.mxu0 %vm3731_vm1, %v3730_v24  ;;  %3485 = vmatprep.mubr.msk.bf16.mxu1 %vm3731_vm1, %v3730_v24 }
 0x67d   : > { %3438 = vmatmul.mubr.msk.bf16.gmra.mxu0 %vm1558_vm2, %v4921_v40  ;;  %3486 = vmatmul.mubr.msk.bf16.gmra.mxu1 %vm1558_vm2, %v4921_v40 }
 0x67e   : > { %3493 = vmatprep.mubr.msk.bf16.mxu0 %vm3731_vm1, %v3730_v24  ;;  %3541 = vmatprep.mubr.msk.bf16.mxu1 %vm3731_vm1, %v3730_v24 }
 0x685   : > { %3494 = vmatmul.mubr.msk.bf16.vlgmr.msra.gmra.mxu0 %vm1558_vm2, %v4778_v33  ;;  %3542 = vmatmul.mubr.msk.bf16.vlgmr.msra.gmra.mxu1 %vm1558_vm2, %v4778_v33  ;;  %v1755_v33 = vadd.f32 %v4856_v45, %v1720_v15 }
 0x686   : > { %3497 = vmatprep.mubr.msk.bf16.mxu0 %vm3731_vm1, %v3730_v24  ;;  %3545 = vmatprep.mubr.msk.bf16.mxu1 %vm3731_vm1, %v3730_v24 }
 0x687   : > { %1783 = vst.msk [vmem:[%s4696_s26 + $0x58] sm:$0xff] %vm475_vm0, %v1755_v33  ;;  %v2017_v33 = vld [vmem:[%s4696_s26 + $0x30] sm:$0xff] }
 0x68d   : > { %3498 = vmatmul.mubr.msk.bf16.gmra.mxu0 %vm1558_vm2, %v4803_v6  ;;  %3546 = vmatmul.mubr.msk.bf16.gmra.mxu1 %vm1558_vm2, %v4803_v6  ;;  %v1726_v6 = vld [vmem:[%s3888_s23 + $0x88] sm:$0xff] }
 0x68e   : > { %3501 = vmatprep.mubr.msk.bf16.mxu0 %vm3731_vm1, %v3730_v24  ;;  %3549 = vmatprep.mubr.msk.bf16.mxu1 %vm3731_vm1, %v3730_v24  ;;  %v1761_v42 = vadd.f32 %v4856_v45, %v1726_v6 }
 0x690   : > { %1789 = vst.msk [vmem:[%s4696_s26 + $0x88] sm:$0xff] %vm475_vm0, %v1761_v42 }
 0x695   : > { %3502 = vmatmul.mubr.msk.bf16.gmra.mxu0 %vm1558_vm2, %v4814_v50  ;;  %3550 = vmatmul.mubr.msk.bf16.gmra.mxu1 %vm1558_vm2, %v4814_v50  ;;  %v1762_v50 = vadd.f32 %v4856_v45, %v1727_v1 }
 0x696   : > { %3505 = vmatprep.mubr.msk.bf16.mxu0 %vm3731_vm1, %v3730_v24  ;;  %3553 = vmatprep.mubr.msk.bf16.mxu1 %vm3731_vm1, %v3730_v24 }
 0x697   : > { %1790 = vst.msk [vmem:[%s4696_s26 + $0x90] sm:$0xff] %vm475_vm0, %v1762_v50 }
 0x69d   : > { %3506 = vmatmul.mubr.msk.bf16.gmra.mxu0 %vm1558_vm2, %v4824_v46  ;;  %3554 = vmatmul.mubr.msk.bf16.gmra.mxu1 %vm1558_vm2, %v4824_v46  ;;  %v1729_v46 = vld [vmem:[%s3888_s23 + $0xa0] sm:$0xff] }
 0x69e   : > { %3509 = vmatprep.mubr.msk.bf16.mxu0 %vm3731_vm1, %v3730_v24  ;;  %3557 = vmatprep.mubr.msk.bf16.mxu1 %vm3731_vm1, %v3730_v24  ;;  %v1764_v31 = vadd.f32 %v4856_v45, %v1729_v46  ;;  %v1733_v46 = vld [vmem:[%s3888_s23 + $0xc0] sm:$0xff] }
 0x6a0   : > { %1792 = vst.msk [vmem:[%s4696_s26 + $0xa0] sm:$0xff] %vm475_vm0, %v1764_v31 }
 0x6a5   : > { %3510 = vmatmul.mubr.msk.bf16.gmra.mxu0 %vm1558_vm2, %v4834_v58  ;;  %3558 = vmatmul.mubr.msk.bf16.gmra.mxu1 %vm1558_vm2, %v4834_v58  ;;  %v1765_v58 = vadd.f32 %v4856_v45, %v1730_v27 }
 0x6a6   : > { %3513 = vmatprep.mubr.msk.bf16.mxu0 %vm3731_vm1, %v3730_v24  ;;  %3561 = vmatprep.mubr.msk.bf16.mxu1 %vm3731_vm1, %v3730_v24 }
 0x6a7   : > { %1793 = vst.msk [vmem:[%s4696_s26 + $0xa8] sm:$0xff] %vm475_vm0, %v1765_v58  ;;  %v1768_v58 = vadd.f32 %v4856_v45, %v1733_v46 }
 0x6a9   : > { %1796 = vst.msk [vmem:[%s4696_s26 + $0xc0] sm:$0xff] %vm475_vm0, %v1768_v58 }
 0x6ad   : > { %3514 = vmatmul.mubr.msk.bf16.gmra.mxu0 %vm1558_vm2, %v4844_v43  ;;  %3562 = vmatmul.mubr.msk.bf16.gmra.mxu1 %vm1558_vm2, %v4844_v43  ;;  %v1766_v43 = vadd.f32 %v4856_v45, %v1731_v28 }
 0x6ae   : > { %3517 = vmatprep.mubr.msk.bf16.mxu0 %vm3731_vm1, %v3730_v24  ;;  %3565 = vmatprep.mubr.msk.bf16.mxu1 %vm3731_vm1, %v3730_v24 }
 0x6af   : > { %1794 = vst.msk [vmem:[%s4696_s26 + $0xb0] sm:$0xff] %vm475_vm0, %v1766_v43 }
 0x6b5   : > { %3518 = vmatmul.mubr.msk.bf16.gmra.mxu0 %vm1558_vm2, %v4861_v23  ;;  %3566 = vmatmul.mubr.msk.bf16.gmra.mxu1 %vm1558_vm2, %v4861_v23 }
 0x6b6   : > { %3521 = vmatprep.mubr.msk.bf16.mxu0 %vm3731_vm1, %v3730_v24  ;;  %3569 = vmatprep.mubr.msk.bf16.mxu1 %vm3731_vm1, %v3730_v24 }
 0x6bd   : > { %3522 = vmatmul.mubr.msk.bf16.gmra.mxu0 %vm1558_vm2, %v4873_v12  ;;  %3570 = vmatmul.mubr.msk.bf16.gmra.mxu1 %vm1558_vm2, %v4873_v12 }
 0x6be   : > { %3525 = vmatprep.mubr.msk.bf16.mxu0 %vm3731_vm1, %v3730_v24  ;;  %3573 = vmatprep.mubr.msk.bf16.mxu1 %vm3731_vm1, %v3730_v24 }
 0x6c5   : > { %3526 = vmatmul.mubr.msk.bf16.gmra.mxu0 %vm1558_vm2, %v4885_v25  ;;  %3574 = vmatmul.mubr.msk.bf16.gmra.mxu1 %vm1558_vm2, %v4885_v25 }
 0x6c6   : > { %3529 = vmatprep.mubr.msk.bf16.mxu0 %vm3731_vm1, %v3730_v24  ;;  %3577 = vmatprep.mubr.msk.bf16.mxu1 %vm3731_vm1, %v3730_v24 }
 0x6cd   : > { %3530 = vmatmul.mubr.msk.bf16.gmra.mxu0 %vm1558_vm2, %v4903_v51  ;;  %3578 = vmatmul.mubr.msk.bf16.gmra.mxu1 %vm1558_vm2, %v4903_v51 }
 0x6ce   : > { %3533 = vmatprep.mubr.msk.bf16.mxu0 %vm3731_vm1, %v3730_v24  ;;  %3581 = vmatprep.mubr.msk.bf16.mxu1 %vm3731_vm1, %v3730_v24 }
 0x6d5   : > { %3534 = vmatmul.mubr.msk.bf16.gmra.mxu0 %vm1558_vm2, %v4921_v40  ;;  %3582 = vmatmul.mubr.msk.bf16.gmra.mxu1 %vm1558_vm2, %v4921_v40 }
 0x6ed   : > { %v1924_v0 = vpop.f32.mrf.mxu0  ;;  %v2111_v23 = vpop.f32.mrf.mxu1 }
 0x6ee   : > { %v2033_v14 = vadd.f32 %v2011_v9, %v1924_v0  ;;  %v2020_v9 = vld [vmem:[%s4696_s26 + $0x48] sm:$0xff] }
 0x6ef   : > { %v3399_v48 = vpop.f32.mrf.mxu0  ;;  %v3447_v12 = vpop.f32.mrf.mxu1 }
 0x6f0   : > { %2055 = vst.msk [vmem:[%s4696_s26] sm:$0xff] %vm475_vm0, %v2033_v14  ;;  %v1734_v14 = vld [vmem:[%s3888_s23 + $0xc8] sm:$0xff] }
 0x6f1   : > { %v1927_v36 = vpop.f32.mrf.mxu0  ;;  %v2114_v13 = vpop.f32.mrf.mxu1 }
 0x6f2   : > { %v2034_v24 = vadd.f32 %v2012_v5, %v1927_v36  ;;  %v1769_v5 = vadd.f32 %v4856_v45, %v1734_v14 }
 0x6f3   : > { %v3400_v35 = vpop.f32.mrf.mxu0  ;;  %v3448_v25 = vpop.f32.mrf.mxu1 }
 0x6f4   : > { %2056 = vst.msk [vmem:[%s4696_s26 + $0x8] sm:$0xff] %vm475_vm0, %v2034_v24  ;;  %1797 = vst.msk [vmem:[%s4696_s26 + $0xc8] sm:$0xff] %vm475_vm0, %v1769_v5  ;;  %v2021_v35 = vld [vmem:[%s4696_s26 + $0x50] sm:$0xff] }
 0x6f5   : > { %v1932_v49 = vpop.f32.mrf.mxu0  ;;  %v2119_v44 = vpop.f32.mrf.mxu1 }
 0x6f6   : > { %v2035_v39 = vadd.f32 %v2013_v54, %v1932_v49 }
 0x6f7   : > { %v3403_v38 = vpop.f32.mrf.mxu0  ;;  %v3451_v16 = vpop.f32.mrf.mxu1 }
 0x6f8   : > { %2057 = vst.msk [vmem:[%s4696_s26 + $0x10] sm:$0xff] %vm475_vm0, %v2035_v39 }
 0x6f9   : > { %v1935_v51 = vpop.f32.mrf.mxu0  ;;  %v2122_v26 = vpop.f32.mrf.mxu1 }
 0x6fa   : > { %v2036_v55 = vadd.f32 %v2014_v34, %v1935_v51  ;;  %v1736_v51 = vld [vmem:[%s3888_s23 + $0xd8] sm:$0xff] }
 0x6fb   : > { %v3404_v3 = vpop.f32.mrf.mxu0  ;;  %v3452_v61 = vpop.f32.mrf.mxu1 }
 0x6fc   : > { %2058 = vst.msk [vmem:[%s4696_s26 + $0x18] sm:$0xff] %vm475_vm0, %v2036_v55 }
 0x6fd   : > { %v1940_v7 = vpop.f32.mrf.mxu0  ;;  %v2127_v18 = vpop.f32.mrf.mxu1 }
 0x6fe   : > { %v2037_v40 = vadd.f32 %v2015_v41, %v1940_v7  ;;  %v1771_v41 = vadd.f32 %v4856_v45, %v1736_v51 }
 0x6ff   : > { %v2938_v20 = vld [vmem:[%s4696_s26 + $0x10] sm:$0xff]  ;;  %v3407_v11 = vpop.f32.mrf.mxu0  ;;  %v3455_v29 = vpop.f32.mrf.mxu1 }
 0x700   : > { %v2221_v56 = vadd.f32 %v2938_v20, %v2111_v23  ;;  %2059 = vst.msk [vmem:[%s4696_s26 + $0x20] sm:$0xff] %vm475_vm0, %v2037_v40  ;;  %1799 = vst.msk [vmem:[%s4696_s26 + $0xd8] sm:$0xff] %vm475_vm0, %v1771_v41 }
 0x701   : > { %v1943_v22 = vpop.f32.mrf.mxu0  ;;  %v2130_v17 = vpop.f32.mrf.mxu1 }
 0x702   : > { %2960 = vst.msk [vmem:[%s4696_s26 + $0x10] sm:$0xff] %vm475_vm0, %v2221_v56  ;;  %v2038_v52 = vadd.f32 %v2016_v30, %v1943_v22  ;;  %v2023_v30 = vld [vmem:[%s4696_s26 + $0x60] sm:$0xff] }
 0x703   : > { %v2939_v57 = vld [vmem:[%s4696_s26 + $0x18] sm:$0xff]  ;;  %v3408_v15 = vpop.f32.mrf.mxu0  ;;  %v3456_v19 = vpop.f32.mrf.mxu1 }
 0x704   : > { %v2222_v32 = vadd.f32 %v2939_v57, %v2114_v13  ;;  %2060 = vst.msk [vmem:[%s4696_s26 + $0x28] sm:$0xff] %vm475_vm0, %v2038_v52  ;;  %v2024_v15 = vld [vmem:[%s4696_s26 + $0x68] sm:$0xff] }
 0x705   : > { %v1948_v4 = vpop.f32.mrf.mxu0  ;;  %v2135_v2 = vpop.f32.mrf.mxu1 }
 0x706   : > { %2961 = vst.msk [vmem:[%s4696_s26 + $0x18] sm:$0xff] %vm475_vm0, %v2222_v32  ;;  %v2039_v10 = vadd.f32 %v2017_v33, %v1948_v4 }
 0x707   : > { %v3411_v62 = vpop.f32.mrf.mxu0  ;;  %v2940_v37 = vld [vmem:[%s4696_s26 + $0x20] sm:$0xff]  ;;  %v3459_v53 = vpop.f32.mrf.mxu1 }
 0x708   : > { %2061 = vst.msk [vmem:[%s4696_s26 + $0x30] sm:$0xff] %vm475_vm0, %v2039_v10  ;;  %v2223_v63 = vadd.f32 %v2940_v37, %v2119_v44  ;;  %v1735_v44 = vld [vmem:[%s3888_s23 + $0xd0] sm:$0xff]  ;;  %s3097_s23 = sshll.u32 (%p3812_p5), %s2857_s30, 4 }
 0x709   : > { %v1951_v6 = vpop.f32.mrf.mxu0  ;;  %v2138_v1 = vpop.f32.mrf.mxu1  ;;  %v1770_v16 = vadd.f32 %v4856_v45, %v1735_v44  ;;  %s5379_s13 = scalar_lea.vmem (%p3812_p5), %s5452_s8, %s3097_s23 }
 0x70a   : > { %v2040_v42 = vadd.f32 %v2018_v21, %v1951_v6  ;;  %2962 = vst.msk [vmem:[%s4696_s26 + $0x20] sm:$0xff] %vm475_vm0, %v2223_v63  ;;  %v2025_v21 = vld [vmem:[%s4696_s26 + $0x70] sm:$0xff] }
 0x70b   : > { %v3412_v50 = vpop.f32.mrf.mxu0  ;;  %v2941_v47 = vld [vmem:[%s4696_s26 + $0x28] sm:$0xff]  ;;  %v3460_v31 = vpop.f32.mrf.mxu1  ;;  %1798 = vst.msk [vmem:[%s4696_s26 + $0xd0] sm:$0xff] %vm475_vm0, %v1770_v16 }
 0x70c   : > { %2062 = vst.msk [vmem:[%s4696_s26 + $0x38] sm:$0xff] %vm475_vm0, %v2040_v42  ;;  %v2224_v27 = vadd.f32 %v2941_v47, %v2122_v26  ;;  %v2022_v26 = vld [vmem:[%s4696_s26 + $0x58] sm:$0xff] }
 0x70d   : > { %v1956_v28 = vpop.f32.mrf.mxu0  ;;  %v2143_v43 = vpop.f32.mrf.mxu1 }
 0x70e   : > { %v2041_v59 = vadd.f32 %v2019_v8, %v1956_v28  ;;  %2963 = vst.msk [vmem:[%s4696_s26 + $0x28] sm:$0xff] %vm475_vm0, %v2224_v27  ;;  %v2026_v8 = vld [vmem:[%s4696_s26 + $0x78] sm:$0xff] }
 0x70f   : > { %v3415_v60 = vpop.f32.mrf.mxu0  ;;  %v2942_v0 = vld [vmem:[%s4696_s26 + $0x30] sm:$0xff]  ;;  %v3463_v23 = vpop.f32.mrf.mxu1 }
 0x710   : > { %2063 = vst.msk [vmem:[%s4696_s26 + $0x40] sm:$0xff] %vm475_vm0, %v2041_v59  ;;  %v2225_v48 = vadd.f32 %v2942_v0, %v2127_v18 }
 0x711   : > { %v1959_v12 = vpop.f32.mrf.mxu0  ;;  %v2146_v24 = vpop.f32.mrf.mxu1 }
 0x712   : > { %v2042_v36 = vadd.f32 %v2020_v9, %v1959_v12  ;;  %2964 = vst.msk [vmem:[%s4696_s26 + $0x30] sm:$0xff] %vm475_vm0, %v2225_v48  ;;  %v2028_v12 = vld [vmem:[%s4696_s26 + $0x88] sm:$0xff] }
 0x713   : > { %v3416_v13 = vpop.f32.mrf.mxu0  ;;  %v2943_v54 = vld [vmem:[%s4696_s26 + $0x38] sm:$0xff]  ;;  %v3464_v25 = vpop.f32.mrf.mxu1 }
 0x714   : > { %2064 = vst.msk [vmem:[%s4696_s26 + $0x48] sm:$0xff] %vm475_vm0, %v2042_v36  ;;  %v2226_v49 = vadd.f32 %v2943_v54, %v2130_v17 }
 0x715   : > { %v1964_v39 = vpop.f32.mrf.mxu0  ;;  %v2151_v34 = vpop.f32.mrf.mxu1 }
 0x716   : > { %v2043_v38 = vadd.f32 %v2021_v35, %v1964_v39  ;;  %2965 = vst.msk [vmem:[%s4696_s26 + $0x38] sm:$0xff] %vm475_vm0, %v2226_v49  ;;  %v2029_v39 = vld [vmem:[%s4696_s26 + $0x90] sm:$0xff] }
 0x717   : > { %v3419_v55 = vpop.f32.mrf.mxu0  ;;  %v2944_v3 = vld [vmem:[%s4696_s26 + $0x40] sm:$0xff]  ;;  %v3467_v61 = vpop.f32.mrf.mxu1 }
 0x718   : > { %2065 = vst.msk [vmem:[%s4696_s26 + $0x50] sm:$0xff] %vm475_vm0, %v2043_v38  ;;  %v2227_v7 = vadd.f32 %v2944_v3, %v2135_v2  ;;  %v2030_v3 = vld [vmem:[%s4696_s26 + $0x98] sm:$0xff] }
 0x719   : > { %v1967_v40 = vpop.f32.mrf.mxu0  ;;  %v2154_v20 = vpop.f32.mrf.mxu1 }
 0x71a   : > { %v2044_v18 = vadd.f32 %v2022_v26, %v1967_v40  ;;  %2966 = vst.msk [vmem:[%s4696_s26 + $0x40] sm:$0xff] %vm475_vm0, %v2227_v7 }
 0x71b   : > { %v3420_v11 = vpop.f32.mrf.mxu0  ;;  %v2945_v45 = vld [vmem:[%s4696_s26 + $0x48] sm:$0xff]  ;;  %v3468_v56 = vpop.f32.mrf.mxu1 }
 0x71c   : > { %2066 = vst.msk [vmem:[%s4696_s26 + $0x58] sm:$0xff] %vm475_vm0, %v2044_v18  ;;  %v2228_v29 = vadd.f32 %v2945_v45, %v2138_v1 }
 0x71d   : > { %v1972_v22 = vpop.f32.mrf.mxu0  ;;  %v2159_v17 = vpop.f32.mrf.mxu1 }
 0x71e   : > { %v2045_v52 = vadd.f32 %v2023_v30, %v1972_v22  ;;  %2967 = vst.msk [vmem:[%s4696_s26 + $0x48] sm:$0xff] %vm475_vm0, %v2228_v29  ;;  %v2031_v30 = vld [vmem:[%s4696_s26 + $0xa0] sm:$0xff]  ;;  %v2958_v29 = vld [vmem:[%s4696_s26 + $0xb0] sm:$0xff] }
 0x71f   : > { %v3423_v57 = vpop.f32.mrf.mxu0  ;;  %v2946_v33 = vld [vmem:[%s4696_s26 + $0x50] sm:$0xff]  ;;  %v3471_v32 = vpop.f32.mrf.mxu1 }
 0x720   : > { %2067 = vst.msk [vmem:[%s4696_s26 + $0x60] sm:$0xff] %vm475_vm0, %v2045_v52  ;;  %v2229_v19 = vadd.f32 %v2946_v33, %v2143_v43  ;;  %v2027_v43 = vld [vmem:[%s4696_s26 + $0x80] sm:$0xff]  ;;  %v2032_v33 = vld [vmem:[%s4696_s26 + $0xa8] sm:$0xff] }
 0x721   : > { %v1975_v4 = vpop.f32.mrf.mxu0  ;;  %v2162_v2 = vpop.f32.mrf.mxu1 }
 0x722   : > { %v2046_v10 = vadd.f32 %v2024_v15, %v1975_v4  ;;  %2968 = vst.msk [vmem:[%s4696_s26 + $0x50] sm:$0xff] %vm475_vm0, %v2229_v19 }
 0x723   : > { %v3424_v62 = vpop.f32.mrf.mxu0  ;;  %v2947_v37 = vld [vmem:[%s4696_s26 + $0x58] sm:$0xff]  ;;  %v3472_v53 = vpop.f32.mrf.mxu1 }
 0x724   : > { %2068 = vst.msk [vmem:[%s4696_s26 + $0x68] sm:$0xff] %vm475_vm0, %v2046_v10  ;;  %v2230_v63 = vadd.f32 %v2947_v37, %v2146_v24  ;;  %v2959_v10 = vld [vmem:[%s4696_s26 + $0xb8] sm:$0xff] }
 0x725   : > { %v1980_v6 = vpop.f32.mrf.mxu0  ;;  %v2167_v1 = vpop.f32.mrf.mxu1 }
 0x726   : > { %v2047_v42 = vadd.f32 %v2025_v21, %v1980_v6  ;;  %2969 = vst.msk [vmem:[%s4696_s26 + $0x58] sm:$0xff] %vm475_vm0, %v2230_v63 }
 0x727   : > { %v3427_v50 = vpop.f32.mrf.mxu0  ;;  %v2948_v47 = vld [vmem:[%s4696_s26 + $0x60] sm:$0xff]  ;;  %v3475_v46 = vpop.f32.mrf.mxu1 }
 0x728   : > { %2069 = vst.msk [vmem:[%s4696_s26 + $0x70] sm:$0xff] %vm475_vm0, %v2047_v42  ;;  %v2231_v31 = vadd.f32 %v2948_v47, %v2151_v34 }
 0x729   : > { %v1983_v27 = vpop.f32.mrf.mxu0  ;;  %v2170_v28 = vpop.f32.mrf.mxu1 }
 0x72a   : > { %v2048_v58 = vadd.f32 %v2026_v8, %v1983_v27  ;;  %2970 = vst.msk [vmem:[%s4696_s26 + $0x60] sm:$0xff] %vm475_vm0, %v2231_v31  ;;  %v2993_v8 = vld [vmem:[%s4696_s26 + $0x20] sm:$0xff] }
 0x72b   : > { %v3428_v59 = vpop.f32.mrf.mxu0  ;;  %v2949_v60 = vld [vmem:[%s4696_s26 + $0x68] sm:$0xff]  ;;  %v3476_v9 = vpop.f32.mrf.mxu1 }
 0x72c   : > { %2070 = vst.msk [vmem:[%s4696_s26 + $0x78] sm:$0xff] %vm475_vm0, %v2048_v58  ;;  %v2232_v0 = vadd.f32 %v2949_v60, %v2154_v20 }
 0x72d   : > { %v1988_v14 = vpop.f32.mrf.mxu0  ;;  %v2175_v48 = vpop.f32.mrf.mxu1 }
 0x72e   : > { %v2049_v23 = vadd.f32 %v2027_v43, %v1988_v14  ;;  %2971 = vst.msk [vmem:[%s4696_s26 + $0x68] sm:$0xff] %vm475_vm0, %v2232_v0  ;;  %v2994_v43 = vld [vmem:[%s4696_s26 + $0x28] sm:$0xff] }
 0x72f   : > { %v3431_v5 = vpop.f32.mrf.mxu0  ;;  %v2950_v36 = vld [vmem:[%s4696_s26 + $0x70] sm:$0xff]  ;;  %v3479_v24 = vpop.f32.mrf.mxu1 }
 0x730   : > { %2071 = vst.msk [vmem:[%s4696_s26 + $0x80] sm:$0xff] %vm475_vm0, %v2049_v23  ;;  %v2233_v13 = vadd.f32 %v2950_v36, %v2159_v17 }
 0x731   : > { %v1991_v35 = vpop.f32.mrf.mxu0  ;;  %v2178_v25 = vpop.f32.mrf.mxu1 }
 0x732   : > { %v2050_v54 = vadd.f32 %v2028_v12, %v1991_v35  ;;  %2972 = vst.msk [vmem:[%s4696_s26 + $0x70] sm:$0xff] %vm475_vm0, %v2233_v13  ;;  %v2995_v12 = vld [vmem:[%s4696_s26 + $0x30] sm:$0xff] }
 0x733   : > { %v3432_v49 = vpop.f32.mrf.mxu0  ;;  %v2951_v44 = vld [vmem:[%s4696_s26 + $0x78] sm:$0xff]  ;;  %v3480_v38 = vpop.f32.mrf.mxu1 }
 0x734   : > { %2072 = vst.msk [vmem:[%s4696_s26 + $0x88] sm:$0xff] %vm475_vm0, %v2050_v54  ;;  %v2234_v34 = vadd.f32 %v2951_v44, %v2162_v2 }
 0x735   : > { %v1996_v16 = vpop.f32.mrf.mxu0  ;;  %v2183_v55 = vpop.f32.mrf.mxu1 }
 0x736   : > { %v2051_v51 = vadd.f32 %v2029_v39, %v1996_v16  ;;  %2973 = vst.msk [vmem:[%s4696_s26 + $0x78] sm:$0xff] %vm475_vm0, %v2234_v34  ;;  %v2997_v16 = vld [vmem:[%s4696_s26 + $0x40] sm:$0xff] }
 0x737   : > { %v3435_v26 = vpop.f32.mrf.mxu0  ;;  %v2952_v41 = vld [vmem:[%s4696_s26 + $0x80] sm:$0xff]  ;;  %v3483_v61 = vpop.f32.mrf.mxu1 }
 0x738   : > { %2073 = vst.msk [vmem:[%s4696_s26 + $0x90] sm:$0xff] %vm475_vm0, %v2051_v51  ;;  %v2235_v7 = vadd.f32 %v2952_v41, %v2167_v1 }
 0x739   : > { %v1999_v40 = vpop.f32.mrf.mxu0  ;;  %v2186_v20 = vpop.f32.mrf.mxu1 }
 0x73a   : > { %v2052_v18 = vadd.f32 %v2030_v3, %v1999_v40  ;;  %2974 = vst.msk [vmem:[%s4696_s26 + $0x80] sm:$0xff] %vm475_vm0, %v2235_v7  ;;  %v2998_v40 = vld [vmem:[%s4696_s26 + $0x48] sm:$0xff] }
 0x73b   : > { %v3436_v11 = vpop.f32.mrf.mxu0  ;;  %v2953_v45 = vld [vmem:[%s4696_s26 + $0x88] sm:$0xff]  ;;  %v3484_v56 = vpop.f32.mrf.mxu1 }
 0x73c   : > { %2074 = vst.msk [vmem:[%s4696_s26 + $0x98] sm:$0xff] %vm475_vm0, %v2052_v18  ;;  %v2236_v22 = vadd.f32 %v2953_v45, %v2170_v28 }
 0x73d   : > { %v2004_v52 = vpop.f32.mrf.mxu0  ;;  %v2191_v57 = vpop.f32.mrf.mxu1 }
 0x73e   : > { %v2053_v17 = vadd.f32 %v2031_v30, %v2004_v52  ;;  %2975 = vst.msk [vmem:[%s4696_s26 + $0x88] sm:$0xff] %vm475_vm0, %v2236_v22  ;;  %v2241_v32 = vadd.f32 %v2958_v29, %v2191_v57  ;;  %v2999_v22 = vld [vmem:[%s4696_s26 + $0x50] sm:$0xff] }
 0x73f   : > { %v3439_v15 = vpop.f32.mrf.mxu0  ;;  %v2954_v19 = vld [vmem:[%s4696_s26 + $0x90] sm:$0xff]  ;;  %v3487_v4 = vpop.f32.mrf.mxu1 }
 0x740   : > { %2075 = vst.msk [vmem:[%s4696_s26 + $0xa0] sm:$0xff] %vm475_vm0, %v2053_v17  ;;  %v2237_v2 = vadd.f32 %v2954_v19, %v2175_v48  ;;  %2980 = vst.msk [vmem:[%s4696_s26 + $0xb0] sm:$0xff] %vm475_vm0, %v2241_v32  ;;  %v3000_v4 = vld [vmem:[%s4696_s26 + $0x58] sm:$0xff] }
 0x741   : > { %v2007_v62 = vpop.f32.mrf.mxu0  ;;  %v2194_v37 = vpop.f32.mrf.mxu1 }
 0x742   : > { %v2054_v21 = vadd.f32 %v2032_v33, %v2007_v62  ;;  %2976 = vst.msk [vmem:[%s4696_s26 + $0x90] sm:$0xff] %vm475_vm0, %v2237_v2  ;;  %v2242_v63 = vadd.f32 %v2959_v10, %v2194_v37 }
 0x743   : > { %v3440_v53 = vpop.f32.mrf.mxu0  ;;  %v2955_v6 = vld [vmem:[%s4696_s26 + $0x98] sm:$0xff]  ;;  %v3488_v42 = vpop.f32.mrf.mxu1 }
 0x744   : > { %2076 = vst.msk [vmem:[%s4696_s26 + $0xa8] sm:$0xff] %vm475_vm0, %v2054_v21  ;;  %v2238_v1 = vadd.f32 %v2955_v6, %v2178_v25  ;;  %2981 = vst.msk [vmem:[%s4696_s26 + $0xb8] sm:$0xff] %vm475_vm0, %v2242_v63  ;;  %v2996_v25 = vld [vmem:[%s4696_s26 + $0x38] sm:$0xff]  ;;  %v3001_v6 = vld [vmem:[%s4696_s26 + $0x60] sm:$0xff] }
 0x745   : > { %v2299_v50 = vpop.f32.mrf.mxu0  ;;  %v2487_v46 = vpop.f32.mrf.mxu1 }
 0x746   : > { %v2409_v47 = vadd.f32 %v2993_v8, %v2299_v50  ;;  %2977 = vst.msk [vmem:[%s4696_s26 + $0x98] sm:$0xff] %vm475_vm0, %v2238_v1 }
 0x747   : > { %v3495_v31 = vpop.f32.mrf.mxu0  ;;  %v2956_v27 = vld [vmem:[%s4696_s26 + $0xa0] sm:$0xff]  ;;  %v3543_v58 = vpop.f32.mrf.mxu1 }
 0x748   : > { %3015 = vst.msk [vmem:[%s4696_s26 + $0x20] sm:$0xff] %vm475_vm0, %v2409_v47  ;;  %v2239_v28 = vadd.f32 %v2956_v27, %v2183_v55  ;;  %v3002_v27 = vld [vmem:[%s4696_s26 + $0x68] sm:$0xff] }
 0x749   : > { %v2302_v59 = vpop.f32.mrf.mxu0  ;;  %v2490_v9 = vpop.f32.mrf.mxu1 }
 0x74a   : > { %v2410_v60 = vadd.f32 %v2994_v43, %v2302_v59  ;;  %2978 = vst.msk [vmem:[%s4696_s26 + $0xa0] sm:$0xff] %vm475_vm0, %v2239_v28 }
 0x74b   : > { %v3496_v0 = vpop.f32.mrf.mxu0  ;;  %v2957_v14 = vld [vmem:[%s4696_s26 + $0xa8] sm:$0xff]  ;;  %v3544_v23 = vpop.f32.mrf.mxu1 }
 0x74c   : > { %3016 = vst.msk [vmem:[%s4696_s26 + $0x28] sm:$0xff] %vm475_vm0, %v2410_v60  ;;  %v2240_v48 = vadd.f32 %v2957_v14, %v2186_v20  ;;  %v3003_v14 = vld [vmem:[%s4696_s26 + $0x70] sm:$0xff] }
 0x74d   : > { %v2307_v5 = vpop.f32.mrf.mxu0  ;;  %v2495_v24 = vpop.f32.mrf.mxu1 }
 0x74e   : > { %v2411_v36 = vadd.f32 %v2995_v12, %v2307_v5  ;;  %2979 = vst.msk [vmem:[%s4696_s26 + $0xa8] sm:$0xff] %vm475_vm0, %v2240_v48 }
 0x74f   : > { %v3499_v13 = vpop.f32.mrf.mxu0  ;;  %v3547_v35 = vpop.f32.mrf.mxu1 }
 0x750   : > { %3017 = vst.msk [vmem:[%s4696_s26 + $0x30] sm:$0xff] %vm475_vm0, %v2411_v36  ;;  %v3004_v35 = vld [vmem:[%s4696_s26 + $0x78] sm:$0xff] }
 0x751   : > { %v2310_v54 = vpop.f32.mrf.mxu0  ;;  %v2498_v39 = vpop.f32.mrf.mxu1 }
 0x752   : > { %v2412_v49 = vadd.f32 %v2996_v25, %v2310_v54 }
 0x753   : > { %v3500_v44 = vpop.f32.mrf.mxu0  ;;  %v3548_v38 = vpop.f32.mrf.mxu1 }
 0x754   : > { %3018 = vst.msk [vmem:[%s4696_s26 + $0x38] sm:$0xff] %vm475_vm0, %v2412_v49 }
 0x755   : > { %v2315_v34 = vpop.f32.mrf.mxu0  ;;  %v2503_v55 = vpop.f32.mrf.mxu1 }
 0x756   : > { %v2413_v51 = vadd.f32 %v2997_v16, %v2315_v34  ;;  %v3005_v16 = vld [vmem:[%s4696_s26 + $0x80] sm:$0xff] }
 0x757   : > { %v3048_v26 = vld [vmem:[%s4696_s26 + $0x30] sm:$0xff]  ;;  %v3503_v3 = vpop.f32.mrf.mxu0  ;;  %v3551_v61 = vpop.f32.mrf.mxu1 }
 0x758   : > { %v2597_v41 = vadd.f32 %v3048_v26, %v2487_v46  ;;  %3019 = vst.msk [vmem:[%s4696_s26 + $0x40] sm:$0xff] %vm475_vm0, %v2413_v51 }
 0x759   : > { %v2318_v7 = vpop.f32.mrf.mxu0  ;;  %v2506_v20 = vpop.f32.mrf.mxu1 }
 0x75a   : > { %3070 = vst.msk [vmem:[%s4696_s26 + $0x30] sm:$0xff] %vm475_vm0, %v2597_v41  ;;  %v2414_v18 = vadd.f32 %v2998_v40, %v2318_v7  ;;  %v3006_v40 = vld [vmem:[%s4696_s26 + $0x88] sm:$0xff] }
 0x75b   : > { %v3049_v11 = vld [vmem:[%s4696_s26 + $0x38] sm:$0xff]  ;;  %v3504_v30 = vpop.f32.mrf.mxu0  ;;  %v3552_v56 = vpop.f32.mrf.mxu1 }
 0x75c   : > { %v2598_v45 = vadd.f32 %v3049_v11, %v2490_v9  ;;  %3020 = vst.msk [vmem:[%s4696_s26 + $0x48] sm:$0xff] %vm475_vm0, %v2414_v18 }
 0x75d   : > { %v2323_v29 = vpop.f32.mrf.mxu0  ;;  %v2511_v17 = vpop.f32.mrf.mxu1 }
 0x75e   : > { %3071 = vst.msk [vmem:[%s4696_s26 + $0x38] sm:$0xff] %vm475_vm0, %v2598_v45  ;;  %v2415_v52 = vadd.f32 %v2999_v22, %v2323_v29  ;;  %v3007_v22 = vld [vmem:[%s4696_s26 + $0x90] sm:$0xff] }
 0x75f   : > { %v3050_v57 = vld [vmem:[%s4696_s26 + $0x40] sm:$0xff]  ;;  %v3507_v15 = vpop.f32.mrf.mxu0  ;;  %v3555_v32 = vpop.f32.mrf.mxu1 }
 0x760   : > { %v2599_v33 = vadd.f32 %v3050_v57, %v2495_v24  ;;  %3021 = vst.msk [vmem:[%s4696_s26 + $0x50] sm:$0xff] %vm475_vm0, %v2415_v52 }
 0x761   : > { %v2326_v19 = vpop.f32.mrf.mxu0  ;;  %v2514_v2 = vpop.f32.mrf.mxu1 }
 0x762   : > { %3072 = vst.msk [vmem:[%s4696_s26 + $0x40] sm:$0xff] %vm475_vm0, %v2599_v33  ;;  %v2416_v10 = vadd.f32 %v3000_v4, %v2326_v19  ;;  %v3008_v4 = vld [vmem:[%s4696_s26 + $0x98] sm:$0xff] }
 0x763   : > { %v3051_v62 = vld [vmem:[%s4696_s26 + $0x48] sm:$0xff]  ;;  %v3508_v21 = vpop.f32.mrf.mxu0  ;;  %v3556_v53 = vpop.f32.mrf.mxu1 }
 0x764   : > { %v2600_v37 = vadd.f32 %v3051_v62, %v2498_v39  ;;  %3022 = vst.msk [vmem:[%s4696_s26 + $0x58] sm:$0xff] %vm475_vm0, %v2416_v10 }
 0x765   : > { %v2331_v63 = vpop.f32.mrf.mxu0  ;;  %v2519_v1 = vpop.f32.mrf.mxu1 }
 0x766   : > { %3073 = vst.msk [vmem:[%s4696_s26 + $0x48] sm:$0xff] %vm475_vm0, %v2600_v37  ;;  %v2417_v42 = vadd.f32 %v3001_v6, %v2331_v63  ;;  %v3009_v6 = vld [vmem:[%s4696_s26 + $0xa0] sm:$0xff] }
 0x767   : > { %v3052_v50 = vld [vmem:[%s4696_s26 + $0x50] sm:$0xff]  ;;  %v3511_v8 = vpop.f32.mrf.mxu0  ;;  %v3559_v46 = vpop.f32.mrf.mxu1 }
 0x768   : > { %v2601_v47 = vadd.f32 %v3052_v50, %v2503_v55  ;;  %3023 = vst.msk [vmem:[%s4696_s26 + $0x60] sm:$0xff] %vm475_vm0, %v2417_v42 }
 0x769   : > { %v2334_v31 = vpop.f32.mrf.mxu0  ;;  %v2522_v28 = vpop.f32.mrf.mxu1 }
 0x76a   : > { %3074 = vst.msk [vmem:[%s4696_s26 + $0x50] sm:$0xff] %vm475_vm0, %v2601_v47  ;;  %v2418_v58 = vadd.f32 %v3002_v27, %v2334_v31  ;;  %v3010_v27 = vld [vmem:[%s4696_s26 + $0xa8] sm:$0xff] }
 0x76b   : > { %v3053_v59 = vld [vmem:[%s4696_s26 + $0x58] sm:$0xff]  ;;  %v3512_v43 = vpop.f32.mrf.mxu0  ;;  %v3560_v9 = vpop.f32.mrf.mxu1 }
 0x76c   : > { %v2602_v60 = vadd.f32 %v3053_v59, %v2506_v20  ;;  %3024 = vst.msk [vmem:[%s4696_s26 + $0x68] sm:$0xff] %vm475_vm0, %v2418_v58 }
 0x76d   : > { %v2339_v0 = vpop.f32.mrf.mxu0  ;;  %v2527_v48 = vpop.f32.mrf.mxu1 }
 0x76e   : > { %3075 = vst.msk [vmem:[%s4696_s26 + $0x58] sm:$0xff] %vm475_vm0, %v2602_v60  ;;  %v2419_v23 = vadd.f32 %v3003_v14, %v2339_v0  ;;  %v3011_v14 = vld [vmem:[%s4696_s26 + $0xb0] sm:$0xff] }
 0x76f   : > { %v3054_v5 = vld [vmem:[%s4696_s26 + $0x60] sm:$0xff]  ;;  %v3515_v12 = vpop.f32.mrf.mxu0  ;;  %v3563_v24 = vpop.f32.mrf.mxu1 }
 0x770   : > { %v2603_v36 = vadd.f32 %v3054_v5, %v2511_v17  ;;  %3025 = vst.msk [vmem:[%s4696_s26 + $0x70] sm:$0xff] %vm475_vm0, %v2419_v23 }
 0x771   : > { %v2342_v13 = vpop.f32.mrf.mxu0  ;;  %v2530_v25 = vpop.f32.mrf.mxu1 }
 0x772   : > { %3076 = vst.msk [vmem:[%s4696_s26 + $0x60] sm:$0xff] %vm475_vm0, %v2603_v36  ;;  %v2420_v54 = vadd.f32 %v3004_v35, %v2342_v13  ;;  %v3012_v35 = vld [vmem:[%s4696_s26 + $0xb8] sm:$0xff] }
 0x773   : > { %v3055_v49 = vld [vmem:[%s4696_s26 + $0x68] sm:$0xff]  ;;  %v3516_v39 = vpop.f32.mrf.mxu0  ;;  %v3564_v38 = vpop.f32.mrf.mxu1 }
 0x774   : > { %v2604_v44 = vadd.f32 %v3055_v49, %v2514_v2  ;;  %3026 = vst.msk [vmem:[%s4696_s26 + $0x78] sm:$0xff] %vm475_vm0, %v2420_v54 }
 0x775   : > { %v2347_v34 = vpop.f32.mrf.mxu0  ;;  %v2535_v55 = vpop.f32.mrf.mxu1 }
 0x776   : > { %3077 = vst.msk [vmem:[%s4696_s26 + $0x68] sm:$0xff] %vm475_vm0, %v2604_v44  ;;  %v2421_v51 = vadd.f32 %v3005_v16, %v2347_v34  ;;  %v3013_v44 = vld [vmem:[%s4696_s26 + $0xc0] sm:$0xff]  ;;  %v3068_v16 = vld [vmem:[%s4696_s26 + $0xd0] sm:$0xff] }
 0x777   : > { %v3056_v26 = vld [vmem:[%s4696_s26 + $0x70] sm:$0xff]  ;;  %v3519_v3 = vpop.f32.mrf.mxu0  ;;  %v3567_v61 = vpop.f32.mrf.mxu1 }
 0x778   : > { %v2605_v41 = vadd.f32 %v3056_v26, %v2519_v1  ;;  %3027 = vst.msk [vmem:[%s4696_s26 + $0x80] sm:$0xff] %vm475_vm0, %v2421_v51  ;;  %v3014_v61 = vld [vmem:[%s4696_s26 + $0xc8] sm:$0xff] }
 0x779   : > { %v2350_v7 = vpop.f32.mrf.mxu0  ;;  %v2538_v20 = vpop.f32.mrf.mxu1 }
 0x77a   : > { %3078 = vst.msk [vmem:[%s4696_s26 + $0x70] sm:$0xff] %vm475_vm0, %v2605_v41  ;;  %v2422_v18 = vadd.f32 %v3006_v40, %v2350_v7 }
 0x77b   : > { %v3057_v11 = vld [vmem:[%s4696_s26 + $0x78] sm:$0xff]  ;;  %v3520_v30 = vpop.f32.mrf.mxu0  ;;  %v3568_v56 = vpop.f32.mrf.mxu1 }
 0x77c   : > { %v2606_v45 = vadd.f32 %v3057_v11, %v2522_v28  ;;  %3028 = vst.msk [vmem:[%s4696_s26 + $0x88] sm:$0xff] %vm475_vm0, %v2422_v18 }
 0x77d   : > { %v2355_v29 = vpop.f32.mrf.mxu0  ;;  %v2543_v17 = vpop.f32.mrf.mxu1 }
 0x77e   : > { %3079 = vst.msk [vmem:[%s4696_s26 + $0x78] sm:$0xff] %vm475_vm0, %v2606_v45  ;;  %v2423_v52 = vadd.f32 %v3007_v22, %v2355_v29 }
 0x77f   : > { %v3058_v57 = vld [vmem:[%s4696_s26 + $0x80] sm:$0xff]  ;;  %v3523_v15 = vpop.f32.mrf.mxu0  ;;  %v3571_v32 = vpop.f32.mrf.mxu1 }
 0x780   : > { %v2607_v33 = vadd.f32 %v3058_v57, %v2527_v48  ;;  %3029 = vst.msk [vmem:[%s4696_s26 + $0x90] sm:$0xff] %vm475_vm0, %v2423_v52 }
 0x781   : > { %v2358_v19 = vpop.f32.mrf.mxu0  ;;  %v2546_v2 = vpop.f32.mrf.mxu1 }
 0x782   : > { %3080 = vst.msk [vmem:[%s4696_s26 + $0x80] sm:$0xff] %vm475_vm0, %v2607_v33  ;;  %v2424_v10 = vadd.f32 %v3008_v4, %v2358_v19  ;;  %v2733_v19 = vld [vmem:[%s4696_s26] sm:$0xff] (%p3812_p5)  ;;  %v2735_v4 = vld [vmem:[%s4696_s26 + $0x8] sm:$0xff] (%p3812_p5) }
 0x783   : > { %v3059_v62 = vld [vmem:[%s4696_s26 + $0x88] sm:$0xff]  ;;  %v3524_v21 = vpop.f32.mrf.mxu0  ;;  %v3572_v53 = vpop.f32.mrf.mxu1  ;;  %2734 = vst [vmem:[%s5379_s13] sm:$0xff] (%p3812_p5), %v2733_v19  ;;  %2736 = vst [vmem:[%s5379_s13 + $0x8] sm:$0xff] (%p3812_p5), %v2735_v4 }
 0x784   : > { %v2608_v37 = vadd.f32 %v3059_v62, %v2530_v25  ;;  %3030 = vst.msk [vmem:[%s4696_s26 + $0x98] sm:$0xff] %vm475_vm0, %v2424_v10  ;;  %v2737_v10 = vld [vmem:[%s4696_s26 + $0x10] sm:$0xff] (%p3812_p5)  ;;  %v2741_v62 = vld [vmem:[%s4696_s26 + $0x20] sm:$0xff] (%p3812_p5)  ;;  %v2743_v21 = vld [vmem:[%s4696_s26 + $0x28] sm:$0xff] (%p3812_p5) }
 0x785   : > { %v2363_v63 = vpop.f32.mrf.mxu0  ;;  %v2551_v1 = vpop.f32.mrf.mxu1  ;;  %2738 = vst [vmem:[%s5379_s13 + $0x20] sm:$0xff] (%p3812_p5), %v2737_v10  ;;  %2742 = vst [vmem:[%s5379_s13 + $0x40] sm:$0xff] (%p3812_p5), %v2741_v62  ;;  %v2747_v53 = vld [vmem:[%s4696_s26 + $0x38] sm:$0xff] (%p3812_p5) }
 0x786   : > { %3081 = vst.msk [vmem:[%s4696_s26 + $0x88] sm:$0xff] %vm475_vm0, %v2608_v37  ;;  %v2425_v42 = vadd.f32 %v3009_v6, %v2363_v63  ;;  %2744 = vst [vmem:[%s5379_s13 + $0x48] sm:$0xff] (%p3812_p5), %v2743_v21  ;;  %v2745_v37 = vld [vmem:[%s4696_s26 + $0x30] sm:$0xff] (%p3812_p5)  ;;  %v2749_v63 = vld [vmem:[%s4696_s26 + $0x40] sm:$0xff] (%p3812_p5) }
 0x787   : > { %v3060_v50 = vld [vmem:[%s4696_s26 + $0x90] sm:$0xff]  ;;  %v3527_v8 = vpop.f32.mrf.mxu0  ;;  %v3575_v46 = vpop.f32.mrf.mxu1  ;;  %2746 = vst [vmem:[%s5379_s13 + $0x60] sm:$0xff] (%p3812_p5), %v2745_v37  ;;  %2748 = vst [vmem:[%s5379_s13 + $0x68] sm:$0xff] (%p3812_p5), %v2747_v53  ;;  %v2751_v6 = vld [vmem:[%s4696_s26 + $0x48] sm:$0xff] (%p3812_p5) }
 0x788   : > { %v2609_v47 = vadd.f32 %v3060_v50, %v2535_v55  ;;  %3031 = vst.msk [vmem:[%s4696_s26 + $0xa0] sm:$0xff] %vm475_vm0, %v2425_v42  ;;  %2750 = vst [vmem:[%s5379_s13 + $0x80] sm:$0xff] (%p3812_p5), %v2749_v63  ;;  %v2753_v42 = vld [vmem:[%s4696_s26 + $0x50] sm:$0xff] (%p3812_p5)  ;;  %v2757_v50 = vld [vmem:[%s4696_s26 + $0x60] sm:$0xff] (%p3812_p5) }
 0x789   : > { %v2366_v31 = vpop.f32.mrf.mxu0  ;;  %v2554_v28 = vpop.f32.mrf.mxu1  ;;  %2752 = vst [vmem:[%s5379_s13 + $0x88] sm:$0xff] (%p3812_p5), %v2751_v6  ;;  %2754 = vst [vmem:[%s5379_s13 + $0xa0] sm:$0xff] (%p3812_p5), %v2753_v42  ;;  %v2759_v8 = vld [vmem:[%s4696_s26 + $0x68] sm:$0xff] (%p3812_p5)  ;;  %v2763_v46 = vld [vmem:[%s4696_s26 + $0x78] sm:$0xff] (%p3812_p5) }
 0x78a   : > { %3082 = vst.msk [vmem:[%s4696_s26 + $0x90] sm:$0xff] %vm475_vm0, %v2609_v47  ;;  %v2426_v58 = vadd.f32 %v3010_v27, %v2366_v31  ;;  %v2761_v47 = vld [vmem:[%s4696_s26 + $0x70] sm:$0xff] (%p3812_p5)  ;;  %2758 = vst [vmem:[%s5379_s13 + $0xc0] sm:$0xff] (%p3812_p5), %v2757_v50  ;;  %v2765_v31 = vld [vmem:[%s4696_s26 + $0x80] sm:$0xff] (%p3812_p5) }
 0x78b   : > { %v3061_v59 = vld [vmem:[%s4696_s26 + $0x98] sm:$0xff]  ;;  %v3528_v43 = vpop.f32.mrf.mxu0  ;;  %v3576_v9 = vpop.f32.mrf.mxu1  ;;  %2760 = vst [vmem:[%s5379_s13 + $0xc8] sm:$0xff] (%p3812_p5), %v2759_v8  ;;  %2762 = vst [vmem:[%s5379_s13 + $0xe0] sm:$0xff] (%p3812_p5), %v2761_v47 }
 0x78c   : > { %v2610_v60 = vadd.f32 %v3061_v59, %v2538_v20  ;;  %3032 = vst.msk [vmem:[%s4696_s26 + $0xa8] sm:$0xff] %vm475_vm0, %v2426_v58  ;;  %v3069_v20 = vld [vmem:[%s4696_s26 + $0xd8] sm:$0xff]  ;;  %2764 = vst [vmem:[%s5379_s13 + $0xe8] sm:$0xff] (%p3812_p5), %v2763_v46 }
 0x78d   : > { %v2371_v0 = vpop.f32.mrf.mxu0  ;;  %v2559_v48 = vpop.f32.mrf.mxu1  ;;  %v2767_v27 = vld [vmem:[%s4696_s26 + $0x88] sm:$0xff] (%p3812_p5)  ;;  %2766 = vst [vmem:[%s5379_s13 + $0x100] sm:$0xff] (%p3812_p5), %v2765_v31 }
 0x78e   : > { %3083 = vst.msk [vmem:[%s4696_s26 + $0x98] sm:$0xff] %vm475_vm0, %v2610_v60  ;;  %v2427_v23 = vadd.f32 %v3011_v14, %v2371_v0  ;;  %2768 = vst [vmem:[%s5379_s13 + $0x108] sm:$0xff] (%p3812_p5), %v2767_v27 }
 0x78f   : > { %v3062_v5 = vld [vmem:[%s4696_s26 + $0xa0] sm:$0xff]  ;;  %v3531_v12 = vpop.f32.mrf.mxu0  ;;  %v3579_v24 = vpop.f32.mrf.mxu1 }
 0x790   : > { %v2611_v36 = vadd.f32 %v3062_v5, %v2543_v17  ;;  %3033 = vst.msk [vmem:[%s4696_s26 + $0xb0] sm:$0xff] %vm475_vm0, %v2427_v23 }
 0x791   : > { %v2374_v13 = vpop.f32.mrf.mxu0  ;;  %v2562_v25 = vpop.f32.mrf.mxu1  ;;  %v2769_v58 = vld [vmem:[%s4696_s26 + $0x90] sm:$0xff] (%p3812_p5) }
 0x792   : > { %3084 = vst.msk [vmem:[%s4696_s26 + $0xa0] sm:$0xff] %vm475_vm0, %v2611_v36  ;;  %v2428_v54 = vadd.f32 %v3012_v35, %v2374_v13  ;;  %2770 = vst [vmem:[%s5379_s13 + $0x120] sm:$0xff] (%p3812_p5), %v2769_v58 }
 0x793   : > { %v3063_v49 = vld [vmem:[%s4696_s26 + $0xa8] sm:$0xff]  ;;  %v3532_v39 = vpop.f32.mrf.mxu0  ;;  %v3580_v34 = vpop.f32.mrf.mxu1 }
 0x794   : > { %v2612_v38 = vadd.f32 %v3063_v49, %v2546_v2  ;;  %3034 = vst.msk [vmem:[%s4696_s26 + $0xb8] sm:$0xff] %vm475_vm0, %v2428_v54  ;;  %v2739_v2 = vld [vmem:[%s4696_s26 + $0x18] sm:$0xff] (%p3812_p5) }
 0x795   : > { %v2379_v51 = vpop.f32.mrf.mxu0  ;;  %v2567_v26 = vpop.f32.mrf.mxu1  ;;  %2740 = vst [vmem:[%s5379_s13 + $0x28] sm:$0xff] (%p3812_p5), %v2739_v2 }
 0x796   : > { %3085 = vst.msk [vmem:[%s4696_s26 + $0xa8] sm:$0xff] %vm475_vm0, %v2612_v38  ;;  %v2429_v55 = vadd.f32 %v3013_v44, %v2379_v51  ;;  %v2617_v7 = vadd.f32 %v3068_v16, %v2567_v26 }
 0x797   : > { %v3064_v3 = vld [vmem:[%s4696_s26 + $0xb0] sm:$0xff]  ;;  %v3535_v41 = vpop.f32.mrf.mxu0  ;;  %v3583_v18 = vpop.f32.mrf.mxu1 }
 0x798   : > { %v2613_v40 = vadd.f32 %v3064_v3, %v2551_v1  ;;  %3035 = vst.msk [vmem:[%s4696_s26 + $0xc0] sm:$0xff] %vm475_vm0, %v2429_v55  ;;  %3090 = vst.msk [vmem:[%s4696_s26 + $0xd0] sm:$0xff] %vm475_vm0, %v2617_v7  ;;  %v2755_v1 = vld [vmem:[%s4696_s26 + $0x58] sm:$0xff] (%p3812_p5) }
 0x799   : > { %v2382_v11 = vpop.f32.mrf.mxu0  ;;  %v2570_v45 = vpop.f32.mrf.mxu1  ;;  %2756 = vst [vmem:[%s5379_s13 + $0xa8] sm:$0xff] (%p3812_p5), %v2755_v1  ;;  %v2773_v59 = vld [vmem:[%s4696_s26 + $0xa0] sm:$0xff] (%p3812_p5) }
 0x79a   : > { %3086 = vst.msk [vmem:[%s4696_s26 + $0xb0] sm:$0xff] %vm475_vm0, %v2613_v40  ;;  %v2430_v30 = vadd.f32 %v3014_v61, %v2382_v11  ;;  %v2618_v22 = vadd.f32 %v3069_v20, %v2570_v45  ;;  %2774 = vst [vmem:[%s5379_s13 + $0x140] sm:$0xff] (%p3812_p5), %v2773_v59 }
 0x79b   : > { %v3065_v56 = vld [vmem:[%s4696_s26 + $0xb8] sm:$0xff]  ;;  %v3536_v29 = vpop.f32.mrf.mxu0  ;;  %v3584_v17 = vpop.f32.mrf.mxu1 }
 0x79c   : > { %v2614_v52 = vadd.f32 %v3065_v56, %v2554_v28  ;;  %3036 = vst.msk [vmem:[%s4696_s26 + $0xc8] sm:$0xff] %vm475_vm0, %v2430_v30  ;;  %3091 = vst.msk [vmem:[%s4696_s26 + $0xd8] sm:$0xff] %vm475_vm0, %v2618_v22  ;;  %v2771_v28 = vld [vmem:[%s4696_s26 + $0x98] sm:$0xff] (%p3812_p5) }
 0x79d   : > { %2772 = vst [vmem:[%s5379_s13 + $0x128] sm:$0xff] (%p3812_p5), %v2771_v28  ;;  %v2775_v43 = vld [vmem:[%s4696_s26 + $0xa8] sm:$0xff] (%p3812_p5) }
 0x79e   : > { %3087 = vst.msk [vmem:[%s4696_s26 + $0xb8] sm:$0xff] %vm475_vm0, %v2614_v52  ;;  %2776 = vst [vmem:[%s5379_s13 + $0x148] sm:$0xff] (%p3812_p5), %v2775_v43 }
 0x79f   : > { %v3066_v57 = vld [vmem:[%s4696_s26 + $0xc0] sm:$0xff]  ;;  %v2785_v23 = vld [vmem:[%s4696_s26 + $0xd0] sm:$0xff] (%p3812_p5) }
 0x7a0   : > { %v2615_v15 = vadd.f32 %v3066_v57, %v2559_v48  ;;  %2786 = vst [vmem:[%s5379_s13 + $0x1a0] sm:$0xff] (%p3812_p5), %v2785_v23 }
 0x7a1   : > { %v2777_v60 = vld [vmem:[%s4696_s26 + $0xb0] sm:$0xff] (%p3812_p5) }
 0x7a2   : > { %3088 = vst.msk [vmem:[%s4696_s26 + $0xc0] sm:$0xff] %vm475_vm0, %v2615_v15  ;;  %2647 = sbr.rel (!%p3812_p5) target bundleno = 1967 (0x7af), region = 101  ;;  %2778 = vst [vmem:[%s5379_s13 + $0x160] sm:$0xff] (%p3812_p5), %v2777_v60 }
 0x7a3   : > { %v3067_v33 = vld [vmem:[%s4696_s26 + $0xc8] sm:$0xff]  ;;  %v2787_v48 = vld [vmem:[%s4696_s26 + $0xd8] sm:$0xff] (%p3812_p5) }
 0x7a4   : > { %v2616_v32 = vadd.f32 %v3067_v33, %v2562_v25  ;;  %2788 = vst [vmem:[%s5379_s13 + $0x1a8] sm:$0xff] (%p3812_p5), %v2787_v48 }
 0x7a5   : > { %v2779_v9 = vld [vmem:[%s4696_s26 + $0xb8] sm:$0xff] (%p3812_p5) }
 0x7a6   : > { %3089 = vst.msk [vmem:[%s4696_s26 + $0xc8] sm:$0xff] %vm475_vm0, %v2616_v32  ;;  %2780 = vst [vmem:[%s5379_s13 + $0x168] sm:$0xff] (%p3812_p5), %v2779_v9 }
 0x7a9   : > { %v2781_v0 = vld [vmem:[%s4696_s26 + $0xc0] sm:$0xff] }
 0x7aa   : > { %2782 = vst [vmem:[%s5379_s13 + $0x180] sm:$0xff] %v2781_v0 }
 0x7ad   : > { %v2783_v14 = vld [vmem:[%s4696_s26 + $0xc8] sm:$0xff] }
 0x7ae   : > { %2784 = vst [vmem:[%s5379_s13 + $0x188] sm:$0xff] %v2783_v14 }
 0x7af PF: > { %p15_p11 = scmp.ge.s32.totalorder %s3799_s9, 4   ;;  %s5454_s27 = smov %s3720_s28 }
 0x7b0   : > { %s5455_s28 = smov %s3810_s12  ;;  %s5456_s29 = smov %s3799_s9 }
 0x7b1   :  { %17 = sbr.rel (!%p15_p11) target bundleno = 2 (0x2), region = 186 }

// kernel: causal_intra_inter_band.2
= control target key start
LH: loop header
LB: loop body
LE: loop exit
PB: predicated region body
PF: predicated region fallthrough
CT: control target
= control target key end

     0   :  { %s4804_s27 = smov 0   ;;  %s4806_s28 = smov 0   ;;  %s6859_s0 = inlined_call_operand.vmem [shape: f32[14,32,16], index: 0, kind: input, shape index: {}]   ;;  %s6860_s1 = inlined_call_operand.vmem [shape: f32[1,16], index: 1, kind: input, shape index: {}]   ;;  %s6861_s2 = inlined_call_operand.vmem [shape: f32[1,16], index: 2, kind: input, shape index: {}]   ;;  %s6862_s3 = inlined_call_operand.vmem [shape: f32[4,16,256], index: 3, kind: input, shape index: {}]   ;;  %s6863_s4 = inlined_call_operand.vmem [shape: f32[1,256], index: 4, kind: input, shape index: {}]   ;;  %s6864_s5 = inlined_call_operand.vmem [shape: f32[2,32,128], index: 5, kind: input, shape index: {}]   ;;  %s6865_s6 = inlined_call_operand.vmem [shape: f32[4,64,16], index: 6, kind: input, shape index: {}]   ;;  %s6866_s7 = inlined_call_operand.vmem [shape: f32[1,16], index: 7, kind: input, shape index: {}]   ;;  %s6867_s8 = inlined_call_operand.vmem [shape: f32[14,32,16], index: 8, kind: output, shape index: {}]  }
   0x1   :  { %s4808_s29 = smov 0  }
   0x2 LB: > { %s3781_s30 = sadd.s32 4294967295, %s4745_s29   ;;  %s4821_s9 = sadd.s32 1, %s4745_s29   ;;  %s4745_s29 = sphi %s4808_s29, %s6911_s29   ;;  %s4741_s28 = sphi %s4806_s28, %s6910_s28   ;;  %s4737_s27 = sphi %s4804_s27, %s6909_s27  }
   0x3   : > { %s22_s10 = ssub.s32 %s4745_s29, %s4821_s9  ;;  %s25_s11 = sadd.s32 1, %s4741_s28 }
   0x4   : > { %p23_p0 = scmp.eq.s32.totalorder %s22_s10, 0  ;;  %p32_p1 = scmp.ne.s32.totalorder %s4741_s28, %s4737_s27 }
   0x5   : > { %p33_p2 = scmp.eq.s32.totalorder %s4745_s29, 0  ;;  %p209_p3 = scmp.eq.s32.totalorder %s3781_s30, 1 }
   0x6   : > { %s4832_s12 = scalar_select %p23_p0, %s4741_s28, %s25_s11  }
   0x7   : > { %p34_p4 = por %p33_p2, %p32_p1  ;;  %p4834_p5 = por %p209_p3, %p32_p1 }
   0x8   : > { %p3784_p6 = scmp.ge.s32.totalorder %s4745_s29, 2 }
   0xa   : > { %252 = sbr.rel (%p3784_p6) target bundleno = 33 (0x21), region = 44 }
   0xf   : > { %255 = sbr.rel (!%p34_p4) target bundleno = 33 (0x21), region = 48  ;;  %s257_s14 = sand.u32 (%p34_p4), 1, %s4741_s28  }
  0x10   : > { %s4076_s15 = sshll.u32 (%p34_p4), %s4745_s29, 4  ;;  %s4588_s16 = smul.u32 (%p34_p4), 224, %s257_s14 }
  0x11   : > { %s4844_s19 = scalar_lea.vmem (%p34_p4), %s6859_s0, %s4076_s15 }
  0x12   : > { %v345_v0 = vld [vmem:[%s4844_s19] sm:$0xff] (%p34_p4)  ;;  %v347_v1 = vld [vmem:[%s4844_s19 + $0x8] sm:$0xff] (%p34_p4)  ;;  %s4852_s20 = scalar_lea.vmem (%p34_p4), [#allocation6], %s4588_s16 }
  0x13   : > { %v349_v2 = vld [vmem:[%s4844_s19 + $0x20] sm:$0xff] (%p34_p4)  ;;  %v351_v3 = vld [vmem:[%s4844_s19 + $0x28] sm:$0xff] (%p34_p4)  ;;  %346 = vst [vmem:[%s4852_s20] sm:$0xff] (%p34_p4), %v345_v0  ;;  %348 = vst [vmem:[%s4852_s20 + $0x8] sm:$0xff] (%p34_p4), %v347_v1 }
  0x14   : > { %v353_v4 = vld [vmem:[%s4844_s19 + $0x40] sm:$0xff]  ;;  %v355_v5 = vld [vmem:[%s4844_s19 + $0x48] sm:$0xff]  ;;  %350 = vst [vmem:[%s4852_s20 + $0x10] sm:$0xff] %v349_v2  ;;  %352 = vst [vmem:[%s4852_s20 + $0x18] sm:$0xff] %v351_v3 }
  0x15   : > { %354 = vst [vmem:[%s4852_s20 + $0x20] sm:$0xff] %v353_v4  ;;  %356 = vst [vmem:[%s4852_s20 + $0x28] sm:$0xff] %v355_v5  ;;  %v357_v6 = vld [vmem:[%s4844_s19 + $0x60] sm:$0xff]  ;;  %v359_v7 = vld [vmem:[%s4844_s19 + $0x68] sm:$0xff] }
  0x16   : > { %v361_v8 = vld [vmem:[%s4844_s19 + $0x80] sm:$0xff]  ;;  %358 = vst [vmem:[%s4852_s20 + $0x30] sm:$0xff] %v357_v6  ;;  %360 = vst [vmem:[%s4852_s20 + $0x38] sm:$0xff] %v359_v7  ;;  %v363_v9 = vld [vmem:[%s4844_s19 + $0x88] sm:$0xff] }
  0x17   : > { %362 = vst [vmem:[%s4852_s20 + $0x40] sm:$0xff] %v361_v8  ;;  %v365_v10 = vld [vmem:[%s4844_s19 + $0xa0] sm:$0xff]  ;;  %v367_v11 = vld [vmem:[%s4844_s19 + $0xa8] sm:$0xff]  ;;  %364 = vst [vmem:[%s4852_s20 + $0x48] sm:$0xff] %v363_v9 }
  0x18   : > { %366 = vst [vmem:[%s4852_s20 + $0x50] sm:$0xff] %v365_v10  ;;  %368 = vst [vmem:[%s4852_s20 + $0x58] sm:$0xff] %v367_v11  ;;  %v369_v12 = vld [vmem:[%s4844_s19 + $0xc0] sm:$0xff]  ;;  %v371_v13 = vld [vmem:[%s4844_s19 + $0xc8] sm:$0xff] }
  0x19   : > { %v373_v14 = vld [vmem:[%s4844_s19 + $0xe0] sm:$0xff]  ;;  %370 = vst [vmem:[%s4852_s20 + $0x60] sm:$0xff] %v369_v12  ;;  %372 = vst [vmem:[%s4852_s20 + $0x68] sm:$0xff] %v371_v13  ;;  %v375_v15 = vld [vmem:[%s4844_s19 + $0xe8] sm:$0xff] }
  0x1a   : > { %374 = vst [vmem:[%s4852_s20 + $0x70] sm:$0xff] %v373_v14  ;;  %v377_v16 = vld [vmem:[%s4844_s19 + $0x100] sm:$0xff]  ;;  %v379_v17 = vld [vmem:[%s4844_s19 + $0x108] sm:$0xff]  ;;  %376 = vst [vmem:[%s4852_s20 + $0x78] sm:$0xff] %v375_v15 }
  0x1b   : > { %378 = vst [vmem:[%s4852_s20 + $0x80] sm:$0xff] %v377_v16  ;;  %380 = vst [vmem:[%s4852_s20 + $0x88] sm:$0xff] %v379_v17  ;;  %v381_v18 = vld [vmem:[%s4844_s19 + $0x120] sm:$0xff]  ;;  %v383_v19 = vld [vmem:[%s4844_s19 + $0x128] sm:$0xff] }
  0x1c   : > { %v385_v20 = vld [vmem:[%s4844_s19 + $0x140] sm:$0xff]  ;;  %382 = vst [vmem:[%s4852_s20 + $0x90] sm:$0xff] %v381_v18  ;;  %384 = vst [vmem:[%s4852_s20 + $0x98] sm:$0xff] %v383_v19  ;;  %v387_v21 = vld [vmem:[%s4844_s19 + $0x148] sm:$0xff] }
  0x1d   : > { %386 = vst [vmem:[%s4852_s20 + $0xa0] sm:$0xff] %v385_v20  ;;  %v389_v22 = vld [vmem:[%s4844_s19 + $0x160] sm:$0xff]  ;;  %v391_v23 = vld [vmem:[%s4844_s19 + $0x168] sm:$0xff]  ;;  %388 = vst [vmem:[%s4852_s20 + $0xa8] sm:$0xff] %v387_v21 }
  0x1e   : > { %390 = vst [vmem:[%s4852_s20 + $0xb0] sm:$0xff] %v389_v22  ;;  %392 = vst [vmem:[%s4852_s20 + $0xb8] sm:$0xff] %v391_v23  ;;  %v393_v24 = vld [vmem:[%s4844_s19 + $0x180] sm:$0xff]  ;;  %v395_v25 = vld [vmem:[%s4844_s19 + $0x188] sm:$0xff] }
  0x1f   : > { %v397_v26 = vld [vmem:[%s4844_s19 + $0x1a0] sm:$0xff]  ;;  %394 = vst [vmem:[%s4852_s20 + $0xc0] sm:$0xff] %v393_v24  ;;  %396 = vst [vmem:[%s4852_s20 + $0xc8] sm:$0xff] %v395_v25  ;;  %v399_v27 = vld [vmem:[%s4844_s19 + $0x1a8] sm:$0xff] }
  0x20   : > { %398 = vst [vmem:[%s4852_s20 + $0xd0] sm:$0xff] %v397_v26  ;;  %400 = vst [vmem:[%s4852_s20 + $0xd8] sm:$0xff] %v399_v27 }
  0x21 PF: > { %p3787_p7 = scmp.ge.s32.totalorder %s4745_s29, 1  ;;  %p405_p8 = scmp.lt.s32.totalorder %s4745_s29, 3 }
  0x23   : > { %p406_p9 = pnand %p3787_p7, %p405_p8 }
  0x25   : > { %409 = sbr.rel (%p406_p9) target bundleno = 2146 (0x862), region = 86 }
  0x2a   : > { %s412_s21 = sand.u32 1, %s4737_s27   ;;  %vm475_vm0 = vcmask 130048   ;;  %vm1752_vm1 = vcmask 261120  }
  0x2b   : > { %s4907_s22 = smul.u32 224, %s412_s21  ;;  %s5830_s21 = smov 0  }
  0x2d   : > { %s4910_s23 = scalar_lea.vmem [#allocation6], %s4907_s22  ;;  %s5828_s20 = scalar_lea.vmem [#allocation7], %s4907_s22 }
  0x2e   : > { %v4913_v28 = vld [vmem:[%s4910_s23 + $0x10] sm:$0xff]  ;;  %v4916_v29 = vld [vmem:[%s4910_s23 + $0x18] sm:$0xff]  ;;  %v4919_v30 = vld [vmem:[%s4910_s23] sm:$0xff] }
  0x2f   : > { %v482_v31 = vsel %vm475_vm0, %v4913_v28, 0.0  ;;  %v476_v32 = vsel %vm475_vm0, %v4919_v30, 0.0  ;;  %v4926_v33 = vld [vmem:[%s4910_s23 + $0x8] sm:$0xff]  ;;  %v485_v34 = vsel %vm475_vm0, %v4916_v29, 0.0  ;;  %v4933_v36 = vld [vmem:[%s4910_s23 + $0x20] sm:$0xff]  ;;  %v4943_v40 = vld [vmem:[%s4910_s23 + $0x30] sm:$0xff] }
  0x30   : > { %483 = vadd.xlane.f32.xlu0 %v482_v31  ;;  %477 = vadd.xlane.f32.xlu1 %v476_v32  ;;  %v479_v35 = vsel %vm475_vm0, %v4926_v33, 0.0  ;;  %v4936_v37 = vld [vmem:[%s4910_s23 + $0x28] sm:$0xff]  ;;  %v488_v38 = vsel %vm475_vm0, %v4933_v36, 0.0  ;;  %v4946_v41 = vld [vmem:[%s4910_s23 + $0x38] sm:$0xff]  ;;  %v494_v42 = vsel %vm475_vm0, %v4943_v40, 0.0  ;;  %v4953_v44 = vld [vmem:[%s4910_s23 + $0x40] sm:$0xff] }
  0x31   : > { %v491_v39 = vsel %vm475_vm0, %v4936_v37, 0.0  ;;  %v497_v43 = vsel %vm475_vm0, %v4946_v41, 0.0  ;;  %v4956_v45 = vld [vmem:[%s4910_s23 + $0x48] sm:$0xff]  ;;  %v500_v46 = vsel %vm475_vm0, %v4953_v44, 0.0  ;;  %v4963_v48 = vld [vmem:[%s4910_s23 + $0x50] sm:$0xff]  ;;  %v4966_v49 = vld [vmem:[%s4910_s23 + $0x58] sm:$0xff] }
  0x32   : > { %v503_v47 = vsel %vm475_vm0, %v4956_v45, 0.0  ;;  %v506_v50 = vsel %vm475_vm0, %v4963_v48, 0.0  ;;  %v509_v51 = vsel %vm475_vm0, %v4966_v49, 0.0  ;;  %v4973_v52 = vld [vmem:[%s4910_s23 + $0x60] sm:$0xff]  ;;  %v4976_v53 = vld [vmem:[%s4910_s23 + $0x68] sm:$0xff]  ;;  %v4983_v56 = vld [vmem:[%s4910_s23 + $0x70] sm:$0xff] }
  0x33   : > { %v512_v54 = vsel %vm475_vm0, %v4973_v52, 0.0  ;;  %v515_v55 = vsel %vm475_vm0, %v4976_v53, 0.0  ;;  %v4986_v57 = vld [vmem:[%s4910_s23 + $0x78] sm:$0xff]  ;;  %v518_v58 = vsel %vm475_vm0, %v4983_v56, 0.0  ;;  %v4993_v60 = vld [vmem:[%s4910_s23 + $0x80] sm:$0xff]  ;;  %v4996_v61 = vld [vmem:[%s4910_s23 + $0x88] sm:$0xff] }
  0x34   : > { %486 = vadd.xlane.f32.xlu0 %v485_v34  ;;  %480 = vadd.xlane.f32.xlu1 %v479_v35  ;;  %v521_v59 = vsel %vm475_vm0, %v4986_v57, 0.0  ;;  %v524_v62 = vsel %vm475_vm0, %v4993_v60, 0.0  ;;  %v527_v63 = vsel %vm475_vm0, %v4996_v61, 0.0  ;;  %v5003_v0 = vld [vmem:[%s4910_s23 + $0x90] sm:$0xff]  ;;  %v5006_v1 = vld [vmem:[%s4910_s23 + $0x98] sm:$0xff]  ;;  %v5013_v4 = vld [vmem:[%s4910_s23 + $0xa0] sm:$0xff] }
  0x35   : > { %v530_v2 = vsel %vm475_vm0, %v5003_v0, 0.0  ;;  %v533_v3 = vsel %vm475_vm0, %v5006_v1, 0.0  ;;  %v5016_v5 = vld [vmem:[%s4910_s23 + $0xa8] sm:$0xff]  ;;  %v536_v6 = vsel %vm475_vm0, %v5013_v4, 0.0 }
  0x36   : > { %v539_v7 = vsel %vm475_vm0, %v5016_v5, 0.0 }
  0x38   : > { %489 = vadd.xlane.f32.xlu0 %v488_v38  ;;  %492 = vadd.xlane.f32.xlu1 %v491_v39 }
  0x3c   : > { %495 = vadd.xlane.f32.xlu0 %v494_v42  ;;  %498 = vadd.xlane.f32.xlu1 %v497_v43 }
  0x40   : > { %501 = vadd.xlane.f32.xlu0 %v500_v46  ;;  %504 = vadd.xlane.f32.xlu1 %v503_v47 }
  0x44   : > { %507 = vadd.xlane.f32.xlu0 %v506_v50  ;;  %510 = vadd.xlane.f32.xlu1 %v509_v51 }
  0x48   : > { %513 = vadd.xlane.f32.xlu0 %v512_v54  ;;  %516 = vadd.xlane.f32.xlu1 %v515_v55 }
  0x4c   : > { %519 = vadd.xlane.f32.xlu0 %v518_v58  ;;  %522 = vadd.xlane.f32.xlu1 %v521_v59 }
  0x50   : > { %525 = vadd.xlane.f32.xlu0 %v524_v62  ;;  %528 = vadd.xlane.f32.xlu1 %v527_v63 }
  0x54   : > { %531 = vadd.xlane.f32.xlu0 %v530_v2  ;;  %534 = vadd.xlane.f32.xlu1 %v533_v3 }
  0x58   : > { %537 = vadd.xlane.f32.xlu0 %v536_v6  ;;  %540 = vadd.xlane.f32.xlu1 %v539_v7 }
  0xb9   : > { %v484_v8 = vpop.xlane.xlu0 %483  ;;  %v478_v9 = vpop.xlane.xlu1 %477 }
  0xba   : > { %v563_v10 = vmul.f32 0.0625, %v484_v8  ;;  %v561_v11 = vmul.f32 0.0625, %v478_v9 }
  0xbc   : > { %v5023_v12 = vsub.f32 %v4913_v28, %v563_v10  ;;  %v5026_v13 = vsub.f32 %v4919_v30, %v561_v11  ;;  %v5043_v28 = vld [vmem:[%s4910_s23 + $0xb0] sm:$0xff] }
  0xbd   : > { %v487_v14 = vpop.xlane.xlu0 %486  ;;  %v481_v15 = vpop.xlane.xlu1 %480  ;;  %v542_v34 = vsel %vm475_vm0, %v5043_v28, 0.0 }
  0xbe   : > { %v564_v16 = vmul.f32 0.0625, %v487_v14  ;;  %v619_v17 = vmul.f32 %v5023_v12, %v5023_v12  ;;  %v562_v18 = vmul.f32 0.0625, %v481_v15  ;;  %v617_v19 = vmul.f32 %v5026_v13, %v5026_v13 }
  0xc0   : > { %v5033_v20 = vsub.f32 %v4916_v29, %v564_v16  ;;  %v651_v21 = vsel %vm475_vm0, %v619_v17, 0.0  ;;  %v5037_v22 = vsub.f32 %v4926_v33, %v562_v18  ;;  %v645_v24 = vsel %vm475_vm0, %v617_v19, 0.0 }
  0xc1   : > { %652 = vadd.xlane.f32.xlu0 %v651_v21  ;;  %v490_v23 = vpop.xlane.xlu0 %489  ;;  %v493_v25 = vpop.xlane.xlu1 %492 }
  0xc2   : > { %v565_v26 = vmul.f32 0.0625, %v490_v23  ;;  %v620_v27 = vmul.f32 %v5033_v20, %v5033_v20  ;;  %v618_v29 = vmul.f32 %v5037_v22, %v5037_v22  ;;  %v566_v30 = vmul.f32 0.0625, %v493_v25 }
  0xc4   : > { %v5048_v31 = vsub.f32 %v4933_v36, %v565_v26  ;;  %v654_v32 = vsel %vm475_vm0, %v620_v27, 0.0  ;;  %v5054_v35 = vsub.f32 %v4936_v37, %v566_v30  ;;  %v648_v42 = vsel %vm475_vm0, %v618_v29, 0.0  ;;  %v5060_v36 = vld [vmem:[%s4910_s23 + $0xb8] sm:$0xff] }
  0xc5   : > { %655 = vadd.xlane.f32.xlu1 %v654_v32  ;;  %646 = vadd.xlane.f32.xlu0 %v645_v24  ;;  %v496_v33 = vpop.xlane.xlu0 %495  ;;  %v499_v38 = vpop.xlane.xlu1 %498  ;;  %v545_v37 = vsel %vm475_vm0, %v5060_v36, 0.0 }
  0xc6   : > { %v567_v39 = vmul.f32 0.0625, %v496_v33  ;;  %v621_v43 = vmul.f32 %v5048_v31, %v5048_v31  ;;  %v568_v46 = vmul.f32 0.0625, %v499_v38  ;;  %v622_v54 = vmul.f32 %v5054_v35, %v5054_v35 }
  0xc8   : > { %v5063_v47 = vsub.f32 %v4943_v40, %v567_v39  ;;  %v5068_v51 = vsub.f32 %v4946_v41, %v568_v46  ;;  %v657_v59 = vsel %vm475_vm0, %v621_v43, 0.0  ;;  %v660_v41 = vsel %vm475_vm0, %v622_v54, 0.0 }
  0xc9   : > { %543 = vadd.xlane.f32.xlu0 %v542_v34  ;;  %649 = vadd.xlane.f32.xlu1 %v648_v42  ;;  %v502_v50 = vpop.xlane.xlu0 %501  ;;  %v505_v55 = vpop.xlane.xlu1 %504 }
  0xca   : > { %v569_v58 = vmul.f32 0.0625, %v502_v50  ;;  %v623_v40 = vmul.f32 %v5063_v47, %v5063_v47  ;;  %v570_v62 = vmul.f32 0.0625, %v505_v55  ;;  %v624_v6 = vmul.f32 %v5068_v51, %v5068_v51 }
  0xcc   : > { %v5076_v63 = vsub.f32 %v4953_v44, %v569_v58  ;;  %v5080_v3 = vsub.f32 %v4956_v45, %v570_v62  ;;  %v663_v9 = vsel %vm475_vm0, %v623_v40, 0.0  ;;  %v666_v45 = vsel %vm475_vm0, %v624_v6, 0.0 }
  0xcd   : > { %658 = vadd.xlane.f32.xlu0 %v657_v59  ;;  %546 = vadd.xlane.f32.xlu1 %v545_v37  ;;  %v508_v2 = vpop.xlane.xlu0 %507  ;;  %v511_v7 = vpop.xlane.xlu1 %510 }
  0xce   : > { %v571_v8 = vmul.f32 0.0625, %v508_v2  ;;  %v625_v10 = vmul.f32 %v5076_v63, %v5076_v63  ;;  %v572_v44 = vmul.f32 0.0625, %v511_v7  ;;  %v626_v16 = vmul.f32 %v5080_v3, %v5080_v3 }
  0xd0   : > { %v5088_v11 = vsub.f32 %v4963_v48, %v571_v8  ;;  %v5092_v15 = vsub.f32 %v4966_v49, %v572_v44  ;;  %v669_v19 = vsel %vm475_vm0, %v625_v10, 0.0  ;;  %v672_v49 = vsel %vm475_vm0, %v626_v16, 0.0  ;;  %v932_v16 = vld [vmem:[%s6862_s3 + $0x38] sm:$0xff] }
  0xd1   : > { %664 = vadd.xlane.f32.xlu0 %v663_v9  ;;  %661 = vadd.xlane.f32.xlu1 %v660_v41  ;;  %v514_v14 = vpop.xlane.xlu0 %513  ;;  %v517_v17 = vpop.xlane.xlu1 %516 }
  0xd2   : > { %v573_v18 = vmul.f32 0.0625, %v514_v14  ;;  %v627_v21 = vmul.f32 %v5088_v11, %v5088_v11  ;;  %v574_v48 = vmul.f32 0.0625, %v517_v17  ;;  %v628_v26 = vmul.f32 %v5092_v15, %v5092_v15 }
  0xd4   : > { %v5100_v23 = vsub.f32 %v4973_v52, %v573_v18  ;;  %v5104_v25 = vsub.f32 %v4976_v53, %v574_v48  ;;  %v675_v30 = vsel %vm475_vm0, %v627_v21, 0.0  ;;  %v678_v53 = vsel %vm475_vm0, %v628_v26, 0.0  ;;  %v931_v18 = vld [vmem:[%s6862_s3 + $0x30] sm:$0xff] }
  0xd5   : > { %670 = vadd.xlane.f32.xlu0 %v669_v19  ;;  %667 = vadd.xlane.f32.xlu1 %v666_v45  ;;  %v520_v24 = vpop.xlane.xlu0 %519  ;;  %v523_v27 = vpop.xlane.xlu1 %522  ;;  %v930_v45 = vld [vmem:[%s6862_s3 + $0x28] sm:$0xff] }
  0xd6   : > { %v575_v29 = vmul.f32 0.0625, %v520_v24  ;;  %v629_v32 = vmul.f32 %v5100_v23, %v5100_v23  ;;  %v576_v52 = vmul.f32 0.0625, %v523_v27  ;;  %v630_v39 = vmul.f32 %v5104_v25, %v5104_v25  ;;  %v926_v27 = vld [vmem:[%s6862_s3 + $0x8] sm:$0xff] }
  0xd7   : > { %v944_v21 = vpack.c.bf16 %v932_v16, %v930_v45 }
  0xd8   : > { %v5112_v33 = vsub.f32 %v4983_v56, %v575_v29  ;;  %v5116_v38 = vsub.f32 %v4986_v57, %v576_v52  ;;  %v681_v46 = vsel %vm475_vm0, %v629_v32, 0.0  ;;  %v684_v57 = vsel %vm475_vm0, %v630_v39, 0.0  ;;  %v928_v29 = vld [vmem:[%s6862_s3 + $0x18] sm:$0xff]  ;;  %v927_v32 = vld [vmem:[%s6862_s3 + $0x10] sm:$0xff] }
  0xd9   : > { %676 = vadd.xlane.f32.xlu0 %v675_v30  ;;  %673 = vadd.xlane.f32.xlu1 %v672_v49  ;;  %v526_v34 = vpop.xlane.xlu0 %525  ;;  %v529_v42 = vpop.xlane.xlu1 %528  ;;  %v942_v30 = vpack.c.bf16 %v928_v29, %v926_v27 }
  0xda   : > { %v577_v43 = vmul.f32 0.0625, %v526_v34  ;;  %v631_v50 = vmul.f32 %v5112_v33, %v5112_v33  ;;  %v578_v56 = vmul.f32 0.0625, %v529_v42  ;;  %v632_v58 = vmul.f32 %v5116_v38, %v5116_v38  ;;  %996 = vmatprep.subr.bf16.mxu0 %v944_v21 }
  0xdb   : > { %v6868_v42 = vmov 0   ;;  %1142 = vmatprep.subr.bf16.mxu1 %v942_v30 }
  0xdc   : > { %v5124_v37 = vsub.f32 %v4993_v60, %v577_v43  ;;  %v5128_v55 = vsub.f32 %v4996_v61, %v578_v56  ;;  %v687_v62 = vsel %vm475_vm0, %v631_v50, 0.0  ;;  %v690_v7 = vsel %vm475_vm0, %v632_v58, 0.0  ;;  %1014 = vmatprep.mubr.bf16.mxu0 %v6868_v42  ;;  %1160 = vmatprep.mubr.bf16.mxu1 %v6868_v42  ;;  %v940_v50 = vld [vmem:[%s6862_s3 + $0x78] sm:$0xff] }
  0xdd   : > { %682 = vadd.xlane.f32.xlu0 %v681_v46  ;;  %679 = vadd.xlane.f32.xlu1 %v678_v53  ;;  %v532_v54 = vpop.xlane.xlu0 %531  ;;  %v535_v59 = vpop.xlane.xlu1 %534  ;;  %v938_v46 = vld [vmem:[%s6862_s3 + $0x68] sm:$0xff] }
  0xde   : > { %v579_v40 = vmul.f32 0.0625, %v532_v54  ;;  %v633_v2 = vmul.f32 %v5124_v37, %v5124_v37  ;;  %v580_v60 = vmul.f32 0.0625, %v535_v59  ;;  %v634_v8 = vmul.f32 %v5128_v55, %v5128_v55 }
  0xdf   : > { %v948_v56 = vpack.c.bf16 %v940_v50, %v938_v46 }
  0xe0   : > { %v5136_v41 = vsub.f32 %v5003_v0, %v579_v40  ;;  %v693_v61 = vsel %vm475_vm0, %v633_v2, 0.0  ;;  %v5143_v44 = vsub.f32 %v5006_v1, %v580_v60  ;;  %v929_v1 = vld [vmem:[%s6862_s3 + $0x20] sm:$0xff]  ;;  %v696_v19 = vsel %vm475_vm0, %v634_v8, 0.0 }
  0xe1   : > { %688 = vadd.xlane.f32.xlu0 %v687_v62  ;;  %685 = vadd.xlane.f32.xlu1 %v684_v57  ;;  %v538_v6 = vpop.xlane.xlu0 %537  ;;  %v541_v9 = vpop.xlane.xlu1 %540  ;;  %v943_v48 = vpack.c.bf16 %v931_v18, %v929_v1 }
  0xe2   : > { %v581_v10 = vmul.f32 0.0625, %v538_v6  ;;  %v635_v14 = vmul.f32 %v5136_v41, %v5136_v41  ;;  %v582_v0 = vmul.f32 0.0625, %v541_v9  ;;  %v636_v26 = vmul.f32 %v5143_v44, %v5143_v44 }
  0xe3   : > { %997 = vmatpush1.bf16.msra.mxu0 %v943_v48 }
  0xe4   : > { %v5154_v17 = vsub.f32 %v5013_v4, %v581_v10  ;;  %v699_v24 = vsel %vm475_vm0, %v635_v14, 0.0  ;;  %v5165_v49 = vsub.f32 %v5016_v5, %v582_v0  ;;  %v925_v5 = vld [vmem:[%s6862_s3] sm:$0xff]  ;;  %v702_v53 = vsel %vm475_vm0, %v636_v26, 0.0 }
  0xe5   : > { %694 = vadd.xlane.f32.xlu0 %v693_v61  ;;  %691 = vadd.xlane.f32.xlu1 %v690_v7  ;;  %v941_v52 = vpack.c.bf16 %v927_v32, %v925_v5  ;;  %v5213_v32 = vld [vmem:[%s4910_s23 + $0xd0] sm:$0xff] }
  0xe6   : > { %v637_v4 = vmul.f32 %v5154_v17, %v5154_v17  ;;  %v638_v39 = vmul.f32 %v5165_v49, %v5165_v49 }
  0xe7   : > { %1143 = vmatpush1.bf16.msra.mxu1 %v941_v52 }
  0xe8   : > { %v705_v34 = vsel %vm475_vm0, %v637_v4, 0.0  ;;  %v708_v43 = vsel %vm475_vm0, %v638_v39, 0.0  ;;  %1478 = vmatprep.subr.bf16.mxu1 %v948_v56  ;;  %v554_v56 = vsel %vm475_vm0, %v5213_v32, 0.0 }
  0xe9   : > { %700 = vadd.xlane.f32.xlu0 %v699_v24  ;;  %697 = vadd.xlane.f32.xlu1 %v696_v19  ;;  %v5202_v19 = vld [vmem:[%s4910_s23 + $0xc0] sm:$0xff] }
  0xea   : > { %v548_v26 = vsel %vm475_vm0, %v5202_v19, 0.0 }
  0xed   : > { %706 = vadd.xlane.f32.xlu0 %v705_v34  ;;  %703 = vadd.xlane.f32.xlu1 %v702_v53 }
  0xf1   : > { %709 = vadd.xlane.f32.xlu1 %v708_v43 }
 0x14a   : > { %v653_v54 = vpop.xlane.xlu0 %652 }
 0x14b   : > { %v731_v57 = vmul.f32 0.0625, %v653_v54 }
 0x14d   : > { %v759_v58 = vadd.f32 1e-05, %v731_v57  ;;  %v5227_v57 = vld [vmem:[%s6860_s1] ss:$0 sm:$0xff] }
 0x14e   : > { %v647_v59 = vpop.xlane.xlu0 %646  ;;  %v656_v40 = vpop.xlane.xlu1 %655 }
 0x14f   : > { %4630 = vrsqrt.f32 %v759_v58  ;;  %v729_v62 = vmul.f32 0.0625, %v647_v59  ;;  %v732_v2 = vmul.f32 0.0625, %v656_v40  ;;  %v5230_v59 = vld [vmem:[%s4910_s23 + $0xd8] sm:$0xff] }
 0x151   : > { %v757_v60 = vadd.f32 1e-05, %v729_v62  ;;  %v760_v6 = vadd.f32 1e-05, %v732_v2 }
 0x152   : > { %v544_v61 = vpop.xlane.xlu0 %543  ;;  %v650_v7 = vpop.xlane.xlu1 %649 }
 0x153   : > { %4632 = vrsqrt.f32 %v757_v60  ;;  %v583_v8 = vmul.f32 0.0625, %v544_v61  ;;  %v730_v9 = vmul.f32 0.0625, %v650_v7 }
 0x154   : > { %4634 = vrsqrt.f32 %v760_v6 }
 0x155   : > { %v5197_v10 = vsub.f32 %v5043_v28, %v583_v8  ;;  %v758_v14 = vadd.f32 1e-05, %v730_v9  ;;  %v557_v8 = vsel %vm475_vm0, %v5230_v59, 0.0  ;;  %v5240_v9 = vld [vmem:[%s6861_s2] ss:$0 sm:$0xff] }
 0x156   : > { %v659_v0 = vpop.xlane.xlu0 %658  ;;  %v547_v45 = vpop.xlane.xlu1 %546 }
 0x157   : > { %4636 = vrsqrt.f32 %v758_v14  ;;  %v733_v16 = vmul.f32 0.0625, %v659_v0  ;;  %v584_v1 = vmul.f32 0.0625, %v547_v45  ;;  %v639_v18 = vmul.f32 %v5197_v10, %v5197_v10 }
 0x159   : > { %v761_v21 = vadd.f32 1e-05, %v733_v16  ;;  %v5205_v48 = vsub.f32 %v5060_v36, %v584_v1  ;;  %v711_v28 = vsel %vm475_vm0, %v639_v18, 0.0  ;;  %v5216_v36 = vld [vmem:[%s4910_s23 + $0xc8] sm:$0xff] }
 0x15a   : > { %712 = vadd.xlane.f32.xlu0 %v711_v28  ;;  %v665_v24 = vpop.xlane.xlu0 %664  ;;  %v662_v4 = vpop.xlane.xlu1 %661  ;;  %v551_v54 = vsel %vm475_vm0, %v5216_v36, 0.0 }
 0x15b   : > { %4638 = vrsqrt.f32 %v761_v21  ;;  %v735_v27 = vmul.f32 0.0625, %v665_v24  ;;  %v734_v29 = vmul.f32 0.0625, %v662_v4  ;;  %v640_v30 = vmul.f32 %v5205_v48, %v5205_v48  ;;  %v937_v4 = vld [vmem:[%s6862_s3 + $0x60] sm:$0xff] }
 0x15c   : > { %v4631_v5 = vpop.eup %4630 }
 0x15d   : > { %v762_v52 = vadd.f32 1e-05, %v734_v29  ;;  %v714_v34 = vsel %vm475_vm0, %v640_v30, 0.0  ;;  %v763_v53 = vadd.f32 1e-05, %v735_v27  ;;  %v815_v43 = vmul.f32 %v4631_v5, %v5023_v12 }
 0x15e   : > { %549 = vadd.xlane.f32.xlu0 %v548_v26  ;;  %715 = vadd.xlane.f32.xlu1 %v714_v34  ;;  %v668_v39 = vpop.xlane.xlu1 %667  ;;  %v671_v46 = vpop.xlane.xlu0 %670 }
 0x15f   : > { %v736_v50 = vmul.f32 0.0625, %v668_v39  ;;  %4640 = vrsqrt.f32 %v762_v52  ;;  %v737_v2 = vmul.f32 0.0625, %v671_v46  ;;  %v850_v61 = vmul.f32 %v5227_v57, %v815_v43 }
 0x160   : > { %v4633_v58 = vpop.eup %4632  ;;  %4642 = vrsqrt.f32 %v763_v53 }
 0x161   : > { %v4635_v40 = vpop.eup %4634  ;;  %v764_v62 = vadd.f32 1e-05, %v736_v50  ;;  %v813_v12 = vmul.f32 %v4633_v58, %v5026_v13  ;;  %v765_v16 = vadd.f32 1e-05, %v737_v2  ;;  %v885_v21 = vadd.f32 %v5240_v9, %v850_v61 }
 0x162   : > { %555 = vadd.xlane.f32.xlu0 %v554_v56  ;;  %552 = vadd.xlane.f32.xlu1 %v551_v54  ;;  %v674_v60 = vpop.xlane.xlu1 %673  ;;  %v816_v6 = vmul.f32 %v4635_v40, %v5033_v20  ;;  %v677_v1 = vpop.xlane.xlu0 %676 }
 0x163   : > { %v738_v7 = vmul.f32 0.0625, %v674_v60  ;;  %4644 = vrsqrt.f32 %v764_v62  ;;  %v848_v20 = vmul.f32 %v5227_v57, %v813_v12  ;;  %v739_v30 = vmul.f32 0.0625, %v677_v1 }
 0x164   : > { %v4637_v14 = vpop.eup %4636  ;;  %v851_v13 = vmul.f32 %v5227_v57, %v816_v6 }
 0x165   : > { %v766_v0 = vadd.f32 1e-05, %v738_v7  ;;  %v814_v45 = vmul.f32 %v4637_v14, %v5037_v22  ;;  %v939_v22 = vld [vmem:[%s6862_s3 + $0x70] sm:$0xff]  ;;  %v883_v5 = vadd.f32 %v5240_v9, %v848_v20  ;;  %v767_v50 = vadd.f32 1e-05, %v739_v30  ;;  %v936_v14 = vld [vmem:[%s6862_s3 + $0x58] sm:$0xff] }
 0x166   : > { %558 = vadd.xlane.f32.xlu1 %v557_v8  ;;  %v680_v18 = vpop.xlane.xlu1 %679  ;;  %v886_v28 = vadd.f32 %v5240_v9, %v851_v13  ;;  %v947_v53 = vpack.c.bf16 %v939_v22, %v937_v4  ;;  %v683_v54 = vpop.xlane.xlu0 %682  ;;  %v933_v13 = vld [vmem:[%s6862_s3 + $0x40] sm:$0xff] }
 0x167   : > { %v849_v24 = vmul.f32 %v5227_v57, %v814_v45  ;;  %4646 = vrsqrt.f32 %v766_v0  ;;  %v740_v27 = vmul.f32 0.0625, %v680_v18  ;;  %v741_v60 = vmul.f32 0.0625, %v683_v54 }
 0x168   : > { %v4639_v26 = vpop.eup %4638  ;;  %v912_v29 = vpack.c.bf16 %v886_v28, %v885_v21  ;;  %4648 = vrsqrt.f32 %v765_v16 }
 0x169   : > { %v884_v52 = vadd.f32 %v5240_v9, %v849_v24  ;;  %v817_v34 = vmul.f32 %v4639_v26, %v5048_v31  ;;  %v768_v43 = vadd.f32 1e-05, %v740_v27  ;;  %v769_v18 = vadd.f32 1e-05, %v741_v60 }
 0x16a   : > { %3790 = vmatmul.mubr.msk.bf16.vlgmr.msra.gmra.mxu0 %vm475_vm0, %v912_v29  ;;  %v686_v56 = vpop.xlane.xlu1 %685  ;;  %v689_v4 = vpop.xlane.xlu0 %688 }
 0x16b   : > { %v911_v39 = vpack.c.bf16 %v884_v52, %v883_v5  ;;  %1024 = vmatprep.mubr.bf16.mxu0 %v6868_v42  ;;  %v852_v40 = vmul.f32 %v5227_v57, %v817_v34  ;;  %4650 = vrsqrt.f32 %v768_v43  ;;  %v742_v31 = vmul.f32 0.0625, %v686_v56 }
 0x16c   : > { %v4641_v46 = vpop.eup %4640  ;;  %4652 = vrsqrt.f32 %v767_v50 }
 0x16d   : > { %3801 = vmatmul.mubr.msk.bf16.vlgmr.msra.gmra.mxu1 %vm475_vm0, %v911_v39  ;;  %v818_v58 = vmul.f32 %v4641_v46, %v5054_v35  ;;  %v4643_v62 = vpop.eup %4642  ;;  %v887_v6 = vadd.f32 %v5240_v9, %v852_v40  ;;  %v934_v35 = vld [vmem:[%s6862_s3 + $0x48] sm:$0xff]  ;;  %v770_v0 = vadd.f32 1e-05, %v742_v31 }
 0x16e   : > { %1170 = vmatprep.mubr.bf16.mxu1 %v6868_v42  ;;  %1479 = vmatpush1.bf16.msra.mxu1 %v947_v53  ;;  %v819_v7 = vmul.f32 %v4643_v62, %v5063_v47  ;;  %v946_v47 = vpack.c.bf16 %v936_v14, %v934_v35  ;;  %v692_v1 = vpop.xlane.xlu1 %691 }
 0x16f   : > { %v853_v12 = vmul.f32 %v5227_v57, %v818_v58  ;;  %4654 = vrsqrt.f32 %v770_v0  ;;  %v744_v22 = vmul.f32 0.0625, %v692_v1 }
 0x170   : > { %v4645_v2 = vpop.eup %4644  ;;  %v854_v21 = vmul.f32 %v5227_v57, %v819_v7  ;;  %1288 = vmatprep.subr.bf16.mxu0 %v946_v47  ;;  %4656 = vrsqrt.f32 %v769_v18 }
 0x171   : > { %v888_v61 = vadd.f32 %v5240_v9, %v853_v12  ;;  %v820_v8 = vmul.f32 %v4645_v2, %v5068_v51  ;;  %v935_v51 = vld [vmem:[%s6862_s3 + $0x50] sm:$0xff]  ;;  %v772_v52 = vadd.f32 1e-05, %v744_v22 }
 0x172   : > { %v945_v28 = vpack.c.bf16 %v935_v51, %v933_v13  ;;  %v889_v30 = vadd.f32 %v5240_v9, %v854_v21  ;;  %v698_v43 = vpop.xlane.xlu1 %697 }
 0x173   : > { %v5277_v45 = vpack.c.bf16 %v888_v61, %v887_v6  ;;  %v855_v20 = vmul.f32 %v5227_v57, %v820_v8  ;;  %4658 = vrsqrt.f32 %v772_v52  ;;  %v746_v56 = vmul.f32 0.0625, %v698_v43 }
 0x174   : > { %v4647_v16 = vpop.eup %4646  ;;  %1289 = vmatpush1.bf16.msra.mxu0 %v945_v28 }
 0x175   : > { %3802 = vmatmul.mubr.msk.bf16.gmra.mxu1 %vm475_vm0, %v912_v29  ;;  %3791 = vmatmul.mubr.msk.bf16.gmra.mxu0 %vm475_vm0, %v5277_v45  ;;  %v4649_v24 = vpop.eup %4648  ;;  %v890_v26 = vadd.f32 %v5240_v9, %v855_v20  ;;  %v822_v27 = vmul.f32 %v4647_v16, %v5080_v3  ;;  %v743_v29 = vmul.f32 0.0625, %v689_v4  ;;  %v774_v12 = vadd.f32 1e-05, %v746_v56 }
 0x176   : > { %1180 = vmatprep.mubr.bf16.mxu1 %v6868_v42  ;;  %1034 = vmatprep.mubr.bf16.mxu0 %v6868_v42  ;;  %v821_v5 = vmul.f32 %v4649_v24, %v5076_v63  ;;  %v695_v63 = vpop.xlane.xlu0 %694  ;;  %v704_v61 = vpop.xlane.xlu1 %703 }
 0x177   : > { %v5293_v34 = vpack.c.bf16 %v890_v26, %v889_v30  ;;  %v857_v53 = vmul.f32 %v5227_v57, %v822_v27  ;;  %v771_v50 = vadd.f32 1e-05, %v743_v29  ;;  %v745_v40 = vmul.f32 0.0625, %v695_v63 }
 0x178   : > { %v4651_v39 = vpop.eup %4650  ;;  %v856_v3 = vmul.f32 %v5227_v57, %v821_v5  ;;  %v748_v35 = vmul.f32 0.0625, %v704_v61 }
 0x179   : > { %v4653_v46 = vpop.eup %4652  ;;  %v892_v54 = vadd.f32 %v5240_v9, %v857_v53  ;;  %v824_v58 = vmul.f32 %v4651_v39, %v5092_v15  ;;  %4660 = vrsqrt.f32 %v771_v50  ;;  %v773_v7 = vadd.f32 1e-05, %v745_v40 }
 0x17a   : > { %v891_v62 = vadd.f32 %v5240_v9, %v856_v3  ;;  %v823_v31 = vmul.f32 %v4653_v46, %v5088_v11  ;;  %v701_v11 = vpop.xlane.xlu0 %700  ;;  %4662 = vrsqrt.f32 %v774_v12  ;;  %v776_v51 = vadd.f32 1e-05, %v748_v35  ;;  %v710_v21 = vpop.xlane.xlu1 %709 }
 0x17b   : > { %v859_v60 = vmul.f32 %v5227_v57, %v824_v58  ;;  %4664 = vrsqrt.f32 %v773_v7  ;;  %v747_v0 = vmul.f32 0.0625, %v701_v11  ;;  %v750_v4 = vmul.f32 0.0625, %v710_v21 }
 0x17c   : > { %v5307_v2 = vpack.c.bf16 %v892_v54, %v891_v62  ;;  %v4655_v6 = vpop.eup %4654  ;;  %v858_v15 = vmul.f32 %v5227_v57, %v823_v31  ;;  %4666 = vrsqrt.f32 %v776_v51 }
 0x17d   : > { %3803 = vmatmul.mubr.msk.bf16.gmra.mxu1 %vm475_vm0, %v5277_v45  ;;  %3792 = vmatmul.mubr.msk.bf16.gmra.mxu0 %vm475_vm0, %v5293_v34  ;;  %v4657_v8 = vpop.eup %4656  ;;  %v894_v14 = vadd.f32 %v5240_v9, %v859_v60  ;;  %v826_v13 = vmul.f32 %v4655_v6, %v5104_v25  ;;  %v775_v28 = vadd.f32 1e-05, %v747_v0  ;;  %v778_v5 = vadd.f32 1e-05, %v750_v4 }
 0x17e   : > { %1190 = vmatprep.mubr.bf16.mxu1 %v6868_v42  ;;  %1044 = vmatprep.mubr.bf16.mxu0 %v6868_v42  ;;  %v893_v20 = vadd.f32 %v5240_v9, %v858_v15  ;;  %v825_v47 = vmul.f32 %v4657_v8, %v5100_v23  ;;  %v707_v23 = vpop.xlane.xlu0 %706 }
 0x17f   : > { %v861_v1 = vmul.f32 %v5227_v57, %v826_v13  ;;  %4668 = vrsqrt.f32 %v775_v28  ;;  %v749_v27 = vmul.f32 0.0625, %v707_v23 }
 0x180   : > { %v5321_v16 = vpack.c.bf16 %v894_v14, %v893_v20  ;;  %v4659_v18 = vpop.eup %4658  ;;  %v860_v25 = vmul.f32 %v5227_v57, %v825_v47  ;;  %4670 = vrsqrt.f32 %v778_v5 }
 0x181   : > { %v896_v22 = vadd.f32 %v5240_v9, %v861_v1  ;;  %v828_v26 = vmul.f32 %v4659_v18, %v5116_v38  ;;  %v777_v43 = vadd.f32 1e-05, %v749_v27 }
 0x182   : > { %v895_v29 = vadd.f32 %v5240_v9, %v860_v25 }
 0x183   : > { %v863_v53 = vmul.f32 %v5227_v57, %v828_v26  ;;  %4672 = vrsqrt.f32 %v777_v43 }
 0x184   : > { %v5335_v52 = vpack.c.bf16 %v896_v22, %v895_v29 }
 0x185   : > { %3804 = vmatmul.mubr.msk.bf16.gmra.mxu1 %vm475_vm0, %v5293_v34  ;;  %3793 = vmatmul.mubr.msk.bf16.gmra.mxu0 %vm475_vm0, %v5307_v2 }
 0x186   : > { %1200 = vmatprep.mubr.bf16.mxu1 %v6868_v42  ;;  %1054 = vmatprep.mubr.bf16.mxu0 %v6868_v42  ;;  %v4661_v24 = vpop.eup %4660 }
 0x187   : > { %v827_v30 = vmul.f32 %v4661_v24, %v5112_v33  ;;  %v4663_v39 = vpop.eup %4662  ;;  %v898_v33 = vadd.f32 %v5240_v9, %v863_v53 }
 0x188   : > { %v4665_v46 = vpop.eup %4664  ;;  %v830_v50 = vmul.f32 %v4663_v39, %v5128_v55 }
 0x189   : > { %v862_v38 = vmul.f32 %v5227_v57, %v827_v30  ;;  %v829_v63 = vmul.f32 %v4665_v46, %v5124_v37  ;;  %v4667_v58 = vpop.eup %4666 }
 0x18a   : > { %v865_v54 = vmul.f32 %v5227_v57, %v830_v50  ;;  %v832_v62 = vmul.f32 %v4667_v58, %v5143_v44 }
 0x18b   : > { %v897_v3 = vadd.f32 %v5240_v9, %v862_v38  ;;  %v864_v55 = vmul.f32 %v5227_v57, %v829_v63 }
 0x18c   : > { %v4669_v40 = vpop.eup %4668  ;;  %v900_v37 = vadd.f32 %v5240_v9, %v865_v54  ;;  %v867_v6 = vmul.f32 %v5227_v57, %v832_v62 }
 0x18d   : > { %3805 = vmatmul.mubr.msk.bf16.gmra.mxu1 %vm475_vm0, %v5307_v2  ;;  %3794 = vmatmul.mubr.msk.bf16.gmra.mxu0 %vm475_vm0, %v5321_v16  ;;  %v5349_v56 = vpack.c.bf16 %v898_v33, %v897_v3  ;;  %v899_v31 = vadd.f32 %v5240_v9, %v864_v55  ;;  %v831_v12 = vmul.f32 %v4669_v40, %v5136_v41  ;;  %v4671_v61 = vpop.eup %4670 }
 0x18e   : > { %1210 = vmatprep.mubr.bf16.mxu1 %v6868_v42  ;;  %1064 = vmatprep.mubr.bf16.mxu0 %v6868_v42  ;;  %v902_v41 = vadd.f32 %v5240_v9, %v867_v6  ;;  %v834_v15 = vmul.f32 %v4671_v61, %v5165_v49 }
 0x18f   : > { %v5363_v60 = vpack.c.bf16 %v900_v37, %v899_v31  ;;  %v866_v7 = vmul.f32 %v5227_v57, %v831_v12 }
 0x190   : > { %v4673_v44 = vpop.eup %4672  ;;  %v869_v14 = vmul.f32 %v5227_v57, %v834_v15 }
 0x191   : > { %v901_v8 = vadd.f32 %v5240_v9, %v866_v7  ;;  %v833_v11 = vmul.f32 %v4673_v44, %v5154_v17 }
 0x192   : > { %v904_v49 = vadd.f32 %v5240_v9, %v869_v14 }
 0x193   : > { %v5377_v35 = vpack.c.bf16 %v902_v41, %v901_v8  ;;  %v868_v13 = vmul.f32 %v5227_v57, %v833_v11 }
 0x195   : > { %3806 = vmatmul.mubr.msk.bf16.gmra.mxu1 %vm475_vm0, %v5321_v16  ;;  %3795 = vmatmul.mubr.msk.bf16.gmra.mxu0 %vm475_vm0, %v5335_v52  ;;  %v903_v17 = vadd.f32 %v5240_v9, %v868_v13 }
 0x196   : > { %1220 = vmatprep.mubr.bf16.mxu1 %v6868_v42  ;;  %1074 = vmatprep.mubr.bf16.mxu0 %v6868_v42 }
 0x197   : > { %v5389_v0 = vpack.c.bf16 %v904_v49, %v903_v17 }
 0x19d   : > { %3807 = vmatmul.mubr.msk.bf16.gmra.mxu1 %vm475_vm0, %v5335_v52  ;;  %3796 = vmatmul.mubr.msk.bf16.gmra.mxu0 %vm475_vm0, %v5349_v56 }
 0x19e   : > { %1230 = vmatprep.mubr.bf16.mxu1 %v6868_v42  ;;  %1084 = vmatprep.mubr.bf16.mxu0 %v6868_v42 }
 0x1a5   : > { %3808 = vmatmul.mubr.msk.bf16.gmra.mxu1 %vm475_vm0, %v5349_v56  ;;  %3797 = vmatmul.mubr.msk.bf16.gmra.mxu0 %vm475_vm0, %v5363_v60 }
 0x1a6   : > { %1240 = vmatprep.mubr.bf16.mxu1 %v6868_v42  ;;  %1094 = vmatprep.mubr.bf16.mxu0 %v6868_v42 }
 0x1ad   : > { %3809 = vmatmul.mubr.msk.bf16.gmra.mxu1 %vm475_vm0, %v5363_v60  ;;  %3798 = vmatmul.mubr.msk.bf16.gmra.mxu0 %vm475_vm0, %v5377_v35 }
 0x1ae   : > { %1250 = vmatprep.mubr.bf16.mxu1 %v6868_v42  ;;  %1104 = vmatprep.mubr.bf16.mxu0 %v6868_v42 }
 0x1b5   : > { %3810 = vmatmul.mubr.msk.bf16.gmra.mxu1 %vm475_vm0, %v5377_v35  ;;  %3799 = vmatmul.mubr.msk.bf16.gmra.mxu0 %vm475_vm0, %v5389_v0 }
 0x1b6   : > { %1260 = vmatprep.mubr.bf16.mxu1 %v6868_v42  ;;  %1114 = vmatprep.mubr.bf16.mxu0 %v6868_v42 }
 0x1bd   : > { %3811 = vmatmul.mubr.msk.bf16.gmra.mxu1 %vm475_vm0, %v5389_v0 }
 0x1be   : > { %1496 = vmatprep.mubr.bf16.mxu1 %v6868_v42 }
 0x1c5   : > { %3823 = vmatmul.mubr.msk.bf16.vlgmr.msra.gmra.mxu1 %vm475_vm0, %v5293_v34 }
 0x1c6   : > { %1506 = vmatprep.mubr.bf16.mxu1 %v6868_v42 }
 0x1cd   : > { %3824 = vmatmul.mubr.msk.bf16.gmra.mxu1 %vm475_vm0, %v5307_v2 }
 0x1ce   : > { %1516 = vmatprep.mubr.bf16.mxu1 %v6868_v42 }
 0x1d5   : > { %3825 = vmatmul.mubr.msk.bf16.gmra.mxu1 %vm475_vm0, %v5321_v16 }
 0x1d6   : > { %1526 = vmatprep.mubr.bf16.mxu1 %v6868_v42 }
 0x1dd   : > { %3826 = vmatmul.mubr.msk.bf16.gmra.mxu1 %vm475_vm0, %v5335_v52 }
 0x1de   : > { %1536 = vmatprep.mubr.bf16.mxu1 %v6868_v42 }
 0x1e3   : > { %v713_v20 = vpop.xlane.xlu0 %712 }
 0x1e4   : > { %v751_v47 = vmul.f32 0.0625, %v713_v20 }
 0x1e5   : > { %3827 = vmatmul.mubr.msk.bf16.gmra.mxu1 %vm475_vm0, %v5349_v56 }
 0x1e6   : > { %v779_v51 = vadd.f32 1e-05, %v751_v47  ;;  %1546 = vmatprep.mubr.bf16.mxu1 %v6868_v42 }
 0x1e7   : > { %v550_v1 = vpop.xlane.xlu0 %549  ;;  %v716_v18 = vpop.xlane.xlu1 %715 }
 0x1e8   : > { %4674 = vrsqrt.f32 %v779_v51  ;;  %v585_v21 = vmul.f32 0.0625, %v550_v1  ;;  %v752_v28 = vmul.f32 0.0625, %v716_v18 }
 0x1ea   : > { %v5416_v25 = vsub.f32 %v5202_v19, %v585_v21  ;;  %v780_v24 = vadd.f32 1e-05, %v752_v28 }
 0x1eb   : > { %v556_v23 = vpop.xlane.xlu0 %555  ;;  %v553_v4 = vpop.xlane.xlu1 %552 }
 0x1ec   : > { %4676 = vrsqrt.f32 %v780_v24  ;;  %v587_v22 = vmul.f32 0.0625, %v556_v23  ;;  %v586_v26 = vmul.f32 0.0625, %v553_v4  ;;  %v641_v27 = vmul.f32 %v5416_v25, %v5416_v25 }
 0x1ed   : > { %3828 = vmatmul.mubr.msk.bf16.gmra.mxu1 %vm475_vm0, %v5363_v60 }
 0x1ee   : > { %v5423_v29 = vsub.f32 %v5213_v32, %v587_v22  ;;  %v5426_v30 = vsub.f32 %v5216_v36, %v586_v26  ;;  %v717_v19 = vsel %vm475_vm0, %v641_v27, 0.0  ;;  %1556 = vmatprep.mubr.bf16.mxu1 %v6868_v42 }
 0x1ef   : > { %718 = vadd.xlane.f32.xlu0 %v717_v19  ;;  %v559_v5 = vpop.xlane.xlu1 %558 }
 0x1f0   : > { %v588_v53 = vmul.f32 0.0625, %v559_v5  ;;  %v643_v39 = vmul.f32 %v5423_v29, %v5423_v29  ;;  %v642_v43 = vmul.f32 %v5426_v30, %v5426_v30 }
 0x1f2   : > { %v5435_v38 = vsub.f32 %v5230_v59, %v588_v53  ;;  %v723_v32 = vsel %vm475_vm0, %v643_v39, 0.0  ;;  %v720_v36 = vsel %vm475_vm0, %v642_v43, 0.0 }
 0x1f3   : > { %724 = vadd.xlane.f32.xlu0 %v723_v32  ;;  %721 = vadd.xlane.f32.xlu1 %v720_v36 }
 0x1f4   : > { %v644_v46 = vmul.f32 %v5435_v38, %v5435_v38 }
 0x1f5   : > { %v4675_v33 = vpop.eup %4674  ;;  %3829 = vmatmul.mubr.msk.bf16.gmra.mxu1 %vm475_vm0, %v5377_v35 }
 0x1f6   : > { %v726_v50 = vsel %vm475_vm0, %v644_v46, 0.0  ;;  %1566 = vmatprep.mubr.bf16.mxu1 %v6868_v42  ;;  %v835_v59 = vmul.f32 %v4675_v33, %v5197_v10 }
 0x1f7   : > { %727 = vadd.xlane.f32.xlu1 %v726_v50 }
 0x1f8   : > { %v870_v54 = vmul.f32 %v5227_v57, %v835_v59 }
 0x1f9   : > { %v4677_v3 = vpop.eup %4676 }
 0x1fa   : > { %v836_v63 = vmul.f32 %v4677_v3, %v5205_v48  ;;  %v905_v55 = vadd.f32 %v5240_v9, %v870_v54 }
 0x1fc   : > { %v871_v58 = vmul.f32 %v5227_v57, %v836_v63 }
 0x1fd   : > { %3830 = vmatmul.mubr.msk.bf16.gmra.mxu1 %vm475_vm0, %v5389_v0 }
 0x1fe   : > { %v906_v40 = vadd.f32 %v5240_v9, %v871_v58  ;;  %1576 = vmatprep.mubr.bf16.mxu1 %v6868_v42 }
 0x200   : > { %v5454_v37 = vpack.c.bf16 %v906_v40, %v905_v55 }
 0x202   : > { %3800 = vmatmul.mubr.msk.bf16.gmra.mxu0 %vm475_vm0, %v5454_v37 }
 0x203   : > { %1306 = vmatprep.mubr.bf16.mxu0 %v6868_v42 }
 0x205   : > { %3831 = vmatmul.mubr.msk.bf16.gmra.mxu1 %vm475_vm0, %v5454_v37 }
 0x206   : > { %1586 = vmatprep.mubr.bf16.mxu1 %v6868_v42 }
 0x20a   : > { %3812 = vmatmul.mubr.msk.bf16.vlgmr.msra.gmra.mxu0 %vm475_vm0, %v5277_v45 }
 0x20b   : > { %1316 = vmatprep.mubr.bf16.mxu0 %v6868_v42 }
 0x212   : > { %3813 = vmatmul.mubr.msk.bf16.gmra.mxu0 %vm475_vm0, %v5293_v34 }
 0x213   : > { %1326 = vmatprep.mubr.bf16.mxu0 %v6868_v42 }
 0x21a   : > { %3814 = vmatmul.mubr.msk.bf16.gmra.mxu0 %vm475_vm0, %v5307_v2 }
 0x21b   : > { %1336 = vmatprep.mubr.bf16.mxu0 %v6868_v42 }
 0x222   : > { %3815 = vmatmul.mubr.msk.bf16.gmra.mxu0 %vm475_vm0, %v5321_v16 }
 0x223   : > { %1346 = vmatprep.mubr.bf16.mxu0 %v6868_v42 }
 0x22a   : > { %v1016_v10 = vpop.f32.mrf.mxu0  ;;  %3816 = vmatmul.mubr.msk.bf16.gmra.mxu0 %vm475_vm0, %v5335_v52 }
 0x22b   : > { %1356 = vmatprep.mubr.bf16.mxu0 %v6868_v42 }
 0x22c   : > { %v1018_v48 = vpop.f32.mrf.mxu0 }
 0x22d   : > { %v1162_v45 = vpop.f32.mrf.mxu1 }
 0x22e   : > { %v5477_v34 = vadd.f32 %v1162_v45, %v1016_v10  ;;  %v1020_v62 = vpop.f32.mrf.mxu0 }
 0x22f   : > { %v1164_v31 = vpop.f32.mrf.mxu1 }
 0x230   : > { %v5479_v2 = vadd.f32 %v1164_v31, %v1018_v48  ;;  %v1022_v16 = vpop.f32.mrf.mxu0 }
 0x231   : > { %v1166_v12 = vpop.f32.mrf.mxu1 }
 0x232   : > { %v5481_v6 = vadd.f32 %v1166_v12, %v1020_v62  ;;  %3817 = vmatmul.mubr.msk.bf16.gmra.mxu0 %vm475_vm0, %v5349_v56 }
 0x233   : > { %v1168_v61 = vpop.f32.mrf.mxu1  ;;  %1366 = vmatprep.mubr.bf16.mxu0 %v6868_v42 }
 0x234   : > { %v5486_v52 = vadd.f32 %v1168_v61, %v1022_v16 }
 0x235   : > { %v1172_v7 = vpop.f32.mrf.mxu1  ;;  %v1026_v44 = vpop.f32.mrf.mxu0 }
 0x236   : > { %v5488_v41 = vadd.f32 %v1172_v7, %v1026_v44 }
 0x237   : > { %v1174_v15 = vpop.f32.mrf.mxu1  ;;  %v1028_v8 = vpop.f32.mrf.mxu0 }
 0x238   : > { %v5490_v11 = vadd.f32 %v1174_v15, %v1028_v8 }
 0x239   : > { %v1176_v14 = vpop.f32.mrf.mxu1  ;;  %v1030_v13 = vpop.f32.mrf.mxu0 }
 0x23a   : > { %3818 = vmatmul.mubr.msk.bf16.gmra.mxu0 %vm475_vm0, %v5363_v60  ;;  %v5494_v56 = vadd.f32 %v1176_v14, %v1030_v13 }
 0x23b   : > { %v1178_v49 = vpop.f32.mrf.mxu1  ;;  %1376 = vmatprep.mubr.bf16.mxu0 %v6868_v42  ;;  %v1032_v17 = vpop.f32.mrf.mxu0 }
 0x23c   : > { %v5497_v20 = vadd.f32 %v1178_v49, %v1032_v17 }
 0x23d   : > { %v1182_v47 = vpop.f32.mrf.mxu1  ;;  %v1036_v51 = vpop.f32.mrf.mxu0 }
 0x23e   : > { %v5499_v1 = vadd.f32 %v1182_v47, %v1036_v51 }
 0x23f   : > { %v1184_v18 = vpop.f32.mrf.mxu1  ;;  %v1038_v21 = vpop.f32.mrf.mxu0 }
 0x240   : > { %v5501_v28 = vadd.f32 %v1184_v18, %v1038_v21 }
 0x241   : > { %v1186_v24 = vpop.f32.mrf.mxu1  ;;  %v1040_v23 = vpop.f32.mrf.mxu0 }
 0x242   : > { %3819 = vmatmul.mubr.msk.bf16.gmra.mxu0 %vm475_vm0, %v5377_v35  ;;  %v5505_v60 = vadd.f32 %v1186_v24, %v1040_v23 }
 0x243   : > { %v1188_v4 = vpop.f32.mrf.mxu1  ;;  %1386 = vmatprep.mubr.bf16.mxu0 %v6868_v42  ;;  %v1042_v22 = vpop.f32.mrf.mxu0 }
 0x244   : > { %v5508_v26 = vadd.f32 %v1188_v4, %v1042_v22 }
 0x245   : > { %v1192_v27 = vpop.f32.mrf.mxu1  ;;  %v1046_v19 = vpop.f32.mrf.mxu0 }
 0x246   : > { %v5510_v5 = vadd.f32 %v1192_v27, %v1046_v19 }
 0x247   : > { %v1194_v53 = vpop.f32.mrf.mxu1  ;;  %v1048_v39 = vpop.f32.mrf.mxu0 }
 0x248   : > { %v5512_v43 = vadd.f32 %v1194_v53, %v1048_v39 }
 0x249   : > { %v1196_v32 = vpop.f32.mrf.mxu1  ;;  %v1050_v36 = vpop.f32.mrf.mxu0 }
 0x24a   : > { %3820 = vmatmul.mubr.msk.bf16.gmra.mxu0 %vm475_vm0, %v5389_v0  ;;  %v5516_v35 = vadd.f32 %v1196_v32, %v1050_v36 }
 0x24b   : > { %v1198_v46 = vpop.f32.mrf.mxu1  ;;  %1396 = vmatprep.mubr.bf16.mxu0 %v6868_v42  ;;  %v1052_v33 = vpop.f32.mrf.mxu0 }
 0x24c   : > { %v5519_v50 = vadd.f32 %v1198_v46, %v1052_v33 }
 0x24d   : > { %v1202_v59 = vpop.f32.mrf.mxu1  ;;  %v1056_v3 = vpop.f32.mrf.mxu0 }
 0x24e   : > { %v5521_v63 = vadd.f32 %v1202_v59, %v1056_v3 }
 0x24f   : > { %v1204_v54 = vpop.f32.mrf.mxu1  ;;  %v1058_v58 = vpop.f32.mrf.mxu0 }
 0x250   : > { %v5523_v55 = vadd.f32 %v1204_v54, %v1058_v58 }
 0x251   : > { %v1206_v40 = vpop.f32.mrf.mxu1  ;;  %v1060_v10 = vpop.f32.mrf.mxu0 }
 0x252   : > { %3821 = vmatmul.mubr.msk.bf16.gmra.mxu0 %vm475_vm0, %v5454_v37  ;;  %v5527_v0 = vadd.f32 %v1206_v40, %v1060_v10 }
 0x253   : > { %v1208_v48 = vpop.f32.mrf.mxu1  ;;  %1406 = vmatprep.mubr.bf16.mxu0 %v6868_v42  ;;  %v1062_v45 = vpop.f32.mrf.mxu0 }
 0x254   : > { %v5530_v62 = vadd.f32 %v1208_v48, %v1062_v45 }
 0x255   : > { %v1212_v31 = vpop.f32.mrf.mxu1  ;;  %v1066_v12 = vpop.f32.mrf.mxu0 }
 0x256   : > { %v5532_v16 = vadd.f32 %v1212_v31, %v1066_v12 }
 0x257   : > { %v1214_v61 = vpop.f32.mrf.mxu1  ;;  %v1068_v7 = vpop.f32.mrf.mxu0 }
 0x258   : > { %v5534_v44 = vadd.f32 %v1214_v61, %v1068_v7 }
 0x259   : > { %v1216_v15 = vpop.f32.mrf.mxu1  ;;  %v1070_v8 = vpop.f32.mrf.mxu0 }
 0x25a   : > { %v5536_v14 = vadd.f32 %v1216_v15, %v1070_v8 }
 0x25b   : > { %v1218_v37 = vpop.f32.mrf.mxu1  ;;  %v1072_v13 = vpop.f32.mrf.mxu0 }
 0x25c   : > { %v5538_v49 = vadd.f32 %v1218_v37, %v1072_v13 }
 0x25d   : > { %v1222_v17 = vpop.f32.mrf.mxu1  ;;  %v1076_v47 = vpop.f32.mrf.mxu0 }
 0x25e   : > { %v5540_v51 = vadd.f32 %v1222_v17, %v1076_v47 }
 0x25f   : > { %v1224_v18 = vpop.f32.mrf.mxu1  ;;  %v1078_v21 = vpop.f32.mrf.mxu0 }
 0x260   : > { %v5542_v24 = vadd.f32 %v1224_v18, %v1078_v21 }
 0x261   : > { %v1226_v23 = vpop.f32.mrf.mxu1  ;;  %v1080_v4 = vpop.f32.mrf.mxu0 }
 0x262   : > { %v5544_v22 = vadd.f32 %v1226_v23, %v1080_v4 }
 0x263   : > { %v1228_v27 = vpop.f32.mrf.mxu1  ;;  %v1082_v19 = vpop.f32.mrf.mxu0 }
 0x264   : > { %v5546_v53 = vadd.f32 %v1228_v27, %v1082_v19 }
 0x265   : > { %v1232_v39 = vpop.f32.mrf.mxu1  ;;  %v1086_v32 = vpop.f32.mrf.mxu0 }
 0x266   : > { %v5548_v36 = vadd.f32 %v1232_v39, %v1086_v32 }
 0x267   : > { %v1234_v46 = vpop.f32.mrf.mxu1  ;;  %v1088_v33 = vpop.f32.mrf.mxu0 }
 0x268   : > { %v5550_v59 = vadd.f32 %v1234_v46, %v1088_v33 }
 0x269   : > { %v1236_v3 = vpop.f32.mrf.mxu1  ;;  %v1090_v54 = vpop.f32.mrf.mxu0 }
 0x26a   : > { %v5552_v58 = vadd.f32 %v1236_v3, %v1090_v54 }
 0x26b   : > { %v1238_v40 = vpop.f32.mrf.mxu1  ;;  %v1092_v10 = vpop.f32.mrf.mxu0 }
 0x26c   : > { %6870 = vst [vmem:[#allocation8_spill] sm:$0xff] %v5552_v58  ;;  %v5554_v48 = vadd.f32 %v1238_v40, %v1092_v10 }
 0x26d   : > { %v1242_v45 = vpop.f32.mrf.mxu1  ;;  %v1096_v31 = vpop.f32.mrf.mxu0 }
 0x26e   : > { %6871 = vst [vmem:[#allocation9_spill] sm:$0xff] %v5554_v48  ;;  %v5556_v12 = vadd.f32 %v1242_v45, %v1096_v31 }
 0x26f   : > { %v1244_v61 = vpop.f32.mrf.mxu1  ;;  %v1098_v7 = vpop.f32.mrf.mxu0 }
 0x270   : > { %6872 = vst [vmem:[#allocation10_spill] sm:$0xff] %v5556_v12  ;;  %v5558_v15 = vadd.f32 %v1244_v61, %v1098_v7 }
 0x271   : > { %v1246_v8 = vpop.f32.mrf.mxu1  ;;  %v1100_v37 = vpop.f32.mrf.mxu0 }
 0x272   : > { %6873 = vst [vmem:[#allocation11_spill] sm:$0xff] %v5558_v15  ;;  %v5560_v13 = vadd.f32 %v1246_v8, %v1100_v37 }
 0x273   : > { %v1248_v17 = vpop.f32.mrf.mxu1  ;;  %v1102_v47 = vpop.f32.mrf.mxu0 }
 0x274   : > { %6874 = vst [vmem:[#allocation12_spill] sm:$0xff] %v5560_v13  ;;  %v5562_v18 = vadd.f32 %v1248_v17, %v1102_v47 }
 0x275   : > { %v1252_v21 = vpop.f32.mrf.mxu1  ;;  %v1106_v23 = vpop.f32.mrf.mxu0 }
 0x276   : > { %6875 = vst [vmem:[#allocation13_spill] sm:$0xff] %v5562_v18  ;;  %v5564_v4 = vadd.f32 %v1252_v21, %v1106_v23 }
 0x277   : > { %v1254_v27 = vpop.f32.mrf.mxu1  ;;  %v1108_v19 = vpop.f32.mrf.mxu0 }
 0x278   : > { %6876 = vst [vmem:[#allocation14_spill] sm:$0xff] %v5564_v4  ;;  %v719_v39 = vpop.xlane.xlu0 %718  ;;  %v5566_v32 = vadd.f32 %v1254_v27, %v1108_v19 }
 0x279   : > { %v753_v46 = vmul.f32 0.0625, %v719_v39  ;;  %v1256_v33 = vpop.f32.mrf.mxu1  ;;  %v1110_v3 = vpop.f32.mrf.mxu0 }
 0x27a   : > { %6877 = vst [vmem:[#allocation15_spill] sm:$0xff] %v5566_v32  ;;  %v5568_v40 = vadd.f32 %v1256_v33, %v1110_v3 }
 0x27b   : > { %v781_v54 = vadd.f32 1e-05, %v753_v46  ;;  %v5570_v10 = vpop.f32.mrf.mxu1 }
 0x27c   : > { %6878 = vst [vmem:[#allocation16_spill] sm:$0xff] %v5568_v40  ;;  %6879 = vst [vmem:[#allocation17_spill] sm:$0xff] %v5570_v10  ;;  %v725_v45 = vpop.xlane.xlu0 %724  ;;  %v722_v61 = vpop.xlane.xlu1 %721  ;;  %v1651_v10 = vld [vmem:[%s6863_s4] sm:$0x3] }
 0x27d   : > { %4678 = vrsqrt.f32 %v781_v54  ;;  %v755_v31 = vmul.f32 0.0625, %v725_v45  ;;  %v5572_v7 = vpop.f32.mrf.mxu1  ;;  %v754_v8 = vmul.f32 0.0625, %v722_v61 }
 0x27e   : > { %6880 = vst [vmem:[#allocation18_spill] sm:$0xff] %v5572_v7 }
 0x27f   : > { %v5574_v37 = vpop.f32.mrf.mxu1  ;;  %v783_v17 = vadd.f32 1e-05, %v755_v31  ;;  %v782_v47 = vadd.f32 1e-05, %v754_v8 }
 0x280   : > { %6881 = vst [vmem:[#allocation19_spill] sm:$0xff] %v5574_v37  ;;  %v728_v21 = vpop.xlane.xlu1 %727 }
 0x281   : > { %v5576_v23 = vpop.f32.mrf.mxu1  ;;  %4680 = vrsqrt.f32 %v782_v47  ;;  %v756_v27 = vmul.f32 0.0625, %v728_v21 }
 0x282   : > { %6882 = vst [vmem:[#allocation20_spill] sm:$0xff] %v5576_v23  ;;  %4682 = vrsqrt.f32 %v783_v17 }
 0x283   : > { %v5578_v19 = vpop.f32.mrf.mxu1  ;;  %v784_v39 = vadd.f32 1e-05, %v756_v27 }
 0x284   : > { %6883 = vst [vmem:[#allocation21_spill] sm:$0xff] %v5578_v19 }
 0x285   : > { %4684 = vrsqrt.f32 %v784_v39  ;;  %v1498_v46 = vpop.f32.mrf.mxu1 }
 0x287   : > { %v1500_v3 = vpop.f32.mrf.mxu1 }
 0x289   : > { %v1502_v45 = vpop.f32.mrf.mxu1 }
 0x28a   : > { %v4679_v33 = vpop.eup %4678 }
 0x28b   : > { %v837_v54 = vmul.f32 %v4679_v33, %v5416_v25  ;;  %v1504_v23 = vpop.f32.mrf.mxu1 }
 0x28d   : > { %v872_v8 = vmul.f32 %v5227_v57, %v837_v54  ;;  %v1508_v25 = vpop.f32.mrf.mxu1  ;;  %v6884_v54 = vmov 0  }
 0x28e   : > { %v4681_v61 = vpop.eup %4680 }
 0x28f   : > { %v838_v31 = vmul.f32 %v4681_v61, %v5426_v30  ;;  %v4683_v42 = vpop.eup %4682  ;;  %v907_v17 = vadd.f32 %v5240_v9, %v872_v8  ;;  %v1510_v61 = vpop.f32.mrf.mxu1 }
 0x290   : > { %v839_v39 = vmul.f32 %v4683_v42, %v5423_v29 }
 0x291   : > { %v873_v47 = vmul.f32 %v5227_v57, %v838_v31  ;;  %v1512_v42 = vpop.f32.mrf.mxu1 }
 0x292   : > { %v4685_v21 = vpop.eup %4684  ;;  %v874_v30 = vmul.f32 %v5227_v57, %v839_v39  ;;  %v5612_v39 = vpop.f32.mrf.mxu0 }
 0x293   : > { %v908_v27 = vadd.f32 %v5240_v9, %v873_v47  ;;  %v840_v19 = vmul.f32 %v4685_v21, %v5435_v38  ;;  %v5596_v38 = vpop.f32.mrf.mxu1  ;;  %6885 = vst [vmem:[#allocation22_spill] sm:$0xff] %v5612_v39 }
 0x294   : > { %v909_v8 = vadd.f32 %v5240_v9, %v874_v30 }
 0x295   : > { %v923_v33 = vpack.c.bf16 %v908_v27, %v907_v17  ;;  %v875_v37 = vmul.f32 %v5227_v57, %v840_v19  ;;  %v5598_v19 = vpop.f32.mrf.mxu1 }
 0x297   : > { %3822 = vmatmul.mubr.msk.bf16.gmra.mxu0 %vm475_vm0, %v923_v33  ;;  %3832 = vmatmul.mubr.msk.bf16.gmra.mxu1 %vm475_vm0, %v923_v33  ;;  %v910_v31 = vadd.f32 %v5240_v9, %v875_v37  ;;  %v5600_v47 = vpop.f32.mrf.mxu1  ;;  %v1653_v9 = vlaneseq }
 0x298   : > { %1596 = vmatprep.mubr.bf16.mxu1 %v6884_v54 }
 0x299   : > { %v924_v29 = vpack.c.bf16 %v910_v31, %v909_v8  ;;  %v5602_v21 = vpop.f32.mrf.mxu1  ;;  %v1654_v54 = vshrl.u32 %v1653_v9, 7 }
 0x29b   : > { %v5604_v57 = vpop.f32.mrf.mxu1  ;;  %v1655_v7 = vsub.s32 0, %v1654_v54  ;;  %v1659_v32 = vsub.s32 1, %v1654_v54 }
 0x29d   : > { %v5606_v17 = vpop.f32.mrf.mxu1  ;;  %v5632_v9 = vrot.slane %v1651_v10, %v1655_v7 }
 0x29f   : > { %3833 = vmatmul.mubr.msk.bf16.gmra.mxu1 %vm475_vm0, %v924_v29  ;;  %v5608_v27 = vpop.f32.mrf.mxu1 }
 0x2a1   : > { %v5610_v37 = vpop.f32.mrf.mxu1 }
 0x2a3   : > { %v5614_v33 = vpop.f32.mrf.mxu1 }
 0x2a5   : > { %v5620_v8 = vpop.f32.mrf.mxu1 }
 0x2a7   : > { %v5629_v39 = vpop.f32.mrf.mxu1 }
 0x2a9   : > { %v5637_v15 = vpop.f32.mrf.mxu1 }
 0x2c2   : > { %v5616_v30 = vpop.f32.mrf.mxu0 }
 0x2c3   : > { %6886 = vst [vmem:[#allocation23_spill] sm:$0xff] %v5616_v30 }
 0x2c4   : > { %v5618_v31 = vpop.f32.mrf.mxu0 }
 0x2c5   : > { %6887 = vst [vmem:[#allocation24_spill] sm:$0xff] %v5618_v31 }
 0x2c6   : > { %v5622_v29 = vpop.f32.mrf.mxu0 }
 0x2c7   : > { %6888 = vst [vmem:[#allocation25_spill] sm:$0xff] %v5622_v29  ;;  %v5635_v29 = vrot.slane %v1651_v10, %v1659_v32 }
 0x2c8   : > { %v5624_v40 = vpop.f32.mrf.mxu0 }
 0x2c9   : > { %6889 = vst [vmem:[#allocation26_spill] sm:$0xff] %v5624_v40 }
 0x2ca   : > { %v1308_v4 = vpop.f32.mrf.mxu0 }
 0x2cb   : > { %v1417_v30 = vadd.f32 %v1308_v4, %v5477_v34 }
 0x2cc   : > { %v1310_v31 = vpop.f32.mrf.mxu0 }
 0x2cd   : > { %v1607_v18 = vadd.f32 %v1498_v46, %v1417_v30  ;;  %v1418_v13 = vadd.f32 %v1310_v31, %v5479_v2  ;;  %v5643_v46 = vpop.f32.mrf.mxu1 }
 0x2ce   : > { %v1312_v40 = vpop.f32.mrf.mxu0 }
 0x2cf   : > { %v1663_v12 = vadd.f32 %v5632_v9, %v1607_v18  ;;  %v1608_v48 = vadd.f32 %v1500_v3, %v1418_v13  ;;  %v1419_v54 = vadd.f32 %v1312_v40, %v5481_v6 }
 0x2d0   : > { %v1314_v58 = vpop.f32.mrf.mxu0 }
 0x2d1   : > { %1707 = vst [vmem:[#allocation2] sm:$0xff] %v1663_v12  ;;  %v1664_v34 = vadd.f32 %v5635_v29, %v1608_v48  ;;  %v1609_v4 = vadd.f32 %v1502_v45, %v1419_v54  ;;  %v1420_v7 = vadd.f32 %v1314_v58, %v5486_v52  ;;  %v5649_v48 = vpop.f32.mrf.mxu1 }
 0x2d2   : > { %v1318_v2 = vpop.f32.mrf.mxu0 }
 0x2d3   : > { %1730 = vst [vmem:[#allocation2 + $0xb0] sm:$0xff] %v1664_v34  ;;  %v1665_v32 = vadd.f32 %v5632_v9, %v1609_v4  ;;  %v1610_v10 = vadd.f32 %v1504_v23, %v1420_v7  ;;  %v1421_v30 = vadd.f32 %v1318_v2, %v5488_v41  ;;  %v5655_v54 = vpop.f32.mrf.mxu1 }
 0x2d4   : > { %v1320_v18 = vpop.f32.mrf.mxu0 }
 0x2d5   : > { %1708 = vst [vmem:[#allocation2 + $0x8] sm:$0xff] %v1665_v32  ;;  %v1666_v6 = vadd.f32 %v5635_v29, %v1610_v10  ;;  %v1611_v13 = vadd.f32 %v1508_v25, %v1421_v30  ;;  %v1422_v12 = vadd.f32 %v1320_v18, %v5490_v11  ;;  %v5663_v2 = vpop.f32.mrf.mxu1 }
 0x2d6   : > { %v1322_v40 = vpop.f32.mrf.mxu0 }
 0x2d7   : > { %1731 = vst [vmem:[#allocation2 + $0xb8] sm:$0xff] %v1666_v6  ;;  %v1667_v52 = vadd.f32 %v5632_v9, %v1611_v13  ;;  %v1612_v58 = vadd.f32 %v1510_v61, %v1422_v12  ;;  %v1423_v3 = vadd.f32 %v1322_v40, %v5494_v56  ;;  %v5671_v6 = vpop.f32.mrf.mxu1 }
 0x2d8   : > { %v1324_v45 = vpop.f32.mrf.mxu0 }
 0x2d9   : > { %1709 = vst [vmem:[#allocation2 + $0x10] sm:$0xff] %v1667_v52  ;;  %v1668_v41 = vadd.f32 %v5635_v29, %v1612_v58  ;;  %v1613_v23 = vadd.f32 %v1512_v42, %v1423_v3  ;;  %v1424_v31 = vadd.f32 %v1324_v45, %v5497_v20  ;;  %v5679_v58 = vpop.f32.mrf.mxu1 }
 0x2da   : > { %v1328_v25 = vpop.f32.mrf.mxu0 }
 0x2db   : > { %1732 = vst [vmem:[#allocation2 + $0xc0] sm:$0xff] %v1668_v41  ;;  %v1669_v11 = vadd.f32 %v5632_v9, %v1613_v23  ;;  %v1614_v34 = vadd.f32 %v5596_v38, %v1424_v31  ;;  %v1425_v4 = vadd.f32 %v1328_v25, %v5499_v1  ;;  %v5687_v31 = vpop.f32.mrf.mxu1  ;;  %v5692_v25 = vld [vmem:[%s6864_s5] sm:$0xff] }
 0x2dc   : > { %v1330_v61 = vpop.f32.mrf.mxu0 }
 0x2dd   : > { %1710 = vst [vmem:[#allocation2 + $0x18] sm:$0xff] %v1669_v11  ;;  %v1670_v56 = vadd.f32 %v5635_v29, %v1614_v34  ;;  %v1615_v7 = vadd.f32 %v5598_v19, %v1425_v4  ;;  %v1426_v42 = vadd.f32 %v1330_v61, %v5501_v28  ;;  %v4752_v34 = vmov 0.0   ;;  %v5733_v4 = vld [vmem:[%s6864_s5 + $0x20] sm:$0xff]  ;;  %v5738_v61 = vld [vmem:[%s6864_s5 + $0x28] sm:$0xff] }
 0x2de   : > { %v1332_v20 = vpop.f32.mrf.mxu0  ;;  %1753 = vst.msk [vmem:[#allocation3] sm:$0xff] %vm1752_vm1, %v4752_v34  ;;  %1754 = vst.msk [vmem:[#allocation3 + $0x8] sm:$0xff] %vm1752_vm1, %v4752_v34 }
 0x2df   : > { %1733 = vst [vmem:[#allocation2 + $0xc8] sm:$0xff] %v1670_v56  ;;  %v1671_v32 = vadd.f32 %v5632_v9, %v1615_v7  ;;  %v1616_v10 = vadd.f32 %v5600_v47, %v1426_v42  ;;  %v1427_v38 = vadd.f32 %v1332_v20, %v5505_v60  ;;  %1755 = vst.msk [vmem:[#allocation3 + $0x10] sm:$0xff] %vm1752_vm1, %v4752_v34  ;;  %v5745_v42 = vld [vmem:[%s6864_s5 + $0x30] sm:$0xff]  ;;  %v5750_v20 = vld [vmem:[%s6864_s5 + $0x38] sm:$0xff] }
 0x2e0   : > { %v1334_v30 = vpop.f32.mrf.mxu0  ;;  %1756 = vst.msk [vmem:[#allocation3 + $0x18] sm:$0xff] %vm1752_vm1, %v4752_v34  ;;  %1757 = vst.msk [vmem:[#allocation4] sm:$0xff] %vm1752_vm1, %v4752_v34 }
 0x2e1   : > { %1711 = vst [vmem:[#allocation2 + $0x20] sm:$0xff] %v1671_v32  ;;  %v1672_v1 = vadd.f32 %v5635_v29, %v1616_v10  ;;  %v1617_v18 = vadd.f32 %v5602_v21, %v1427_v38  ;;  %v1428_v19 = vadd.f32 %v1334_v30, %v5508_v26  ;;  %1758 = vst.msk [vmem:[#allocation4 + $0x8] sm:$0xff] %vm1752_vm1, %v4752_v34 }
 0x2e2   : > { %v1338_v28 = vpop.f32.mrf.mxu0  ;;  %1759 = vst.msk [vmem:[#allocation4 + $0x10] sm:$0xff] %vm1752_vm1, %v4752_v34  ;;  %1760 = vst.msk [vmem:[#allocation4 + $0x18] sm:$0xff] %vm1752_vm1, %v4752_v34  ;;  %v1772_v32 = vpack.c.bf16 %v5738_v61, %v5733_v4 }
 0x2e3   : > { %1734 = vst [vmem:[#allocation2 + $0xd0] sm:$0xff] %v1672_v1  ;;  %v1673_v13 = vadd.f32 %v5632_v9, %v1617_v18  ;;  %v1618_v12 = vadd.f32 %v5604_v57, %v1428_v19  ;;  %v1429_v47 = vadd.f32 %v1338_v28, %v5510_v5  ;;  %v1773_v1 = vpack.c.bf16 %v5750_v20, %v5745_v42  ;;  %v1562_v18 = vpop.f32.mrf.mxu1 }
 0x2e4   : > { %v1340_v40 = vpop.f32.mrf.mxu0 }
 0x2e5   : > { %1712 = vst [vmem:[#allocation2 + $0x28] sm:$0xff] %v1673_v13  ;;  %v1674_v60 = vadd.f32 %v5635_v29, %v1618_v12  ;;  %v1619_v52 = vadd.f32 %v5606_v17, %v1429_v47  ;;  %v1430_v21 = vadd.f32 %v1340_v40, %v5512_v43 }
 0x2e6   : > { %v1342_v26 = vpop.f32.mrf.mxu0 }
 0x2e7   : > { %1735 = vst [vmem:[#allocation2 + $0xd8] sm:$0xff] %v1674_v60  ;;  %v1675_v3 = vadd.f32 %v5632_v9, %v1619_v52  ;;  %v1620_v45 = vadd.f32 %v5608_v27, %v1430_v21  ;;  %v1431_v57 = vadd.f32 %v1342_v26, %v5516_v35  ;;  %v5697_v35 = vld [vmem:[%s6864_s5 + $0x8] sm:$0xff]  ;;  %v5702_v27 = vld [vmem:[%s6864_s5 + $0x10] sm:$0xff]  ;;  %v1564_v60 = vpop.f32.mrf.mxu1 }
 0x2e8   : > { %v1344_v41 = vpop.f32.mrf.mxu0 }
 0x2e9   : > { %1713 = vst [vmem:[#allocation2 + $0x30] sm:$0xff] %v1675_v3  ;;  %v1676_v5 = vadd.f32 %v5635_v29, %v1620_v45  ;;  %v1621_v23 = vadd.f32 %v5610_v37, %v1431_v57  ;;  %v1432_v17 = vadd.f32 %v1344_v41, %v5519_v50 }
 0x2ea   : > { %v1348_v43 = vpop.f32.mrf.mxu0 }
 0x2eb   : > { %1736 = vst [vmem:[#allocation2 + $0xe0] sm:$0xff] %v1676_v5  ;;  %v1677_v50 = vadd.f32 %v5632_v9, %v1621_v23  ;;  %v1622_v37 = vadd.f32 %v5614_v33, %v1432_v17  ;;  %v1433_v11 = vadd.f32 %v1348_v43, %v5521_v63  ;;  %v5726_v63 = vld [vmem:[%s6864_s5 + $0x18] sm:$0xff]  ;;  %v1765_v33 = vpack.c.bf16 %v5697_v35, %v5692_v25 }
 0x2ec   : > { %v1350_v56 = vpop.f32.mrf.mxu0  ;;  %v1766_v7 = vpack.c.bf16 %v5726_v63, %v5702_v27 }
 0x2ed   : > { %1714 = vst [vmem:[#allocation2 + $0x38] sm:$0xff] %v1677_v50  ;;  %v1678_v10 = vadd.f32 %v5635_v29, %v1622_v37  ;;  %v1623_v38 = vadd.f32 %v5620_v8, %v1433_v11  ;;  %v1434_v30 = vadd.f32 %v1350_v56, %v5523_v55 }
 0x2ee   : > { %v1352_v19 = vpop.f32.mrf.mxu0 }
 0x2ef   : > { %1737 = vst [vmem:[#allocation2 + $0xe8] sm:$0xff] %v1678_v10  ;;  %v1679_v28 = vadd.f32 %v5632_v9, %v1623_v38  ;;  %v1624_v13 = vadd.f32 %v5629_v39, %v1434_v30  ;;  %v1435_v12 = vadd.f32 %v1352_v19, %v5527_v0 }
 0x2f0   : > { %v1354_v47 = vpop.f32.mrf.mxu0 }
 0x2f1   : > { %1715 = vst [vmem:[#allocation2 + $0x40] sm:$0xff] %v1679_v28  ;;  %v1680_v40 = vadd.f32 %v5635_v29, %v1624_v13  ;;  %v1625_v8 = vadd.f32 %v5637_v15, %v1435_v12  ;;  %v1436_v55 = vadd.f32 %v1354_v47, %v5530_v62  ;;  %v1568_v15 = vpop.f32.mrf.mxu1 }
 0x2f2   : > { %v1358_v52 = vpop.f32.mrf.mxu0 }
 0x2f3   : > { %1738 = vst [vmem:[#allocation2 + $0xf0] sm:$0xff] %v1680_v40  ;;  %v1681_v21 = vadd.f32 %v5632_v9, %v1625_v8  ;;  %v1626_v26 = vadd.f32 %v5643_v46, %v1436_v55  ;;  %v1437_v3 = vadd.f32 %v1358_v52, %v5532_v16 }
 0x2f4   : > { %v1360_v39 = vpop.f32.mrf.mxu0 }
 0x2f5   : > { %1716 = vst [vmem:[#allocation2 + $0x48] sm:$0xff] %v1681_v21  ;;  %v1682_v0 = vadd.f32 %v5635_v29, %v1626_v26  ;;  %v1627_v45 = vadd.f32 %v5649_v48, %v1437_v3  ;;  %v1438_v57 = vadd.f32 %v1360_v39, %v5534_v44  ;;  %v1570_v48 = vpop.f32.mrf.mxu1  ;;  %v6890_v26 = vld [vmem:[#allocation8_spill] sm:$0xff] }
 0x2f6   : > { %v1362_v41 = vpop.f32.mrf.mxu0 }
 0x2f7   : > { %1739 = vst [vmem:[#allocation2 + $0xf8] sm:$0xff] %v1682_v0  ;;  %v1683_v62 = vadd.f32 %v5632_v9, %v1627_v45  ;;  %v1628_v5 = vadd.f32 %v5655_v54, %v1438_v57  ;;  %v1439_v23 = vadd.f32 %v1362_v41, %v5536_v14  ;;  %v6891_v0 = vld [vmem:[#allocation9_spill] sm:$0xff] }
 0x2f8   : > { %v1364_v46 = vpop.f32.mrf.mxu0 }
 0x2f9   : > { %1717 = vst [vmem:[#allocation2 + $0x50] sm:$0xff] %v1683_v62  ;;  %v1684_v16 = vadd.f32 %v5635_v29, %v1628_v5  ;;  %v1629_v17 = vadd.f32 %v5663_v2, %v1439_v23  ;;  %v1440_v43 = vadd.f32 %v1364_v46, %v5538_v49  ;;  %v1572_v2 = vpop.f32.mrf.mxu1  ;;  %v6892_v62 = vld [vmem:[#allocation10_spill] sm:$0xff] }
 0x2fa   : > { %v1368_v50 = vpop.f32.mrf.mxu0 }
 0x2fb   : > { %1740 = vst [vmem:[#allocation2 + $0x100] sm:$0xff] %v1684_v16  ;;  %v1685_v44 = vadd.f32 %v5632_v9, %v1629_v17  ;;  %v1630_v37 = vadd.f32 %v5671_v6, %v1440_v43  ;;  %v1441_v11 = vadd.f32 %v1368_v50, %v5540_v51  ;;  %v1574_v12 = vpop.f32.mrf.mxu1  ;;  %v6893_v17 = vld [vmem:[#allocation11_spill] sm:$0xff] }
 0x2fc   : > { %v1370_v54 = vpop.f32.mrf.mxu0 }
 0x2fd   : > { %1718 = vst [vmem:[#allocation2 + $0x58] sm:$0xff] %v1685_v44  ;;  %v1686_v14 = vadd.f32 %v5635_v29, %v1630_v37  ;;  %v1631_v56 = vadd.f32 %v5679_v58, %v1441_v11  ;;  %v1442_v10 = vadd.f32 %v1370_v54, %v5542_v24  ;;  %v1578_v52 = vpop.f32.mrf.mxu1  ;;  %v6894_v11 = vld [vmem:[#allocation12_spill] sm:$0xff] }
 0x2fe   : > { %v1372_v38 = vpop.f32.mrf.mxu0 }
 0x2ff   : > { %1741 = vst [vmem:[#allocation2 + $0x108] sm:$0xff] %v1686_v14  ;;  %v1687_v49 = vadd.f32 %v5632_v9, %v1631_v56  ;;  %v1632_v30 = vadd.f32 %v5687_v31, %v1442_v10  ;;  %v1443_v19 = vadd.f32 %v1372_v38, %v5544_v22  ;;  %v1580_v57 = vpop.f32.mrf.mxu1 }
 0x300   : > { %v1374_v6 = vpop.f32.mrf.mxu0 }
 0x301   : > { %1719 = vst [vmem:[#allocation2 + $0x60] sm:$0xff] %v1687_v49  ;;  %v1688_v51 = vadd.f32 %v5635_v29, %v1632_v30  ;;  %v1633_v28 = vadd.f32 %v1562_v18, %v1443_v19  ;;  %v1444_v13 = vadd.f32 %v1374_v6, %v5546_v53 }
 0x302   : > { %v1378_v58 = vpop.f32.mrf.mxu0 }
 0x303   : > { %1742 = vst [vmem:[#allocation2 + $0x110] sm:$0xff] %v1688_v51  ;;  %v1689_v24 = vadd.f32 %v5632_v9, %v1633_v28  ;;  %v1634_v47 = vadd.f32 %v1564_v60, %v1444_v13  ;;  %v1445_v40 = vadd.f32 %v1378_v58, %v5548_v36  ;;  %v6896_v58 = vld [vmem:[#allocation14_spill] sm:$0xff] }
 0x304   : > { %v1380_v8 = vpop.f32.mrf.mxu0 }
 0x305   : > { %1720 = vst [vmem:[#allocation2 + $0x68] sm:$0xff] %v1689_v24  ;;  %v1690_v31 = vadd.f32 %v5635_v29, %v1634_v47  ;;  %v1635_v22 = vadd.f32 %v1568_v15, %v1445_v40  ;;  %v1446_v55 = vadd.f32 %v1380_v8, %v5550_v59  ;;  %v6897_v8 = vld [vmem:[#allocation15_spill] sm:$0xff] }
 0x306   : > { %v1382_v21 = vpop.f32.mrf.mxu0 }
 0x307   : > { %1743 = vst [vmem:[#allocation2 + $0x118] sm:$0xff] %v1690_v31  ;;  %v1691_v53 = vadd.f32 %v5632_v9, %v1635_v22  ;;  %v1636_v18 = vadd.f32 %v1570_v48, %v1446_v55  ;;  %v1447_v3 = vadd.f32 %v1382_v21, %v6890_v26  ;;  %v1582_v48 = vpop.f32.mrf.mxu1  ;;  %v6898_v21 = vld [vmem:[#allocation22_spill] sm:$0xff]  ;;  %v6900_v26 = vld [vmem:[#allocation16_spill] sm:$0xff] }
 0x308   : > { %v1384_v39 = vpop.f32.mrf.mxu0 }
 0x309   : > { %1721 = vst [vmem:[#allocation2 + $0x70] sm:$0xff] %v1691_v53  ;;  %v1692_v60 = vadd.f32 %v5635_v29, %v1636_v18  ;;  %v1637_v36 = vadd.f32 %v1572_v2, %v1447_v3  ;;  %v1448_v45 = vadd.f32 %v1384_v39, %v6891_v0  ;;  %v6895_v2 = vld [vmem:[#allocation13_spill] sm:$0xff]  ;;  %v1584_v49 = vpop.f32.mrf.mxu1  ;;  %v6901_v0 = vld [vmem:[#allocation23_spill] sm:$0xff] }
 0x30a   : > { %v1388_v41 = vpop.f32.mrf.mxu0  ;;  %v6899_v53 = vld [vmem:[#allocation17_spill] sm:$0xff] }
 0x30b   : > { %1744 = vst [vmem:[#allocation2 + $0x120] sm:$0xff] %v1692_v60  ;;  %v1693_v59 = vadd.f32 %v5632_v9, %v1637_v36  ;;  %v1638_v15 = vadd.f32 %v1574_v12, %v1448_v45  ;;  %v1449_v5 = vadd.f32 %v1388_v41, %v6892_v62  ;;  %v1259_v18 = vadd.f32 %v6899_v53, %v6898_v21  ;;  %v6902_v45 = vld [vmem:[#allocation18_spill] sm:$0xff] }
 0x30c   : > { %v1390_v23 = vpop.f32.mrf.mxu0 }
 0x30d   : > { %1722 = vst [vmem:[#allocation2 + $0x78] sm:$0xff] %v1693_v59  ;;  %v1694_v46 = vadd.f32 %v5635_v29, %v1638_v15  ;;  %v1639_v16 = vadd.f32 %v1578_v52, %v1449_v5  ;;  %v1450_v43 = vadd.f32 %v1390_v23, %v6893_v17  ;;  %v6903_v23 = vld [vmem:[#allocation24_spill] sm:$0xff] }
 0x30e   : > { %v1392_v50 = vpop.f32.mrf.mxu0 }
 0x30f   : > { %1745 = vst [vmem:[#allocation2 + $0x128] sm:$0xff] %v1694_v46  ;;  %v1695_v44 = vadd.f32 %v5632_v9, %v1639_v16  ;;  %v1640_v37 = vadd.f32 %v1580_v57, %v1450_v43  ;;  %v1451_v54 = vadd.f32 %v1392_v50, %v6894_v11  ;;  %v1263_v57 = vadd.f32 %v6902_v45, %v6901_v0  ;;  %v6904_v46 = vld [vmem:[#allocation19_spill] sm:$0xff] }
 0x310   : > { %v1394_v14 = vpop.f32.mrf.mxu0  ;;  %v1265_v16 = vadd.f32 %v6904_v46, %v6903_v23 }
 0x311   : > { %1723 = vst [vmem:[#allocation2 + $0x80] sm:$0xff] %v1695_v44  ;;  %v1696_v56 = vadd.f32 %v5635_v29, %v1640_v37  ;;  %v1641_v10 = vadd.f32 %v1582_v48, %v1451_v54  ;;  %v1452_v38 = vadd.f32 %v1394_v14, %v6895_v2  ;;  %v6905_v44 = vld [vmem:[#allocation25_spill] sm:$0xff]  ;;  %v6906_v37 = vld [vmem:[#allocation20_spill] sm:$0xff] }
 0x312   : > { %v1398_v51 = vpop.f32.mrf.mxu0  ;;  %v1267_v11 = vadd.f32 %v6906_v37, %v6905_v44 }
 0x313   : > { %1746 = vst [vmem:[#allocation2 + $0x130] sm:$0xff] %v1696_v56  ;;  %v1697_v30 = vadd.f32 %v5632_v9, %v1641_v10  ;;  %v1642_v19 = vadd.f32 %v1584_v49, %v1452_v38  ;;  %v1453_v24 = vadd.f32 %v1398_v51, %v6896_v58  ;;  %v6907_v38 = vld [vmem:[#allocation26_spill] sm:$0xff]  ;;  %v6908_v49 = vld [vmem:[#allocation21_spill] sm:$0xff] }
 0x314   : > { %v1400_v28 = vpop.f32.mrf.mxu0 }
 0x315   : > { %1724 = vst [vmem:[#allocation2 + $0x88] sm:$0xff] %v1697_v30  ;;  %v1698_v6 = vadd.f32 %v5635_v29, %v1642_v19  ;;  %v1454_v31 = vadd.f32 %v1400_v28, %v6897_v8  ;;  %v1269_v30 = vadd.f32 %v6908_v49, %v6907_v38 }
 0x316   : > { %v1402_v13 = vpop.f32.mrf.mxu0 }
 0x317   : > { %1747 = vst [vmem:[#allocation2 + $0x138] sm:$0xff] %v1698_v6  ;;  %v1455_v3 = vadd.f32 %v1402_v13, %v6900_v26 }
 0x318   : > { %v1404_v12 = vpop.f32.mrf.mxu0 }
 0x319   : > { %v1456_v41 = vadd.f32 %v1404_v12, %v1259_v18 }
 0x357   : > { %v1408_v47 = vpop.f32.mrf.mxu0  ;;  %v1588_v40 = vpop.f32.mrf.mxu1 }
 0x358   : > { %v1643_v22 = vadd.f32 %v1588_v40, %v1453_v24  ;;  %v1457_v17 = vadd.f32 %v1408_v47, %v1263_v57 }
 0x359   : > { %v1410_v55 = vpop.f32.mrf.mxu0  ;;  %v1590_v52 = vpop.f32.mrf.mxu1 }
 0x35a   : > { %v1699_v39 = vadd.f32 %v5632_v9, %v1643_v22  ;;  %v1644_v60 = vadd.f32 %v1590_v52, %v1454_v31  ;;  %v1458_v54 = vadd.f32 %v1410_v55, %v1265_v16 }
 0x35b   : > { %v1592_v36 = vpop.f32.mrf.mxu1  ;;  %v1412_v62 = vpop.f32.mrf.mxu0 }
 0x35c   : > { %1725 = vst [vmem:[#allocation2 + $0x90] sm:$0xff] %v1699_v39  ;;  %v1700_v59 = vadd.f32 %v5635_v29, %v1644_v60  ;;  %v1645_v15 = vadd.f32 %v1592_v36, %v1455_v3  ;;  %v1459_v19 = vadd.f32 %v1412_v62, %v1267_v11 }
 0x35d   : > { %v1594_v5 = vpop.f32.mrf.mxu1  ;;  %v1414_v10 = vpop.f32.mrf.mxu0 }
 0x35e   : > { %1748 = vst [vmem:[#allocation2 + $0x140] sm:$0xff] %v1700_v59  ;;  %v1701_v43 = vadd.f32 %v5632_v9, %v1645_v15  ;;  %v1646_v48 = vadd.f32 %v1594_v5, %v1456_v41  ;;  %v1460_v13 = vadd.f32 %v1414_v10, %v1269_v30 }
 0x35f   : > { %v1598_v50 = vpop.f32.mrf.mxu1 }
 0x360   : > { %1726 = vst [vmem:[#allocation2 + $0x98] sm:$0xff] %v1701_v43  ;;  %v1702_v14 = vadd.f32 %v5635_v29, %v1646_v48  ;;  %v1647_v56 = vadd.f32 %v1598_v50, %v1457_v17 }
 0x361   : > { %v1600_v2 = vpop.f32.mrf.mxu1 }
 0x362   : > { %1749 = vst [vmem:[#allocation2 + $0x148] sm:$0xff] %v1702_v14  ;;  %v1703_v6 = vadd.f32 %v5632_v9, %v1647_v56  ;;  %v1648_v51 = vadd.f32 %v1600_v2, %v1458_v54 }
 0x363   : > { %v1602_v28 = vpop.f32.mrf.mxu1 }
 0x364   : > { %1727 = vst [vmem:[#allocation2 + $0xa0] sm:$0xff] %v1703_v6  ;;  %v1704_v12 = vadd.f32 %v5635_v29, %v1648_v51  ;;  %v1649_v58 = vadd.f32 %v1602_v28, %v1459_v19 }
 0x365   : > { %v1604_v24 = vpop.f32.mrf.mxu1 }
 0x366   : > { %1750 = vst [vmem:[#allocation2 + $0x150] sm:$0xff] %v1704_v12  ;;  %v1705_v47 = vadd.f32 %v5632_v9, %v1649_v58  ;;  %v1650_v40 = vadd.f32 %v1604_v24, %v1460_v13 }
 0x368   : > { %1728 = vst [vmem:[#allocation2 + $0xa8] sm:$0xff] %v1705_v47  ;;  %v1706_v8 = vadd.f32 %v5635_v29, %v1650_v40 }
 0x36a   : > { %1751 = vst [vmem:[#allocation2 + $0x158] sm:$0xff] %v1706_v8 }
 0x36b LB: >> { %v4753_v31 = vmov 0.0   ;;  %v1784_v22 = vld [vmem:[#allocation3] sm:$0xff]  ;;  %v1785_v29 = vld [vmem:[#allocation3 + $0x8] sm:$0xff]  ;;  %v1921_v9 = vld [vmem:[#allocation3 + $0x10] sm:$0xff]  ;;  %vm4754_vm2 = vmmov 0   ;;  %s1914_s22 = ssub.s32 10, %s4749_s21  ;;  %s4749_s21 = sphi %s5830_s21, %s1779_s21  }
 0x36c   : >> { %4188 = vmatprep.subr.bf16.mxu0 %v4753_v31  ;;  %4196 = vmatprep.subr.bf16.mxu1 %v4753_v31  ;;  %v1922_v55 = vld [vmem:[#allocation3 + $0x18] sm:$0xff]  ;;  %v1786_v52 = vpack.c.bf16 %v1785_v29, %v1784_v22  ;;  %s3838_s24 = sshll.u32 %s4749_s21, 4  ;;  %s5851_s25 = sshll.u32 %s1914_s22, 4  ;;  %v1847_v48 = vld [vmem:[#allocation4] sm:$0xff]  ;;  %v1848_v50 = vld [vmem:[#allocation4 + $0x8] sm:$0xff] }
 0x36d   : >> { %4189 = vmatpush3.bf16.msra.mxu0 %v1766_v7  ;;  %4197 = vmatpush3.bf16.msra.mxu1 %v1773_v1  ;;  %v1923_v21 = vpack.c.bf16 %v1922_v55, %v1921_v9  ;;  %s1781_s26 = scalar_lea.vmem [#allocation2], %s3838_s24  ;;  %s3737_s27 = scalar_lea.vmem [#allocation2], %s5851_s25  ;;  %v1985_v44 = vld [vmem:[#allocation4 + $0x10] sm:$0xff]  ;;  %v1986_v37 = vld [vmem:[#allocation4 + $0x18] sm:$0xff] }
 0x36e   : >> { %4190 = vmatprep.subr.bf16.mxu0 %v4753_v31  ;;  %4198 = vmatprep.subr.bf16.mxu1 %v4753_v31  ;;  %s4755_s10 = smov 64   ;;  %s4756_s11 = smov 32  }
 0x36f   : >> { %4192 = vmatprep.mubr.msk.bf16.mxu0 %vm4754_vm2, %v4753_v31  ;;  %4200 = vmatprep.mubr.msk.bf16.mxu1 %vm4754_vm2, %v4753_v31  ;;  %s4757_s14 = smov 96   ;;  %s1911_s15 = scalar_lea.vmem [#allocation5], %s3838_s24 }
 0x370   : >> { %s3740_s16 = scalar_lea.vmem [#allocation5], %s5851_s25  ;;  %s1779_s21 = sadd.s32 1, %s4749_s21  }
 0x371   : >> { %4191 = vmatpush3.bf16.msra.mxu0 %v1765_v33  ;;  %4199 = vmatpush3.bf16.msra.mxu1 %v1772_v32  ;;  %v1782_v53 = vld [vmem:[%s1781_s26] sm:$0xff]  ;;  %v3843_v18 = vld [vmem:[%s3737_s27 + $0xb0] sm:$0xff]  ;;  %v1783_v45 = vld [vmem:[%s1781_s26 + $0x8] sm:$0xff]  ;;  %p1776_p10 = scmp.ge.s32.totalorder %s1779_s21, 11  }
 0x372   : >> { %v3844_v57 = vld [vmem:[%s3737_s27 + $0xb8] sm:$0xff]  ;;  %4204 = vmatprep.subr.bf16.mxu0 (%p1776_p10), %v4752_v34  ;;  %4252 = vmatprep.subr.bf16.mxu1 (%p1776_p10), %v4752_v34  ;;  %v2147_v35 = vld [vmem:[%s6865_s6 + $0x20] sm:$0xff] (%p1776_p10)  ;;  %v2148_v27 = vld [vmem:[%s6865_s6 + $0x28] sm:$0xff] (%p1776_p10)  ;;  %vm4758_vm3 = vmmov (%p1776_p10), 0  }
 0x373   : > { %v2146_v25 = vld [vmem:[%s6865_s6 + $0x18] sm:$0xff] (%p1776_p10)  ;;  %v2143_v33 = vld [vmem:[%s6865_s6] sm:$0xff] (%p1776_p10)  ;;  %v2144_v4 = vld [vmem:[%s6865_s6 + $0x8] sm:$0xff] (%p1776_p10)  ;;  %v2177_v61 = vpack.c.bf16 (%p1776_p10), %v2148_v27, %v2147_v35 }
 0x374   : >> { %4193 = vmatmul.mubr.msk.bf16.vlgmr.msra.gmra.mxu0 %vm1752_vm1, %v1786_v52  ;;  %4201 = vmatmul.mubr.msk.bf16.vlgmr.msra.gmra.mxu1 %vm1752_vm1, %v1923_v21  ;;  %v2175_v32 = vpack.c.bf16 (%p1776_p10), %v2144_v4, %v2143_v33 }
 0x375   : > { %4208 = vmatprep.mubr.msk.bf16.mxu0 (%p1776_p10), %vm4758_vm3, %v4752_v34  ;;  %4256 = vmatprep.mubr.msk.bf16.mxu1 (%p1776_p10), %vm4758_vm3, %v4752_v34 }
 0x434   : >> { %v1824_v26 = vpop.f32.mrf.mxu0  ;;  %v1961_v3 = vpop.f32.mrf.mxu1 }
 0x435   : >> { %v1831_v39 = vadd.f32 %v1824_v26, %v1782_v53  ;;  %v1968_v60 = vadd.f32 %v3843_v18, %v1961_v3 }
 0x436   : >> { %v4194_v36 = vpop.f32.mrf.mxu0  ;;  %v4202_v0 = vpop.f32.mrf.mxu1 }
 0x437   : >> { %4686 = vtanh.f32 %v1831_v39  ;;  %v3840_v11 = vmul.f32 -1.442695, %v1831_v39  ;;  %v3846_v54 = vmul.f32 -1.442695, %v1968_v60 }
 0x438   : >> { %4688 = vtanh.f32 %v1968_v60  ;;  %v1827_v41 = vpop.f32.mrf.mxu0  ;;  %v1964_v59 = vpop.f32.mrf.mxu1 }
 0x439   : >> { %v1832_v15 = vadd.f32 %v1827_v41, %v1783_v45  ;;  %v1969_v62 = vadd.f32 %v3844_v57, %v1964_v59 }
 0x43a   : >> { %v4195_v5 = vpop.f32.mrf.mxu0  ;;  %v4203_v23 = vpop.f32.mrf.mxu1 }
 0x43b   : >> { %4690 = vtanh.f32 %v1832_v15  ;;  %v3841_v14 = vmul.f32 -1.442695, %v1832_v15  ;;  %v3847_v56 = vmul.f32 -1.442695, %v1969_v62 }
 0x43c   : >> { %4692 = vtanh.f32 %v1969_v62 }
 0x43d   : >> { %4694 = vpow2.f32 %v3840_v11 }
 0x43e   : >> { %4696 = vpow2.f32 %v3846_v54 }
 0x43f   : >> { %4698 = vpow2.f32 %v3841_v14 }
 0x440   : >> { %4700 = vpow2.f32 %v3847_v56 }
 0x444   : >> { %v4687_v46 = vpop.eup %4686 }
 0x445   : >> { %v4689_v16 = vpop.eup %4688  ;;  %1861 = vrot.lane.b32.xlu0 %v4687_v46, %s4755_s10 }
 0x446   : >> { %1999 = vrot.lane.b32.xlu1 %v4689_v16, %s4755_s10 }
 0x448   : >> { %v4691_v17 = vpop.eup %4690 }
 0x449   : >> { %v4693_v43 = vpop.eup %4692  ;;  %1863 = vrot.lane.b32.xlu0 %v4691_v17, %s4755_s10 }
 0x44a   : >> { %2001 = vrot.lane.b32.xlu1 %v4693_v43, %s4755_s10  ;;  %v4695_v10 = vpop.eup %4694 }
 0x44b   : >> { %v4697_v2 = vpop.eup %4696  ;;  %v1839_v38 = vadd.f32 1.0, %v4695_v10 }
 0x44c   : >> { %v4699_v49 = vpop.eup %4698  ;;  %v1976_v30 = vadd.f32 1.0, %v4697_v2 }
 0x44d   : >> { %1851 = vrot.lane.b32.xlu0 %v1847_v48, %s4756_s11  ;;  %4702 = vrcp.f32 %v1839_v38  ;;  %v1840_v19 = vadd.f32 1.0, %v4699_v49  ;;  %v4701_v6 = vpop.eup %4700 }
 0x44e   : >> { %1853 = vrot.lane.b32.xlu1 %v1848_v50, %s4756_s11  ;;  %4704 = vrcp.f32 %v1976_v30  ;;  %v1977_v51 = vadd.f32 1.0, %v4701_v6  ;;  %v2150_v6 = vld [vmem:[%s6865_s6 + $0x38] sm:$0xff] (%p1776_p10) }
 0x44f   : >> { %4706 = vrcp.f32 %v1840_v19  ;;  %v2149_v19 = vld [vmem:[%s6865_s6 + $0x30] sm:$0xff] (%p1776_p10) }
 0x450   : >> { %4708 = vrcp.f32 %v1977_v51  ;;  %v2145_v51 = vld [vmem:[%s6865_s6 + $0x10] sm:$0xff] (%p1776_p10) }
 0x451   : >> { %1989 = vrot.lane.b32.xlu0 %v1985_v44, %s4756_s11  ;;  %v2176_v63 = vpack.c.bf16 (%p1776_p10), %v2146_v25, %v2145_v51 }
 0x452   : >> { %1991 = vrot.lane.b32.xlu1 %v1986_v37, %s4756_s11 }
 0x453   : > { %4253 = vmatpush3.bf16.msra.mxu1 (%p1776_p10), %v2176_v63 }
 0x454   : > { %4254 = vmatprep.subr.bf16.mxu1 (%p1776_p10), %v4752_v34 }
 0x457   : > { %4255 = vmatpush3.bf16.msra.mxu1 (%p1776_p10), %v2175_v32 }
 0x458   : > { %4348 = vmatprep.subr.bf16.mxu1 (%p1776_p10), %v4752_v34 }
 0x45a   : >> { %v4703_v28 = vpop.eup %4702 }
 0x45b   : >> { %v4705_v24 = vpop.eup %4704 }
 0x45c   : >> { %v4707_v47 = vpop.eup %4706 }
 0x45d   : >> { %v4709_v29 = vpop.eup %4708 }
 0x4b7   : >> { %v1862_v13 = vpop.permute.xlu0 %1861 }
 0x4b8   : >> { %v2000_v12 = vpop.permute.xlu1 %1999  ;;  %v1867_v58 = vmul.f32 %v4703_v28, %v1862_v13  ;;  %v2157_v13 = vld [vmem:[%s6865_s6 + $0x70] sm:$0xff] (%p1776_p10) }
 0x4b9   : >> { %v2005_v8 = vmul.f32 %v4705_v24, %v2000_v12  ;;  %v2158_v12 = vld [vmem:[%s6865_s6 + $0x78] sm:$0xff] (%p1776_p10) }
 0x4ba   : >> { %1871 = vrot.lane.b32.xlu0 %v1867_v58, %s4756_s11  ;;  %v2153_v58 = vld [vmem:[%s6865_s6 + $0x50] sm:$0xff] (%p1776_p10) }
 0x4bb   : >> { %v1864_v40 = vpop.permute.xlu0 %1863 }
 0x4bc   : >> { %v1868_v31 = vmul.f32 %v4707_v47, %v1864_v40  ;;  %v2002_v22 = vpop.permute.xlu1 %2001 }
 0x4bd   : >> { %v2006_v9 = vmul.f32 %v4709_v29, %v2002_v22 }
 0x4be   : >> { %1873 = vrot.lane.b32.xlu1 %v1868_v31, %s4756_s11  ;;  %2009 = vrot.lane.b32.xlu0 %v2005_v8, %s4756_s11  ;;  %v2182_v8 = vpack.c.bf16 (%p1776_p10), %v2158_v12, %v2157_v13 }
 0x4bf   : >> { %v1852_v55 = vpop.permute.xlu0 %1851 }
 0x4c0   : >> { %v1854_v52 = vpop.permute.xlu1 %1853  ;;  %v1857_v53 = vmul.f32 %v4703_v28, %v1852_v55 }
 0x4c1   : >> { %v1858_v39 = vmul.f32 %v4707_v47, %v1854_v52  ;;  %v2155_v52 = vld [vmem:[%s6865_s6 + $0x60] sm:$0xff] (%p1776_p10) }
 0x4c2   : >> { %2011 = vrot.lane.b32.xlu1 %v2006_v9, %s4756_s11 }
 0x4c3   : >> { %v1990_v21 = vpop.permute.xlu0 %1989 }
 0x4c4   : >> { %v1992_v18 = vpop.permute.xlu1 %1991  ;;  %v1995_v60 = vmul.f32 %v4705_v24, %v1990_v21  ;;  %v2156_v21 = vld [vmem:[%s6865_s6 + $0x68] sm:$0xff] (%p1776_p10) }
 0x4c5   : >> { %v1996_v41 = vmul.f32 %v4709_v29, %v1992_v18  ;;  %v2181_v18 = vpack.c.bf16 (%p1776_p10), %v2156_v21, %v2155_v52 }
 0x52c   : >> { %v1872_v26 = vpop.permute.xlu0 %1871 }
 0x52d   : >> { %v1877_v3 = vadd.f32 %v1872_v26, %v1857_v53  ;;  %v2151_v53 = vld [vmem:[%s6865_s6 + $0x40] sm:$0xff] (%p1776_p10)  ;;  %v2152_v26 = vld [vmem:[%s6865_s6 + $0x48] sm:$0xff] (%p1776_p10) }
 0x52f   : >> { %4710 = vtanh.f32 %v1877_v3 }
 0x530   : >> { %v1874_v36 = vpop.permute.xlu1 %1873  ;;  %v2010_v0 = vpop.permute.xlu0 %2009 }
 0x531   : >> { %v1878_v45 = vadd.f32 %v1874_v36, %v1858_v39  ;;  %v2015_v57 = vadd.f32 %v2010_v0, %v1995_v60  ;;  %v2179_v39 = vpack.c.bf16 (%p1776_p10), %v2152_v26, %v2151_v53  ;;  %v2055_v53 = vld [vmem:[%s4910_s23 + $0x18] sm:$0xff] (%p1776_p10) }
 0x533   : >> { %4712 = vtanh.f32 %v1878_v45 }
 0x534   : >> { %4714 = vtanh.f32 %v2015_v57  ;;  %v2012_v59 = vpop.permute.xlu1 %2011 }
 0x535   : >> { %v2016_v15 = vadd.f32 %v2012_v59, %v1996_v41 }
 0x537   : >> { %4716 = vtanh.f32 %v2016_v15 }
 0x53c   : >> { %v4711_v62 = vpop.eup %4710 }
 0x53d   : >> { %1883 = vrot.lane.b32.xlu0 %v4711_v62, %s4755_s10 }
 0x540   : >> { %v4713_v5 = vpop.eup %4712 }
 0x541   : >> { %v4715_v23 = vpop.eup %4714  ;;  %1885 = vrot.lane.b32.xlu1 %v4713_v5, %s4755_s10 }
 0x542   : >> { %2021 = vrot.lane.b32.xlu0 %v4715_v23, %s4755_s10 }
 0x544   : >> { %v4717_v46 = vpop.eup %4716 }
 0x545   : >> { %2023 = vrot.lane.b32.xlu1 %v4717_v46, %s4755_s10 }
 0x546   : >> { %1893 = vrot.lane.b32.xlu0 %v1877_v3, %s4757_s14 }
 0x549   : >> { %1895 = vrot.lane.b32.xlu1 %v1878_v45, %s4757_s14 }
 0x54a   : >> { %2031 = vrot.lane.b32.xlu0 %v2015_v57, %s4757_s14 }
 0x54d   : >> { %2033 = vrot.lane.b32.xlu1 %v2016_v15, %s4757_s14 }
 0x5af   : >> { %v1884_v16 = vpop.permute.xlu0 %1883 }
 0x5b0   : >> { %v1889_v17 = vmul.f32 %v4703_v28, %v1884_v16  ;;  %v2178_v28 = vpack.c.bf16 (%p1776_p10), %v2150_v6, %v2149_v19 }
 0x5b2   : >> { %1903 = vrot.lane.b32.xlu0 %v1889_v17, %s4756_s11  ;;  %4205 = vmatpush3.bf16.msra.mxu0 (%p1776_p10), %v2178_v28 }
 0x5b3   : >> { %v1886_v43 = vpop.permute.xlu1 %1885  ;;  %4206 = vmatprep.subr.bf16.mxu0 (%p1776_p10), %v4752_v34 }
 0x5b4   : >> { %v1890_v48 = vmul.f32 %v4707_v47, %v1886_v43  ;;  %v2022_v50 = vpop.permute.xlu0 %2021 }
 0x5b5   : >> { %v2027_v44 = vmul.f32 %v4705_v24, %v2022_v50  ;;  %v2154_v24 = vld [vmem:[%s6865_s6 + $0x58] sm:$0xff] (%p1776_p10) }
 0x5b6   : >> { %1905 = vrot.lane.b32.xlu1 %v1890_v48, %s4756_s11  ;;  %4207 = vmatpush3.bf16.msra.mxu0 (%p1776_p10), %v2177_v61  ;;  %v2180_v31 = vpack.c.bf16 (%p1776_p10), %v2154_v24, %v2153_v58  ;;  %v2053_v58 = vld [vmem:[%s4910_s23 + $0x8] sm:$0xff] (%p1776_p10) }
 0x5b7   : >> { %2041 = vrot.lane.b32.xlu0 %v2027_v44, %s4756_s11  ;;  %v2024_v37 = vpop.permute.xlu1 %2023  ;;  %4300 = vmatprep.subr.bf16.mxu0 (%p1776_p10), %v4752_v34 }
 0x5b8   : >> { %v2028_v11 = vmul.f32 %v4709_v29, %v2024_v37  ;;  %v1894_v54 = vpop.permute.xlu0 %1893 }
 0x5b9   : >> { %1899 = vst.msk [vmem:[#allocation4] sm:$0xff] %vm1752_vm1, %v1894_v54 }
 0x5ba   : >> { %2043 = vrot.lane.b32.xlu1 %v2028_v11, %s4756_s11 }
 0x5bb   : >> { %v1896_v14 = vpop.permute.xlu1 %1895 }
 0x5bc   : >> { %1900 = vst.msk [vmem:[#allocation4 + $0x8] sm:$0xff] %vm1752_vm1, %v1896_v14  ;;  %v2032_v56 = vpop.permute.xlu0 %2031 }
 0x5bd   : >> { %2037 = vst.msk [vmem:[#allocation4 + $0x10] sm:$0xff] %vm1752_vm1, %v2032_v56 }
 0x5bf   : >> { %v2034_v10 = vpop.permute.xlu1 %2033 }
 0x5c0   : >> { %2038 = vst.msk [vmem:[#allocation4 + $0x18] sm:$0xff] %vm1752_vm1, %v2034_v10 }
 0x624   : >> { %v1904_v2 = vpop.permute.xlu0 %1903 }
 0x625   : >> { %1909 = vst.msk [vmem:[#allocation3] sm:$0xff] %vm1752_vm1, %v1904_v2  ;;  %1912 = vst.msk [vmem:[%s1911_s15] sm:$0xff] %vm1752_vm1, %v1904_v2 }
 0x628   : >> { %v1906_v38 = vpop.permute.xlu1 %1905 }
 0x629   : >> { %1910 = vst.msk [vmem:[#allocation3 + $0x8] sm:$0xff] %vm1752_vm1, %v1906_v38  ;;  %1913 = vst.msk [vmem:[%s1911_s15 + $0x8] sm:$0xff] %vm1752_vm1, %v1906_v38  ;;  %v2042_v49 = vpop.permute.xlu0 %2041 }
 0x62a   : >> { %2047 = vst.msk [vmem:[#allocation3 + $0x10] sm:$0xff] %vm1752_vm1, %v2042_v49  ;;  %3849 = vst.msk [vmem:[%s3740_s16 + $0xb0] sm:$0xff] %vm1752_vm1, %v2042_v49 }
 0x62c   : >> { %v2044_v30 = vpop.permute.xlu1 %2043 }
 0x62d   : >> { %2048 = vst.msk [vmem:[#allocation3 + $0x18] sm:$0xff] %vm1752_vm1, %v2044_v30  ;;  %3850 = vst.msk [vmem:[%s3740_s16 + $0xb8] sm:$0xff] %vm1752_vm1, %v2044_v30 }
 0x62f   : > { %1778 = sbr.rel (!%p1776_p10) target bundleno = 875 (0x36b), region = 182 }
 0x634   : > { %v2225_v7 = vld [vmem:[#allocation5 + $0xb0] sm:$0xff]  ;;  %v2226_v42 = vld [vmem:[#allocation5 + $0xb8] sm:$0xff]  ;;  %v2191_v20 = vld [vmem:[#allocation5] sm:$0xff] }
 0x635   : > { %v2192_v1 = vld [vmem:[#allocation5 + $0x8] sm:$0xff]  ;;  %v5938_v47 = vpack.c.bf16 %v2226_v42, %v2225_v7  ;;  %v2227_v22 = vld [vmem:[#allocation5 + $0xc0] sm:$0xff]  ;;  %v2193_v9 = vld [vmem:[#allocation5 + $0x10] sm:$0xff] }
 0x636   : > { %v5940_v40 = vpack.c.bf16 %v2192_v1, %v2191_v20  ;;  %v2228_v29 = vld [vmem:[#allocation5 + $0xc8] sm:$0xff]  ;;  %v2194_v55 = vld [vmem:[#allocation5 + $0x18] sm:$0xff]  ;;  %v2229_v36 = vld [vmem:[#allocation5 + $0xd0] sm:$0xff] }
 0x637   : > { %4209 = vmatmul.mubr.msk.bf16.vlgmr.msra.gmra.mxu0 %vm1752_vm1, %v5938_v47  ;;  %v5965_v3 = vpack.c.bf16 %v2228_v29, %v2227_v22  ;;  %v5968_v60 = vpack.c.bf16 %v2194_v55, %v2193_v9  ;;  %v2230_v0 = vld [vmem:[#allocation5 + $0xd8] sm:$0xff]  ;;  %v2195_v45 = vld [vmem:[#allocation5 + $0x20] sm:$0xff]  ;;  %v2196_v57 = vld [vmem:[#allocation5 + $0x28] sm:$0xff] }
 0x638   : > { %4257 = vmatmul.mubr.msk.bf16.vlgmr.msra.gmra.mxu1 %vm1752_vm1, %v5940_v40  ;;  %4301 = vmatpush3.bf16.msra.mxu0 %v2182_v8  ;;  %v5980_v41 = vpack.c.bf16 %v2230_v0, %v2229_v36  ;;  %v5982_v59 = vpack.c.bf16 %v2196_v57, %v2195_v45  ;;  %v2231_v15 = vld [vmem:[#allocation5 + $0xe0] sm:$0xff]  ;;  %v2232_v62 = vld [vmem:[#allocation5 + $0xe8] sm:$0xff]  ;;  %v2197_v5 = vld [vmem:[#allocation5 + $0x30] sm:$0xff] }
 0x639   : > { %4349 = vmatpush3.bf16.msra.mxu1 %v2180_v31  ;;  %4212 = vmatprep.mubr.msk.bf16.mxu0 %vm4758_vm3, %v4752_v34  ;;  %v2198_v23 = vld [vmem:[#allocation5 + $0x38] sm:$0xff]  ;;  %v5992_v46 = vpack.c.bf16 %v2232_v62, %v2231_v15  ;;  %v2233_v17 = vld [vmem:[#allocation5 + $0xf0] sm:$0xff]  ;;  %v2199_v48 = vld [vmem:[#allocation5 + $0x40] sm:$0xff] }
 0x63a   : > { %4260 = vmatprep.mubr.msk.bf16.mxu1 %vm4758_vm3, %v4752_v34  ;;  %4302 = vmatprep.subr.bf16.mxu0 %v4752_v34  ;;  %v5994_v16 = vpack.c.bf16 %v2198_v23, %v2197_v5  ;;  %v2234_v43 = vld [vmem:[#allocation5 + $0xf8] sm:$0xff]  ;;  %v2200_v50 = vld [vmem:[#allocation5 + $0x48] sm:$0xff]  ;;  %v2235_v11 = vld [vmem:[#allocation5 + $0x100] sm:$0xff] }
 0x63b   : > { %4350 = vmatprep.subr.bf16.mxu1 %v4752_v34  ;;  %v6004_v44 = vpack.c.bf16 %v2234_v43, %v2233_v17  ;;  %v6006_v37 = vpack.c.bf16 %v2200_v50, %v2199_v48  ;;  %v2236_v54 = vld [vmem:[#allocation5 + $0x108] sm:$0xff]  ;;  %v2201_v14 = vld [vmem:[#allocation5 + $0x50] sm:$0xff]  ;;  %v2202_v56 = vld [vmem:[#allocation5 + $0x58] sm:$0xff] }
 0x63c   : > { %4303 = vmatpush3.bf16.msra.mxu0 %v2181_v18  ;;  %v6016_v10 = vpack.c.bf16 %v2236_v54, %v2235_v11  ;;  %v6018_v2 = vpack.c.bf16 %v2202_v56, %v2201_v14  ;;  %v2237_v38 = vld [vmem:[#allocation5 + $0x110] sm:$0xff]  ;;  %v2238_v49 = vld [vmem:[#allocation5 + $0x118] sm:$0xff]  ;;  %v2203_v30 = vld [vmem:[#allocation5 + $0x60] sm:$0xff] }
 0x63d   : > { %4351 = vmatpush3.bf16.msra.mxu1 %v2179_v39  ;;  %4396 = vmatprep.subr.bf16.mxu0 %v4752_v34  ;;  %v2204_v19 = vld [vmem:[#allocation5 + $0x68] sm:$0xff]  ;;  %v6028_v6 = vpack.c.bf16 %v2238_v49, %v2237_v38  ;;  %v2239_v28 = vld [vmem:[#allocation5 + $0x120] sm:$0xff]  ;;  %v2205_v35 = vld [vmem:[#allocation5 + $0x70] sm:$0xff] }
 0x63e   : > { %4444 = vmatprep.subr.bf16.mxu1 %v4752_v34  ;;  %v6030_v51 = vpack.c.bf16 %v2204_v19, %v2203_v30  ;;  %v2240_v25 = vld [vmem:[#allocation5 + $0x128] sm:$0xff]  ;;  %v2206_v27 = vld [vmem:[#allocation5 + $0x78] sm:$0xff]  ;;  %v2241_v4 = vld [vmem:[#allocation5 + $0x130] sm:$0xff] }
 0x63f   : > { %4213 = vmatmul.mubr.msk.bf16.gmra.mxu0 %vm1752_vm1, %v5965_v3  ;;  %v6040_v63 = vpack.c.bf16 %v2240_v25, %v2239_v28  ;;  %v6042_v33 = vpack.c.bf16 %v2206_v27, %v2205_v35  ;;  %v2242_v61 = vld [vmem:[#allocation5 + $0x138] sm:$0xff]  ;;  %v2052_v7 = vld [vmem:[%s4910_s23] sm:$0xff]  ;;  %v2208_v32 = vld [vmem:[#allocation5 + $0x88] sm:$0xff] }
 0x640   : > { %4261 = vmatmul.mubr.msk.bf16.gmra.mxu1 %vm1752_vm1, %v5968_v60  ;;  %4216 = vmatprep.mubr.msk.bf16.mxu0 %vm4758_vm3, %v4752_v34  ;;  %v6054_v42 = vld [vmem:[%s6866_s7] ss:$0 sm:$0xff]  ;;  %v6059_v13 = vpack.c.bf16 %v2242_v61, %v2241_v4  ;;  %v2244_v31 = vld [vmem:[#allocation5 + $0x148] sm:$0xff]  ;;  %v2054_v22 = vld [vmem:[%s4910_s23 + $0x10] sm:$0xff] }
 0x641   : > { %4264 = vmatprep.mubr.msk.bf16.mxu1 %vm4758_vm3, %v4752_v34  ;;  %v2207_v20 = vld [vmem:[#allocation5 + $0x80] sm:$0xff]  ;;  %v2087_v1 = vadd.f32 %v6054_v42, %v2052_v7  ;;  %v2088_v24 = vadd.f32 %v6054_v42, %v2053_v58  ;;  %v2209_v29 = vld [vmem:[#allocation5 + $0x90] sm:$0xff]  ;;  %v2210_v9 = vld [vmem:[#allocation5 + $0x98] sm:$0xff]  ;;  %v2089_v55 = vadd.f32 %v6054_v42, %v2054_v22  ;;  %v2090_v18 = vadd.f32 %v6054_v42, %v2055_v53 }
 0x642   : > { %v6063_v12 = vpack.c.bf16 %v2208_v32, %v2207_v20  ;;  %v2243_v8 = vld [vmem:[#allocation5 + $0x140] sm:$0xff]  ;;  %v6083_v21 = vpack.c.bf16 %v2210_v9, %v2209_v29  ;;  %v2245_v26 = vld [vmem:[#allocation5 + $0x150] sm:$0xff]  ;;  %v2246_v39 = vld [vmem:[#allocation5 + $0x158] sm:$0xff] }
 0x643   : > { %2115 = vst.msk [vmem:[%s5828_s20] sm:$0xff] %vm475_vm0, %v2087_v1  ;;  %2116 = vst.msk [vmem:[%s5828_s20 + $0x8] sm:$0xff] %vm475_vm0, %v2088_v24  ;;  %v6079_v52 = vpack.c.bf16 %v2244_v31, %v2243_v8  ;;  %v2056_v36 = vld [vmem:[%s4910_s23 + $0x20] sm:$0xff]  ;;  %v2212_v45 = vld [vmem:[#allocation5 + $0xa8] sm:$0xff]  ;;  %v6099_v15 = vpack.c.bf16 %v2246_v39, %v2245_v26 }
 0x644   : > { %2117 = vst.msk [vmem:[%s5828_s20 + $0x10] sm:$0xff] %vm475_vm0, %v2089_v55  ;;  %2118 = vst.msk [vmem:[%s5828_s20 + $0x18] sm:$0xff] %vm475_vm0, %v2090_v18  ;;  %v2211_v0 = vld [vmem:[#allocation5 + $0xa0] sm:$0xff]  ;;  %v2091_v57 = vadd.f32 %v6054_v42, %v2056_v36  ;;  %v2057_v5 = vld [vmem:[%s4910_s23 + $0x28] sm:$0xff] }
 0x645   : > { %v6103_v62 = vpack.c.bf16 %v2212_v45, %v2211_v0  ;;  %v2092_v23 = vadd.f32 %v6054_v42, %v2057_v5  ;;  %v2058_v17 = vld [vmem:[%s4910_s23 + $0x30] sm:$0xff]  ;;  %v2166_v48 = vld [vmem:[%s6865_s6 + $0xb8] sm:$0xff]  ;;  %v2163_v49 = vld [vmem:[%s6865_s6 + $0xa0] sm:$0xff] }
 0x646   : > { %2119 = vst.msk [vmem:[%s5828_s20 + $0x20] sm:$0xff] %vm475_vm0, %v2091_v57  ;;  %v2165_v43 = vld [vmem:[%s6865_s6 + $0xb0] sm:$0xff]  ;;  %v2093_v50 = vadd.f32 %v6054_v42, %v2058_v17  ;;  %v2162_v54 = vld [vmem:[%s6865_s6 + $0x98] sm:$0xff]  ;;  %v2164_v30 = vld [vmem:[%s6865_s6 + $0xa8] sm:$0xff] }
 0x647   : > { %4217 = vmatmul.mubr.msk.bf16.gmra.mxu0 %vm1752_vm1, %v5980_v41  ;;  %2120 = vst.msk [vmem:[%s5828_s20 + $0x28] sm:$0xff] %vm475_vm0, %v2092_v23  ;;  %v2161_v11 = vld [vmem:[%s6865_s6 + $0x90] sm:$0xff]  ;;  %v2186_v14 = vpack.c.bf16 %v2166_v48, %v2165_v43  ;;  %v2059_v56 = vld [vmem:[%s4910_s23 + $0x38] sm:$0xff]  ;;  %v2159_v28 = vld [vmem:[%s6865_s6 + $0x80] sm:$0xff]  ;;  %v2185_v35 = vpack.c.bf16 %v2164_v30, %v2163_v49 }
 0x648   : > { %4265 = vmatmul.mubr.msk.bf16.gmra.mxu1 %vm1752_vm1, %v5982_v59  ;;  %4220 = vmatprep.mubr.msk.bf16.mxu0 %vm4758_vm3, %v4752_v34  ;;  %2121 = vst.msk [vmem:[%s5828_s20 + $0x30] sm:$0xff] %vm475_vm0, %v2093_v50  ;;  %v2184_v38 = vpack.c.bf16 %v2162_v54, %v2161_v11  ;;  %v2094_v19 = vadd.f32 %v6054_v42, %v2059_v56  ;;  %v2160_v25 = vld [vmem:[%s6865_s6 + $0x88] sm:$0xff]  ;;  %v2060_v27 = vld [vmem:[%s4910_s23 + $0x40] sm:$0xff]  ;;  %v2062_v32 = vld [vmem:[%s4910_s23 + $0x50] sm:$0xff] }
 0x649   : > { %4268 = vmatprep.mubr.msk.bf16.mxu1 %vm4758_vm3, %v4752_v34  ;;  %v2183_v4 = vpack.c.bf16 %v2160_v25, %v2159_v28  ;;  %v2095_v61 = vadd.f32 %v6054_v42, %v2060_v27  ;;  %v2061_v7 = vld [vmem:[%s4910_s23 + $0x48] sm:$0xff]  ;;  %v2097_v1 = vadd.f32 %v6054_v42, %v2062_v32  ;;  %v2063_v58 = vld [vmem:[%s4910_s23 + $0x58] sm:$0xff]  ;;  %v2064_v8 = vld [vmem:[%s4910_s23 + $0x60] sm:$0xff] }
 0x64a   : > { %2122 = vst.msk [vmem:[%s5828_s20 + $0x38] sm:$0xff] %vm475_vm0, %v2094_v19  ;;  %v2096_v20 = vadd.f32 %v6054_v42, %v2061_v7  ;;  %v2098_v24 = vadd.f32 %v6054_v42, %v2063_v58  ;;  %v2099_v31 = vadd.f32 %v6054_v42, %v2064_v8  ;;  %v2065_v22 = vld [vmem:[%s4910_s23 + $0x68] sm:$0xff]  ;;  %v2066_v9 = vld [vmem:[%s4910_s23 + $0x70] sm:$0xff]  ;;  %v2067_v53 = vld [vmem:[%s4910_s23 + $0x78] sm:$0xff] }
 0x64b   : > { %2123 = vst.msk [vmem:[%s5828_s20 + $0x40] sm:$0xff] %vm475_vm0, %v2095_v61  ;;  %2125 = vst.msk [vmem:[%s5828_s20 + $0x50] sm:$0xff] %vm475_vm0, %v2097_v1  ;;  %v2100_v29 = vadd.f32 %v6054_v42, %v2065_v22  ;;  %v2101_v55 = vadd.f32 %v6054_v42, %v2066_v9  ;;  %v2102_v18 = vadd.f32 %v6054_v42, %v2067_v53  ;;  %v2068_v26 = vld [vmem:[%s4910_s23 + $0x80] sm:$0xff]  ;;  %v2069_v36 = vld [vmem:[%s4910_s23 + $0x88] sm:$0xff] }
 0x64c   : > { %2124 = vst.msk [vmem:[%s5828_s20 + $0x48] sm:$0xff] %vm475_vm0, %v2096_v20  ;;  %2126 = vst.msk [vmem:[%s5828_s20 + $0x58] sm:$0xff] %vm475_vm0, %v2098_v24  ;;  %v2103_v39 = vadd.f32 %v6054_v42, %v2068_v26  ;;  %v2104_v0 = vadd.f32 %v6054_v42, %v2069_v36  ;;  %v2070_v45 = vld [vmem:[%s4910_s23 + $0x90] sm:$0xff]  ;;  %v2071_v5 = vld [vmem:[%s4910_s23 + $0x98] sm:$0xff] }
 0x64d   : > { %2127 = vst.msk [vmem:[%s5828_s20 + $0x60] sm:$0xff] %vm475_vm0, %v2099_v31  ;;  %2128 = vst.msk [vmem:[%s5828_s20 + $0x68] sm:$0xff] %vm475_vm0, %v2100_v29  ;;  %v2105_v57 = vadd.f32 %v6054_v42, %v2070_v45  ;;  %v2106_v23 = vadd.f32 %v6054_v42, %v2071_v5  ;;  %v2072_v17 = vld [vmem:[%s4910_s23 + $0xa0] sm:$0xff]  ;;  %v2073_v48 = vld [vmem:[%s4910_s23 + $0xa8] sm:$0xff] }
 0x64e   : > { %2129 = vst.msk [vmem:[%s5828_s20 + $0x70] sm:$0xff] %vm475_vm0, %v2101_v55  ;;  %2130 = vst.msk [vmem:[%s5828_s20 + $0x78] sm:$0xff] %vm475_vm0, %v2102_v18  ;;  %v2107_v43 = vadd.f32 %v6054_v42, %v2072_v17  ;;  %v2108_v50 = vadd.f32 %v6054_v42, %v2073_v48  ;;  %v2173_v11 = vld [vmem:[%s6865_s6 + $0xf0] sm:$0xff]  ;;  %v2174_v54 = vld [vmem:[%s6865_s6 + $0xf8] sm:$0xff] }
 0x64f   : > { %4221 = vmatmul.mubr.msk.bf16.gmra.mxu0 %vm1752_vm1, %v5992_v46  ;;  %2131 = vst.msk [vmem:[%s5828_s20 + $0x80] sm:$0xff] %vm475_vm0, %v2103_v39  ;;  %2132 = vst.msk [vmem:[%s5828_s20 + $0x88] sm:$0xff] %vm475_vm0, %v2104_v0  ;;  %v2170_v56 = vld [vmem:[%s6865_s6 + $0xd8] sm:$0xff]  ;;  %v2171_v30 = vld [vmem:[%s6865_s6 + $0xe0] sm:$0xff] }
 0x650   : > { %4269 = vmatmul.mubr.msk.bf16.gmra.mxu1 %vm1752_vm1, %v5994_v16  ;;  %4224 = vmatprep.mubr.msk.bf16.mxu0 %vm4758_vm3, %v4752_v34  ;;  %2133 = vst.msk [vmem:[%s5828_s20 + $0x90] sm:$0xff] %vm475_vm0, %v2105_v57  ;;  %2134 = vst.msk [vmem:[%s5828_s20 + $0x98] sm:$0xff] %vm475_vm0, %v2106_v23  ;;  %v2172_v19 = vld [vmem:[%s6865_s6 + $0xe8] sm:$0xff]  ;;  %v2167_v28 = vld [vmem:[%s6865_s6 + $0xc0] sm:$0xff] }
 0x651   : > { %4272 = vmatprep.mubr.msk.bf16.mxu1 %vm4758_vm3, %v4752_v34  ;;  %2135 = vst.msk [vmem:[%s5828_s20 + $0xa0] sm:$0xff] %vm475_vm0, %v2107_v43  ;;  %2136 = vst.msk [vmem:[%s5828_s20 + $0xa8] sm:$0xff] %vm475_vm0, %v2108_v50  ;;  %v2168_v25 = vld [vmem:[%s6865_s6 + $0xc8] sm:$0xff]  ;;  %v2566_v7 = vld [vmem:[%s5828_s20] sm:$0xff] }
 0x652   : > { %v2187_v27 = vpack.c.bf16 %v2168_v25, %v2167_v28  ;;  %v2567_v31 = vld [vmem:[%s5828_s20 + $0x8] sm:$0xff]  ;;  %v2568_v26 = vld [vmem:[%s5828_s20 + $0x10] sm:$0xff]  ;;  %v2569_v23 = vld [vmem:[%s5828_s20 + $0x18] sm:$0xff] }
 0x653   : > { %v2571_v25 = vld [vmem:[%s5828_s20 + $0x28] sm:$0xff] }
 0x657   : > { %4225 = vmatmul.mubr.msk.bf16.gmra.mxu0 %vm1752_vm1, %v6004_v44 }
 0x658   : > { %4273 = vmatmul.mubr.msk.bf16.gmra.mxu1 %vm1752_vm1, %v6006_v37  ;;  %4228 = vmatprep.mubr.msk.bf16.mxu0 %vm4758_vm3, %v4752_v34 }
 0x659   : > { %4276 = vmatprep.mubr.msk.bf16.mxu1 %vm4758_vm3, %v4752_v34 }
 0x65f   : > { %4229 = vmatmul.mubr.msk.bf16.gmra.mxu0 %vm1752_vm1, %v6016_v10 }
 0x660   : > { %4277 = vmatmul.mubr.msk.bf16.gmra.mxu1 %vm1752_vm1, %v6018_v2  ;;  %4232 = vmatprep.mubr.msk.bf16.mxu0 %vm4758_vm3, %v4752_v34 }
 0x661   : > { %4280 = vmatprep.mubr.msk.bf16.mxu1 %vm4758_vm3, %v4752_v34 }
 0x667   : > { %4233 = vmatmul.mubr.msk.bf16.gmra.mxu0 %vm1752_vm1, %v6028_v6 }
 0x668   : > { %4281 = vmatmul.mubr.msk.bf16.gmra.mxu1 %vm1752_vm1, %v6030_v51  ;;  %4236 = vmatprep.mubr.msk.bf16.mxu0 %vm4758_vm3, %v4752_v34 }
 0x669   : > { %4284 = vmatprep.mubr.msk.bf16.mxu1 %vm4758_vm3, %v4752_v34 }
 0x66f   : > { %4237 = vmatmul.mubr.msk.bf16.gmra.mxu0 %vm1752_vm1, %v6040_v63 }
 0x670   : > { %4285 = vmatmul.mubr.msk.bf16.gmra.mxu1 %vm1752_vm1, %v6042_v33  ;;  %4240 = vmatprep.mubr.msk.bf16.mxu0 %vm4758_vm3, %v4752_v34 }
 0x671   : > { %4288 = vmatprep.mubr.msk.bf16.mxu1 %vm4758_vm3, %v4752_v34 }
 0x677   : > { %4241 = vmatmul.mubr.msk.bf16.gmra.mxu0 %vm1752_vm1, %v6059_v13 }
 0x678   : > { %4289 = vmatmul.mubr.msk.bf16.gmra.mxu1 %vm1752_vm1, %v6063_v12  ;;  %4244 = vmatprep.mubr.msk.bf16.mxu0 %vm4758_vm3, %v4752_v34 }
 0x679   : > { %4292 = vmatprep.mubr.msk.bf16.mxu1 %vm4758_vm3, %v4752_v34 }
 0x67f   : > { %4245 = vmatmul.mubr.msk.bf16.gmra.mxu0 %vm1752_vm1, %v6079_v52 }
 0x680   : > { %4293 = vmatmul.mubr.msk.bf16.gmra.mxu1 %vm1752_vm1, %v6083_v21  ;;  %4248 = vmatprep.mubr.msk.bf16.mxu0 %vm4758_vm3, %v4752_v34 }
 0x681   : > { %4296 = vmatprep.mubr.msk.bf16.mxu1 %vm4758_vm3, %v4752_v34 }
 0x687   : > { %4249 = vmatmul.mubr.msk.bf16.gmra.mxu0 %vm1752_vm1, %v6099_v15 }
 0x688   : > { %4297 = vmatmul.mubr.msk.bf16.gmra.mxu1 %vm1752_vm1, %v6103_v62  ;;  %4304 = vmatprep.mubr.msk.bf16.mxu0 %vm4758_vm3, %v4752_v34 }
 0x689   : > { %4352 = vmatprep.mubr.msk.bf16.mxu1 %vm4758_vm3, %v4752_v34 }
 0x68f   : > { %4305 = vmatmul.mubr.msk.bf16.vlgmr.msra.gmra.mxu0 %vm1752_vm1, %v5938_v47 }
 0x690   : > { %4353 = vmatmul.mubr.msk.bf16.vlgmr.msra.gmra.mxu1 %vm1752_vm1, %v5940_v40  ;;  %4397 = vmatpush3.bf16.msra.mxu0 %v2186_v14  ;;  %v2169_v14 = vld [vmem:[%s6865_s6 + $0xd0] sm:$0xff] }
 0x691   : > { %4445 = vmatpush3.bf16.msra.mxu1 %v2184_v38  ;;  %4308 = vmatprep.mubr.msk.bf16.mxu0 %vm4758_vm3, %v4752_v34  ;;  %v2190_v38 = vpack.c.bf16 %v2174_v54, %v2173_v11  ;;  %v2188_v49 = vpack.c.bf16 %v2170_v56, %v2169_v14  ;;  %v2570_v14 = vld [vmem:[%s5828_s20 + $0x20] sm:$0xff] }
 0x692   : > { %4356 = vmatprep.mubr.msk.bf16.mxu1 %vm4758_vm3, %v4752_v34  ;;  %4398 = vmatprep.subr.bf16.mxu0 %v4752_v34 }
 0x693   : > { %4446 = vmatprep.subr.bf16.mxu1 %v4752_v34 }
 0x694   : > { %4399 = vmatpush3.bf16.msra.mxu0 %v2185_v35  ;;  %v2189_v35 = vpack.c.bf16 %v2172_v19, %v2171_v30 }
 0x695   : > { %4447 = vmatpush3.bf16.msra.mxu1 %v2183_v4  ;;  %4492 = vmatprep.subr.bf16.mxu0 %v4752_v34 }
 0x696   : > { %4540 = vmatprep.subr.bf16.mxu1 %v4752_v34 }
 0x697   : > { %4309 = vmatmul.mubr.msk.bf16.gmra.mxu0 %vm1752_vm1, %v5965_v3 }
 0x698   : > { %4357 = vmatmul.mubr.msk.bf16.gmra.mxu1 %vm1752_vm1, %v5968_v60  ;;  %4312 = vmatprep.mubr.msk.bf16.mxu0 %vm4758_vm3, %v4752_v34 }
 0x699   : > { %4360 = vmatprep.mubr.msk.bf16.mxu1 %vm4758_vm3, %v4752_v34 }
 0x69f   : > { %4313 = vmatmul.mubr.msk.bf16.gmra.mxu0 %vm1752_vm1, %v5980_v41 }
 0x6a0   : > { %4361 = vmatmul.mubr.msk.bf16.gmra.mxu1 %vm1752_vm1, %v5982_v59  ;;  %4316 = vmatprep.mubr.msk.bf16.mxu0 %vm4758_vm3, %v4752_v34 }
 0x6a1   : > { %4364 = vmatprep.mubr.msk.bf16.mxu1 %vm4758_vm3, %v4752_v34 }
 0x6a7   : > { %4317 = vmatmul.mubr.msk.bf16.gmra.mxu0 %vm1752_vm1, %v5992_v46 }
 0x6a8   : > { %4365 = vmatmul.mubr.msk.bf16.gmra.mxu1 %vm1752_vm1, %v5994_v16  ;;  %4320 = vmatprep.mubr.msk.bf16.mxu0 %vm4758_vm3, %v4752_v34 }
 0x6a9   : > { %4368 = vmatprep.mubr.msk.bf16.mxu1 %vm4758_vm3, %v4752_v34 }
 0x6af   : > { %4321 = vmatmul.mubr.msk.bf16.gmra.mxu0 %vm1752_vm1, %v6004_v44 }
 0x6b0   : > { %4369 = vmatmul.mubr.msk.bf16.gmra.mxu1 %vm1752_vm1, %v6006_v37  ;;  %4324 = vmatprep.mubr.msk.bf16.mxu0 %vm4758_vm3, %v4752_v34 }
 0x6b1   : > { %4372 = vmatprep.mubr.msk.bf16.mxu1 %vm4758_vm3, %v4752_v34 }
 0x6b7   : > { %4325 = vmatmul.mubr.msk.bf16.gmra.mxu0 %vm1752_vm1, %v6016_v10 }
 0x6b8   : > { %4373 = vmatmul.mubr.msk.bf16.gmra.mxu1 %vm1752_vm1, %v6018_v2  ;;  %4328 = vmatprep.mubr.msk.bf16.mxu0 %vm4758_vm3, %v4752_v34 }
 0x6b9   : > { %4376 = vmatprep.mubr.msk.bf16.mxu1 %vm4758_vm3, %v4752_v34 }
 0x6bf   : > { %4329 = vmatmul.mubr.msk.bf16.gmra.mxu0 %vm1752_vm1, %v6028_v6 }
 0x6c0   : > { %4377 = vmatmul.mubr.msk.bf16.gmra.mxu1 %vm1752_vm1, %v6030_v51  ;;  %4332 = vmatprep.mubr.msk.bf16.mxu0 %vm4758_vm3, %v4752_v34 }
 0x6c1   : > { %4380 = vmatprep.mubr.msk.bf16.mxu1 %vm4758_vm3, %v4752_v34 }
 0x6c7   : > { %4333 = vmatmul.mubr.msk.bf16.gmra.mxu0 %vm1752_vm1, %v6040_v63 }
 0x6c8   : > { %4381 = vmatmul.mubr.msk.bf16.gmra.mxu1 %vm1752_vm1, %v6042_v33  ;;  %4336 = vmatprep.mubr.msk.bf16.mxu0 %vm4758_vm3, %v4752_v34 }
 0x6c9   : > { %4384 = vmatprep.mubr.msk.bf16.mxu1 %vm4758_vm3, %v4752_v34 }
 0x6cf   : > { %4337 = vmatmul.mubr.msk.bf16.gmra.mxu0 %vm1752_vm1, %v6059_v13 }
 0x6d0   : > { %4385 = vmatmul.mubr.msk.bf16.gmra.mxu1 %vm1752_vm1, %v6063_v12  ;;  %4340 = vmatprep.mubr.msk.bf16.mxu0 %vm4758_vm3, %v4752_v34 }
 0x6d1   : > { %4388 = vmatprep.mubr.msk.bf16.mxu1 %vm4758_vm3, %v4752_v34 }
 0x6d7   : > { %4341 = vmatmul.mubr.msk.bf16.gmra.mxu0 %vm1752_vm1, %v6079_v52 }
 0x6d8   : > { %4389 = vmatmul.mubr.msk.bf16.gmra.mxu1 %vm1752_vm1, %v6083_v21  ;;  %4344 = vmatprep.mubr.msk.bf16.mxu0 %vm4758_vm3, %v4752_v34 }
 0x6d9   : > { %4392 = vmatprep.mubr.msk.bf16.mxu1 %vm4758_vm3, %v4752_v34 }
 0x6df   : > { %4345 = vmatmul.mubr.msk.bf16.gmra.mxu0 %vm1752_vm1, %v6099_v15 }
 0x6e0   : > { %4393 = vmatmul.mubr.msk.bf16.gmra.mxu1 %vm1752_vm1, %v6103_v62  ;;  %4400 = vmatprep.mubr.msk.bf16.mxu0 %vm4758_vm3, %v4752_v34 }
 0x6e1   : > { %4448 = vmatprep.mubr.msk.bf16.mxu1 %vm4758_vm3, %v4752_v34 }
 0x6e7   : > { %4401 = vmatmul.mubr.msk.bf16.vlgmr.msra.gmra.mxu0 %vm1752_vm1, %v5938_v47 }
 0x6e8   : > { %4449 = vmatmul.mubr.msk.bf16.vlgmr.msra.gmra.mxu1 %vm1752_vm1, %v5940_v40  ;;  %4493 = vmatpush3.bf16.msra.mxu0 %v2190_v38 }
 0x6e9   : > { %4541 = vmatpush3.bf16.msra.mxu1 %v2188_v49  ;;  %4404 = vmatprep.mubr.msk.bf16.mxu0 %vm4758_vm3, %v4752_v34 }
 0x6ea   : > { %4452 = vmatprep.mubr.msk.bf16.mxu1 %vm4758_vm3, %v4752_v34  ;;  %4494 = vmatprep.subr.bf16.mxu0 %v4752_v34 }
 0x6eb   : > { %4542 = vmatprep.subr.bf16.mxu1 %v4752_v34 }
 0x6ec   : > { %4495 = vmatpush3.bf16.msra.mxu0 %v2189_v35 }
 0x6ed   : > { %4543 = vmatpush3.bf16.msra.mxu1 %v2187_v27 }
 0x6ef   : > { %4405 = vmatmul.mubr.msk.bf16.gmra.mxu0 %vm1752_vm1, %v5965_v3 }
 0x6f0   : > { %4453 = vmatmul.mubr.msk.bf16.gmra.mxu1 %vm1752_vm1, %v5968_v60  ;;  %4408 = vmatprep.mubr.msk.bf16.mxu0 %vm4758_vm3, %v4752_v34 }
 0x6f1   : > { %4456 = vmatprep.mubr.msk.bf16.mxu1 %vm4758_vm3, %v4752_v34 }
 0x6f7   : > { %v2325_v4 = vpop.f32.mrf.mxu0  ;;  %4409 = vmatmul.mubr.msk.bf16.gmra.mxu0 %vm1752_vm1, %v5980_v41 }
 0x6f8   : > { %v2479_v61 = vpop.f32.mrf.mxu1  ;;  %4457 = vmatmul.mubr.msk.bf16.gmra.mxu1 %vm1752_vm1, %v5982_v59  ;;  %4412 = vmatprep.mubr.msk.bf16.mxu0 %vm4758_vm3, %v4752_v34 }
 0x6f9   : > { %v2480_v20 = vadd.f32 %v2479_v61, %v2325_v4  ;;  %v4210_v32 = vpop.f32.mrf.mxu0  ;;  %4460 = vmatprep.mubr.msk.bf16.mxu1 %vm4758_vm3, %v4752_v34 }
 0x6fa   : > { %v4258_v1 = vpop.f32.mrf.mxu1  ;;  %v2572_v32 = vld [vmem:[%s5828_s20 + $0x30] sm:$0xff] }
 0x6fb   : > { %v2588_v58 = vadd.f32 %v2566_v7, %v2480_v20  ;;  %v2328_v24 = vpop.f32.mrf.mxu0 }
 0x6fc   : > { %v2482_v8 = vpop.f32.mrf.mxu1 }
 0x6fd   : > { %2610 = vst.msk [vmem:[%s5828_s20] sm:$0xff] %vm475_vm0, %v2588_v58  ;;  %v2483_v22 = vadd.f32 %v2482_v8, %v2328_v24  ;;  %v4211_v29 = vpop.f32.mrf.mxu0 }
 0x6fe   : > { %v4259_v9 = vpop.f32.mrf.mxu1  ;;  %v2573_v29 = vld [vmem:[%s5828_s20 + $0x38] sm:$0xff] }
 0x6ff   : > { %v2589_v55 = vadd.f32 %v2567_v31, %v2483_v22  ;;  %v2333_v53 = vpop.f32.mrf.mxu0  ;;  %4413 = vmatmul.mubr.msk.bf16.gmra.mxu0 %vm1752_vm1, %v5992_v46 }
 0x700   : > { %v2487_v18 = vpop.f32.mrf.mxu1  ;;  %4461 = vmatmul.mubr.msk.bf16.gmra.mxu1 %vm1752_vm1, %v5994_v16  ;;  %4416 = vmatprep.mubr.msk.bf16.mxu0 %vm4758_vm3, %v4752_v34 }
 0x701   : > { %2611 = vst.msk [vmem:[%s5828_s20 + $0x8] sm:$0xff] %vm475_vm0, %v2589_v55  ;;  %v2488_v39 = vadd.f32 %v2487_v18, %v2333_v53  ;;  %v4214_v36 = vpop.f32.mrf.mxu0  ;;  %4464 = vmatprep.mubr.msk.bf16.mxu1 %vm4758_vm3, %v4752_v34 }
 0x702   : > { %v4262_v0 = vpop.f32.mrf.mxu1  ;;  %v2574_v36 = vld [vmem:[%s5828_s20 + $0x40] sm:$0xff] }
 0x703   : > { %v2590_v45 = vadd.f32 %v2568_v26, %v2488_v39  ;;  %v2336_v57 = vpop.f32.mrf.mxu0  ;;  %v2074_v0 = vld [vmem:[%s4910_s23 + $0xb0] sm:$0xff] }
 0x704   : > { %v2490_v5 = vpop.f32.mrf.mxu1 }
 0x705   : > { %2612 = vst.msk [vmem:[%s5828_s20 + $0x10] sm:$0xff] %vm475_vm0, %v2590_v45  ;;  %v2491_v17 = vadd.f32 %v2490_v5, %v2336_v57  ;;  %v4215_v43 = vpop.f32.mrf.mxu0  ;;  %v2109_v5 = vadd.f32 %v6054_v42, %v2074_v0 }
 0x706   : > { %v4263_v48 = vpop.f32.mrf.mxu1 }
 0x707   : > { %v2591_v50 = vadd.f32 %v2569_v23, %v2491_v17  ;;  %v2341_v11 = vpop.f32.mrf.mxu0  ;;  %4417 = vmatmul.mubr.msk.bf16.gmra.mxu0 %vm1752_vm1, %v6004_v44  ;;  %2137 = vst.msk [vmem:[%s5828_s20 + $0xb0] sm:$0xff] %vm475_vm0, %v2109_v5 }
 0x708   : > { %v2495_v54 = vpop.f32.mrf.mxu1  ;;  %4465 = vmatmul.mubr.msk.bf16.gmra.mxu1 %vm1752_vm1, %v6006_v37  ;;  %4420 = vmatprep.mubr.msk.bf16.mxu0 %vm4758_vm3, %v4752_v34 }
 0x709   : > { %2613 = vst.msk [vmem:[%s5828_s20 + $0x18] sm:$0xff] %vm475_vm0, %v2591_v50  ;;  %v2496_v56 = vadd.f32 %v2495_v54, %v2341_v11  ;;  %v4218_v38 = vpop.f32.mrf.mxu0  ;;  %4468 = vmatprep.mubr.msk.bf16.mxu1 %vm4758_vm3, %v4752_v34  ;;  %v2575_v50 = vld [vmem:[%s5828_s20 + $0x48] sm:$0xff]  ;;  %v2075_v11 = vld [vmem:[%s4910_s23 + $0xb8] sm:$0xff] }
 0x70a   : > { %v4266_v49 = vpop.f32.mrf.mxu1 }
 0x70b   : > { %v2592_v30 = vadd.f32 %v2570_v14, %v2496_v56  ;;  %v2344_v19 = vpop.f32.mrf.mxu0  ;;  %v2110_v56 = vadd.f32 %v6054_v42, %v2075_v11 }
 0x70c   : > { %v2498_v28 = vpop.f32.mrf.mxu1 }
 0x70d   : > { %2614 = vst.msk [vmem:[%s5828_s20 + $0x20] sm:$0xff] %vm475_vm0, %v2592_v30  ;;  %v2499_v35 = vadd.f32 %v2498_v28, %v2344_v19  ;;  %v4219_v27 = vpop.f32.mrf.mxu0  ;;  %2138 = vst.msk [vmem:[%s5828_s20 + $0xb8] sm:$0xff] %vm475_vm0, %v2110_v56  ;;  %v2576_v28 = vld [vmem:[%s5828_s20 + $0x50] sm:$0xff]  ;;  %v2581_v56 = vld [vmem:[%s5828_s20 + $0x78] sm:$0xff] }
 0x70e   : > { %v4267_v4 = vpop.f32.mrf.mxu1 }
 0x70f   : > { %v2593_v61 = vadd.f32 %v2571_v25, %v2499_v35  ;;  %v2349_v7 = vpop.f32.mrf.mxu0  ;;  %4421 = vmatmul.mubr.msk.bf16.gmra.mxu0 %vm1752_vm1, %v6016_v10 }
 0x710   : > { %v2503_v20 = vpop.f32.mrf.mxu1  ;;  %4469 = vmatmul.mubr.msk.bf16.gmra.mxu1 %vm1752_vm1, %v6018_v2  ;;  %4424 = vmatprep.mubr.msk.bf16.mxu0 %vm4758_vm3, %v4752_v34 }
 0x711   : > { %2615 = vst.msk [vmem:[%s5828_s20 + $0x28] sm:$0xff] %vm475_vm0, %v2593_v61  ;;  %v2504_v1 = vadd.f32 %v2503_v20, %v2349_v7  ;;  %v4222_v58 = vpop.f32.mrf.mxu0  ;;  %4472 = vmatprep.mubr.msk.bf16.mxu1 %vm4758_vm3, %v4752_v34  ;;  %v2577_v20 = vld [vmem:[%s5828_s20 + $0x58] sm:$0xff] }
 0x712   : > { %v4270_v24 = vpop.f32.mrf.mxu1 }
 0x713   : > { %v2594_v8 = vadd.f32 %v2572_v32, %v2504_v1  ;;  %v2352_v31 = vpop.f32.mrf.mxu0 }
 0x714   : > { %v2506_v22 = vpop.f32.mrf.mxu1 }
 0x715   : > { %2616 = vst.msk [vmem:[%s5828_s20 + $0x30] sm:$0xff] %vm475_vm0, %v2594_v8  ;;  %v2507_v9 = vadd.f32 %v2506_v22, %v2352_v31  ;;  %v4223_v55 = vpop.f32.mrf.mxu0  ;;  %v2578_v22 = vld [vmem:[%s5828_s20 + $0x60] sm:$0xff] }
 0x716   : > { %v4271_v53 = vpop.f32.mrf.mxu1 }
 0x717   : > { %v2595_v18 = vadd.f32 %v2573_v29, %v2507_v9  ;;  %v2357_v26 = vpop.f32.mrf.mxu0  ;;  %4425 = vmatmul.mubr.msk.bf16.gmra.mxu0 %vm1752_vm1, %v6028_v6 }
 0x718   : > { %v2511_v39 = vpop.f32.mrf.mxu1  ;;  %4473 = vmatmul.mubr.msk.bf16.gmra.mxu1 %vm1752_vm1, %v6030_v51  ;;  %4428 = vmatprep.mubr.msk.bf16.mxu0 %vm4758_vm3, %v4752_v34 }
 0x719   : > { %2617 = vst.msk [vmem:[%s5828_s20 + $0x38] sm:$0xff] %vm475_vm0, %v2595_v18  ;;  %v2512_v45 = vadd.f32 %v2511_v39, %v2357_v26  ;;  %v4226_v57 = vpop.f32.mrf.mxu0  ;;  %4476 = vmatprep.mubr.msk.bf16.mxu1 %vm4758_vm3, %v4752_v34  ;;  %v2579_v39 = vld [vmem:[%s5828_s20 + $0x68] sm:$0xff] }
 0x71a   : > { %v4274_v23 = vpop.f32.mrf.mxu1 }
 0x71b   : > { %v2596_v17 = vadd.f32 %v2574_v36, %v2512_v45  ;;  %v2360_v43 = vpop.f32.mrf.mxu0 }
 0x71c   : > { %v2514_v48 = vpop.f32.mrf.mxu1 }
 0x71d   : > { %2618 = vst.msk [vmem:[%s5828_s20 + $0x40] sm:$0xff] %vm475_vm0, %v2596_v17  ;;  %v2515_v54 = vadd.f32 %v2514_v48, %v2360_v43  ;;  %v4227_v14 = vpop.f32.mrf.mxu0  ;;  %v2580_v17 = vld [vmem:[%s5828_s20 + $0x70] sm:$0xff] }
 0x71e   : > { %v4275_v38 = vpop.f32.mrf.mxu1 }
 0x71f   : > { %v2597_v49 = vadd.f32 %v2575_v50, %v2515_v54  ;;  %v2365_v30 = vpop.f32.mrf.mxu0  ;;  %4429 = vmatmul.mubr.msk.bf16.gmra.mxu0 %vm1752_vm1, %v6040_v63 }
 0x720   : > { %v2519_v19 = vpop.f32.mrf.mxu1  ;;  %4477 = vmatmul.mubr.msk.bf16.gmra.mxu1 %vm1752_vm1, %v6042_v33  ;;  %4432 = vmatprep.mubr.msk.bf16.mxu0 %vm4758_vm3, %v4752_v34 }
 0x721   : > { %2619 = vst.msk [vmem:[%s5828_s20 + $0x48] sm:$0xff] %vm475_vm0, %v2597_v49  ;;  %v2520_v25 = vadd.f32 %v2519_v19, %v2365_v30  ;;  %v4230_v35 = vpop.f32.mrf.mxu0  ;;  %4480 = vmatprep.mubr.msk.bf16.mxu1 %vm4758_vm3, %v4752_v34 }
 0x722   : > { %v4278_v27 = vpop.f32.mrf.mxu1  ;;  %v2582_v35 = vld [vmem:[%s5828_s20 + $0x80] sm:$0xff] }
 0x723   : > { %v2598_v4 = vadd.f32 %v2576_v28, %v2520_v25  ;;  %v2368_v61 = vpop.f32.mrf.mxu0 }
 0x724   : > { %v2522_v7 = vpop.f32.mrf.mxu1 }
 0x725   : > { %2620 = vst.msk [vmem:[%s5828_s20 + $0x50] sm:$0xff] %vm475_vm0, %v2598_v4  ;;  %v2523_v32 = vadd.f32 %v2522_v7, %v2368_v61  ;;  %v4231_v1 = vpop.f32.mrf.mxu0 }
 0x726   : > { %v4279_v58 = vpop.f32.mrf.mxu1  ;;  %v2583_v1 = vld [vmem:[%s5828_s20 + $0x88] sm:$0xff] }
 0x727   : > { %v2599_v24 = vadd.f32 %v2577_v20, %v2523_v32  ;;  %v2373_v8 = vpop.f32.mrf.mxu0  ;;  %4433 = vmatmul.mubr.msk.bf16.gmra.mxu0 %vm1752_vm1, %v6059_v13 }
 0x728   : > { %v2527_v31 = vpop.f32.mrf.mxu1  ;;  %4481 = vmatmul.mubr.msk.bf16.gmra.mxu1 %vm1752_vm1, %v6063_v12  ;;  %4436 = vmatprep.mubr.msk.bf16.mxu0 %vm4758_vm3, %v4752_v34 }
 0x729   : > { %2621 = vst.msk [vmem:[%s5828_s20 + $0x58] sm:$0xff] %vm475_vm0, %v2599_v24  ;;  %v2528_v29 = vadd.f32 %v2527_v31, %v2373_v8  ;;  %v4234_v9 = vpop.f32.mrf.mxu0  ;;  %4484 = vmatprep.mubr.msk.bf16.mxu1 %vm4758_vm3, %v4752_v34 }
 0x72a   : > { %v4282_v55 = vpop.f32.mrf.mxu1  ;;  %v2584_v9 = vld [vmem:[%s5828_s20 + $0x90] sm:$0xff] }
 0x72b   : > { %v2600_v53 = vadd.f32 %v2578_v22, %v2528_v29  ;;  %v2376_v18 = vpop.f32.mrf.mxu0 }
 0x72c   : > { %v2530_v26 = vpop.f32.mrf.mxu1 }
 0x72d   : > { %2622 = vst.msk [vmem:[%s5828_s20 + $0x60] sm:$0xff] %vm475_vm0, %v2600_v53  ;;  %v2531_v36 = vadd.f32 %v2530_v26, %v2376_v18  ;;  %v4235_v0 = vpop.f32.mrf.mxu0 }
 0x72e   : > { %v4283_v45 = vpop.f32.mrf.mxu1 }
 0x72f   : > { %v2601_v57 = vadd.f32 %v2579_v39, %v2531_v36  ;;  %v2381_v5 = vpop.f32.mrf.mxu0  ;;  %4437 = vmatmul.mubr.msk.bf16.gmra.mxu0 %vm1752_vm1, %v6079_v52  ;;  %v2585_v36 = vld [vmem:[%s5828_s20 + $0x98] sm:$0xff] }
 0x730   : > { %v2535_v23 = vpop.f32.mrf.mxu1  ;;  %4485 = vmatmul.mubr.msk.bf16.gmra.mxu1 %vm1752_vm1, %v6083_v21  ;;  %4440 = vmatprep.mubr.msk.bf16.mxu0 %vm4758_vm3, %v4752_v34 }
 0x731   : > { %2623 = vst.msk [vmem:[%s5828_s20 + $0x68] sm:$0xff] %vm475_vm0, %v2601_v57  ;;  %v2536_v43 = vadd.f32 %v2535_v23, %v2381_v5  ;;  %v4238_v48 = vpop.f32.mrf.mxu0  ;;  %4488 = vmatprep.mubr.msk.bf16.mxu1 %vm4758_vm3, %v4752_v34 }
 0x732   : > { %v4286_v50 = vpop.f32.mrf.mxu1 }
 0x733   : > { %v2602_v11 = vadd.f32 %v2580_v17, %v2536_v43  ;;  %v2384_v54 = vpop.f32.mrf.mxu0  ;;  %v2586_v17 = vld [vmem:[%s5828_s20 + $0xa0] sm:$0xff] }
 0x734   : > { %v2538_v14 = vpop.f32.mrf.mxu1 }
 0x735   : > { %2624 = vst.msk [vmem:[%s5828_s20 + $0x70] sm:$0xff] %vm475_vm0, %v2602_v11  ;;  %v2539_v38 = vadd.f32 %v2538_v14, %v2384_v54  ;;  %v4239_v49 = vpop.f32.mrf.mxu0  ;;  %v2587_v14 = vld [vmem:[%s5828_s20 + $0xa8] sm:$0xff] }
 0x736   : > { %v4287_v30 = vpop.f32.mrf.mxu1 }
 0x737   : > { %v2603_v19 = vadd.f32 %v2581_v56, %v2539_v38  ;;  %v2389_v28 = vpop.f32.mrf.mxu0  ;;  %4441 = vmatmul.mubr.msk.bf16.gmra.mxu0 %vm1752_vm1, %v6099_v15 }
 0x738   : > { %v2543_v25 = vpop.f32.mrf.mxu1  ;;  %4489 = vmatmul.mubr.msk.bf16.gmra.mxu1 %vm1752_vm1, %v6103_v62  ;;  %4496 = vmatprep.mubr.msk.bf16.mxu0 %vm4758_vm3, %v4752_v34 }
 0x739   : > { %2625 = vst.msk [vmem:[%s5828_s20 + $0x78] sm:$0xff] %vm475_vm0, %v2603_v19  ;;  %v2544_v27 = vadd.f32 %v2543_v25, %v2389_v28  ;;  %v4242_v4 = vpop.f32.mrf.mxu0  ;;  %4544 = vmatprep.mubr.msk.bf16.mxu1 %vm4758_vm3, %v4752_v34 }
 0x73a   : > { %v4290_v61 = vpop.f32.mrf.mxu1 }
 0x73b   : > { %v2604_v7 = vadd.f32 %v2582_v35, %v2544_v27  ;;  %v2392_v20 = vpop.f32.mrf.mxu0  ;;  %v3896_v35 = vld [vmem:[%s5828_s20 + $0x10] sm:$0xff] }
 0x73c   : > { %v2546_v32 = vpop.f32.mrf.mxu1 }
 0x73d   : > { %2626 = vst.msk [vmem:[%s5828_s20 + $0x80] sm:$0xff] %vm475_vm0, %v2604_v7  ;;  %v2547_v58 = vadd.f32 %v2546_v32, %v2392_v20  ;;  %v4243_v24 = vpop.f32.mrf.mxu0  ;;  %v3897_v20 = vld [vmem:[%s5828_s20 + $0x18] sm:$0xff] }
 0x73e   : > { %v4291_v8 = vpop.f32.mrf.mxu1 }
 0x73f   : > { %v2605_v31 = vadd.f32 %v2583_v1, %v2547_v58  ;;  %v2397_v22 = vpop.f32.mrf.mxu0  ;;  %4497 = vmatmul.mubr.msk.bf16.vlgmr.msra.gmra.mxu0 %vm1752_vm1, %v5938_v47 }
 0x740   : > { %v2551_v29 = vpop.f32.mrf.mxu1  ;;  %4545 = vmatmul.mubr.msk.bf16.vlgmr.msra.gmra.mxu1 %vm1752_vm1, %v5940_v40  ;;  %4500 = vmatprep.mubr.msk.bf16.mxu0 %vm4758_vm3, %v4752_v34 }
 0x741   : > { %2627 = vst.msk [vmem:[%s5828_s20 + $0x88] sm:$0xff] %vm475_vm0, %v2605_v31  ;;  %v2552_v55 = vadd.f32 %v2551_v29, %v2397_v22  ;;  %v4246_v53 = vpop.f32.mrf.mxu0  ;;  %4548 = vmatprep.mubr.msk.bf16.mxu1 %vm4758_vm3, %v4752_v34  ;;  %v3898_v22 = vld [vmem:[%s5828_s20 + $0x20] sm:$0xff] }
 0x742   : > { %v4294_v18 = vpop.f32.mrf.mxu1 }
 0x743   : > { %v2606_v26 = vadd.f32 %v2584_v9, %v2552_v55  ;;  %v2400_v47 = vpop.f32.mrf.mxu0  ;;  %v3899_v18 = vld [vmem:[%s5828_s20 + $0x28] sm:$0xff] }
 0x744   : > { %v2554_v39 = vpop.f32.mrf.mxu1 }
 0x745   : > { %2628 = vst.msk [vmem:[%s5828_s20 + $0x90] sm:$0xff] %vm475_vm0, %v2606_v26  ;;  %v2555_v40 = vadd.f32 %v2554_v39, %v2400_v47  ;;  %v4247_v0 = vpop.f32.mrf.mxu0 }
 0x746   : > { %v4295_v45 = vpop.f32.mrf.mxu1 }
 0x747   : > { %v2607_v57 = vadd.f32 %v2585_v36, %v2555_v40  ;;  %v2405_v5 = vpop.f32.mrf.mxu0  ;;  %4501 = vmatmul.mubr.msk.bf16.gmra.mxu0 %vm1752_vm1, %v5965_v3  ;;  %v3900_v45 = vld [vmem:[%s5828_s20 + $0x30] sm:$0xff] }
 0x748   : > { %v2559_v23 = vpop.f32.mrf.mxu1  ;;  %4549 = vmatmul.mubr.msk.bf16.gmra.mxu1 %vm1752_vm1, %v5968_v60  ;;  %4504 = vmatprep.mubr.msk.bf16.mxu0 %vm4758_vm3, %v4752_v34 }
 0x749   : > { %2629 = vst.msk [vmem:[%s5828_s20 + $0x98] sm:$0xff] %vm475_vm0, %v2607_v57  ;;  %v2560_v43 = vadd.f32 %v2559_v23, %v2405_v5  ;;  %v4250_v48 = vpop.f32.mrf.mxu0  ;;  %4552 = vmatprep.mubr.msk.bf16.mxu1 %vm4758_vm3, %v4752_v34 }
 0x74a   : > { %v4298_v50 = vpop.f32.mrf.mxu1 }
 0x74b   : > { %v2608_v11 = vadd.f32 %v2586_v17, %v2560_v43  ;;  %v2408_v54 = vpop.f32.mrf.mxu0  ;;  %v3901_v43 = vld [vmem:[%s5828_s20 + $0x38] sm:$0xff] }
 0x74c   : > { %v2562_v3 = vpop.f32.mrf.mxu1 }
 0x74d   : > { %2630 = vst.msk [vmem:[%s5828_s20 + $0xa0] sm:$0xff] %vm475_vm0, %v2608_v11  ;;  %v2563_v60 = vadd.f32 %v2562_v3, %v2408_v54  ;;  %v4251_v56 = vpop.f32.mrf.mxu0 }
 0x74e   : > { %v4299_v38 = vpop.f32.mrf.mxu1 }
 0x74f   : > { %v2609_v49 = vadd.f32 %v2587_v14, %v2563_v60  ;;  %v2666_v30 = vpop.f32.mrf.mxu0  ;;  %4505 = vmatmul.mubr.msk.bf16.gmra.mxu0 %vm1752_vm1, %v5980_v41  ;;  %v3902_v60 = vld [vmem:[%s5828_s20 + $0x40] sm:$0xff] }
 0x750   : > { %v2787_v19 = vpop.f32.mrf.mxu1  ;;  %4553 = vmatmul.mubr.msk.bf16.gmra.mxu1 %vm1752_vm1, %v5982_v59  ;;  %4508 = vmatprep.mubr.msk.bf16.mxu0 %vm4758_vm3, %v4752_v34 }
 0x751   : > { %2631 = vst.msk [vmem:[%s5828_s20 + $0xa8] sm:$0xff] %vm475_vm0, %v2609_v49  ;;  %v2788_v28 = vadd.f32 %v2787_v19, %v2666_v30  ;;  %v4306_v25 = vpop.f32.mrf.mxu0  ;;  %4556 = vmatprep.mubr.msk.bf16.mxu1 %vm4758_vm3, %v4752_v34  ;;  %v3903_v19 = vld [vmem:[%s5828_s20 + $0x48] sm:$0xff] }
 0x752   : > { %v4354_v27 = vpop.f32.mrf.mxu1 }
 0x753   : > { %v2897_v4 = vadd.f32 %v3896_v35, %v2788_v28  ;;  %v2669_v41 = vpop.f32.mrf.mxu0 }
 0x754   : > { %v2790_v61 = vpop.f32.mrf.mxu1 }
 0x755   : > { %3918 = vst.msk [vmem:[%s5828_s20 + $0x10] sm:$0xff] %vm475_vm0, %v2897_v4  ;;  %v2791_v59 = vadd.f32 %v2790_v61, %v2669_v41  ;;  %v4307_v7 = vpop.f32.mrf.mxu0  ;;  %v2076_v4 = vld [vmem:[%s4910_s23 + $0xc0] sm:$0xff] }
 0x756   : > { %v4355_v32 = vpop.f32.mrf.mxu1 }
 0x757   : > { %v2898_v1 = vadd.f32 %v3897_v20, %v2791_v59  ;;  %v2674_v58 = vpop.f32.mrf.mxu0  ;;  %4509 = vmatmul.mubr.msk.bf16.gmra.mxu0 %vm1752_vm1, %v5992_v46  ;;  %v3904_v59 = vld [vmem:[%s5828_s20 + $0x50] sm:$0xff] }
 0x758   : > { %v2795_v24 = vpop.f32.mrf.mxu1  ;;  %4557 = vmatmul.mubr.msk.bf16.gmra.mxu1 %vm1752_vm1, %v5994_v16  ;;  %4512 = vmatprep.mubr.msk.bf16.mxu0 %vm4758_vm3, %v4752_v34 }
 0x759   : > { %3919 = vst.msk [vmem:[%s5828_s20 + $0x18] sm:$0xff] %vm475_vm0, %v2898_v1  ;;  %v2796_v8 = vadd.f32 %v2795_v24, %v2674_v58  ;;  %v4310_v31 = vpop.f32.mrf.mxu0  ;;  %4560 = vmatprep.mubr.msk.bf16.mxu1 %vm4758_vm3, %v4752_v34  ;;  %v2077_v1 = vld [vmem:[%s4910_s23 + $0xc8] sm:$0xff] }
 0x75a   : > { %v4358_v29 = vpop.f32.mrf.mxu1  ;;  %v3905_v31 = vld [vmem:[%s5828_s20 + $0x58] sm:$0xff] }
 0x75b   : > { %v2899_v9 = vadd.f32 %v3898_v22, %v2796_v8  ;;  %v2677_v46 = vpop.f32.mrf.mxu0  ;;  %v2112_v8 = vadd.f32 %v6054_v42, %v2077_v1 }
 0x75c   : > { %v2798_v55 = vpop.f32.mrf.mxu1 }
 0x75d   : > { %3920 = vst.msk [vmem:[%s5828_s20 + $0x20] sm:$0xff] %vm475_vm0, %v2899_v9  ;;  %v2799_v16 = vadd.f32 %v2798_v55, %v2677_v46  ;;  %v4311_v53 = vpop.f32.mrf.mxu0  ;;  %2140 = vst.msk [vmem:[%s5828_s20 + $0xc8] sm:$0xff] %vm475_vm0, %v2112_v8  ;;  %v3914_v8 = vld [vmem:[%s5828_s20 + $0xa0] sm:$0xff] }
 0x75e   : > { %v4359_v26 = vpop.f32.mrf.mxu1 }
 0x75f   : > { %v2900_v47 = vadd.f32 %v3899_v18, %v2799_v16  ;;  %v2682_v39 = vpop.f32.mrf.mxu0  ;;  %4513 = vmatmul.mubr.msk.bf16.gmra.mxu0 %vm1752_vm1, %v6004_v44  ;;  %v3906_v16 = vld [vmem:[%s5828_s20 + $0x60] sm:$0xff] }
 0x760   : > { %v2803_v36 = vpop.f32.mrf.mxu1  ;;  %4561 = vmatmul.mubr.msk.bf16.gmra.mxu1 %vm1752_vm1, %v6006_v37  ;;  %4516 = vmatprep.mubr.msk.bf16.mxu0 %vm4758_vm3, %v4752_v34 }
 0x761   : > { %3921 = vst.msk [vmem:[%s5828_s20 + $0x28] sm:$0xff] %vm475_vm0, %v2900_v47  ;;  %v2804_v40 = vadd.f32 %v2803_v36, %v2682_v39  ;;  %v4314_v0 = vpop.f32.mrf.mxu0  ;;  %4564 = vmatprep.mubr.msk.bf16.mxu1 %vm4758_vm3, %v4752_v34  ;;  %v3907_v39 = vld [vmem:[%s5828_s20 + $0x68] sm:$0xff] }
 0x762   : > { %v4362_v57 = vpop.f32.mrf.mxu1 }
 0x763   : > { %v2901_v5 = vadd.f32 %v3900_v45, %v2804_v40  ;;  %v2685_v44 = vpop.f32.mrf.mxu0 }
 0x764   : > { %v2806_v23 = vpop.f32.mrf.mxu1 }
 0x765   : > { %3922 = vst.msk [vmem:[%s5828_s20 + $0x30] sm:$0xff] %vm475_vm0, %v2901_v5  ;;  %v2807_v37 = vadd.f32 %v2806_v23, %v2685_v44  ;;  %v4315_v17 = vpop.f32.mrf.mxu0  ;;  %v3908_v44 = vld [vmem:[%s5828_s20 + $0x70] sm:$0xff] }
 0x766   : > { %v4363_v48 = vpop.f32.mrf.mxu1 }
 0x767   : > { %v2902_v50 = vadd.f32 %v3901_v43, %v2807_v37  ;;  %v2690_v11 = vpop.f32.mrf.mxu0  ;;  %4517 = vmatmul.mubr.msk.bf16.gmra.mxu0 %vm1752_vm1, %v6016_v10  ;;  %v3909_v48 = vld [vmem:[%s5828_s20 + $0x78] sm:$0xff] }
 0x768   : > { %v2811_v54 = vpop.f32.mrf.mxu1  ;;  %4565 = vmatmul.mubr.msk.bf16.gmra.mxu1 %vm1752_vm1, %v6018_v2  ;;  %4520 = vmatprep.mubr.msk.bf16.mxu0 %vm4758_vm3, %v4752_v34 }
 0x769   : > { %3923 = vst.msk [vmem:[%s5828_s20 + $0x38] sm:$0xff] %vm475_vm0, %v2902_v50  ;;  %v2812_v3 = vadd.f32 %v2811_v54, %v2690_v11  ;;  %v4318_v14 = vpop.f32.mrf.mxu0  ;;  %4568 = vmatprep.mubr.msk.bf16.mxu1 %vm4758_vm3, %v4752_v34 }
 0x76a   : > { %v4366_v56 = vpop.f32.mrf.mxu1 }
 0x76b   : > { %v2903_v10 = vadd.f32 %v3902_v60, %v2812_v3  ;;  %v2693_v38 = vpop.f32.mrf.mxu0  ;;  %v3910_v56 = vld [vmem:[%s5828_s20 + $0x80] sm:$0xff] }
 0x76c   : > { %v2814_v49 = vpop.f32.mrf.mxu1 }
 0x76d   : > { %3924 = vst.msk [vmem:[%s5828_s20 + $0x40] sm:$0xff] %vm475_vm0, %v2903_v10  ;;  %v2815_v2 = vadd.f32 %v2814_v49, %v2693_v38  ;;  %v4319_v30 = vpop.f32.mrf.mxu0 }
 0x76e   : > { %v4367_v28 = vpop.f32.mrf.mxu1  ;;  %v3911_v30 = vld [vmem:[%s5828_s20 + $0x88] sm:$0xff] }
 0x76f   : > { %v2904_v25 = vadd.f32 %v3903_v19, %v2815_v2  ;;  %v2698_v35 = vpop.f32.mrf.mxu0  ;;  %4521 = vmatmul.mubr.msk.bf16.gmra.mxu0 %vm1752_vm1, %v6028_v6  ;;  %v2111_v6 = vadd.f32 %v6054_v42, %v2076_v4  ;;  %v3912_v4 = vld [vmem:[%s5828_s20 + $0x90] sm:$0xff] }
 0x770   : > { %v2819_v27 = vpop.f32.mrf.mxu1  ;;  %4569 = vmatmul.mubr.msk.bf16.gmra.mxu1 %vm1752_vm1, %v6030_v51  ;;  %4524 = vmatprep.mubr.msk.bf16.mxu0 %vm4758_vm3, %v4752_v34 }
 0x771   : > { %3925 = vst.msk [vmem:[%s5828_s20 + $0x48] sm:$0xff] %vm475_vm0, %v2904_v25  ;;  %v2820_v41 = vadd.f32 %v2819_v27, %v2698_v35  ;;  %v4322_v61 = vpop.f32.mrf.mxu0  ;;  %4572 = vmatprep.mubr.msk.bf16.mxu1 %vm4758_vm3, %v4752_v34  ;;  %2139 = vst.msk [vmem:[%s5828_s20 + $0xc0] sm:$0xff] %vm475_vm0, %v2111_v6 }
 0x772   : > { %v4370_v7 = vpop.f32.mrf.mxu1 }
 0x773   : > { %v2905_v20 = vadd.f32 %v3904_v59, %v2820_v41  ;;  %v2701_v32 = vpop.f32.mrf.mxu0 }
 0x774   : > { %v2822_v51 = vpop.f32.mrf.mxu1 }
 0x775   : > { %3926 = vst.msk [vmem:[%s5828_s20 + $0x50] sm:$0xff] %vm475_vm0, %v2905_v20  ;;  %v2823_v58 = vadd.f32 %v2822_v51, %v2701_v32  ;;  %v4323_v24 = vpop.f32.mrf.mxu0  ;;  %v3913_v20 = vld [vmem:[%s5828_s20 + $0x98] sm:$0xff] }
 0x776   : > { %v4371_v22 = vpop.f32.mrf.mxu1 }
 0x777   : > { %v2906_v29 = vadd.f32 %v3905_v31, %v2823_v58  ;;  %v2706_v9 = vpop.f32.mrf.mxu0  ;;  %4525 = vmatmul.mubr.msk.bf16.gmra.mxu0 %vm1752_vm1, %v6040_v63 }
 0x778   : > { %v2827_v46 = vpop.f32.mrf.mxu1  ;;  %4573 = vmatmul.mubr.msk.bf16.gmra.mxu1 %vm1752_vm1, %v6042_v33  ;;  %4528 = vmatprep.mubr.msk.bf16.mxu0 %vm4758_vm3, %v4752_v34 }
 0x779   : > { %3927 = vst.msk [vmem:[%s5828_s20 + $0x58] sm:$0xff] %vm475_vm0, %v2906_v29  ;;  %v2828_v42 = vadd.f32 %v2827_v46, %v2706_v9  ;;  %v4326_v55 = vpop.f32.mrf.mxu0  ;;  %4576 = vmatprep.mubr.msk.bf16.mxu1 %vm4758_vm3, %v4752_v34 }
 0x77a   : > { %v4374_v63 = vpop.f32.mrf.mxu1  ;;  %v3915_v55 = vld [vmem:[%s5828_s20 + $0xa8] sm:$0xff] }
 0x77b   : > { %v2907_v53 = vadd.f32 %v3906_v16, %v2828_v42  ;;  %v2709_v18 = vpop.f32.mrf.mxu0 }
 0x77c   : > { %v2830_v26 = vpop.f32.mrf.mxu1 }
 0x77d   : > { %3928 = vst.msk [vmem:[%s5828_s20 + $0x60] sm:$0xff] %vm475_vm0, %v2907_v53  ;;  %v2831_v33 = vadd.f32 %v2830_v26, %v2709_v18  ;;  %v4327_v47 = vpop.f32.mrf.mxu0  ;;  %v3916_v26 = vld [vmem:[%s5828_s20 + $0xb0] sm:$0xff] }
 0x77e   : > { %v4375_v36 = vpop.f32.mrf.mxu1 }
 0x77f   : > { %v2908_v40 = vadd.f32 %v3907_v39, %v2831_v33  ;;  %v2714_v0 = vpop.f32.mrf.mxu0  ;;  %4529 = vmatmul.mubr.msk.bf16.gmra.mxu0 %vm1752_vm1, %v6059_v13 }
 0x780   : > { %v2835_v45 = vpop.f32.mrf.mxu1  ;;  %4577 = vmatmul.mubr.msk.bf16.gmra.mxu1 %vm1752_vm1, %v6063_v12  ;;  %4532 = vmatprep.mubr.msk.bf16.mxu0 %vm4758_vm3, %v4752_v34 }
 0x781   : > { %3929 = vst.msk [vmem:[%s5828_s20 + $0x68] sm:$0xff] %vm475_vm0, %v2908_v40  ;;  %v2836_v57 = vadd.f32 %v2835_v45, %v2714_v0  ;;  %v4330_v5 = vpop.f32.mrf.mxu0  ;;  %4580 = vmatprep.mubr.msk.bf16.mxu1 %vm4758_vm3, %v4752_v34  ;;  %v3917_v45 = vld [vmem:[%s5828_s20 + $0xb8] sm:$0xff] }
 0x782   : > { %v4378_v23 = vpop.f32.mrf.mxu1 }
 0x783   : > { %v2909_v37 = vadd.f32 %v3908_v44, %v2836_v57  ;;  %v2717_v13 = vpop.f32.mrf.mxu0 }
 0x784   : > { %v2838_v17 = vpop.f32.mrf.mxu1 }
 0x785   : > { %3930 = vst.msk [vmem:[%s5828_s20 + $0x70] sm:$0xff] %vm475_vm0, %v2909_v37  ;;  %v2839_v12 = vadd.f32 %v2838_v17, %v2717_v13  ;;  %v4331_v43 = vpop.f32.mrf.mxu0 }
 0x786   : > { %v4379_v50 = vpop.f32.mrf.mxu1  ;;  %v3962_v43 = vld [vmem:[%s5828_s20 + $0x20] sm:$0xff] }
 0x787   : > { %v2910_v11 = vadd.f32 %v3909_v48, %v2839_v12  ;;  %v2722_v54 = vpop.f32.mrf.mxu0  ;;  %4533 = vmatmul.mubr.msk.bf16.gmra.mxu0 %vm1752_vm1, %v6079_v52 }
 0x788   : > { %v2843_v3 = vpop.f32.mrf.mxu1  ;;  %4581 = vmatmul.mubr.msk.bf16.gmra.mxu1 %vm1752_vm1, %v6083_v21  ;;  %4536 = vmatprep.mubr.msk.bf16.mxu0 %vm4758_vm3, %v4752_v34 }
 0x789   : > { %3931 = vst.msk [vmem:[%s5828_s20 + $0x78] sm:$0xff] %vm475_vm0, %v2910_v11  ;;  %v2844_v14 = vadd.f32 %v2843_v3, %v2722_v54  ;;  %v4334_v60 = vpop.f32.mrf.mxu0  ;;  %4584 = vmatprep.mubr.msk.bf16.mxu1 %vm4758_vm3, %v4752_v34 }
 0x78a   : > { %v4382_v10 = vpop.f32.mrf.mxu1  ;;  %v3963_v60 = vld [vmem:[%s5828_s20 + $0x28] sm:$0xff] }
 0x78b   : > { %v2911_v38 = vadd.f32 %v3910_v56, %v2844_v14  ;;  %v2725_v52 = vpop.f32.mrf.mxu0 }
 0x78c   : > { %v2846_v49 = vpop.f32.mrf.mxu1 }
 0x78d   : > { %3932 = vst.msk [vmem:[%s5828_s20 + $0x80] sm:$0xff] %vm475_vm0, %v2911_v38  ;;  %v2847_v21 = vadd.f32 %v2846_v49, %v2725_v52  ;;  %v4335_v2 = vpop.f32.mrf.mxu0 }
 0x78e   : > { %v4383_v19 = vpop.f32.mrf.mxu1  ;;  %v3964_v2 = vld [vmem:[%s5828_s20 + $0x30] sm:$0xff] }
 0x78f   : > { %v2912_v28 = vadd.f32 %v3911_v30, %v2847_v21  ;;  %v2730_v25 = vpop.f32.mrf.mxu0  ;;  %4537 = vmatmul.mubr.msk.bf16.gmra.mxu0 %vm1752_vm1, %v6099_v15 }
 0x790   : > { %v2851_v34 = vpop.f32.mrf.mxu1  ;;  %4585 = vmatmul.mubr.msk.bf16.gmra.mxu1 %vm1752_vm1, %v6103_v62 }
 0x791   : > { %3933 = vst.msk [vmem:[%s5828_s20 + $0x88] sm:$0xff] %vm475_vm0, %v2912_v28  ;;  %v2852_v35 = vadd.f32 %v2851_v34, %v2730_v25  ;;  %v4338_v27 = vpop.f32.mrf.mxu0 }
 0x792   : > { %v4386_v41 = vpop.f32.mrf.mxu1  ;;  %v3965_v27 = vld [vmem:[%s5828_s20 + $0x38] sm:$0xff] }
 0x793   : > { %v2913_v61 = vadd.f32 %v3912_v4, %v2852_v35  ;;  %v2733_v6 = vpop.f32.mrf.mxu0 }
 0x794   : > { %v2854_v59 = vpop.f32.mrf.mxu1 }
 0x795   : > { %3934 = vst.msk [vmem:[%s5828_s20 + $0x90] sm:$0xff] %vm475_vm0, %v2913_v61  ;;  %v2855_v7 = vadd.f32 %v2854_v59, %v2733_v6  ;;  %v4339_v15 = vpop.f32.mrf.mxu0 }
 0x796   : > { %v4387_v32 = vpop.f32.mrf.mxu1  ;;  %v3966_v15 = vld [vmem:[%s5828_s20 + $0x40] sm:$0xff] }
 0x797   : > { %v2914_v62 = vadd.f32 %v3913_v20, %v2855_v7  ;;  %v2738_v51 = vpop.f32.mrf.mxu0 }
 0x798   : > { %v2859_v1 = vpop.f32.mrf.mxu1 }
 0x799   : > { %3935 = vst.msk [vmem:[%s5828_s20 + $0x98] sm:$0xff] %vm475_vm0, %v2914_v62  ;;  %v2860_v58 = vadd.f32 %v2859_v1, %v2738_v51  ;;  %v4342_v24 = vpop.f32.mrf.mxu0 }
 0x79a   : > { %v4390_v31 = vpop.f32.mrf.mxu1  ;;  %v3967_v24 = vld [vmem:[%s5828_s20 + $0x48] sm:$0xff] }
 0x79b   : > { %v2915_v22 = vadd.f32 %v3914_v8, %v2860_v58  ;;  %v2741_v29 = vpop.f32.mrf.mxu0 }
 0x79c   : > { %v2862_v9 = vpop.f32.mrf.mxu1 }
 0x79d   : > { %3936 = vst.msk [vmem:[%s5828_s20 + $0xa0] sm:$0xff] %vm475_vm0, %v2915_v22  ;;  %v2863_v46 = vadd.f32 %v2862_v9, %v2741_v29  ;;  %v4343_v42 = vpop.f32.mrf.mxu0 }
 0x79e   : > { %v4391_v16 = vpop.f32.mrf.mxu1  ;;  %v3968_v42 = vld [vmem:[%s5828_s20 + $0x50] sm:$0xff] }
 0x79f   : > { %v2916_v63 = vadd.f32 %v3915_v55, %v2863_v46  ;;  %v2746_v53 = vpop.f32.mrf.mxu0 }
 0x7a0   : > { %v2867_v18 = vpop.f32.mrf.mxu1 }
 0x7a1   : > { %3937 = vst.msk [vmem:[%s5828_s20 + $0xa8] sm:$0xff] %vm475_vm0, %v2916_v63  ;;  %v2868_v33 = vadd.f32 %v2867_v18, %v2746_v53  ;;  %v4346_v47 = vpop.f32.mrf.mxu0 }
 0x7a2   : > { %v4394_v39 = vpop.f32.mrf.mxu1 }
 0x7a3   : > { %v2917_v36 = vadd.f32 %v3916_v26, %v2868_v33  ;;  %v2749_v40 = vpop.f32.mrf.mxu0  ;;  %v3969_v33 = vld [vmem:[%s5828_s20 + $0x58] sm:$0xff] }
 0x7a4   : > { %v2870_v0 = vpop.f32.mrf.mxu1 }
 0x7a5   : > { %3938 = vst.msk [vmem:[%s5828_s20 + $0xb0] sm:$0xff] %vm475_vm0, %v2917_v36  ;;  %v2871_v57 = vadd.f32 %v2870_v0, %v2749_v40  ;;  %v4347_v5 = vpop.f32.mrf.mxu0  ;;  %v2078_v0 = vld [vmem:[%s4910_s23 + $0xd0] sm:$0xff] }
 0x7a6   : > { %v4395_v44 = vpop.f32.mrf.mxu1  ;;  %v4718_v5 = vld [vmem:[%s6866_s7] ss:$0 sm:$0xff] }
 0x7a7   : > { %v2918_v23 = vadd.f32 %v3917_v45, %v2871_v57  ;;  %v2975_v37 = vpop.f32.mrf.mxu0  ;;  %v2113_v44 = vadd.f32 %v4718_v5, %v2078_v0 }
 0x7a8   : > { %v3096_v13 = vpop.f32.mrf.mxu1 }
 0x7a9   : > { %3939 = vst.msk [vmem:[%s5828_s20 + $0xb8] sm:$0xff] %vm475_vm0, %v2918_v23  ;;  %v3097_v17 = vadd.f32 %v3096_v13, %v2975_v37  ;;  %v4402_v12 = vpop.f32.mrf.mxu0  ;;  %v3970_v23 = vld [vmem:[%s5828_s20 + $0x60] sm:$0xff]  ;;  %2141 = vst.msk [vmem:[%s5828_s20 + $0xd0] sm:$0xff] %vm475_vm0, %v2113_v44 }
 0x7aa   : > { %v4450_v48 = vpop.f32.mrf.mxu1 }
 0x7ab   : > { %v3206_v50 = vadd.f32 %v3962_v43, %v3097_v17  ;;  %v2978_v11 = vpop.f32.mrf.mxu0  ;;  %v2079_v43 = vld [vmem:[%s4910_s23 + $0xd8] sm:$0xff]  ;;  %s4077_s23 = sshll.u32 (%p4834_p5), %s3781_s30, 4 }
 0x7ac   : > { %v3099_v54 = vpop.f32.mrf.mxu1  ;;  %s6794_s13 = scalar_lea.vmem (%p4834_p5), %s6867_s8, %s4077_s23 }
 0x7ad   : > { %3984 = vst.msk [vmem:[%s5828_s20 + $0x20] sm:$0xff] %vm475_vm0, %v3206_v50  ;;  %v3100_v3 = vadd.f32 %v3099_v54, %v2978_v11  ;;  %v4403_v14 = vpop.f32.mrf.mxu0  ;;  %v2114_v11 = vadd.f32 %v4718_v5, %v2079_v43  ;;  %v3971_v54 = vld [vmem:[%s5828_s20 + $0x68] sm:$0xff] }
 0x7ae   : > { %v4451_v56 = vpop.f32.mrf.mxu1 }
 0x7af   : > { %v3207_v10 = vadd.f32 %v3963_v60, %v3100_v3  ;;  %v2983_v38 = vpop.f32.mrf.mxu0  ;;  %2142 = vst.msk [vmem:[%s5828_s20 + $0xd8] sm:$0xff] %vm475_vm0, %v2114_v11  ;;  %v3980_v11 = vld [vmem:[%s5828_s20 + $0xb0] sm:$0xff] }
 0x7b0   : > { %v3104_v52 = vpop.f32.mrf.mxu1 }
 0x7b1   : > { %3985 = vst.msk [vmem:[%s5828_s20 + $0x28] sm:$0xff] %vm475_vm0, %v3207_v10  ;;  %v3105_v49 = vadd.f32 %v3104_v52, %v2983_v38  ;;  %v4406_v21 = vpop.f32.mrf.mxu0  ;;  %v3972_v52 = vld [vmem:[%s5828_s20 + $0x70] sm:$0xff] }
 0x7b2   : > { %v4454_v30 = vpop.f32.mrf.mxu1 }
 0x7b3   : > { %v3208_v19 = vadd.f32 %v3964_v2, %v3105_v49  ;;  %v2986_v28 = vpop.f32.mrf.mxu0 }
 0x7b4   : > { %v3107_v25 = vpop.f32.mrf.mxu1 }
 0x7b5   : > { %3986 = vst.msk [vmem:[%s5828_s20 + $0x30] sm:$0xff] %vm475_vm0, %v3208_v19  ;;  %v3108_v34 = vadd.f32 %v3107_v25, %v2986_v28  ;;  %v4407_v35 = vpop.f32.mrf.mxu0  ;;  %v3973_v25 = vld [vmem:[%s5828_s20 + $0x78] sm:$0xff] }
 0x7b6   : > { %v4455_v4 = vpop.f32.mrf.mxu1 }
 0x7b7   : > { %v3209_v41 = vadd.f32 %v3965_v27, %v3108_v34  ;;  %v2991_v61 = vpop.f32.mrf.mxu0 }
 0x7b8   : > { %v3112_v6 = vpop.f32.mrf.mxu1 }
 0x7b9   : > { %3987 = vst.msk [vmem:[%s5828_s20 + $0x38] sm:$0xff] %vm475_vm0, %v3209_v41  ;;  %v3113_v59 = vadd.f32 %v3112_v6, %v2991_v61  ;;  %v4410_v7 = vpop.f32.mrf.mxu0  ;;  %v3974_v6 = vld [vmem:[%s5828_s20 + $0x80] sm:$0xff] }
 0x7ba   : > { %v4458_v20 = vpop.f32.mrf.mxu1 }
 0x7bb   : > { %v3210_v32 = vadd.f32 %v3966_v15, %v3113_v59  ;;  %v2994_v62 = vpop.f32.mrf.mxu0 }
 0x7bc   : > { %v3115_v51 = vpop.f32.mrf.mxu1 }
 0x7bd   : > { %3988 = vst.msk [vmem:[%s5828_s20 + $0x40] sm:$0xff] %vm475_vm0, %v3210_v32  ;;  %v3116_v1 = vadd.f32 %v3115_v51, %v2994_v62  ;;  %v4411_v58 = vpop.f32.mrf.mxu0  ;;  %v3975_v51 = vld [vmem:[%s5828_s20 + $0x88] sm:$0xff] }
 0x7be   : > { %v4459_v8 = vpop.f32.mrf.mxu1 }
 0x7bf   : > { %v3211_v31 = vadd.f32 %v3967_v24, %v3116_v1  ;;  %v2999_v22 = vpop.f32.mrf.mxu0 }
 0x7c0   : > { %v3120_v29 = vpop.f32.mrf.mxu1 }
 0x7c1   : > { %3989 = vst.msk [vmem:[%s5828_s20 + $0x48] sm:$0xff] %vm475_vm0, %v3211_v31  ;;  %v3121_v9 = vadd.f32 %v3120_v29, %v2999_v22  ;;  %v4414_v46 = vpop.f32.mrf.mxu0  ;;  %v3976_v29 = vld [vmem:[%s5828_s20 + $0x90] sm:$0xff] }
 0x7c2   : > { %v4462_v55 = vpop.f32.mrf.mxu1 }
 0x7c3   : > { %v3212_v16 = vadd.f32 %v3968_v42, %v3121_v9  ;;  %v3002_v63 = vpop.f32.mrf.mxu0 }
 0x7c4   : > { %v3123_v53 = vpop.f32.mrf.mxu1 }
 0x7c5   : > { %3990 = vst.msk [vmem:[%s5828_s20 + $0x50] sm:$0xff] %vm475_vm0, %v3212_v16  ;;  %v3124_v18 = vadd.f32 %v3123_v53, %v3002_v63  ;;  %v4415_v26 = vpop.f32.mrf.mxu0  ;;  %v3977_v53 = vld [vmem:[%s5828_s20 + $0x98] sm:$0xff] }
 0x7c6   : > { %v4463_v47 = vpop.f32.mrf.mxu1 }
 0x7c7   : > { %v3213_v39 = vadd.f32 %v3969_v33, %v3124_v18  ;;  %v3007_v36 = vpop.f32.mrf.mxu0 }
 0x7c8   : > { %v3128_v40 = vpop.f32.mrf.mxu1 }
 0x7c9   : > { %3991 = vst.msk [vmem:[%s5828_s20 + $0x58] sm:$0xff] %vm475_vm0, %v3213_v39  ;;  %v3129_v45 = vadd.f32 %v3128_v40, %v3007_v36  ;;  %v4418_v57 = vpop.f32.mrf.mxu0  ;;  %v3978_v40 = vld [vmem:[%s5828_s20 + $0xa0] sm:$0xff] }
 0x7ca   : > { %v4466_v37 = vpop.f32.mrf.mxu1 }
 0x7cb   : > { %v3214_v13 = vadd.f32 %v3970_v23, %v3129_v45  ;;  %v3010_v17 = vpop.f32.mrf.mxu0  ;;  %v3979_v37 = vld [vmem:[%s5828_s20 + $0xa8] sm:$0xff] }
 0x7cc   : > { %v3131_v12 = vpop.f32.mrf.mxu1 }
 0x7cd   : > { %3992 = vst.msk [vmem:[%s5828_s20 + $0x60] sm:$0xff] %vm475_vm0, %v3214_v13  ;;  %v3132_v48 = vadd.f32 %v3131_v12, %v3010_v17  ;;  %v4419_v50 = vpop.f32.mrf.mxu0 }
 0x7ce   : > { %v4467_v3 = vpop.f32.mrf.mxu1 }
 0x7cf   : > { %v3215_v14 = vadd.f32 %v3971_v54, %v3132_v48  ;;  %v3015_v60 = vpop.f32.mrf.mxu0 }
 0x7d0   : > { %v3136_v56 = vpop.f32.mrf.mxu1 }
 0x7d1   : > { %3993 = vst.msk [vmem:[%s5828_s20 + $0x68] sm:$0xff] %vm475_vm0, %v3215_v14  ;;  %v3137_v10 = vadd.f32 %v3136_v56, %v3015_v60  ;;  %v4422_v38 = vpop.f32.mrf.mxu0 }
 0x7d2   : > { %v4470_v49 = vpop.f32.mrf.mxu1  ;;  %v3981_v38 = vld [vmem:[%s5828_s20 + $0xb8] sm:$0xff] }
 0x7d3   : > { %v3216_v21 = vadd.f32 %v3972_v52, %v3137_v10  ;;  %v3018_v2 = vpop.f32.mrf.mxu0 }
 0x7d4   : > { %v3139_v30 = vpop.f32.mrf.mxu1 }
 0x7d5   : > { %3994 = vst.msk [vmem:[%s5828_s20 + $0x70] sm:$0xff] %vm475_vm0, %v3216_v21  ;;  %v3140_v19 = vadd.f32 %v3139_v30, %v3018_v2  ;;  %v4423_v28 = vpop.f32.mrf.mxu0  ;;  %v3982_v30 = vld [vmem:[%s5828_s20 + $0xc0] sm:$0xff] }
 0x7d6   : > { %v4471_v34 = vpop.f32.mrf.mxu1 }
 0x7d7   : > { %v3217_v35 = vadd.f32 %v3973_v25, %v3140_v19  ;;  %v3023_v27 = vpop.f32.mrf.mxu0 }
 0x7d8   : > { %v3144_v4 = vpop.f32.mrf.mxu1 }
 0x7d9   : > { %3995 = vst.msk [vmem:[%s5828_s20 + $0x78] sm:$0xff] %vm475_vm0, %v3217_v35  ;;  %v3145_v41 = vadd.f32 %v3144_v4, %v3023_v27  ;;  %v4426_v61 = vpop.f32.mrf.mxu0  ;;  %v3983_v4 = vld [vmem:[%s5828_s20 + $0xc8] sm:$0xff] }
 0x7da   : > { %v4474_v59 = vpop.f32.mrf.mxu1 }
 0x7db   : > { %v3218_v7 = vadd.f32 %v3974_v6, %v3145_v41  ;;  %v3026_v15 = vpop.f32.mrf.mxu0 }
 0x7dc   : > { %v3147_v20 = vpop.f32.mrf.mxu1 }
 0x7dd   : > { %3996 = vst.msk [vmem:[%s5828_s20 + $0x80] sm:$0xff] %vm475_vm0, %v3218_v7  ;;  %v3148_v32 = vadd.f32 %v3147_v20, %v3026_v15  ;;  %v4427_v62 = vpop.f32.mrf.mxu0 }
 0x7de   : > { %v4475_v1 = vpop.f32.mrf.mxu1  ;;  %v4028_v62 = vld [vmem:[%s5828_s20 + $0x30] sm:$0xff] }
 0x7df   : > { %v3219_v58 = vadd.f32 %v3975_v51, %v3148_v32  ;;  %v3031_v24 = vpop.f32.mrf.mxu0 }
 0x7e0   : > { %v3152_v8 = vpop.f32.mrf.mxu1 }
 0x7e1   : > { %3997 = vst.msk [vmem:[%s5828_s20 + $0x88] sm:$0xff] %vm475_vm0, %v3219_v58  ;;  %v3153_v31 = vadd.f32 %v3152_v8, %v3031_v24  ;;  %v4430_v22 = vpop.f32.mrf.mxu0 }
 0x7e2   : > { %v4478_v9 = vpop.f32.mrf.mxu1  ;;  %v4029_v22 = vld [vmem:[%s5828_s20 + $0x38] sm:$0xff] }
 0x7e3   : > { %v3220_v46 = vadd.f32 %v3976_v29, %v3153_v31  ;;  %v3034_v42 = vpop.f32.mrf.mxu0 }
 0x7e4   : > { %v3155_v55 = vpop.f32.mrf.mxu1 }
 0x7e5   : > { %3998 = vst.msk [vmem:[%s5828_s20 + $0x90] sm:$0xff] %vm475_vm0, %v3220_v46  ;;  %v3156_v16 = vadd.f32 %v3155_v55, %v3034_v42  ;;  %v4431_v63 = vpop.f32.mrf.mxu0 }
 0x7e6   : > { %v4479_v18 = vpop.f32.mrf.mxu1  ;;  %v4030_v63 = vld [vmem:[%s5828_s20 + $0x40] sm:$0xff] }
 0x7e7   : > { %v3221_v26 = vadd.f32 %v3977_v53, %v3156_v16  ;;  %v3039_v33 = vpop.f32.mrf.mxu0 }
 0x7e8   : > { %v3160_v47 = vpop.f32.mrf.mxu1 }
 0x7e9   : > { %3999 = vst.msk [vmem:[%s5828_s20 + $0x98] sm:$0xff] %vm475_vm0, %v3221_v26  ;;  %v3161_v39 = vadd.f32 %v3160_v47, %v3039_v33  ;;  %v4434_v36 = vpop.f32.mrf.mxu0 }
 0x7ea   : > { %v4482_v0 = vpop.f32.mrf.mxu1  ;;  %v4031_v36 = vld [vmem:[%s5828_s20 + $0x48] sm:$0xff] }
 0x7eb   : > { %v3222_v45 = vadd.f32 %v3978_v40, %v3161_v39  ;;  %v3042_v57 = vpop.f32.mrf.mxu0 }
 0x7ec   : > { %v3163_v5 = vpop.f32.mrf.mxu1 }
 0x7ed   : > { %4000 = vst.msk [vmem:[%s5828_s20 + $0xa0] sm:$0xff] %vm475_vm0, %v3222_v45  ;;  %v3164_v44 = vadd.f32 %v3163_v5, %v3042_v57  ;;  %v4435_v23 = vpop.f32.mrf.mxu0 }
 0x7ee   : > { %v4483_v13 = vpop.f32.mrf.mxu1  ;;  %v4032_v23 = vld [vmem:[%s5828_s20 + $0x50] sm:$0xff] }
 0x7ef   : > { %v3223_v17 = vadd.f32 %v3979_v37, %v3164_v44  ;;  %v3047_v12 = vpop.f32.mrf.mxu0 }
 0x7f0   : > { %v3168_v43 = vpop.f32.mrf.mxu1 }
 0x7f1   : > { %4001 = vst.msk [vmem:[%s5828_s20 + $0xa8] sm:$0xff] %vm475_vm0, %v3223_v17  ;;  %v3169_v48 = vadd.f32 %v3168_v43, %v3047_v12  ;;  %v4438_v50 = vpop.f32.mrf.mxu0 }
 0x7f2   : > { %v4486_v54 = vpop.f32.mrf.mxu1  ;;  %v4033_v50 = vld [vmem:[%s5828_s20 + $0x58] sm:$0xff] }
 0x7f3   : > { %v3224_v3 = vadd.f32 %v3980_v11, %v3169_v48  ;;  %v3050_v14 = vpop.f32.mrf.mxu0 }
 0x7f4   : > { %v3171_v60 = vpop.f32.mrf.mxu1 }
 0x7f5   : > { %4002 = vst.msk [vmem:[%s5828_s20 + $0xb0] sm:$0xff] %vm475_vm0, %v3224_v3  ;;  %v3172_v56 = vadd.f32 %v3171_v60, %v3050_v14  ;;  %v4439_v10 = vpop.f32.mrf.mxu0 }
 0x7f6   : > { %v4487_v52 = vpop.f32.mrf.mxu1  ;;  %v4034_v10 = vld [vmem:[%s5828_s20 + $0x60] sm:$0xff] }
 0x7f7   : > { %v3225_v49 = vadd.f32 %v3981_v38, %v3172_v56  ;;  %v3055_v21 = vpop.f32.mrf.mxu0 }
 0x7f8   : > { %v3176_v2 = vpop.f32.mrf.mxu1 }
 0x7f9   : > { %4003 = vst.msk [vmem:[%s5828_s20 + $0xb8] sm:$0xff] %vm475_vm0, %v3225_v49  ;;  %v3177_v19 = vadd.f32 %v3176_v2, %v3055_v21  ;;  %v4442_v28 = vpop.f32.mrf.mxu0 }
 0x7fa   : > { %v4490_v25 = vpop.f32.mrf.mxu1 }
 0x7fb   : > { %v3226_v34 = vadd.f32 %v3982_v30, %v3177_v19  ;;  %v3058_v35 = vpop.f32.mrf.mxu0  ;;  %v4035_v19 = vld [vmem:[%s5828_s20 + $0x68] sm:$0xff] }
 0x7fc   : > { %v3179_v27 = vpop.f32.mrf.mxu1 }
 0x7fd   : > { %4004 = vst.msk [vmem:[%s5828_s20 + $0xc0] sm:$0xff] %vm475_vm0, %v3226_v34  ;;  %v3180_v41 = vadd.f32 %v3179_v27, %v3058_v35  ;;  %v4443_v61 = vpop.f32.mrf.mxu0 }
 0x7fe   : > { %v4491_v6 = vpop.f32.mrf.mxu1 }
 0x7ff   : > { %v3227_v59 = vadd.f32 %v3983_v4, %v3180_v41  ;;  %v3284_v7 = vpop.f32.mrf.mxu0  ;;  %v4036_v41 = vld [vmem:[%s5828_s20 + $0x70] sm:$0xff] }
 0x800   : > { %v3405_v15 = vpop.f32.mrf.mxu1 }
 0x801   : > { %4005 = vst.msk [vmem:[%s5828_s20 + $0xc8] sm:$0xff] %vm475_vm0, %v3227_v59  ;;  %v3406_v20 = vadd.f32 %v3405_v15, %v3284_v7  ;;  %v4498_v32 = vpop.f32.mrf.mxu0 }
 0x802   : > { %v4546_v51 = vpop.f32.mrf.mxu1  ;;  %v4037_v32 = vld [vmem:[%s5828_s20 + $0x78] sm:$0xff] }
 0x803   : > { %v3515_v1 = vadd.f32 %v4028_v62, %v3406_v20  ;;  %v3287_v58 = vpop.f32.mrf.mxu0 }
 0x804   : > { %v3408_v24 = vpop.f32.mrf.mxu1 }
 0x805   : > { %4050 = vst.msk [vmem:[%s5828_s20 + $0x30] sm:$0xff] %vm475_vm0, %v3515_v1  ;;  %v3409_v8 = vadd.f32 %v3408_v24, %v3287_v58  ;;  %v4499_v31 = vpop.f32.mrf.mxu0 }
 0x806   : > { %v4547_v29 = vpop.f32.mrf.mxu1  ;;  %v4038_v31 = vld [vmem:[%s5828_s20 + $0x80] sm:$0xff] }
 0x807   : > { %v3516_v9 = vadd.f32 %v4029_v22, %v3409_v8  ;;  %v3292_v46 = vpop.f32.mrf.mxu0 }
 0x808   : > { %v3413_v42 = vpop.f32.mrf.mxu1 }
 0x809   : > { %4051 = vst.msk [vmem:[%s5828_s20 + $0x38] sm:$0xff] %vm475_vm0, %v3516_v9  ;;  %v3414_v55 = vadd.f32 %v3413_v42, %v3292_v46  ;;  %v4502_v16 = vpop.f32.mrf.mxu0 }
 0x80a   : > { %v4550_v53 = vpop.f32.mrf.mxu1  ;;  %v4039_v16 = vld [vmem:[%s5828_s20 + $0x88] sm:$0xff] }
 0x80b   : > { %v3517_v18 = vadd.f32 %v4030_v63, %v3414_v55  ;;  %v3295_v26 = vpop.f32.mrf.mxu0 }
 0x80c   : > { %v3416_v33 = vpop.f32.mrf.mxu1 }
 0x80d   : > { %4052 = vst.msk [vmem:[%s5828_s20 + $0x40] sm:$0xff] %vm475_vm0, %v3517_v18  ;;  %v3417_v47 = vadd.f32 %v3416_v33, %v3295_v26  ;;  %v4503_v39 = vpop.f32.mrf.mxu0 }
 0x80e   : > { %v4551_v40 = vpop.f32.mrf.mxu1  ;;  %v4040_v39 = vld [vmem:[%s5828_s20 + $0x90] sm:$0xff] }
 0x80f   : > { %v3518_v0 = vadd.f32 %v4031_v36, %v3417_v47  ;;  %v3300_v45 = vpop.f32.mrf.mxu0 }
 0x810   : > { %v3421_v57 = vpop.f32.mrf.mxu1 }
 0x811   : > { %4053 = vst.msk [vmem:[%s5828_s20 + $0x48] sm:$0xff] %vm475_vm0, %v3518_v0  ;;  %v3422_v5 = vadd.f32 %v3421_v57, %v3300_v45  ;;  %v4506_v44 = vpop.f32.mrf.mxu0 }
 0x812   : > { %v4554_v37 = vpop.f32.mrf.mxu1  ;;  %v4041_v44 = vld [vmem:[%s5828_s20 + $0x98] sm:$0xff] }
 0x813   : > { %v3519_v13 = vadd.f32 %v4032_v23, %v3422_v5  ;;  %v3303_v17 = vpop.f32.mrf.mxu0 }
 0x814   : > { %v3424_v12 = vpop.f32.mrf.mxu1 }
 0x815   : > { %4054 = vst.msk [vmem:[%s5828_s20 + $0x50] sm:$0xff] %vm475_vm0, %v3519_v13  ;;  %v3425_v43 = vadd.f32 %v3424_v12, %v3303_v17  ;;  %v4507_v48 = vpop.f32.mrf.mxu0 }
 0x816   : > { %v4555_v11 = vpop.f32.mrf.mxu1  ;;  %v4042_v48 = vld [vmem:[%s5828_s20 + $0xa0] sm:$0xff] }
 0x817   : > { %v3520_v54 = vadd.f32 %v4033_v50, %v3425_v43  ;;  %v3308_v3 = vpop.f32.mrf.mxu0 }
 0x818   : > { %v3429_v14 = vpop.f32.mrf.mxu1 }
 0x819   : > { %4055 = vst.msk [vmem:[%s5828_s20 + $0x58] sm:$0xff] %vm475_vm0, %v3520_v54  ;;  %v3430_v60 = vadd.f32 %v3429_v14, %v3308_v3  ;;  %v4510_v56 = vpop.f32.mrf.mxu0 }
 0x81a   : > { %v4558_v38 = vpop.f32.mrf.mxu1  ;;  %v4043_v56 = vld [vmem:[%s5828_s20 + $0xa8] sm:$0xff] }
 0x81b   : > { %v3521_v52 = vadd.f32 %v4034_v10, %v3430_v60  ;;  %v3311_v49 = vpop.f32.mrf.mxu0 }
 0x81c   : > { %v3432_v21 = vpop.f32.mrf.mxu1 }
 0x81d   : > { %4056 = vst.msk [vmem:[%s5828_s20 + $0x60] sm:$0xff] %vm475_vm0, %v3521_v52  ;;  %v3433_v2 = vadd.f32 %v3432_v21, %v3311_v49  ;;  %v4511_v30 = vpop.f32.mrf.mxu0 }
 0x81e   : > { %v4559_v28 = vpop.f32.mrf.mxu1  ;;  %v4044_v30 = vld [vmem:[%s5828_s20 + $0xb0] sm:$0xff] }
 0x81f   : > { %v3522_v25 = vadd.f32 %v4035_v19, %v3433_v2  ;;  %v3316_v34 = vpop.f32.mrf.mxu0 }
 0x820   : > { %v3437_v35 = vpop.f32.mrf.mxu1 }
 0x821   : > { %4057 = vst.msk [vmem:[%s5828_s20 + $0x68] sm:$0xff] %vm475_vm0, %v3522_v25  ;;  %v3438_v27 = vadd.f32 %v3437_v35, %v3316_v34  ;;  %v4514_v4 = vpop.f32.mrf.mxu0 }
 0x822   : > { %v4562_v61 = vpop.f32.mrf.mxu1  ;;  %v4045_v4 = vld [vmem:[%s5828_s20 + $0xb8] sm:$0xff] }
 0x823   : > { %v3523_v6 = vadd.f32 %v4036_v41, %v3438_v27  ;;  %v3319_v59 = vpop.f32.mrf.mxu0 }
 0x824   : > { %v3440_v7 = vpop.f32.mrf.mxu1 }
 0x825   : > { %4058 = vst.msk [vmem:[%s5828_s20 + $0x70] sm:$0xff] %vm475_vm0, %v3523_v6  ;;  %v3441_v15 = vadd.f32 %v3440_v7, %v3319_v59  ;;  %v4515_v20 = vpop.f32.mrf.mxu0 }
 0x826   : > { %v4563_v62 = vpop.f32.mrf.mxu1  ;;  %v4046_v20 = vld [vmem:[%s5828_s20 + $0xc0] sm:$0xff] }
 0x827   : > { %v3524_v51 = vadd.f32 %v4037_v32, %v3441_v15  ;;  %v3324_v1 = vpop.f32.mrf.mxu0 }
 0x828   : > { %v3445_v58 = vpop.f32.mrf.mxu1 }
 0x829   : > { %4059 = vst.msk [vmem:[%s5828_s20 + $0x78] sm:$0xff] %vm475_vm0, %v3524_v51  ;;  %v3446_v24 = vadd.f32 %v3445_v58, %v3324_v1  ;;  %v4518_v8 = vpop.f32.mrf.mxu0 }
 0x82a   : > { %v4566_v22 = vpop.f32.mrf.mxu1  ;;  %v4047_v8 = vld [vmem:[%s5828_s20 + $0xc8] sm:$0xff] }
 0x82b   : > { %v3525_v29 = vadd.f32 %v4038_v31, %v3446_v24  ;;  %v3327_v9 = vpop.f32.mrf.mxu0 }
 0x82c   : > { %v3448_v46 = vpop.f32.mrf.mxu1 }
 0x82d   : > { %4060 = vst.msk [vmem:[%s5828_s20 + $0x80] sm:$0xff] %vm475_vm0, %v3525_v29  ;;  %v3449_v42 = vadd.f32 %v3448_v46, %v3327_v9  ;;  %v4519_v55 = vpop.f32.mrf.mxu0  ;;  %v4048_v46 = vld [vmem:[%s5828_s20 + $0xd0] sm:$0xff] }
 0x82e   : > { %v4567_v63 = vpop.f32.mrf.mxu1 }
 0x82f   : > { %v3526_v53 = vadd.f32 %v4039_v16, %v3449_v42  ;;  %v3332_v18 = vpop.f32.mrf.mxu0 }
 0x830   : > { %v3453_v26 = vpop.f32.mrf.mxu1 }
 0x831   : > { %4061 = vst.msk [vmem:[%s5828_s20 + $0x88] sm:$0xff] %vm475_vm0, %v3526_v53  ;;  %v3454_v33 = vadd.f32 %v3453_v26, %v3332_v18  ;;  %v4522_v47 = vpop.f32.mrf.mxu0  ;;  %v4049_v26 = vld [vmem:[%s5828_s20 + $0xd8] sm:$0xff] }
 0x832   : > { %v4570_v36 = vpop.f32.mrf.mxu1 }
 0x833   : > { %v3527_v40 = vadd.f32 %v4040_v39, %v3454_v33  ;;  %v3335_v0 = vpop.f32.mrf.mxu0 }
 0x834   : > { %v3456_v45 = vpop.f32.mrf.mxu1 }
 0x835   : > { %4062 = vst.msk [vmem:[%s5828_s20 + $0x90] sm:$0xff] %vm475_vm0, %v3527_v40  ;;  %v3457_v57 = vadd.f32 %v3456_v45, %v3335_v0  ;;  %v4523_v5 = vpop.f32.mrf.mxu0  ;;  %v3651_v40 = vld [vmem:[%s5828_s20] sm:$0xff] (%p4834_p5)  ;;  %v3653_v0 = vld [vmem:[%s5828_s20 + $0x8] sm:$0xff] (%p4834_p5)  ;;  %v3655_v45 = vld [vmem:[%s5828_s20 + $0x10] sm:$0xff] (%p4834_p5) }
 0x836   : > { %v4571_v23 = vpop.f32.mrf.mxu1  ;;  %v3659_v5 = vld [vmem:[%s5828_s20 + $0x20] sm:$0xff] (%p4834_p5)  ;;  %3652 = vst [vmem:[%s6794_s13] sm:$0xff] (%p4834_p5), %v3651_v40  ;;  %3654 = vst [vmem:[%s6794_s13 + $0x8] sm:$0xff] (%p4834_p5), %v3653_v0 }
 0x837   : > { %v3528_v37 = vadd.f32 %v4041_v44, %v3457_v57  ;;  %v3340_v13 = vpop.f32.mrf.mxu0  ;;  %v3657_v57 = vld [vmem:[%s5828_s20 + $0x18] sm:$0xff] (%p4834_p5)  ;;  %v3661_v44 = vld [vmem:[%s5828_s20 + $0x28] sm:$0xff] (%p4834_p5)  ;;  %3656 = vst [vmem:[%s6794_s13 + $0x20] sm:$0xff] (%p4834_p5), %v3655_v45  ;;  %3660 = vst [vmem:[%s6794_s13 + $0x40] sm:$0xff] (%p4834_p5), %v3659_v5 }
 0x838   : > { %v3461_v17 = vpop.f32.mrf.mxu1  ;;  %3658 = vst [vmem:[%s6794_s13 + $0x28] sm:$0xff] (%p4834_p5), %v3657_v57  ;;  %3662 = vst [vmem:[%s6794_s13 + $0x48] sm:$0xff] (%p4834_p5), %v3661_v44  ;;  %v3663_v23 = vld [vmem:[%s5828_s20 + $0x30] sm:$0xff] (%p4834_p5) }
 0x839   : > { %4063 = vst.msk [vmem:[%s5828_s20 + $0x98] sm:$0xff] %vm475_vm0, %v3528_v37  ;;  %v3462_v12 = vadd.f32 %v3461_v17, %v3340_v13  ;;  %v4526_v43 = vpop.f32.mrf.mxu0  ;;  %v3665_v37 = vld [vmem:[%s5828_s20 + $0x38] sm:$0xff] (%p4834_p5)  ;;  %v3667_v13 = vld [vmem:[%s5828_s20 + $0x40] sm:$0xff] (%p4834_p5)  ;;  %3664 = vst [vmem:[%s6794_s13 + $0x60] sm:$0xff] (%p4834_p5), %v3663_v23 }
 0x83a   : > { %v4574_v50 = vpop.f32.mrf.mxu1  ;;  %3666 = vst [vmem:[%s6794_s13 + $0x68] sm:$0xff] (%p4834_p5), %v3665_v37  ;;  %3668 = vst [vmem:[%s6794_s13 + $0x80] sm:$0xff] (%p4834_p5), %v3667_v13  ;;  %v3669_v17 = vld [vmem:[%s5828_s20 + $0x48] sm:$0xff] (%p4834_p5)  ;;  %v3673_v43 = vld [vmem:[%s5828_s20 + $0x58] sm:$0xff] (%p4834_p5) }
 0x83b   : > { %v3529_v11 = vadd.f32 %v4042_v48, %v3462_v12  ;;  %v3343_v54 = vpop.f32.mrf.mxu0  ;;  %v3671_v12 = vld [vmem:[%s5828_s20 + $0x50] sm:$0xff] (%p4834_p5)  ;;  %3670 = vst [vmem:[%s6794_s13 + $0x88] sm:$0xff] (%p4834_p5), %v3669_v17  ;;  %3674 = vst [vmem:[%s6794_s13 + $0xa8] sm:$0xff] (%p4834_p5), %v3673_v43  ;;  %v3675_v48 = vld [vmem:[%s5828_s20 + $0x60] sm:$0xff] (%p4834_p5) }
 0x83c   : > { %v3464_v3 = vpop.f32.mrf.mxu1  ;;  %3672 = vst [vmem:[%s6794_s13 + $0xa0] sm:$0xff] (%p4834_p5), %v3671_v12  ;;  %v3677_v50 = vld [vmem:[%s5828_s20 + $0x68] sm:$0xff] (%p4834_p5)  ;;  %3676 = vst [vmem:[%s6794_s13 + $0xc0] sm:$0xff] (%p4834_p5), %v3675_v48 }
 0x83d   : > { %4064 = vst.msk [vmem:[%s5828_s20 + $0xa0] sm:$0xff] %vm475_vm0, %v3529_v11  ;;  %v3465_v14 = vadd.f32 %v3464_v3, %v3343_v54  ;;  %v4527_v60 = vpop.f32.mrf.mxu0  ;;  %v3679_v11 = vld [vmem:[%s5828_s20 + $0x70] sm:$0xff] (%p4834_p5)  ;;  %3678 = vst [vmem:[%s6794_s13 + $0xc8] sm:$0xff] (%p4834_p5), %v3677_v50  ;;  %v3681_v54 = vld [vmem:[%s5828_s20 + $0x78] sm:$0xff] (%p4834_p5) }
 0x83e   : > { %v4575_v10 = vpop.f32.mrf.mxu1  ;;  %3680 = vst [vmem:[%s6794_s13 + $0xe0] sm:$0xff] (%p4834_p5), %v3679_v11  ;;  %v3683_v3 = vld [vmem:[%s5828_s20 + $0x80] sm:$0xff] (%p4834_p5)  ;;  %3682 = vst [vmem:[%s6794_s13 + $0xe8] sm:$0xff] (%p4834_p5), %v3681_v54  ;;  %v3687_v60 = vld [vmem:[%s5828_s20 + $0x90] sm:$0xff] (%p4834_p5) }
 0x83f   : > { %v3530_v38 = vadd.f32 %v4043_v56, %v3465_v14  ;;  %v3348_v52 = vpop.f32.mrf.mxu0  ;;  %v3685_v14 = vld [vmem:[%s5828_s20 + $0x88] sm:$0xff] (%p4834_p5)  ;;  %3684 = vst [vmem:[%s6794_s13 + $0x100] sm:$0xff] (%p4834_p5), %v3683_v3  ;;  %3688 = vst [vmem:[%s6794_s13 + $0x120] sm:$0xff] (%p4834_p5), %v3687_v60 }
 0x840   : > { %v3469_v49 = vpop.f32.mrf.mxu1  ;;  %3686 = vst [vmem:[%s6794_s13 + $0x108] sm:$0xff] (%p4834_p5), %v3685_v14  ;;  %v3689_v56 = vld [vmem:[%s5828_s20 + $0x98] sm:$0xff] (%p4834_p5) }
 0x841   : > { %4065 = vst.msk [vmem:[%s5828_s20 + $0xa8] sm:$0xff] %vm475_vm0, %v3530_v38  ;;  %v3470_v21 = vadd.f32 %v3469_v49, %v3348_v52  ;;  %v4530_v2 = vpop.f32.mrf.mxu0  ;;  %3690 = vst [vmem:[%s6794_s13 + $0x128] sm:$0xff] (%p4834_p5), %v3689_v56 }
 0x842   : > { %v4578_v19 = vpop.f32.mrf.mxu1 }
 0x843   : > { %v3531_v28 = vadd.f32 %v4044_v30, %v3470_v21  ;;  %v3351_v25 = vpop.f32.mrf.mxu0 }
 0x844   : > { %v3472_v34 = vpop.f32.mrf.mxu1  ;;  %v3691_v10 = vld [vmem:[%s5828_s20 + $0xa0] sm:$0xff] (%p4834_p5) }
 0x845   : > { %4066 = vst.msk [vmem:[%s5828_s20 + $0xb0] sm:$0xff] %vm475_vm0, %v3531_v28  ;;  %v3473_v35 = vadd.f32 %v3472_v34, %v3351_v25  ;;  %v4531_v27 = vpop.f32.mrf.mxu0  ;;  %3692 = vst [vmem:[%s6794_s13 + $0x140] sm:$0xff] (%p4834_p5), %v3691_v10 }
 0x846   : > { %v4579_v41 = vpop.f32.mrf.mxu1 }
 0x847   : > { %v3532_v61 = vadd.f32 %v4045_v4, %v3473_v35  ;;  %v3356_v6 = vpop.f32.mrf.mxu0 }
 0x848   : > { %v3477_v59 = vpop.f32.mrf.mxu1  ;;  %v3693_v38 = vld [vmem:[%s5828_s20 + $0xa8] sm:$0xff] (%p4834_p5) }
 0x849   : > { %4067 = vst.msk [vmem:[%s5828_s20 + $0xb8] sm:$0xff] %vm475_vm0, %v3532_v61  ;;  %v3478_v7 = vadd.f32 %v3477_v59, %v3356_v6  ;;  %v4534_v15 = vpop.f32.mrf.mxu0  ;;  %3694 = vst [vmem:[%s6794_s13 + $0x148] sm:$0xff] (%p4834_p5), %v3693_v38 }
 0x84a   : > { %v4582_v32 = vpop.f32.mrf.mxu1 }
 0x84b   : > { %v3533_v62 = vadd.f32 %v4046_v20, %v3478_v7  ;;  %v3359_v51 = vpop.f32.mrf.mxu0 }
 0x84c   : > { %v3480_v1 = vpop.f32.mrf.mxu1  ;;  %v3695_v52 = vld [vmem:[%s5828_s20 + $0xb0] sm:$0xff] (%p4834_p5) }
 0x84d   : > { %4068 = vst.msk [vmem:[%s5828_s20 + $0xc0] sm:$0xff] %vm475_vm0, %v3533_v62  ;;  %v3481_v58 = vadd.f32 %v3480_v1, %v3359_v51  ;;  %v4535_v24 = vpop.f32.mrf.mxu0  ;;  %3696 = vst [vmem:[%s6794_s13 + $0x160] sm:$0xff] (%p4834_p5), %v3695_v52 }
 0x84e   : > { %v4583_v31 = vpop.f32.mrf.mxu1 }
 0x84f   : > { %v3534_v22 = vadd.f32 %v4047_v8, %v3481_v58  ;;  %v3364_v29 = vpop.f32.mrf.mxu0 }
 0x850   : > { %v3485_v9 = vpop.f32.mrf.mxu1  ;;  %v3697_v49 = vld [vmem:[%s5828_s20 + $0xb8] sm:$0xff] (%p4834_p5) }
 0x851   : > { %4069 = vst.msk [vmem:[%s5828_s20 + $0xc8] sm:$0xff] %vm475_vm0, %v3534_v22  ;;  %v3486_v42 = vadd.f32 %v3485_v9, %v3364_v29  ;;  %v4538_v55 = vpop.f32.mrf.mxu0  ;;  %3698 = vst [vmem:[%s6794_s13 + $0x168] sm:$0xff] (%p4834_p5), %v3697_v49 }
 0x852   : > { %v4586_v16 = vpop.f32.mrf.mxu1 }
 0x853   : > { %v3535_v63 = vadd.f32 %v4048_v46, %v3486_v42  ;;  %v3367_v53 = vpop.f32.mrf.mxu0 }
 0x854   : > { %v3488_v18 = vpop.f32.mrf.mxu1  ;;  %v3699_v21 = vld [vmem:[%s5828_s20 + $0xc0] sm:$0xff] (%p4834_p5) }
 0x855   : > { %4070 = vst.msk [vmem:[%s5828_s20 + $0xd0] sm:$0xff] %vm475_vm0, %v3535_v63  ;;  %v3489_v33 = vadd.f32 %v3488_v18, %v3367_v53  ;;  %v4539_v47 = vpop.f32.mrf.mxu0  ;;  %3565 = sbr.rel (!%p4834_p5) target bundleno = 2146 (0x862), region = 101  ;;  %3700 = vst [vmem:[%s6794_s13 + $0x180] sm:$0xff] (%p4834_p5), %v3699_v21 }
 0x856   : > { %v4587_v39 = vpop.f32.mrf.mxu1 }
 0x857   : > { %v3536_v36 = vadd.f32 %v4049_v26, %v3489_v33 }
 0x858   : > { %v3701_v2 = vld [vmem:[%s5828_s20 + $0xc8] sm:$0xff] (%p4834_p5) }
 0x859   : > { %4071 = vst.msk [vmem:[%s5828_s20 + $0xd8] sm:$0xff] %vm475_vm0, %v3536_v36  ;;  %3702 = vst [vmem:[%s6794_s13 + $0x188] sm:$0xff] (%p4834_p5), %v3701_v2 }
 0x85c   : > { %v3703_v30 = vld [vmem:[%s5828_s20 + $0xd0] sm:$0xff] }
 0x85d   : > { %3704 = vst [vmem:[%s6794_s13 + $0x1a0] sm:$0xff] %v3703_v30 }
 0x860   : > { %v3705_v19 = vld [vmem:[%s5828_s20 + $0xd8] sm:$0xff] }
 0x861   : > { %3706 = vst [vmem:[%s6794_s13 + $0x1a8] sm:$0xff] %v3705_v19 }
 0x862 PF: > { %p15_p11 = scmp.ge.s32.totalorder %s4821_s9, 4   ;;  %s6909_s27 = smov %s4741_s28 }
 0x863   : > { %s6910_s28 = smov %s4832_s12  ;;  %s6911_s29 = smov %s4821_s9 }
 0x864   :  { %17 = sbr.rel (!%p15_p11) target bundleno = 2 (0x2), region = 193 }

</bundles_post_ra>
